<compile_context>
chip_gen: v7x
topology: tpu7x:2x2x1
jax: 0.10.0
libtpu: 0.0.40
codegen_flags: <defaults>
</compile_context>

<pallas_src>
import functools

import jax
import jax.numpy as jnp
from jax.experimental import pallas as pl
from jax.experimental.pallas import tpu as pltpu


# ----------------------------------------------------------------------------
# Fused Pallas kernel: all conv(4x4, stride 1/2, pad 2) + activation layers
# ----------------------------------------------------------------------------
def _fused_disc_kernel(*refs, layer_cfg, pad):
    # refs = [col0, w0, b0, ..., w5, b5, o_ref, scratch_0, ..., scratch_{L-2}]
    n_layers = len(layer_cfg)
    col0_ref = refs[0]
    wb = refs[1:1 + 2 * n_layers]
    o_ref = refs[1 + 2 * n_layers]
    scratch = refs[2 + 2 * n_layers:]

    def activate(y, act):
        if act == "leaky_relu":
            return jnp.where(y >= 0, y, 0.2 * y)
        if act == "sigmoid":
            return jax.nn.sigmoid(y)
        return y

    def store_padded(s_ref, y, oh, ow, c):
        # Zero only the 4 padding-halo stripes (not the whole buffer), then write
        # the interior.  The scratch holds the *padded* input of the next layer.
        s_ref[pl.ds(0, pad), :, :] = jnp.zeros((pad, ow + 2 * pad, c), s_ref.dtype)
        s_ref[pl.ds(oh + pad, pad), :, :] = jnp.zeros((pad, ow + 2 * pad, c), s_ref.dtype)
        s_ref[pl.ds(pad, oh), pl.ds(0, pad), :] = jnp.zeros((oh, pad, c), s_ref.dtype)
        s_ref[pl.ds(pad, oh), pl.ds(ow + pad, pad), :] = jnp.zeros((oh, pad, c), s_ref.dtype)
        s_ref[pl.ds(pad, oh), pl.ds(pad, ow), :] = y.reshape(oh, ow, c).astype(s_ref.dtype)

    # ---- layer 0: im2col precomputed in XLA, single (M, 16*input_nc) matmul ----
    _, act0, oh0, ow0, _, c0 = layer_cfg[0]
    y = jnp.dot(col0_ref[0], wb[0][...], preferred_element_type=jnp.float32)
    y = activate(y + wb[1][...], act0)
    store_padded(scratch[0], y, oh0, ow0, c0)
    in_ref = scratch[0]

    # ---- layers 1..L-1: tap-accumulated bf16 matmuls, f32 accumulation ---------
    for i in range(1, n_layers):
        stride, act, oh, ow, cin, cout = layer_cfg[i]
        w_ref = wb[2 * i]       # (16, cin, cout) bf16
        b_ref = wb[2 * i + 1]   # (1, cout)       f32
        m = oh * ow

        if stride == 1:
            a = in_ref[...].astype(jnp.bfloat16)        # (oh_in+4, ow_in+4, cin)

            def tap(kh, kw, _a=a):
                return _a[kh:kh + oh, kw:kw + ow, :]
        else:
            # Deinterleave into 4 stride-phase planes: 4 strided ref reads instead
            # of 16; every tap below is then a contiguous slice of a phase plane.
            # TODO(synk): store the producer layer's output pre-deinterleaved into
            # this scratch so these strided reads disappear entirely.
            phases = {}
            for ph in range(2):
                for pw in range(2):
                    phases[(ph, pw)] = in_ref[
                        pl.ds(ph, oh + 1, 2), pl.ds(pw, ow + 1, 2), :
                    ].astype(jnp.bfloat16)

            def tap(kh, kw, _phases=phases):
                p = _phases[(kh % 2, kw % 2)]
                qh, qw = kh // 2, kw // 2
                return p[qh:qh + oh, qw:qw + ow, :]

        acc = None
        for kh in range(4):
            for kw in range(4):
                t = kh * 4 + kw
                d = jnp.dot(tap(kh, kw).reshape(m, cin), w_ref[t],
                            preferred_element_type=jnp.float32)
                acc = d if acc is None else acc + d
        y = activate(acc + b_ref[...], act)

        if i == n_layers - 1:
            # lane-dense output store: (1, OH, OW), no trailing channel-1 dim
            o_ref[...] = y.reshape(1, oh, ow).astype(o_ref.dtype)
        else:
            store_padded(scratch[i], y, oh, ow, cout)
            in_ref = scratch[i]


def _pick_vmem_limit():
    # ~100 MiB on v5e/v6e (128 MiB physical), capped with headroom under v7x's
    # 64 MiB per-TC VMEM.
    try:
        cap = int(pltpu.get_tpu_info().vmem_capacity_bytes)
    except Exception:
        cap = 64 * 1024 * 1024
    return max(32 * 1024 * 1024, min(cap - 8 * 1024 * 1024, 100 * 1024 * 1024))


# ----------------------------------------------------------------------------
# Wrapper: builds layer metadata, flattens weights, launches ONE pallas_call
# ----------------------------------------------------------------------------
def discriminator_forward(x_nchw, params, use_sigmoid=True):
    pad = 2
    x = jnp.transpose(x_nchw, (0, 2, 3, 1)).astype(jnp.float32)   # NCHW -> NHWC
    n, h, w, in_c = x.shape
    n_conv = len(params)

    # ---- layer 0 im2col in XLA (cin=3 is lane-hostile inside the kernel); the
    # layer-0 matmul itself still runs inside the Pallas kernel. ----
    w0, b0, s0 = params[0]
    k0h, k0w, _, c0 = w0.shape
    hp, wp = h + 2 * pad, w + 2 * pad
    oh0 = (hp - k0h) // s0 + 1
    ow0 = (wp - k0w) // s0 + 1
    xp = jnp.pad(x, ((0, 0), (pad, pad), (pad, pad), (0, 0)))
    taps = []
    for kh in range(k0h):
        for kw in range(k0w):
            taps.append(xp[:, kh:kh + (oh0 - 1) * s0 + 1:s0,
                           kw:kw + (ow0 - 1) * s0 + 1:s0, :])
    col0 = jnp.concatenate(taps, axis=-1).reshape(
        n, oh0 * ow0, k0h * k0w * in_c).astype(jnp.bfloat16)

    layer_cfg = [(s0, "leaky_relu", oh0, ow0, in_c, c0)]
    flat_wb = [w0.reshape(k0h * k0w * in_c, c0).astype(jnp.bfloat16),
               b0.reshape(1, c0).astype(jnp.float32)]
    in_specs = [
        pl.BlockSpec((1, oh0 * ow0, k0h * k0w * in_c), lambda i: (i, 0, 0)),
        pl.BlockSpec((k0h * k0w * in_c, c0), lambda i: (0, 0)),
        pl.BlockSpec((1, c0), lambda i: (0, 0)),
    ]
    # Padded input of each next layer lives in VMEM, sized PER BATCH ELEMENT
    # (batch is the parallel grid axis).
    # TODO(synk): ping-pong/reuse scratch buffers and keep them in bf16 to cut
    # resident VMEM further at very large resolutions on v7x; round odd OH/OW
    # up to multiples of 8 to keep interior stores unmasked.
    scratch_shapes = [pltpu.VMEM((oh0 + 2 * pad, ow0 + 2 * pad, c0), jnp.float32)]

    hc, wc = oh0 + 2 * pad, ow0 + 2 * pad
    out_shape = None
    out_spec = None
    for li in range(1, n_conv):
        wgt, bias, s = params[li]
        kh_, kw_, cin, cout = wgt.shape
        oh = (hc - kh_) // s + 1
        ow = (wc - kw_) // s + 1
        last = li == n_conv - 1
        act = ("sigmoid" if use_sigmoid else "none") if last else "leaky_relu"
        layer_cfg.append((s, act, oh, ow, cin, cout))
        flat_wb.append(wgt.reshape(kh_ * kw_, cin, cout).astype(jnp.bfloat16))
        flat_wb.append(bias.reshape(1, cout).astype(jnp.float32))
        in_specs.append(pl.BlockSpec((kh_ * kw_, cin, cout), lambda i: (0, 0, 0)))
        in_specs.append(pl.BlockSpec((1, cout), lambda i: (0, 0)))
        if last:
            assert cout == 1, "PatchGAN discriminator must end with 1 channel"
            out_shape = jax.ShapeDtypeStruct((n, oh, ow), jnp.float32)
            out_spec = pl.BlockSpec((1, oh, ow), lambda i: (i, 0, 0))
        else:
            hc, wc = oh + 2 * pad, ow + 2 * pad
            scratch_shapes.append(pltpu.VMEM((hc, wc, cout), jnp.float32))

    kernel = functools.partial(
        _fused_disc_kernel, layer_cfg=tuple(layer_cfg), pad=pad)

    y = pl.pallas_call(
        kernel,
        out_shape=out_shape,
        grid_spec=pltpu.PrefetchScalarGridSpec(
            num_scalar_prefetch=0,
            grid=(n,),
            in_specs=in_specs,
            out_specs=out_spec,
            scratch_shapes=scratch_shapes),
        compiler_params=pltpu.CompilerParams(
            dimension_semantics=("parallel",),
            vmem_limit_bytes=_pick_vmem_limit()),
    )(col0, *flat_wb)

    return y.reshape(n, 1, y.shape[1], y.shape[2])   # NCHW (N, 1, OH, OW)


# ----------------------------------------------------------------------------
# Model definition (mirrors NoNormDiscriminator.__init__ layer construction)
# ----------------------------------------------------------------------------
def init_params(key, input_nc=3, ndf=8, n_layers=4):
    kw = 4
    layer_defs = [(input_nc, ndf, 2)]  # self.initial
    nf_mult = 1
    for n in range(1, n_layers):
        nf_mult_prev = nf_mult
        nf_mult = min(2 ** n, 8)
        layer_defs.append((nf_mult_prev * ndf, nf_mult * ndf, 2))
    nf_mult_prev = nf_mult
    nf_mult = min(2 ** n_layers, 8)
    layer_defs.append((nf_mult_prev * ndf, nf_mult * ndf, 1))
    layer_defs.append((nf_mult * ndf, 1, 1))

    params = []
    for cin, cout, s in layer_defs:
        key, k1, k2 = jax.random.split(key, 3)
        bound = 1.0 / (cin * kw * kw) ** 0.5  # PyTorch default conv init bound
        w = jax.random.uniform(k1, (kw, kw, cin, cout), jnp.float32, -bound, bound)
        b = jax.random.uniform(k2, (cout,), jnp.float32, -bound, bound)
        params.append((w, b, s))
    return params


# ----------------------------------------------------------------------------
# Pure-JAX reference (for correctness check)
# ----------------------------------------------------------------------------
def discriminator_forward_ref(x_nchw, params, use_sigmoid=True):
    x = jnp.transpose(x_nchw, (0, 2, 3, 1))
    n_conv = len(params)
    for i, (w, b, s) in enumerate(params):
        y = jax.lax.conv_general_dilated(
            x, w, (s, s), [(2, 2), (2, 2)],
            dimension_numbers=("NHWC", "HWIO", "NHWC"),
        ) + b
        if i == n_conv - 1:
            y = jax.nn.sigmoid(y) if use_sigmoid else y
        else:
            y = jnp.where(y >= 0, y, 0.2 * y)
        x = y
    return jnp.transpose(x, (0, 3, 1, 2))


if __name__ == "__main__":
    key = jax.random.PRNGKey(0)
    pkey, xkey = jax.random.split(key)

    # Small config: input_nc=3, ndf=8, n_layers=4, use_sigmoid=True
    params = init_params(pkey, input_nc=3, ndf=8, n_layers=4)
    x = jax.random.normal(xkey, (2, 3, 16, 16), jnp.float32)  # NCHW, like PyTorch

    out = discriminator_forward(x, params, use_sigmoid=True)
    out = jax.block_until_ready(out)

    ref = discriminator_forward_ref(x, params, use_sigmoid=True)
    assert out.shape == ref.shape, (out.shape, ref.shape)
    # bf16 MXU operands (f32 accumulation) -> looser tolerance than the pure-f32 path
    err = float(jnp.max(jnp.abs(out - ref)))
    assert jnp.allclose(out, ref, atol=2e-2, rtol=2e-2), err

    print("KERNEL_OK")
</pallas_src>

<mosaic_0001>
module attributes {stable_mosaic.version = 11 : i64} {
  func.func @_fused_disc_kernel(%arg0: i32, %arg1: memref<1x81x48xbf16, #tpu.memory_space<vmem>>, %arg2: memref<48x8xbf16, #tpu.memory_space<vmem>>, %arg3: memref<1x8xf32, #tpu.memory_space<vmem>>, %arg4: memref<16x8x16xbf16, #tpu.memory_space<vmem>>, %arg5: memref<1x16xf32, #tpu.memory_space<vmem>>, %arg6: memref<16x16x32xbf16, #tpu.memory_space<vmem>>, %arg7: memref<1x32xf32, #tpu.memory_space<vmem>>, %arg8: memref<16x32x64xbf16, #tpu.memory_space<vmem>>, %arg9: memref<1x64xf32, #tpu.memory_space<vmem>>, %arg10: memref<16x64x64xbf16, #tpu.memory_space<vmem>>, %arg11: memref<1x64xf32, #tpu.memory_space<vmem>>, %arg12: memref<16x64x1xbf16, #tpu.memory_space<vmem>>, %arg13: memref<1x1xf32, #tpu.memory_space<vmem>>, %arg14: memref<1x4x4xf32, #tpu.memory_space<vmem>>, %arg15: memref<13x13x8xf32, #tpu.memory_space<vmem>>, %arg16: memref<9x9x16xf32, #tpu.memory_space<vmem>>, %arg17: memref<7x7x32xf32, #tpu.memory_space<vmem>>, %arg18: memref<6x6x64xf32, #tpu.memory_space<vmem>>, %arg19: memref<7x7x64xf32, #tpu.memory_space<vmem>>) attributes {dimension_semantics = [#tpu.dimension_semantics<parallel>], iteration_bounds = array<i64: 2>, scalar_prefetch = 0 : i64, scratch_operands = 5 : i64, tpu.core_type = #tpu.core_type<tc>, window_params = [{transform_indices = @transform_0, window_bounds = array<i64: 1, 81, 48>}, {pipeline_mode = #tpu.pipeline_mode<synchronous>, transform_indices = @transform_1, window_bounds = array<i64: 48, 8>}, {pipeline_mode = #tpu.pipeline_mode<synchronous>, transform_indices = @transform_2, window_bounds = array<i64: 1, 8>}, {pipeline_mode = #tpu.pipeline_mode<synchronous>, transform_indices = @transform_3, window_bounds = array<i64: 16, 8, 16>}, {pipeline_mode = #tpu.pipeline_mode<synchronous>, transform_indices = @transform_4, window_bounds = array<i64: 1, 16>}, {pipeline_mode = #tpu.pipeline_mode<synchronous>, transform_indices = @transform_5, window_bounds = array<i64: 16, 16, 32>}, {pipeline_mode = #tpu.pipeline_mode<synchronous>, transform_indices = @transform_6, window_bounds = array<i64: 1, 32>}, {pipeline_mode = #tpu.pipeline_mode<synchronous>, transform_indices = @transform_7, window_bounds = array<i64: 16, 32, 64>}, {pipeline_mode = #tpu.pipeline_mode<synchronous>, transform_indices = @transform_8, window_bounds = array<i64: 1, 64>}, {pipeline_mode = #tpu.pipeline_mode<synchronous>, transform_indices = @transform_9, window_bounds = array<i64: 16, 64, 64>}, {pipeline_mode = #tpu.pipeline_mode<synchronous>, transform_indices = @transform_10, window_bounds = array<i64: 1, 64>}, {pipeline_mode = #tpu.pipeline_mode<synchronous>, transform_indices = @transform_11, window_bounds = array<i64: 16, 64, 1>}, {pipeline_mode = #tpu.pipeline_mode<synchronous>, transform_indices = @transform_12, window_bounds = array<i64: 1, 1>}, {transform_indices = @transform_13, window_bounds = array<i64: 1, 4, 4>}]} {
    %c0 = arith.constant 0 : index
    %c0_0 = arith.constant 0 : index
    %c0_1 = arith.constant 0 : index
    %0 = vector.load %arg1[%c0, %c0_0, %c0_1] : memref<1x81x48xbf16, #tpu.memory_space<vmem>>, vector<1x81x48xbf16>
    %1 = vector.shape_cast %0 : vector<1x81x48xbf16> to vector<81x48xbf16>
    %c0_2 = arith.constant 0 : index
    %c0_3 = arith.constant 0 : index
    %2 = vector.load %arg2[%c0_2, %c0_3] : memref<48x8xbf16, #tpu.memory_space<vmem>>, vector<48x8xbf16>
    %cst = arith.constant dense<0.000000e+00> : vector<81x8xf32>
    %3 = tpu.matmul %1, %2, %cst {dimension_numbers = #tpu.dot_dimension_numbers<[1], [0], [0], [1], [0, 0, 1, 1], [], []>} : vector<81x48xbf16>, vector<48x8xbf16>, vector<81x8xf32> -> vector<81x8xf32>
    %c0_4 = arith.constant 0 : index
    %c0_5 = arith.constant 0 : index
    %4 = vector.load %arg3[%c0_4, %c0_5] : memref<1x8xf32, #tpu.memory_space<vmem>>, vector<1x8xf32>
    %5 = vector.broadcast %4 : vector<1x8xf32> to vector<81x8xf32>
    %6 = arith.addf %3, %5 : vector<81x8xf32>
    %cst_6 = arith.constant 0.000000e+00 : f32
    %7 = vector.broadcast %cst_6 : f32 to vector<81x8xf32>
    %8 = arith.cmpf oge, %6, %7 : vector<81x8xf32>
    %cst_7 = arith.constant 2.000000e-01 : f32
    %9 = vector.broadcast %cst_7 : f32 to vector<81x8xf32>
    %10 = arith.mulf %9, %6 : vector<81x8xf32>
    %11 = arith.select %8, %6, %10 : vector<81x8xi1>, vector<81x8xf32>
    %cst_8 = arith.constant 0.000000e+00 : f32
    %12 = vector.broadcast %cst_8 : f32 to vector<2x13x8xf32>
    %c0_9 = arith.constant 0 : index
    %c0_10 = arith.constant 0 : index
    %c0_11 = arith.constant 0 : index
    %13 = vector.load %arg15[%c0_9, %c0_10, %c0_11] : memref<13x13x8xf32, #tpu.memory_space<vmem>>, vector<2x13x8xf32>
    tpu.vector_store %arg15[%c0_9, %c0_10, %c0_11], %12 {strides = array<i32>} : memref<13x13x8xf32, #tpu.memory_space<vmem>>, vector<2x13x8xf32>,
    %cst_12 = arith.constant 0.000000e+00 : f32
    %14 = vector.broadcast %cst_12 : f32 to vector<2x13x8xf32>
    %c11 = arith.constant 11 : index
    %c0_13 = arith.constant 0 : index
    %c0_14 = arith.constant 0 : index
    %15 = vector.load %arg15[%c11, %c0_13, %c0_14] : memref<13x13x8xf32, #tpu.memory_space<vmem>>, vector<2x13x8xf32>
    tpu.vector_store %arg15[%c11, %c0_13, %c0_14], %14 {strides = array<i32>} : memref<13x13x8xf32, #tpu.memory_space<vmem>>, vector<2x13x8xf32>,
    %cst_15 = arith.constant 0.000000e+00 : f32
    %16 = vector.broadcast %cst_15 : f32 to vector<9x2x8xf32>
    %c2 = arith.constant 2 : index
    %c0_16 = arith.constant 0 : index
    %c0_17 = arith.constant 0 : index
    %17 = vector.load %arg15[%c2, %c0_16, %c0_17] : memref<13x13x8xf32, #tpu.memory_space<vmem>>, vector<9x2x8xf32>
    tpu.vector_store %arg15[%c2, %c0_16, %c0_17], %16 {strides = array<i32>} : memref<13x13x8xf32, #tpu.memory_space<vmem>>, vector<9x2x8xf32>,
    %cst_18 = arith.constant 0.000000e+00 : f32
    %18 = vector.broadcast %cst_18 : f32 to vector<9x2x8xf32>
    %c2_19 = arith.constant 2 : index
    %c11_20 = arith.constant 11 : index
    %c0_21 = arith.constant 0 : index
    %19 = vector.load %arg15[%c2_19, %c11_20, %c0_21] : memref<13x13x8xf32, #tpu.memory_space<vmem>>, vector<9x2x8xf32>
    tpu.vector_store %arg15[%c2_19, %c11_20, %c0_21], %18 {strides = array<i32>} : memref<13x13x8xf32, #tpu.memory_space<vmem>>, vector<9x2x8xf32>,
    %20 = vector.shape_cast %11 : vector<81x8xf32> to vector<9x9x8xf32>
    %c2_22 = arith.constant 2 : index
    %c2_23 = arith.constant 2 : index
    %c0_24 = arith.constant 0 : index
    %21 = vector.load %arg15[%c2_22, %c2_23, %c0_24] : memref<13x13x8xf32, #tpu.memory_space<vmem>>, vector<9x9x8xf32>
    tpu.vector_store %arg15[%c2_22, %c2_23, %c0_24], %20 {strides = array<i32>} : memref<13x13x8xf32, #tpu.memory_space<vmem>>, vector<9x9x8xf32>,
    %c0_25 = arith.constant 0 : index
    %c0_26 = arith.constant 0 : index
    %c0_27 = arith.constant 0 : index
    %22 = tpu.strided_load %arg15[%c0_25, %c0_26, %c0_27] {strides = array<i32: 2, 2, 1>} : memref<13x13x8xf32, #tpu.memory_space<vmem>>, vector<6x6x8xf32>
    %23 = arith.truncf %22 : vector<6x6x8xf32> to vector<6x6x8xbf16>
    %c0_28 = arith.constant 0 : index
    %c1 = arith.constant 1 : index
    %c0_29 = arith.constant 0 : index
    %24 = tpu.strided_load %arg15[%c0_28, %c1, %c0_29] {strides = array<i32: 2, 2, 1>} : memref<13x13x8xf32, #tpu.memory_space<vmem>>, vector<6x6x8xf32>
    %25 = arith.truncf %24 : vector<6x6x8xf32> to vector<6x6x8xbf16>
    %c1_30 = arith.constant 1 : index
    %c0_31 = arith.constant 0 : index
    %c0_32 = arith.constant 0 : index
    %26 = tpu.strided_load %arg15[%c1_30, %c0_31, %c0_32] {strides = array<i32: 2, 2, 1>} : memref<13x13x8xf32, #tpu.memory_space<vmem>>, vector<6x6x8xf32>
    %27 = arith.truncf %26 : vector<6x6x8xf32> to vector<6x6x8xbf16>
    %c1_33 = arith.constant 1 : index
    %c1_34 = arith.constant 1 : index
    %c0_35 = arith.constant 0 : index
    %28 = tpu.strided_load %arg15[%c1_33, %c1_34, %c0_35] {strides = array<i32: 2, 2, 1>} : memref<13x13x8xf32, #tpu.memory_space<vmem>>, vector<6x6x8xf32>
    %29 = arith.truncf %28 : vector<6x6x8xf32> to vector<6x6x8xbf16>
    %30 = vector.extract_strided_slice %23 {offsets = [0, 0, 0], sizes = [5, 5, 8], strides = [1, 1, 1]} : vector<6x6x8xbf16> to vector<5x5x8xbf16>
    %31 = vector.shape_cast %30 : vector<5x5x8xbf16> to vector<25x8xbf16>
    %c0_36 = arith.constant 0 : index
    %c0_37 = arith.constant 0 : index
    %c0_38 = arith.constant 0 : index
    %32 = vector.load %arg4[%c0_36, %c0_37, %c0_38] : memref<16x8x16xbf16, #tpu.memory_space<vmem>>, vector<1x8x16xbf16>
    %33 = vector.shape_cast %32 : vector<1x8x16xbf16> to vector<8x16xbf16>
    %cst_39 = arith.constant dense<0.000000e+00> : vector<25x16xf32>
    %34 = tpu.matmul %31, %33, %cst_39 {dimension_numbers = #tpu.dot_dimension_numbers<[1], [0], [0], [1], [0, 0, 1, 1], [], []>} : vector<25x8xbf16>, vector<8x16xbf16>, vector<25x16xf32> -> vector<25x16xf32>
    %35 = vector.extract_strided_slice %25 {offsets = [0, 0, 0], sizes = [5, 5, 8], strides = [1, 1, 1]} : vector<6x6x8xbf16> to vector<5x5x8xbf16>
    %36 = vector.shape_cast %35 : vector<5x5x8xbf16> to vector<25x8xbf16>
    %c1_40 = arith.constant 1 : index
    %c0_41 = arith.constant 0 : index
    %c0_42 = arith.constant 0 : index
    %37 = vector.load %arg4[%c1_40, %c0_41, %c0_42] : memref<16x8x16xbf16, #tpu.memory_space<vmem>>, vector<1x8x16xbf16>
    %38 = vector.shape_cast %37 : vector<1x8x16xbf16> to vector<8x16xbf16>
    %cst_43 = arith.constant dense<0.000000e+00> : vector<25x16xf32>
    %39 = tpu.matmul %36, %38, %cst_43 {dimension_numbers = #tpu.dot_dimension_numbers<[1], [0], [0], [1], [0, 0, 1, 1], [], []>} : vector<25x8xbf16>, vector<8x16xbf16>, vector<25x16xf32> -> vector<25x16xf32>
    %40 = arith.addf %34, %39 : vector<25x16xf32>
    %41 = vector.extract_strided_slice %23 {offsets = [0, 1, 0], sizes = [5, 5, 8], strides = [1, 1, 1]} : vector<6x6x8xbf16> to vector<5x5x8xbf16>
    %42 = vector.shape_cast %41 : vector<5x5x8xbf16> to vector<25x8xbf16>
    %c2_44 = arith.constant 2 : index
    %c0_45 = arith.constant 0 : index
    %c0_46 = arith.constant 0 : index
    %43 = vector.load %arg4[%c2_44, %c0_45, %c0_46] : memref<16x8x16xbf16, #tpu.memory_space<vmem>>, vector<1x8x16xbf16>
    %44 = vector.shape_cast %43 : vector<1x8x16xbf16> to vector<8x16xbf16>
    %cst_47 = arith.constant dense<0.000000e+00> : vector<25x16xf32>
    %45 = tpu.matmul %42, %44, %cst_47 {dimension_numbers = #tpu.dot_dimension_numbers<[1], [0], [0], [1], [0, 0, 1, 1], [], []>} : vector<25x8xbf16>, vector<8x16xbf16>, vector<25x16xf32> -> vector<25x16xf32>
    %46 = arith.addf %40, %45 : vector<25x16xf32>
    %47 = vector.extract_strided_slice %25 {offsets = [0, 1, 0], sizes = [5, 5, 8], strides = [1, 1, 1]} : vector<6x6x8xbf16> to vector<5x5x8xbf16>
    %48 = vector.shape_cast %47 : vector<5x5x8xbf16> to vector<25x8xbf16>
    %c3 = arith.constant 3 : index
    %c0_48 = arith.constant 0 : index
    %c0_49 = arith.constant 0 : index
    %49 = vector.load %arg4[%c3, %c0_48, %c0_49] : memref<16x8x16xbf16, #tpu.memory_space<vmem>>, vector<1x8x16xbf16>
    %50 = vector.shape_cast %49 : vector<1x8x16xbf16> to vector<8x16xbf16>
    %cst_50 = arith.constant dense<0.000000e+00> : vector<25x16xf32>
    %51 = tpu.matmul %48, %50, %cst_50 {dimension_numbers = #tpu.dot_dimension_numbers<[1], [0], [0], [1], [0, 0, 1, 1], [], []>} : vector<25x8xbf16>, vector<8x16xbf16>, vector<25x16xf32> -> vector<25x16xf32>
    %52 = arith.addf %46, %51 : vector<25x16xf32>
    %53 = vector.extract_strided_slice %27 {offsets = [0, 0, 0], sizes = [5, 5, 8], strides = [1, 1, 1]} : vector<6x6x8xbf16> to vector<5x5x8xbf16>
    %54 = vector.shape_cast %53 : vector<5x5x8xbf16> to vector<25x8xbf16>
    %c4 = arith.constant 4 : index
    %c0_51 = arith.constant 0 : index
    %c0_52 = arith.constant 0 : index
    %55 = vector.load %arg4[%c4, %c0_51, %c0_52] : memref<16x8x16xbf16, #tpu.memory_space<vmem>>, vector<1x8x16xbf16>
    %56 = vector.shape_cast %55 : vector<1x8x16xbf16> to vector<8x16xbf16>
    %cst_53 = arith.constant dense<0.000000e+00> : vector<25x16xf32>
    %57 = tpu.matmul %54, %56, %cst_53 {dimension_numbers = #tpu.dot_dimension_numbers<[1], [0], [0], [1], [0, 0, 1, 1], [], []>} : vector<25x8xbf16>, vector<8x16xbf16>, vector<25x16xf32> -> vector<25x16xf32>
    %58 = arith.addf %52, %57 : vector<25x16xf32>
    %59 = vector.extract_strided_slice %29 {offsets = [0, 0, 0], sizes = [5, 5, 8], strides = [1, 1, 1]} : vector<6x6x8xbf16> to vector<5x5x8xbf16>
    %60 = vector.shape_cast %59 : vector<5x5x8xbf16> to vector<25x8xbf16>
    %c5 = arith.constant 5 : index
    %c0_54 = arith.constant 0 : index
    %c0_55 = arith.constant 0 : index
    %61 = vector.load %arg4[%c5, %c0_54, %c0_55] : memref<16x8x16xbf16, #tpu.memory_space<vmem>>, vector<1x8x16xbf16>
    %62 = vector.shape_cast %61 : vector<1x8x16xbf16> to vector<8x16xbf16>
    %cst_56 = arith.constant dense<0.000000e+00> : vector<25x16xf32>
    %63 = tpu.matmul %60, %62, %cst_56 {dimension_numbers = #tpu.dot_dimension_numbers<[1], [0], [0], [1], [0, 0, 1, 1], [], []>} : vector<25x8xbf16>, vector<8x16xbf16>, vector<25x16xf32> -> vector<25x16xf32>
    %64 = arith.addf %58, %63 : vector<25x16xf32>
    %65 = vector.extract_strided_slice %27 {offsets = [0, 1, 0], sizes = [5, 5, 8], strides = [1, 1, 1]} : vector<6x6x8xbf16> to vector<5x5x8xbf16>
    %66 = vector.shape_cast %65 : vector<5x5x8xbf16> to vector<25x8xbf16>
    %c6 = arith.constant 6 : index
    %c0_57 = arith.constant 0 : index
    %c0_58 = arith.constant 0 : index
    %67 = vector.load %arg4[%c6, %c0_57, %c0_58] : memref<16x8x16xbf16, #tpu.memory_space<vmem>>, vector<1x8x16xbf16>
    %68 = vector.shape_cast %67 : vector<1x8x16xbf16> to vector<8x16xbf16>
    %cst_59 = arith.constant dense<0.000000e+00> : vector<25x16xf32>
    %69 = tpu.matmul %66, %68, %cst_59 {dimension_numbers = #tpu.dot_dimension_numbers<[1], [0], [0], [1], [0, 0, 1, 1], [], []>} : vector<25x8xbf16>, vector<8x16xbf16>, vector<25x16xf32> -> vector<25x16xf32>
    %70 = arith.addf %64, %69 : vector<25x16xf32>
    %71 = vector.extract_strided_slice %29 {offsets = [0, 1, 0], sizes = [5, 5, 8], strides = [1, 1, 1]} : vector<6x6x8xbf16> to vector<5x5x8xbf16>
    %72 = vector.shape_cast %71 : vector<5x5x8xbf16> to vector<25x8xbf16>
    %c7 = arith.constant 7 : index
    %c0_60 = arith.constant 0 : index
    %c0_61 = arith.constant 0 : index
    %73 = vector.load %arg4[%c7, %c0_60, %c0_61] : memref<16x8x16xbf16, #tpu.memory_space<vmem>>, vector<1x8x16xbf16>
    %74 = vector.shape_cast %73 : vector<1x8x16xbf16> to vector<8x16xbf16>
    %cst_62 = arith.constant dense<0.000000e+00> : vector<25x16xf32>
    %75 = tpu.matmul %72, %74, %cst_62 {dimension_numbers = #tpu.dot_dimension_numbers<[1], [0], [0], [1], [0, 0, 1, 1], [], []>} : vector<25x8xbf16>, vector<8x16xbf16>, vector<25x16xf32> -> vector<25x16xf32>
    %76 = arith.addf %70, %75 : vector<25x16xf32>
    %77 = vector.extract_strided_slice %23 {offsets = [1, 0, 0], sizes = [5, 5, 8], strides = [1, 1, 1]} : vector<6x6x8xbf16> to vector<5x5x8xbf16>
    %78 = vector.shape_cast %77 : vector<5x5x8xbf16> to vector<25x8xbf16>
    %c8 = arith.constant 8 : index
    %c0_63 = arith.constant 0 : index
    %c0_64 = arith.constant 0 : index
    %79 = vector.load %arg4[%c8, %c0_63, %c0_64] : memref<16x8x16xbf16, #tpu.memory_space<vmem>>, vector<1x8x16xbf16>
    %80 = vector.shape_cast %79 : vector<1x8x16xbf16> to vector<8x16xbf16>
    %cst_65 = arith.constant dense<0.000000e+00> : vector<25x16xf32>
    %81 = tpu.matmul %78, %80, %cst_65 {dimension_numbers = #tpu.dot_dimension_numbers<[1], [0], [0], [1], [0, 0, 1, 1], [], []>} : vector<25x8xbf16>, vector<8x16xbf16>, vector<25x16xf32> -> vector<25x16xf32>
    %82 = arith.addf %76, %81 : vector<25x16xf32>
    %83 = vector.extract_strided_slice %25 {offsets = [1, 0, 0], sizes = [5, 5, 8], strides = [1, 1, 1]} : vector<6x6x8xbf16> to vector<5x5x8xbf16>
    %84 = vector.shape_cast %83 : vector<5x5x8xbf16> to vector<25x8xbf16>
    %c9 = arith.constant 9 : index
    %c0_66 = arith.constant 0 : index
    %c0_67 = arith.constant 0 : index
    %85 = vector.load %arg4[%c9, %c0_66, %c0_67] : memref<16x8x16xbf16, #tpu.memory_space<vmem>>, vector<1x8x16xbf16>
    %86 = vector.shape_cast %85 : vector<1x8x16xbf16> to vector<8x16xbf16>
    %cst_68 = arith.constant dense<0.000000e+00> : vector<25x16xf32>
    %87 = tpu.matmul %84, %86, %cst_68 {dimension_numbers = #tpu.dot_dimension_numbers<[1], [0], [0], [1], [0, 0, 1, 1], [], []>} : vector<25x8xbf16>, vector<8x16xbf16>, vector<25x16xf32> -> vector<25x16xf32>
    %88 = arith.addf %82, %87 : vector<25x16xf32>
    %89 = vector.extract_strided_slice %23 {offsets = [1, 1, 0], sizes = [5, 5, 8], strides = [1, 1, 1]} : vector<6x6x8xbf16> to vector<5x5x8xbf16>
    %90 = vector.shape_cast %89 : vector<5x5x8xbf16> to vector<25x8xbf16>
    %c10 = arith.constant 10 : index
    %c0_69 = arith.constant 0 : index
    %c0_70 = arith.constant 0 : index
    %91 = vector.load %arg4[%c10, %c0_69, %c0_70] : memref<16x8x16xbf16, #tpu.memory_space<vmem>>, vector<1x8x16xbf16>
    %92 = vector.shape_cast %91 : vector<1x8x16xbf16> to vector<8x16xbf16>
    %cst_71 = arith.constant dense<0.000000e+00> : vector<25x16xf32>
    %93 = tpu.matmul %90, %92, %cst_71 {dimension_numbers = #tpu.dot_dimension_numbers<[1], [0], [0], [1], [0, 0, 1, 1], [], []>} : vector<25x8xbf16>, vector<8x16xbf16>, vector<25x16xf32> -> vector<25x16xf32>
    %94 = arith.addf %88, %93 : vector<25x16xf32>
    %95 = vector.extract_strided_slice %25 {offsets = [1, 1, 0], sizes = [5, 5, 8], strides = [1, 1, 1]} : vector<6x6x8xbf16> to vector<5x5x8xbf16>
    %96 = vector.shape_cast %95 : vector<5x5x8xbf16> to vector<25x8xbf16>
    %c11_72 = arith.constant 11 : index
    %c0_73 = arith.constant 0 : index
    %c0_74 = arith.constant 0 : index
    %97 = vector.load %arg4[%c11_72, %c0_73, %c0_74] : memref<16x8x16xbf16, #tpu.memory_space<vmem>>, vector<1x8x16xbf16>
    %98 = vector.shape_cast %97 : vector<1x8x16xbf16> to vector<8x16xbf16>
    %cst_75 = arith.constant dense<0.000000e+00> : vector<25x16xf32>
    %99 = tpu.matmul %96, %98, %cst_75 {dimension_numbers = #tpu.dot_dimension_numbers<[1], [0], [0], [1], [0, 0, 1, 1], [], []>} : vector<25x8xbf16>, vector<8x16xbf16>, vector<25x16xf32> -> vector<25x16xf32>
    %100 = arith.addf %94, %99 : vector<25x16xf32>
    %101 = vector.extract_strided_slice %27 {offsets = [1, 0, 0], sizes = [5, 5, 8], strides = [1, 1, 1]} : vector<6x6x8xbf16> to vector<5x5x8xbf16>
    %102 = vector.shape_cast %101 : vector<5x5x8xbf16> to vector<25x8xbf16>
    %c12 = arith.constant 12 : index
    %c0_76 = arith.constant 0 : index
    %c0_77 = arith.constant 0 : index
    %103 = vector.load %arg4[%c12, %c0_76, %c0_77] : memref<16x8x16xbf16, #tpu.memory_space<vmem>>, vector<1x8x16xbf16>
    %104 = vector.shape_cast %103 : vector<1x8x16xbf16> to vector<8x16xbf16>
    %cst_78 = arith.constant dense<0.000000e+00> : vector<25x16xf32>
    %105 = tpu.matmul %102, %104, %cst_78 {dimension_numbers = #tpu.dot_dimension_numbers<[1], [0], [0], [1], [0, 0, 1, 1], [], []>} : vector<25x8xbf16>, vector<8x16xbf16>, vector<25x16xf32> -> vector<25x16xf32>
    %106 = arith.addf %100, %105 : vector<25x16xf32>
    %107 = vector.extract_strided_slice %29 {offsets = [1, 0, 0], sizes = [5, 5, 8], strides = [1, 1, 1]} : vector<6x6x8xbf16> to vector<5x5x8xbf16>
    %108 = vector.shape_cast %107 : vector<5x5x8xbf16> to vector<25x8xbf16>
    %c13 = arith.constant 13 : index
    %c0_79 = arith.constant 0 : index
    %c0_80 = arith.constant 0 : index
    %109 = vector.load %arg4[%c13, %c0_79, %c0_80] : memref<16x8x16xbf16, #tpu.memory_space<vmem>>, vector<1x8x16xbf16>
    %110 = vector.shape_cast %109 : vector<1x8x16xbf16> to vector<8x16xbf16>
    %cst_81 = arith.constant dense<0.000000e+00> : vector<25x16xf32>
    %111 = tpu.matmul %108, %110, %cst_81 {dimension_numbers = #tpu.dot_dimension_numbers<[1], [0], [0], [1], [0, 0, 1, 1], [], []>} : vector<25x8xbf16>, vector<8x16xbf16>, vector<25x16xf32> -> vector<25x16xf32>
    %112 = arith.addf %106, %111 : vector<25x16xf32>
    %113 = vector.extract_strided_slice %27 {offsets = [1, 1, 0], sizes = [5, 5, 8], strides = [1, 1, 1]} : vector<6x6x8xbf16> to vector<5x5x8xbf16>
    %114 = vector.shape_cast %113 : vector<5x5x8xbf16> to vector<25x8xbf16>
    %c14 = arith.constant 14 : index
    %c0_82 = arith.constant 0 : index
    %c0_83 = arith.constant 0 : index
    %115 = vector.load %arg4[%c14, %c0_82, %c0_83] : memref<16x8x16xbf16, #tpu.memory_space<vmem>>, vector<1x8x16xbf16>
    %116 = vector.shape_cast %115 : vector<1x8x16xbf16> to vector<8x16xbf16>
    %cst_84 = arith.constant dense<0.000000e+00> : vector<25x16xf32>
    %117 = tpu.matmul %114, %116, %cst_84 {dimension_numbers = #tpu.dot_dimension_numbers<[1], [0], [0], [1], [0, 0, 1, 1], [], []>} : vector<25x8xbf16>, vector<8x16xbf16>, vector<25x16xf32> -> vector<25x16xf32>
    %118 = arith.addf %112, %117 : vector<25x16xf32>
    %119 = vector.extract_strided_slice %29 {offsets = [1, 1, 0], sizes = [5, 5, 8], strides = [1, 1, 1]} : vector<6x6x8xbf16> to vector<5x5x8xbf16>
    %120 = vector.shape_cast %119 : vector<5x5x8xbf16> to vector<25x8xbf16>
    %c15 = arith.constant 15 : index
    %c0_85 = arith.constant 0 : index
    %c0_86 = arith.constant 0 : index
    %121 = vector.load %arg4[%c15, %c0_85, %c0_86] : memref<16x8x16xbf16, #tpu.memory_space<vmem>>, vector<1x8x16xbf16>
    %122 = vector.shape_cast %121 : vector<1x8x16xbf16> to vector<8x16xbf16>
    %cst_87 = arith.constant dense<0.000000e+00> : vector<25x16xf32>
    %123 = tpu.matmul %120, %122, %cst_87 {dimension_numbers = #tpu.dot_dimension_numbers<[1], [0], [0], [1], [0, 0, 1, 1], [], []>} : vector<25x8xbf16>, vector<8x16xbf16>, vector<25x16xf32> -> vector<25x16xf32>
    %124 = arith.addf %118, %123 : vector<25x16xf32>
    %c0_88 = arith.constant 0 : index
    %c0_89 = arith.constant 0 : index
    %125 = vector.load %arg5[%c0_88, %c0_89] : memref<1x16xf32, #tpu.memory_space<vmem>>, vector<1x16xf32>
    %126 = vector.broadcast %125 : vector<1x16xf32> to vector<25x16xf32>
    %127 = arith.addf %124, %126 : vector<25x16xf32>
    %cst_90 = arith.constant 0.000000e+00 : f32
    %128 = vector.broadcast %cst_90 : f32 to vector<25x16xf32>
    %129 = arith.cmpf oge, %127, %128 : vector<25x16xf32>
    %cst_91 = arith.constant 2.000000e-01 : f32
    %130 = vector.broadcast %cst_91 : f32 to vector<25x16xf32>
    %131 = arith.mulf %130, %127 : vector<25x16xf32>
    %132 = arith.select %129, %127, %131 : vector<25x16xi1>, vector<25x16xf32>
    %cst_92 = arith.constant 0.000000e+00 : f32
    %133 = vector.broadcast %cst_92 : f32 to vector<2x9x16xf32>
    %c0_93 = arith.constant 0 : index
    %c0_94 = arith.constant 0 : index
    %c0_95 = arith.constant 0 : index
    %134 = vector.load %arg16[%c0_93, %c0_94, %c0_95] : memref<9x9x16xf32, #tpu.memory_space<vmem>>, vector<2x9x16xf32>
    tpu.vector_store %arg16[%c0_93, %c0_94, %c0_95], %133 {strides = array<i32>} : memref<9x9x16xf32, #tpu.memory_space<vmem>>, vector<2x9x16xf32>,
    %cst_96 = arith.constant 0.000000e+00 : f32
    %135 = vector.broadcast %cst_96 : f32 to vector<2x9x16xf32>
    %c7_97 = arith.constant 7 : index
    %c0_98 = arith.constant 0 : index
    %c0_99 = arith.constant 0 : index
    %136 = vector.load %arg16[%c7_97, %c0_98, %c0_99] : memref<9x9x16xf32, #tpu.memory_space<vmem>>, vector<2x9x16xf32>
    tpu.vector_store %arg16[%c7_97, %c0_98, %c0_99], %135 {strides = array<i32>} : memref<9x9x16xf32, #tpu.memory_space<vmem>>, vector<2x9x16xf32>,
    %cst_100 = arith.constant 0.000000e+00 : f32
    %137 = vector.broadcast %cst_100 : f32 to vector<5x2x16xf32>
    %c2_101 = arith.constant 2 : index
    %c0_102 = arith.constant 0 : index
    %c0_103 = arith.constant 0 : index
    %138 = vector.load %arg16[%c2_101, %c0_102, %c0_103] : memref<9x9x16xf32, #tpu.memory_space<vmem>>, vector<5x2x16xf32>
    tpu.vector_store %arg16[%c2_101, %c0_102, %c0_103], %137 {strides = array<i32>} : memref<9x9x16xf32, #tpu.memory_space<vmem>>, vector<5x2x16xf32>,
    %cst_104 = arith.constant 0.000000e+00 : f32
    %139 = vector.broadcast %cst_104 : f32 to vector<5x2x16xf32>
    %c2_105 = arith.constant 2 : index
    %c7_106 = arith.constant 7 : index
    %c0_107 = arith.constant 0 : index
    %140 = vector.load %arg16[%c2_105, %c7_106, %c0_107] : memref<9x9x16xf32, #tpu.memory_space<vmem>>, vector<5x2x16xf32>
    tpu.vector_store %arg16[%c2_105, %c7_106, %c0_107], %139 {strides = array<i32>} : memref<9x9x16xf32, #tpu.memory_space<vmem>>, vector<5x2x16xf32>,
    %141 = vector.shape_cast %132 : vector<25x16xf32> to vector<5x5x16xf32>
    %c2_108 = arith.constant 2 : index
    %c2_109 = arith.constant 2 : index
    %c0_110 = arith.constant 0 : index
    %142 = vector.load %arg16[%c2_108, %c2_109, %c0_110] : memref<9x9x16xf32, #tpu.memory_space<vmem>>, vector<5x5x16xf32>
    tpu.vector_store %arg16[%c2_108, %c2_109, %c0_110], %141 {strides = array<i32>} : memref<9x9x16xf32, #tpu.memory_space<vmem>>, vector<5x5x16xf32>,
    %c0_111 = arith.constant 0 : index
    %c0_112 = arith.constant 0 : index
    %c0_113 = arith.constant 0 : index
    %143 = tpu.strided_load %arg16[%c0_111, %c0_112, %c0_113] {strides = array<i32: 2, 2, 1>} : memref<9x9x16xf32, #tpu.memory_space<vmem>>, vector<4x4x16xf32>
    %144 = arith.truncf %143 : vector<4x4x16xf32> to vector<4x4x16xbf16>
    %c0_114 = arith.constant 0 : index
    %c1_115 = arith.constant 1 : index
    %c0_116 = arith.constant 0 : index
    %145 = tpu.strided_load %arg16[%c0_114, %c1_115, %c0_116] {strides = array<i32: 2, 2, 1>} : memref<9x9x16xf32, #tpu.memory_space<vmem>>, vector<4x4x16xf32>
    %146 = arith.truncf %145 : vector<4x4x16xf32> to vector<4x4x16xbf16>
    %c1_117 = arith.constant 1 : index
    %c0_118 = arith.constant 0 : index
    %c0_119 = arith.constant 0 : index
    %147 = tpu.strided_load %arg16[%c1_117, %c0_118, %c0_119] {strides = array<i32: 2, 2, 1>} : memref<9x9x16xf32, #tpu.memory_space<vmem>>, vector<4x4x16xf32>
    %148 = arith.truncf %147 : vector<4x4x16xf32> to vector<4x4x16xbf16>
    %c1_120 = arith.constant 1 : index
    %c1_121 = arith.constant 1 : index
    %c0_122 = arith.constant 0 : index
    %149 = tpu.strided_load %arg16[%c1_120, %c1_121, %c0_122] {strides = array<i32: 2, 2, 1>} : memref<9x9x16xf32, #tpu.memory_space<vmem>>, vector<4x4x16xf32>
    %150 = arith.truncf %149 : vector<4x4x16xf32> to vector<4x4x16xbf16>
    %151 = vector.extract_strided_slice %144 {offsets = [0, 0, 0], sizes = [3, 3, 16], strides = [1, 1, 1]} : vector<4x4x16xbf16> to vector<3x3x16xbf16>
    %152 = vector.shape_cast %151 : vector<3x3x16xbf16> to vector<9x16xbf16>
    %c0_123 = arith.constant 0 : index
    %c0_124 = arith.constant 0 : index
    %c0_125 = arith.constant 0 : index
    %153 = vector.load %arg6[%c0_123, %c0_124, %c0_125] : memref<16x16x32xbf16, #tpu.memory_space<vmem>>, vector<1x16x32xbf16>
    %154 = vector.shape_cast %153 : vector<1x16x32xbf16> to vector<16x32xbf16>
    %cst_126 = arith.constant dense<0.000000e+00> : vector<9x32xf32>
    %155 = tpu.matmul %152, %154, %cst_126 {dimension_numbers = #tpu.dot_dimension_numbers<[1], [0], [0], [1], [0, 0, 1, 1], [], []>} : vector<9x16xbf16>, vector<16x32xbf16>, vector<9x32xf32> -> vector<9x32xf32>
    %156 = vector.extract_strided_slice %146 {offsets = [0, 0, 0], sizes = [3, 3, 16], strides = [1, 1, 1]} : vector<4x4x16xbf16> to vector<3x3x16xbf16>
    %157 = vector.shape_cast %156 : vector<3x3x16xbf16> to vector<9x16xbf16>
    %c1_127 = arith.constant 1 : index
    %c0_128 = arith.constant 0 : index
    %c0_129 = arith.constant 0 : index
    %158 = vector.load %arg6[%c1_127, %c0_128, %c0_129] : memref<16x16x32xbf16, #tpu.memory_space<vmem>>, vector<1x16x32xbf16>
    %159 = vector.shape_cast %158 : vector<1x16x32xbf16> to vector<16x32xbf16>
    %cst_130 = arith.constant dense<0.000000e+00> : vector<9x32xf32>
    %160 = tpu.matmul %157, %159, %cst_130 {dimension_numbers = #tpu.dot_dimension_numbers<[1], [0], [0], [1], [0, 0, 1, 1], [], []>} : vector<9x16xbf16>, vector<16x32xbf16>, vector<9x32xf32> -> vector<9x32xf32>
    %161 = arith.addf %155, %160 : vector<9x32xf32>
    %162 = vector.extract_strided_slice %144 {offsets = [0, 1, 0], sizes = [3, 3, 16], strides = [1, 1, 1]} : vector<4x4x16xbf16> to vector<3x3x16xbf16>
    %163 = vector.shape_cast %162 : vector<3x3x16xbf16> to vector<9x16xbf16>
    %c2_131 = arith.constant 2 : index
    %c0_132 = arith.constant 0 : index
    %c0_133 = arith.constant 0 : index
    %164 = vector.load %arg6[%c2_131, %c0_132, %c0_133] : memref<16x16x32xbf16, #tpu.memory_space<vmem>>, vector<1x16x32xbf16>
    %165 = vector.shape_cast %164 : vector<1x16x32xbf16> to vector<16x32xbf16>
    %cst_134 = arith.constant dense<0.000000e+00> : vector<9x32xf32>
    %166 = tpu.matmul %163, %165, %cst_134 {dimension_numbers = #tpu.dot_dimension_numbers<[1], [0], [0], [1], [0, 0, 1, 1], [], []>} : vector<9x16xbf16>, vector<16x32xbf16>, vector<9x32xf32> -> vector<9x32xf32>
    %167 = arith.addf %161, %166 : vector<9x32xf32>
    %168 = vector.extract_strided_slice %146 {offsets = [0, 1, 0], sizes = [3, 3, 16], strides = [1, 1, 1]} : vector<4x4x16xbf16> to vector<3x3x16xbf16>
    %169 = vector.shape_cast %168 : vector<3x3x16xbf16> to vector<9x16xbf16>
    %c3_135 = arith.constant 3 : index
    %c0_136 = arith.constant 0 : index
    %c0_137 = arith.constant 0 : index
    %170 = vector.load %arg6[%c3_135, %c0_136, %c0_137] : memref<16x16x32xbf16, #tpu.memory_space<vmem>>, vector<1x16x32xbf16>
    %171 = vector.shape_cast %170 : vector<1x16x32xbf16> to vector<16x32xbf16>
    %cst_138 = arith.constant dense<0.000000e+00> : vector<9x32xf32>
    %172 = tpu.matmul %169, %171, %cst_138 {dimension_numbers = #tpu.dot_dimension_numbers<[1], [0], [0], [1], [0, 0, 1, 1], [], []>} : vector<9x16xbf16>, vector<16x32xbf16>, vector<9x32xf32> -> vector<9x32xf32>
    %173 = arith.addf %167, %172 : vector<9x32xf32>
    %174 = vector.extract_strided_slice %148 {offsets = [0, 0, 0], sizes = [3, 3, 16], strides = [1, 1, 1]} : vector<4x4x16xbf16> to vector<3x3x16xbf16>
    %175 = vector.shape_cast %174 : vector<3x3x16xbf16> to vector<9x16xbf16>
    %c4_139 = arith.constant 4 : index
    %c0_140 = arith.constant 0 : index
    %c0_141 = arith.constant 0 : index
    %176 = vector.load %arg6[%c4_139, %c0_140, %c0_141] : memref<16x16x32xbf16, #tpu.memory_space<vmem>>, vector<1x16x32xbf16>
    %177 = vector.shape_cast %176 : vector<1x16x32xbf16> to vector<16x32xbf16>
    %cst_142 = arith.constant dense<0.000000e+00> : vector<9x32xf32>
    %178 = tpu.matmul %175, %177, %cst_142 {dimension_numbers = #tpu.dot_dimension_numbers<[1], [0], [0], [1], [0, 0, 1, 1], [], []>} : vector<9x16xbf16>, vector<16x32xbf16>, vector<9x32xf32> -> vector<9x32xf32>
    %179 = arith.addf %173, %178 : vector<9x32xf32>
    %180 = vector.extract_strided_slice %150 {offsets = [0, 0, 0], sizes = [3, 3, 16], strides = [1, 1, 1]} : vector<4x4x16xbf16> to vector<3x3x16xbf16>
    %181 = vector.shape_cast %180 : vector<3x3x16xbf16> to vector<9x16xbf16>
    %c5_143 = arith.constant 5 : index
    %c0_144 = arith.constant 0 : index
    %c0_145 = arith.constant 0 : index
    %182 = vector.load %arg6[%c5_143, %c0_144, %c0_145] : memref<16x16x32xbf16, #tpu.memory_space<vmem>>, vector<1x16x32xbf16>
    %183 = vector.shape_cast %182 : vector<1x16x32xbf16> to vector<16x32xbf16>
    %cst_146 = arith.constant dense<0.000000e+00> : vector<9x32xf32>
    %184 = tpu.matmul %181, %183, %cst_146 {dimension_numbers = #tpu.dot_dimension_numbers<[1], [0], [0], [1], [0, 0, 1, 1], [], []>} : vector<9x16xbf16>, vector<16x32xbf16>, vector<9x32xf32> -> vector<9x32xf32>
    %185 = arith.addf %179, %184 : vector<9x32xf32>
    %186 = vector.extract_strided_slice %148 {offsets = [0, 1, 0], sizes = [3, 3, 16], strides = [1, 1, 1]} : vector<4x4x16xbf16> to vector<3x3x16xbf16>
    %187 = vector.shape_cast %186 : vector<3x3x16xbf16> to vector<9x16xbf16>
    %c6_147 = arith.constant 6 : index
    %c0_148 = arith.constant 0 : index
    %c0_149 = arith.constant 0 : index
    %188 = vector.load %arg6[%c6_147, %c0_148, %c0_149] : memref<16x16x32xbf16, #tpu.memory_space<vmem>>, vector<1x16x32xbf16>
    %189 = vector.shape_cast %188 : vector<1x16x32xbf16> to vector<16x32xbf16>
    %cst_150 = arith.constant dense<0.000000e+00> : vector<9x32xf32>
    %190 = tpu.matmul %187, %189, %cst_150 {dimension_numbers = #tpu.dot_dimension_numbers<[1], [0], [0], [1], [0, 0, 1, 1], [], []>} : vector<9x16xbf16>, vector<16x32xbf16>, vector<9x32xf32> -> vector<9x32xf32>
    %191 = arith.addf %185, %190 : vector<9x32xf32>
    %192 = vector.extract_strided_slice %150 {offsets = [0, 1, 0], sizes = [3, 3, 16], strides = [1, 1, 1]} : vector<4x4x16xbf16> to vector<3x3x16xbf16>
    %193 = vector.shape_cast %192 : vector<3x3x16xbf16> to vector<9x16xbf16>
    %c7_151 = arith.constant 7 : index
    %c0_152 = arith.constant 0 : index
    %c0_153 = arith.constant 0 : index
    %194 = vector.load %arg6[%c7_151, %c0_152, %c0_153] : memref<16x16x32xbf16, #tpu.memory_space<vmem>>, vector<1x16x32xbf16>
    %195 = vector.shape_cast %194 : vector<1x16x32xbf16> to vector<16x32xbf16>
    %cst_154 = arith.constant dense<0.000000e+00> : vector<9x32xf32>
    %196 = tpu.matmul %193, %195, %cst_154 {dimension_numbers = #tpu.dot_dimension_numbers<[1], [0], [0], [1], [0, 0, 1, 1], [], []>} : vector<9x16xbf16>, vector<16x32xbf16>, vector<9x32xf32> -> vector<9x32xf32>
    %197 = arith.addf %191, %196 : vector<9x32xf32>
    %198 = vector.extract_strided_slice %144 {offsets = [1, 0, 0], sizes = [3, 3, 16], strides = [1, 1, 1]} : vector<4x4x16xbf16> to vector<3x3x16xbf16>
    %199 = vector.shape_cast %198 : vector<3x3x16xbf16> to vector<9x16xbf16>
    %c8_155 = arith.constant 8 : index
    %c0_156 = arith.constant 0 : index
    %c0_157 = arith.constant 0 : index
    %200 = vector.load %arg6[%c8_155, %c0_156, %c0_157] : memref<16x16x32xbf16, #tpu.memory_space<vmem>>, vector<1x16x32xbf16>
    %201 = vector.shape_cast %200 : vector<1x16x32xbf16> to vector<16x32xbf16>
    %cst_158 = arith.constant dense<0.000000e+00> : vector<9x32xf32>
    %202 = tpu.matmul %199, %201, %cst_158 {dimension_numbers = #tpu.dot_dimension_numbers<[1], [0], [0], [1], [0, 0, 1, 1], [], []>} : vector<9x16xbf16>, vector<16x32xbf16>, vector<9x32xf32> -> vector<9x32xf32>
    %203 = arith.addf %197, %202 : vector<9x32xf32>
    %204 = vector.extract_strided_slice %146 {offsets = [1, 0, 0], sizes = [3, 3, 16], strides = [1, 1, 1]} : vector<4x4x16xbf16> to vector<3x3x16xbf16>
    %205 = vector.shape_cast %204 : vector<3x3x16xbf16> to vector<9x16xbf16>
    %c9_159 = arith.constant 9 : index
    %c0_160 = arith.constant 0 : index
    %c0_161 = arith.constant 0 : index
    %206 = vector.load %arg6[%c9_159, %c0_160, %c0_161] : memref<16x16x32xbf16, #tpu.memory_space<vmem>>, vector<1x16x32xbf16>
    %207 = vector.shape_cast %206 : vector<1x16x32xbf16> to vector<16x32xbf16>
    %cst_162 = arith.constant dense<0.000000e+00> : vector<9x32xf32>
    %208 = tpu.matmul %205, %207, %cst_162 {dimension_numbers = #tpu.dot_dimension_numbers<[1], [0], [0], [1], [0, 0, 1, 1], [], []>} : vector<9x16xbf16>, vector<16x32xbf16>, vector<9x32xf32> -> vector<9x32xf32>
    %209 = arith.addf %203, %208 : vector<9x32xf32>
    %210 = vector.extract_strided_slice %144 {offsets = [1, 1, 0], sizes = [3, 3, 16], strides = [1, 1, 1]} : vector<4x4x16xbf16> to vector<3x3x16xbf16>
    %211 = vector.shape_cast %210 : vector<3x3x16xbf16> to vector<9x16xbf16>
    %c10_163 = arith.constant 10 : index
    %c0_164 = arith.constant 0 : index
    %c0_165 = arith.constant 0 : index
    %212 = vector.load %arg6[%c10_163, %c0_164, %c0_165] : memref<16x16x32xbf16, #tpu.memory_space<vmem>>, vector<1x16x32xbf16>
    %213 = vector.shape_cast %212 : vector<1x16x32xbf16> to vector<16x32xbf16>
    %cst_166 = arith.constant dense<0.000000e+00> : vector<9x32xf32>
    %214 = tpu.matmul %211, %213, %cst_166 {dimension_numbers = #tpu.dot_dimension_numbers<[1], [0], [0], [1], [0, 0, 1, 1], [], []>} : vector<9x16xbf16>, vector<16x32xbf16>, vector<9x32xf32> -> vector<9x32xf32>
    %215 = arith.addf %209, %214 : vector<9x32xf32>
    %216 = vector.extract_strided_slice %146 {offsets = [1, 1, 0], sizes = [3, 3, 16], strides = [1, 1, 1]} : vector<4x4x16xbf16> to vector<3x3x16xbf16>
    %217 = vector.shape_cast %216 : vector<3x3x16xbf16> to vector<9x16xbf16>
    %c11_167 = arith.constant 11 : index
    %c0_168 = arith.constant 0 : index
    %c0_169 = arith.constant 0 : index
    %218 = vector.load %arg6[%c11_167, %c0_168, %c0_169] : memref<16x16x32xbf16, #tpu.memory_space<vmem>>, vector<1x16x32xbf16>
    %219 = vector.shape_cast %218 : vector<1x16x32xbf16> to vector<16x32xbf16>
    %cst_170 = arith.constant dense<0.000000e+00> : vector<9x32xf32>
    %220 = tpu.matmul %217, %219, %cst_170 {dimension_numbers = #tpu.dot_dimension_numbers<[1], [0], [0], [1], [0, 0, 1, 1], [], []>} : vector<9x16xbf16>, vector<16x32xbf16>, vector<9x32xf32> -> vector<9x32xf32>
    %221 = arith.addf %215, %220 : vector<9x32xf32>
    %222 = vector.extract_strided_slice %148 {offsets = [1, 0, 0], sizes = [3, 3, 16], strides = [1, 1, 1]} : vector<4x4x16xbf16> to vector<3x3x16xbf16>
    %223 = vector.shape_cast %222 : vector<3x3x16xbf16> to vector<9x16xbf16>
    %c12_171 = arith.constant 12 : index
    %c0_172 = arith.constant 0 : index
    %c0_173 = arith.constant 0 : index
    %224 = vector.load %arg6[%c12_171, %c0_172, %c0_173] : memref<16x16x32xbf16, #tpu.memory_space<vmem>>, vector<1x16x32xbf16>
    %225 = vector.shape_cast %224 : vector<1x16x32xbf16> to vector<16x32xbf16>
    %cst_174 = arith.constant dense<0.000000e+00> : vector<9x32xf32>
    %226 = tpu.matmul %223, %225, %cst_174 {dimension_numbers = #tpu.dot_dimension_numbers<[1], [0], [0], [1], [0, 0, 1, 1], [], []>} : vector<9x16xbf16>, vector<16x32xbf16>, vector<9x32xf32> -> vector<9x32xf32>
    %227 = arith.addf %221, %226 : vector<9x32xf32>
    %228 = vector.extract_strided_slice %150 {offsets = [1, 0, 0], sizes = [3, 3, 16], strides = [1, 1, 1]} : vector<4x4x16xbf16> to vector<3x3x16xbf16>
    %229 = vector.shape_cast %228 : vector<3x3x16xbf16> to vector<9x16xbf16>
    %c13_175 = arith.constant 13 : index
    %c0_176 = arith.constant 0 : index
    %c0_177 = arith.constant 0 : index
    %230 = vector.load %arg6[%c13_175, %c0_176, %c0_177] : memref<16x16x32xbf16, #tpu.memory_space<vmem>>, vector<1x16x32xbf16>
    %231 = vector.shape_cast %230 : vector<1x16x32xbf16> to vector<16x32xbf16>
    %cst_178 = arith.constant dense<0.000000e+00> : vector<9x32xf32>
    %232 = tpu.matmul %229, %231, %cst_178 {dimension_numbers = #tpu.dot_dimension_numbers<[1], [0], [0], [1], [0, 0, 1, 1], [], []>} : vector<9x16xbf16>, vector<16x32xbf16>, vector<9x32xf32> -> vector<9x32xf32>
    %233 = arith.addf %227, %232 : vector<9x32xf32>
    %234 = vector.extract_strided_slice %148 {offsets = [1, 1, 0], sizes = [3, 3, 16], strides = [1, 1, 1]} : vector<4x4x16xbf16> to vector<3x3x16xbf16>
    %235 = vector.shape_cast %234 : vector<3x3x16xbf16> to vector<9x16xbf16>
    %c14_179 = arith.constant 14 : index
    %c0_180 = arith.constant 0 : index
    %c0_181 = arith.constant 0 : index
    %236 = vector.load %arg6[%c14_179, %c0_180, %c0_181] : memref<16x16x32xbf16, #tpu.memory_space<vmem>>, vector<1x16x32xbf16>
    %237 = vector.shape_cast %236 : vector<1x16x32xbf16> to vector<16x32xbf16>
    %cst_182 = arith.constant dense<0.000000e+00> : vector<9x32xf32>
    %238 = tpu.matmul %235, %237, %cst_182 {dimension_numbers = #tpu.dot_dimension_numbers<[1], [0], [0], [1], [0, 0, 1, 1], [], []>} : vector<9x16xbf16>, vector<16x32xbf16>, vector<9x32xf32> -> vector<9x32xf32>
    %239 = arith.addf %233, %238 : vector<9x32xf32>
    %240 = vector.extract_strided_slice %150 {offsets = [1, 1, 0], sizes = [3, 3, 16], strides = [1, 1, 1]} : vector<4x4x16xbf16> to vector<3x3x16xbf16>
    %241 = vector.shape_cast %240 : vector<3x3x16xbf16> to vector<9x16xbf16>
    %c15_183 = arith.constant 15 : index
    %c0_184 = arith.constant 0 : index
    %c0_185 = arith.constant 0 : index
    %242 = vector.load %arg6[%c15_183, %c0_184, %c0_185] : memref<16x16x32xbf16, #tpu.memory_space<vmem>>, vector<1x16x32xbf16>
    %243 = vector.shape_cast %242 : vector<1x16x32xbf16> to vector<16x32xbf16>
    %cst_186 = arith.constant dense<0.000000e+00> : vector<9x32xf32>
    %244 = tpu.matmul %241, %243, %cst_186 {dimension_numbers = #tpu.dot_dimension_numbers<[1], [0], [0], [1], [0, 0, 1, 1], [], []>} : vector<9x16xbf16>, vector<16x32xbf16>, vector<9x32xf32> -> vector<9x32xf32>
    %245 = arith.addf %239, %244 : vector<9x32xf32>
    %c0_187 = arith.constant 0 : index
    %c0_188 = arith.constant 0 : index
    %246 = vector.load %arg7[%c0_187, %c0_188] : memref<1x32xf32, #tpu.memory_space<vmem>>, vector<1x32xf32>
    %247 = vector.broadcast %246 : vector<1x32xf32> to vector<9x32xf32>
    %248 = arith.addf %245, %247 : vector<9x32xf32>
    %cst_189 = arith.constant 0.000000e+00 : f32
    %249 = vector.broadcast %cst_189 : f32 to vector<9x32xf32>
    %250 = arith.cmpf oge, %248, %249 : vector<9x32xf32>
    %cst_190 = arith.constant 2.000000e-01 : f32
    %251 = vector.broadcast %cst_190 : f32 to vector<9x32xf32>
    %252 = arith.mulf %251, %248 : vector<9x32xf32>
    %253 = arith.select %250, %248, %252 : vector<9x32xi1>, vector<9x32xf32>
    %cst_191 = arith.constant 0.000000e+00 : f32
    %254 = vector.broadcast %cst_191 : f32 to vector<2x7x32xf32>
    %c0_192 = arith.constant 0 : index
    %c0_193 = arith.constant 0 : index
    %c0_194 = arith.constant 0 : index
    %255 = vector.load %arg17[%c0_192, %c0_193, %c0_194] : memref<7x7x32xf32, #tpu.memory_space<vmem>>, vector<2x7x32xf32>
    tpu.vector_store %arg17[%c0_192, %c0_193, %c0_194], %254 {strides = array<i32>} : memref<7x7x32xf32, #tpu.memory_space<vmem>>, vector<2x7x32xf32>,
    %cst_195 = arith.constant 0.000000e+00 : f32
    %256 = vector.broadcast %cst_195 : f32 to vector<2x7x32xf32>
    %c5_196 = arith.constant 5 : index
    %c0_197 = arith.constant 0 : index
    %c0_198 = arith.constant 0 : index
    %257 = vector.load %arg17[%c5_196, %c0_197, %c0_198] : memref<7x7x32xf32, #tpu.memory_space<vmem>>, vector<2x7x32xf32>
    tpu.vector_store %arg17[%c5_196, %c0_197, %c0_198], %256 {strides = array<i32>} : memref<7x7x32xf32, #tpu.memory_space<vmem>>, vector<2x7x32xf32>,
    %cst_199 = arith.constant 0.000000e+00 : f32
    %258 = vector.broadcast %cst_199 : f32 to vector<3x2x32xf32>
    %c2_200 = arith.constant 2 : index
    %c0_201 = arith.constant 0 : index
    %c0_202 = arith.constant 0 : index
    %259 = vector.load %arg17[%c2_200, %c0_201, %c0_202] : memref<7x7x32xf32, #tpu.memory_space<vmem>>, vector<3x2x32xf32>
    tpu.vector_store %arg17[%c2_200, %c0_201, %c0_202], %258 {strides = array<i32>} : memref<7x7x32xf32, #tpu.memory_space<vmem>>, vector<3x2x32xf32>,
    %cst_203 = arith.constant 0.000000e+00 : f32
    %260 = vector.broadcast %cst_203 : f32 to vector<3x2x32xf32>
    %c2_204 = arith.constant 2 : index
    %c5_205 = arith.constant 5 : index
    %c0_206 = arith.constant 0 : index
    %261 = vector.load %arg17[%c2_204, %c5_205, %c0_206] : memref<7x7x32xf32, #tpu.memory_space<vmem>>, vector<3x2x32xf32>
    tpu.vector_store %arg17[%c2_204, %c5_205, %c0_206], %260 {strides = array<i32>} : memref<7x7x32xf32, #tpu.memory_space<vmem>>, vector<3x2x32xf32>,
    %262 = vector.shape_cast %253 : vector<9x32xf32> to vector<3x3x32xf32>
    %c2_207 = arith.constant 2 : index
    %c2_208 = arith.constant 2 : index
    %c0_209 = arith.constant 0 : index
    %263 = vector.load %arg17[%c2_207, %c2_208, %c0_209] : memref<7x7x32xf32, #tpu.memory_space<vmem>>, vector<3x3x32xf32>
    tpu.vector_store %arg17[%c2_207, %c2_208, %c0_209], %262 {strides = array<i32>} : memref<7x7x32xf32, #tpu.memory_space<vmem>>, vector<3x3x32xf32>,
    %c0_210 = arith.constant 0 : index
    %c0_211 = arith.constant 0 : index
    %c0_212 = arith.constant 0 : index
    %264 = tpu.strided_load %arg17[%c0_210, %c0_211, %c0_212] {strides = array<i32: 2, 2, 1>} : memref<7x7x32xf32, #tpu.memory_space<vmem>>, vector<3x3x32xf32>
    %265 = arith.truncf %264 : vector<3x3x32xf32> to vector<3x3x32xbf16>
    %c0_213 = arith.constant 0 : index
    %c1_214 = arith.constant 1 : index
    %c0_215 = arith.constant 0 : index
    %266 = tpu.strided_load %arg17[%c0_213, %c1_214, %c0_215] {strides = array<i32: 2, 2, 1>} : memref<7x7x32xf32, #tpu.memory_space<vmem>>, vector<3x3x32xf32>
    %267 = arith.truncf %266 : vector<3x3x32xf32> to vector<3x3x32xbf16>
    %c1_216 = arith.constant 1 : index
    %c0_217 = arith.constant 0 : index
    %c0_218 = arith.constant 0 : index
    %268 = tpu.strided_load %arg17[%c1_216, %c0_217, %c0_218] {strides = array<i32: 2, 2, 1>} : memref<7x7x32xf32, #tpu.memory_space<vmem>>, vector<3x3x32xf32>
    %269 = arith.truncf %268 : vector<3x3x32xf32> to vector<3x3x32xbf16>
    %c1_219 = arith.constant 1 : index
    %c1_220 = arith.constant 1 : index
    %c0_221 = arith.constant 0 : index
    %270 = tpu.strided_load %arg17[%c1_219, %c1_220, %c0_221] {strides = array<i32: 2, 2, 1>} : memref<7x7x32xf32, #tpu.memory_space<vmem>>, vector<3x3x32xf32>
    %271 = arith.truncf %270 : vector<3x3x32xf32> to vector<3x3x32xbf16>
    %272 = vector.extract_strided_slice %265 {offsets = [0, 0, 0], sizes = [2, 2, 32], strides = [1, 1, 1]} : vector<3x3x32xbf16> to vector<2x2x32xbf16>
    %273 = vector.shape_cast %272 : vector<2x2x32xbf16> to vector<4x32xbf16>
    %c0_222 = arith.constant 0 : index
    %c0_223 = arith.constant 0 : index
    %c0_224 = arith.constant 0 : index
    %274 = vector.load %arg8[%c0_222, %c0_223, %c0_224] : memref<16x32x64xbf16, #tpu.memory_space<vmem>>, vector<1x32x64xbf16>
    %275 = vector.shape_cast %274 : vector<1x32x64xbf16> to vector<32x64xbf16>
    %cst_225 = arith.constant dense<0.000000e+00> : vector<4x64xf32>
    %276 = tpu.matmul %273, %275, %cst_225 {dimension_numbers = #tpu.dot_dimension_numbers<[1], [0], [0], [1], [0, 0, 1, 1], [], []>} : vector<4x32xbf16>, vector<32x64xbf16>, vector<4x64xf32> -> vector<4x64xf32>
    %277 = vector.extract_strided_slice %267 {offsets = [0, 0, 0], sizes = [2, 2, 32], strides = [1, 1, 1]} : vector<3x3x32xbf16> to vector<2x2x32xbf16>
    %278 = vector.shape_cast %277 : vector<2x2x32xbf16> to vector<4x32xbf16>
    %c1_226 = arith.constant 1 : index
    %c0_227 = arith.constant 0 : index
    %c0_228 = arith.constant 0 : index
    %279 = vector.load %arg8[%c1_226, %c0_227, %c0_228] : memref<16x32x64xbf16, #tpu.memory_space<vmem>>, vector<1x32x64xbf16>
    %280 = vector.shape_cast %279 : vector<1x32x64xbf16> to vector<32x64xbf16>
    %cst_229 = arith.constant dense<0.000000e+00> : vector<4x64xf32>
    %281 = tpu.matmul %278, %280, %cst_229 {dimension_numbers = #tpu.dot_dimension_numbers<[1], [0], [0], [1], [0, 0, 1, 1], [], []>} : vector<4x32xbf16>, vector<32x64xbf16>, vector<4x64xf32> -> vector<4x64xf32>
    %282 = arith.addf %276, %281 : vector<4x64xf32>
    %283 = vector.extract_strided_slice %265 {offsets = [0, 1, 0], sizes = [2, 2, 32], strides = [1, 1, 1]} : vector<3x3x32xbf16> to vector<2x2x32xbf16>
    %284 = vector.shape_cast %283 : vector<2x2x32xbf16> to vector<4x32xbf16>
    %c2_230 = arith.constant 2 : index
    %c0_231 = arith.constant 0 : index
    %c0_232 = arith.constant 0 : index
    %285 = vector.load %arg8[%c2_230, %c0_231, %c0_232] : memref<16x32x64xbf16, #tpu.memory_space<vmem>>, vector<1x32x64xbf16>
    %286 = vector.shape_cast %285 : vector<1x32x64xbf16> to vector<32x64xbf16>
    %cst_233 = arith.constant dense<0.000000e+00> : vector<4x64xf32>
    %287 = tpu.matmul %284, %286, %cst_233 {dimension_numbers = #tpu.dot_dimension_numbers<[1], [0], [0], [1], [0, 0, 1, 1], [], []>} : vector<4x32xbf16>, vector<32x64xbf16>, vector<4x64xf32> -> vector<4x64xf32>
    %288 = arith.addf %282, %287 : vector<4x64xf32>
    %289 = vector.extract_strided_slice %267 {offsets = [0, 1, 0], sizes = [2, 2, 32], strides = [1, 1, 1]} : vector<3x3x32xbf16> to vector<2x2x32xbf16>
    %290 = vector.shape_cast %289 : vector<2x2x32xbf16> to vector<4x32xbf16>
    %c3_234 = arith.constant 3 : index
    %c0_235 = arith.constant 0 : index
    %c0_236 = arith.constant 0 : index
    %291 = vector.load %arg8[%c3_234, %c0_235, %c0_236] : memref<16x32x64xbf16, #tpu.memory_space<vmem>>, vector<1x32x64xbf16>
    %292 = vector.shape_cast %291 : vector<1x32x64xbf16> to vector<32x64xbf16>
    %cst_237 = arith.constant dense<0.000000e+00> : vector<4x64xf32>
    %293 = tpu.matmul %290, %292, %cst_237 {dimension_numbers = #tpu.dot_dimension_numbers<[1], [0], [0], [1], [0, 0, 1, 1], [], []>} : vector<4x32xbf16>, vector<32x64xbf16>, vector<4x64xf32> -> vector<4x64xf32>
    %294 = arith.addf %288, %293 : vector<4x64xf32>
    %295 = vector.extract_strided_slice %269 {offsets = [0, 0, 0], sizes = [2, 2, 32], strides = [1, 1, 1]} : vector<3x3x32xbf16> to vector<2x2x32xbf16>
    %296 = vector.shape_cast %295 : vector<2x2x32xbf16> to vector<4x32xbf16>
    %c4_238 = arith.constant 4 : index
    %c0_239 = arith.constant 0 : index
    %c0_240 = arith.constant 0 : index
    %297 = vector.load %arg8[%c4_238, %c0_239, %c0_240] : memref<16x32x64xbf16, #tpu.memory_space<vmem>>, vector<1x32x64xbf16>
    %298 = vector.shape_cast %297 : vector<1x32x64xbf16> to vector<32x64xbf16>
    %cst_241 = arith.constant dense<0.000000e+00> : vector<4x64xf32>
    %299 = tpu.matmul %296, %298, %cst_241 {dimension_numbers = #tpu.dot_dimension_numbers<[1], [0], [0], [1], [0, 0, 1, 1], [], []>} : vector<4x32xbf16>, vector<32x64xbf16>, vector<4x64xf32> -> vector<4x64xf32>
    %300 = arith.addf %294, %299 : vector<4x64xf32>
    %301 = vector.extract_strided_slice %271 {offsets = [0, 0, 0], sizes = [2, 2, 32], strides = [1, 1, 1]} : vector<3x3x32xbf16> to vector<2x2x32xbf16>
    %302 = vector.shape_cast %301 : vector<2x2x32xbf16> to vector<4x32xbf16>
    %c5_242 = arith.constant 5 : index
    %c0_243 = arith.constant 0 : index
    %c0_244 = arith.constant 0 : index
    %303 = vector.load %arg8[%c5_242, %c0_243, %c0_244] : memref<16x32x64xbf16, #tpu.memory_space<vmem>>, vector<1x32x64xbf16>
    %304 = vector.shape_cast %303 : vector<1x32x64xbf16> to vector<32x64xbf16>
    %cst_245 = arith.constant dense<0.000000e+00> : vector<4x64xf32>
    %305 = tpu.matmul %302, %304, %cst_245 {dimension_numbers = #tpu.dot_dimension_numbers<[1], [0], [0], [1], [0, 0, 1, 1], [], []>} : vector<4x32xbf16>, vector<32x64xbf16>, vector<4x64xf32> -> vector<4x64xf32>
    %306 = arith.addf %300, %305 : vector<4x64xf32>
    %307 = vector.extract_strided_slice %269 {offsets = [0, 1, 0], sizes = [2, 2, 32], strides = [1, 1, 1]} : vector<3x3x32xbf16> to vector<2x2x32xbf16>
    %308 = vector.shape_cast %307 : vector<2x2x32xbf16> to vector<4x32xbf16>
    %c6_246 = arith.constant 6 : index
    %c0_247 = arith.constant 0 : index
    %c0_248 = arith.constant 0 : index
    %309 = vector.load %arg8[%c6_246, %c0_247, %c0_248] : memref<16x32x64xbf16, #tpu.memory_space<vmem>>, vector<1x32x64xbf16>
    %310 = vector.shape_cast %309 : vector<1x32x64xbf16> to vector<32x64xbf16>
    %cst_249 = arith.constant dense<0.000000e+00> : vector<4x64xf32>
    %311 = tpu.matmul %308, %310, %cst_249 {dimension_numbers = #tpu.dot_dimension_numbers<[1], [0], [0], [1], [0, 0, 1, 1], [], []>} : vector<4x32xbf16>, vector<32x64xbf16>, vector<4x64xf32> -> vector<4x64xf32>
    %312 = arith.addf %306, %311 : vector<4x64xf32>
    %313 = vector.extract_strided_slice %271 {offsets = [0, 1, 0], sizes = [2, 2, 32], strides = [1, 1, 1]} : vector<3x3x32xbf16> to vector<2x2x32xbf16>
    %314 = vector.shape_cast %313 : vector<2x2x32xbf16> to vector<4x32xbf16>
    %c7_250 = arith.constant 7 : index
    %c0_251 = arith.constant 0 : index
    %c0_252 = arith.constant 0 : index
    %315 = vector.load %arg8[%c7_250, %c0_251, %c0_252] : memref<16x32x64xbf16, #tpu.memory_space<vmem>>, vector<1x32x64xbf16>
    %316 = vector.shape_cast %315 : vector<1x32x64xbf16> to vector<32x64xbf16>
    %cst_253 = arith.constant dense<0.000000e+00> : vector<4x64xf32>
    %317 = tpu.matmul %314, %316, %cst_253 {dimension_numbers = #tpu.dot_dimension_numbers<[1], [0], [0], [1], [0, 0, 1, 1], [], []>} : vector<4x32xbf16>, vector<32x64xbf16>, vector<4x64xf32> -> vector<4x64xf32>
    %318 = arith.addf %312, %317 : vector<4x64xf32>
    %319 = vector.extract_strided_slice %265 {offsets = [1, 0, 0], sizes = [2, 2, 32], strides = [1, 1, 1]} : vector<3x3x32xbf16> to vector<2x2x32xbf16>
    %320 = vector.shape_cast %319 : vector<2x2x32xbf16> to vector<4x32xbf16>
    %c8_254 = arith.constant 8 : index
    %c0_255 = arith.constant 0 : index
    %c0_256 = arith.constant 0 : index
    %321 = vector.load %arg8[%c8_254, %c0_255, %c0_256] : memref<16x32x64xbf16, #tpu.memory_space<vmem>>, vector<1x32x64xbf16>
    %322 = vector.shape_cast %321 : vector<1x32x64xbf16> to vector<32x64xbf16>
    %cst_257 = arith.constant dense<0.000000e+00> : vector<4x64xf32>
    %323 = tpu.matmul %320, %322, %cst_257 {dimension_numbers = #tpu.dot_dimension_numbers<[1], [0], [0], [1], [0, 0, 1, 1], [], []>} : vector<4x32xbf16>, vector<32x64xbf16>, vector<4x64xf32> -> vector<4x64xf32>
    %324 = arith.addf %318, %323 : vector<4x64xf32>
    %325 = vector.extract_strided_slice %267 {offsets = [1, 0, 0], sizes = [2, 2, 32], strides = [1, 1, 1]} : vector<3x3x32xbf16> to vector<2x2x32xbf16>
    %326 = vector.shape_cast %325 : vector<2x2x32xbf16> to vector<4x32xbf16>
    %c9_258 = arith.constant 9 : index
    %c0_259 = arith.constant 0 : index
    %c0_260 = arith.constant 0 : index
    %327 = vector.load %arg8[%c9_258, %c0_259, %c0_260] : memref<16x32x64xbf16, #tpu.memory_space<vmem>>, vector<1x32x64xbf16>
    %328 = vector.shape_cast %327 : vector<1x32x64xbf16> to vector<32x64xbf16>
    %cst_261 = arith.constant dense<0.000000e+00> : vector<4x64xf32>
    %329 = tpu.matmul %326, %328, %cst_261 {dimension_numbers = #tpu.dot_dimension_numbers<[1], [0], [0], [1], [0, 0, 1, 1], [], []>} : vector<4x32xbf16>, vector<32x64xbf16>, vector<4x64xf32> -> vector<4x64xf32>
    %330 = arith.addf %324, %329 : vector<4x64xf32>
    %331 = vector.extract_strided_slice %265 {offsets = [1, 1, 0], sizes = [2, 2, 32], strides = [1, 1, 1]} : vector<3x3x32xbf16> to vector<2x2x32xbf16>
    %332 = vector.shape_cast %331 : vector<2x2x32xbf16> to vector<4x32xbf16>
    %c10_262 = arith.constant 10 : index
    %c0_263 = arith.constant 0 : index
    %c0_264 = arith.constant 0 : index
    %333 = vector.load %arg8[%c10_262, %c0_263, %c0_264] : memref<16x32x64xbf16, #tpu.memory_space<vmem>>, vector<1x32x64xbf16>
    %334 = vector.shape_cast %333 : vector<1x32x64xbf16> to vector<32x64xbf16>
    %cst_265 = arith.constant dense<0.000000e+00> : vector<4x64xf32>
    %335 = tpu.matmul %332, %334, %cst_265 {dimension_numbers = #tpu.dot_dimension_numbers<[1], [0], [0], [1], [0, 0, 1, 1], [], []>} : vector<4x32xbf16>, vector<32x64xbf16>, vector<4x64xf32> -> vector<4x64xf32>
    %336 = arith.addf %330, %335 : vector<4x64xf32>
    %337 = vector.extract_strided_slice %267 {offsets = [1, 1, 0], sizes = [2, 2, 32], strides = [1, 1, 1]} : vector<3x3x32xbf16> to vector<2x2x32xbf16>
    %338 = vector.shape_cast %337 : vector<2x2x32xbf16> to vector<4x32xbf16>
    %c11_266 = arith.constant 11 : index
    %c0_267 = arith.constant 0 : index
    %c0_268 = arith.constant 0 : index
    %339 = vector.load %arg8[%c11_266, %c0_267, %c0_268] : memref<16x32x64xbf16, #tpu.memory_space<vmem>>, vector<1x32x64xbf16>
    %340 = vector.shape_cast %339 : vector<1x32x64xbf16> to vector<32x64xbf16>
    %cst_269 = arith.constant dense<0.000000e+00> : vector<4x64xf32>
    %341 = tpu.matmul %338, %340, %cst_269 {dimension_numbers = #tpu.dot_dimension_numbers<[1], [0], [0], [1], [0, 0, 1, 1], [], []>} : vector<4x32xbf16>, vector<32x64xbf16>, vector<4x64xf32> -> vector<4x64xf32>
    %342 = arith.addf %336, %341 : vector<4x64xf32>
    %343 = vector.extract_strided_slice %269 {offsets = [1, 0, 0], sizes = [2, 2, 32], strides = [1, 1, 1]} : vector<3x3x32xbf16> to vector<2x2x32xbf16>
    %344 = vector.shape_cast %343 : vector<2x2x32xbf16> to vector<4x32xbf16>
    %c12_270 = arith.constant 12 : index
    %c0_271 = arith.constant 0 : index
    %c0_272 = arith.constant 0 : index
    %345 = vector.load %arg8[%c12_270, %c0_271, %c0_272] : memref<16x32x64xbf16, #tpu.memory_space<vmem>>, vector<1x32x64xbf16>
    %346 = vector.shape_cast %345 : vector<1x32x64xbf16> to vector<32x64xbf16>
    %cst_273 = arith.constant dense<0.000000e+00> : vector<4x64xf32>
    %347 = tpu.matmul %344, %346, %cst_273 {dimension_numbers = #tpu.dot_dimension_numbers<[1], [0], [0], [1], [0, 0, 1, 1], [], []>} : vector<4x32xbf16>, vector<32x64xbf16>, vector<4x64xf32> -> vector<4x64xf32>
    %348 = arith.addf %342, %347 : vector<4x64xf32>
    %349 = vector.extract_strided_slice %271 {offsets = [1, 0, 0], sizes = [2, 2, 32], strides = [1, 1, 1]} : vector<3x3x32xbf16> to vector<2x2x32xbf16>
    %350 = vector.shape_cast %349 : vector<2x2x32xbf16> to vector<4x32xbf16>
    %c13_274 = arith.constant 13 : index
    %c0_275 = arith.constant 0 : index
    %c0_276 = arith.constant 0 : index
    %351 = vector.load %arg8[%c13_274, %c0_275, %c0_276] : memref<16x32x64xbf16, #tpu.memory_space<vmem>>, vector<1x32x64xbf16>
    %352 = vector.shape_cast %351 : vector<1x32x64xbf16> to vector<32x64xbf16>
    %cst_277 = arith.constant dense<0.000000e+00> : vector<4x64xf32>
    %353 = tpu.matmul %350, %352, %cst_277 {dimension_numbers = #tpu.dot_dimension_numbers<[1], [0], [0], [1], [0, 0, 1, 1], [], []>} : vector<4x32xbf16>, vector<32x64xbf16>, vector<4x64xf32> -> vector<4x64xf32>
    %354 = arith.addf %348, %353 : vector<4x64xf32>
    %355 = vector.extract_strided_slice %269 {offsets = [1, 1, 0], sizes = [2, 2, 32], strides = [1, 1, 1]} : vector<3x3x32xbf16> to vector<2x2x32xbf16>
    %356 = vector.shape_cast %355 : vector<2x2x32xbf16> to vector<4x32xbf16>
    %c14_278 = arith.constant 14 : index
    %c0_279 = arith.constant 0 : index
    %c0_280 = arith.constant 0 : index
    %357 = vector.load %arg8[%c14_278, %c0_279, %c0_280] : memref<16x32x64xbf16, #tpu.memory_space<vmem>>, vector<1x32x64xbf16>
    %358 = vector.shape_cast %357 : vector<1x32x64xbf16> to vector<32x64xbf16>
    %cst_281 = arith.constant dense<0.000000e+00> : vector<4x64xf32>
    %359 = tpu.matmul %356, %358, %cst_281 {dimension_numbers = #tpu.dot_dimension_numbers<[1], [0], [0], [1], [0, 0, 1, 1], [], []>} : vector<4x32xbf16>, vector<32x64xbf16>, vector<4x64xf32> -> vector<4x64xf32>
    %360 = arith.addf %354, %359 : vector<4x64xf32>
    %361 = vector.extract_strided_slice %271 {offsets = [1, 1, 0], sizes = [2, 2, 32], strides = [1, 1, 1]} : vector<3x3x32xbf16> to vector<2x2x32xbf16>
    %362 = vector.shape_cast %361 : vector<2x2x32xbf16> to vector<4x32xbf16>
    %c15_282 = arith.constant 15 : index
    %c0_283 = arith.constant 0 : index
    %c0_284 = arith.constant 0 : index
    %363 = vector.load %arg8[%c15_282, %c0_283, %c0_284] : memref<16x32x64xbf16, #tpu.memory_space<vmem>>, vector<1x32x64xbf16>
    %364 = vector.shape_cast %363 : vector<1x32x64xbf16> to vector<32x64xbf16>
    %cst_285 = arith.constant dense<0.000000e+00> : vector<4x64xf32>
    %365 = tpu.matmul %362, %364, %cst_285 {dimension_numbers = #tpu.dot_dimension_numbers<[1], [0], [0], [1], [0, 0, 1, 1], [], []>} : vector<4x32xbf16>, vector<32x64xbf16>, vector<4x64xf32> -> vector<4x64xf32>
    %366 = arith.addf %360, %365 : vector<4x64xf32>
    %c0_286 = arith.constant 0 : index
    %c0_287 = arith.constant 0 : index
    %367 = vector.load %arg9[%c0_286, %c0_287] : memref<1x64xf32, #tpu.memory_space<vmem>>, vector<1x64xf32>
    %368 = vector.broadcast %367 : vector<1x64xf32> to vector<4x64xf32>
    %369 = arith.addf %366, %368 : vector<4x64xf32>
    %cst_288 = arith.constant 0.000000e+00 : f32
    %370 = vector.broadcast %cst_288 : f32 to vector<4x64xf32>
    %371 = arith.cmpf oge, %369, %370 : vector<4x64xf32>
    %cst_289 = arith.constant 2.000000e-01 : f32
    %372 = vector.broadcast %cst_289 : f32 to vector<4x64xf32>
    %373 = arith.mulf %372, %369 : vector<4x64xf32>
    %374 = arith.select %371, %369, %373 : vector<4x64xi1>, vector<4x64xf32>
    %cst_290 = arith.constant 0.000000e+00 : f32
    %375 = vector.broadcast %cst_290 : f32 to vector<2x6x64xf32>
    %c0_291 = arith.constant 0 : index
    %c0_292 = arith.constant 0 : index
    %c0_293 = arith.constant 0 : index
    %376 = vector.load %arg18[%c0_291, %c0_292, %c0_293] : memref<6x6x64xf32, #tpu.memory_space<vmem>>, vector<2x6x64xf32>
    tpu.vector_store %arg18[%c0_291, %c0_292, %c0_293], %375 {strides = array<i32>} : memref<6x6x64xf32, #tpu.memory_space<vmem>>, vector<2x6x64xf32>,
    %cst_294 = arith.constant 0.000000e+00 : f32
    %377 = vector.broadcast %cst_294 : f32 to vector<2x6x64xf32>
    %c4_295 = arith.constant 4 : index
    %c0_296 = arith.constant 0 : index
    %c0_297 = arith.constant 0 : index
    %378 = vector.load %arg18[%c4_295, %c0_296, %c0_297] : memref<6x6x64xf32, #tpu.memory_space<vmem>>, vector<2x6x64xf32>
    tpu.vector_store %arg18[%c4_295, %c0_296, %c0_297], %377 {strides = array<i32>} : memref<6x6x64xf32, #tpu.memory_space<vmem>>, vector<2x6x64xf32>,
    %cst_298 = arith.constant 0.000000e+00 : f32
    %379 = vector.broadcast %cst_298 : f32 to vector<2x2x64xf32>
    %c2_299 = arith.constant 2 : index
    %c0_300 = arith.constant 0 : index
    %c0_301 = arith.constant 0 : index
    %380 = vector.load %arg18[%c2_299, %c0_300, %c0_301] : memref<6x6x64xf32, #tpu.memory_space<vmem>>, vector<2x2x64xf32>
    tpu.vector_store %arg18[%c2_299, %c0_300, %c0_301], %379 {strides = array<i32>} : memref<6x6x64xf32, #tpu.memory_space<vmem>>, vector<2x2x64xf32>,
    %cst_302 = arith.constant 0.000000e+00 : f32
    %381 = vector.broadcast %cst_302 : f32 to vector<2x2x64xf32>
    %c2_303 = arith.constant 2 : index
    %c4_304 = arith.constant 4 : index
    %c0_305 = arith.constant 0 : index
    %382 = vector.load %arg18[%c2_303, %c4_304, %c0_305] : memref<6x6x64xf32, #tpu.memory_space<vmem>>, vector<2x2x64xf32>
    tpu.vector_store %arg18[%c2_303, %c4_304, %c0_305], %381 {strides = array<i32>} : memref<6x6x64xf32, #tpu.memory_space<vmem>>, vector<2x2x64xf32>,
    %383 = vector.shape_cast %374 : vector<4x64xf32> to vector<2x2x64xf32>
    %c2_306 = arith.constant 2 : index
    %c2_307 = arith.constant 2 : index
    %c0_308 = arith.constant 0 : index
    %384 = vector.load %arg18[%c2_306, %c2_307, %c0_308] : memref<6x6x64xf32, #tpu.memory_space<vmem>>, vector<2x2x64xf32>
    tpu.vector_store %arg18[%c2_306, %c2_307, %c0_308], %383 {strides = array<i32>} : memref<6x6x64xf32, #tpu.memory_space<vmem>>, vector<2x2x64xf32>,
    %c0_309 = arith.constant 0 : index
    %c0_310 = arith.constant 0 : index
    %c0_311 = arith.constant 0 : index
    %385 = vector.load %arg18[%c0_309, %c0_310, %c0_311] : memref<6x6x64xf32, #tpu.memory_space<vmem>>, vector<6x6x64xf32>
    %386 = arith.truncf %385 : vector<6x6x64xf32> to vector<6x6x64xbf16>
    %387 = vector.extract_strided_slice %386 {offsets = [0, 0, 0], sizes = [3, 3, 64], strides = [1, 1, 1]} : vector<6x6x64xbf16> to vector<3x3x64xbf16>
    %388 = vector.shape_cast %387 : vector<3x3x64xbf16> to vector<9x64xbf16>
    %c0_312 = arith.constant 0 : index
    %c0_313 = arith.constant 0 : index
    %c0_314 = arith.constant 0 : index
    %389 = vector.load %arg10[%c0_312, %c0_313, %c0_314] : memref<16x64x64xbf16, #tpu.memory_space<vmem>>, vector<1x64x64xbf16>
    %390 = vector.shape_cast %389 : vector<1x64x64xbf16> to vector<64x64xbf16>
    %cst_315 = arith.constant dense<0.000000e+00> : vector<9x64xf32>
    %391 = tpu.matmul %388, %390, %cst_315 {dimension_numbers = #tpu.dot_dimension_numbers<[1], [0], [0], [1], [0, 0, 1, 1], [], []>} : vector<9x64xbf16>, vector<64x64xbf16>, vector<9x64xf32> -> vector<9x64xf32>
    %392 = vector.extract_strided_slice %386 {offsets = [0, 1, 0], sizes = [3, 3, 64], strides = [1, 1, 1]} : vector<6x6x64xbf16> to vector<3x3x64xbf16>
    %393 = vector.shape_cast %392 : vector<3x3x64xbf16> to vector<9x64xbf16>
    %c1_316 = arith.constant 1 : index
    %c0_317 = arith.constant 0 : index
    %c0_318 = arith.constant 0 : index
    %394 = vector.load %arg10[%c1_316, %c0_317, %c0_318] : memref<16x64x64xbf16, #tpu.memory_space<vmem>>, vector<1x64x64xbf16>
    %395 = vector.shape_cast %394 : vector<1x64x64xbf16> to vector<64x64xbf16>
    %cst_319 = arith.constant dense<0.000000e+00> : vector<9x64xf32>
    %396 = tpu.matmul %393, %395, %cst_319 {dimension_numbers = #tpu.dot_dimension_numbers<[1], [0], [0], [1], [0, 0, 1, 1], [], []>} : vector<9x64xbf16>, vector<64x64xbf16>, vector<9x64xf32> -> vector<9x64xf32>
    %397 = arith.addf %391, %396 : vector<9x64xf32>
    %398 = vector.extract_strided_slice %386 {offsets = [0, 2, 0], sizes = [3, 3, 64], strides = [1, 1, 1]} : vector<6x6x64xbf16> to vector<3x3x64xbf16>
    %399 = vector.shape_cast %398 : vector<3x3x64xbf16> to vector<9x64xbf16>
    %c2_320 = arith.constant 2 : index
    %c0_321 = arith.constant 0 : index
    %c0_322 = arith.constant 0 : index
    %400 = vector.load %arg10[%c2_320, %c0_321, %c0_322] : memref<16x64x64xbf16, #tpu.memory_space<vmem>>, vector<1x64x64xbf16>
    %401 = vector.shape_cast %400 : vector<1x64x64xbf16> to vector<64x64xbf16>
    %cst_323 = arith.constant dense<0.000000e+00> : vector<9x64xf32>
    %402 = tpu.matmul %399, %401, %cst_323 {dimension_numbers = #tpu.dot_dimension_numbers<[1], [0], [0], [1], [0, 0, 1, 1], [], []>} : vector<9x64xbf16>, vector<64x64xbf16>, vector<9x64xf32> -> vector<9x64xf32>
    %403 = arith.addf %397, %402 : vector<9x64xf32>
    %404 = vector.extract_strided_slice %386 {offsets = [0, 3, 0], sizes = [3, 3, 64], strides = [1, 1, 1]} : vector<6x6x64xbf16> to vector<3x3x64xbf16>
    %405 = vector.shape_cast %404 : vector<3x3x64xbf16> to vector<9x64xbf16>
    %c3_324 = arith.constant 3 : index
    %c0_325 = arith.constant 0 : index
    %c0_326 = arith.constant 0 : index
    %406 = vector.load %arg10[%c3_324, %c0_325, %c0_326] : memref<16x64x64xbf16, #tpu.memory_space<vmem>>, vector<1x64x64xbf16>
    %407 = vector.shape_cast %406 : vector<1x64x64xbf16> to vector<64x64xbf16>
    %cst_327 = arith.constant dense<0.000000e+00> : vector<9x64xf32>
    %408 = tpu.matmul %405, %407, %cst_327 {dimension_numbers = #tpu.dot_dimension_numbers<[1], [0], [0], [1], [0, 0, 1, 1], [], []>} : vector<9x64xbf16>, vector<64x64xbf16>, vector<9x64xf32> -> vector<9x64xf32>
    %409 = arith.addf %403, %408 : vector<9x64xf32>
    %410 = vector.extract_strided_slice %386 {offsets = [1, 0, 0], sizes = [3, 3, 64], strides = [1, 1, 1]} : vector<6x6x64xbf16> to vector<3x3x64xbf16>
    %411 = vector.shape_cast %410 : vector<3x3x64xbf16> to vector<9x64xbf16>
    %c4_328 = arith.constant 4 : index
    %c0_329 = arith.constant 0 : index
    %c0_330 = arith.constant 0 : index
    %412 = vector.load %arg10[%c4_328, %c0_329, %c0_330] : memref<16x64x64xbf16, #tpu.memory_space<vmem>>, vector<1x64x64xbf16>
    %413 = vector.shape_cast %412 : vector<1x64x64xbf16> to vector<64x64xbf16>
    %cst_331 = arith.constant dense<0.000000e+00> : vector<9x64xf32>
    %414 = tpu.matmul %411, %413, %cst_331 {dimension_numbers = #tpu.dot_dimension_numbers<[1], [0], [0], [1], [0, 0, 1, 1], [], []>} : vector<9x64xbf16>, vector<64x64xbf16>, vector<9x64xf32> -> vector<9x64xf32>
    %415 = arith.addf %409, %414 : vector<9x64xf32>
    %416 = vector.extract_strided_slice %386 {offsets = [1, 1, 0], sizes = [3, 3, 64], strides = [1, 1, 1]} : vector<6x6x64xbf16> to vector<3x3x64xbf16>
    %417 = vector.shape_cast %416 : vector<3x3x64xbf16> to vector<9x64xbf16>
    %c5_332 = arith.constant 5 : index
    %c0_333 = arith.constant 0 : index
    %c0_334 = arith.constant 0 : index
    %418 = vector.load %arg10[%c5_332, %c0_333, %c0_334] : memref<16x64x64xbf16, #tpu.memory_space<vmem>>, vector<1x64x64xbf16>
    %419 = vector.shape_cast %418 : vector<1x64x64xbf16> to vector<64x64xbf16>
    %cst_335 = arith.constant dense<0.000000e+00> : vector<9x64xf32>
    %420 = tpu.matmul %417, %419, %cst_335 {dimension_numbers = #tpu.dot_dimension_numbers<[1], [0], [0], [1], [0, 0, 1, 1], [], []>} : vector<9x64xbf16>, vector<64x64xbf16>, vector<9x64xf32> -> vector<9x64xf32>
    %421 = arith.addf %415, %420 : vector<9x64xf32>
    %422 = vector.extract_strided_slice %386 {offsets = [1, 2, 0], sizes = [3, 3, 64], strides = [1, 1, 1]} : vector<6x6x64xbf16> to vector<3x3x64xbf16>
    %423 = vector.shape_cast %422 : vector<3x3x64xbf16> to vector<9x64xbf16>
    %c6_336 = arith.constant 6 : index
    %c0_337 = arith.constant 0 : index
    %c0_338 = arith.constant 0 : index
    %424 = vector.load %arg10[%c6_336, %c0_337, %c0_338] : memref<16x64x64xbf16, #tpu.memory_space<vmem>>, vector<1x64x64xbf16>
    %425 = vector.shape_cast %424 : vector<1x64x64xbf16> to vector<64x64xbf16>
    %cst_339 = arith.constant dense<0.000000e+00> : vector<9x64xf32>
    %426 = tpu.matmul %423, %425, %cst_339 {dimension_numbers = #tpu.dot_dimension_numbers<[1], [0], [0], [1], [0, 0, 1, 1], [], []>} : vector<9x64xbf16>, vector<64x64xbf16>, vector<9x64xf32> -> vector<9x64xf32>
    %427 = arith.addf %421, %426 : vector<9x64xf32>
    %428 = vector.extract_strided_slice %386 {offsets = [1, 3, 0], sizes = [3, 3, 64], strides = [1, 1, 1]} : vector<6x6x64xbf16> to vector<3x3x64xbf16>
    %429 = vector.shape_cast %428 : vector<3x3x64xbf16> to vector<9x64xbf16>
    %c7_340 = arith.constant 7 : index
    %c0_341 = arith.constant 0 : index
    %c0_342 = arith.constant 0 : index
    %430 = vector.load %arg10[%c7_340, %c0_341, %c0_342] : memref<16x64x64xbf16, #tpu.memory_space<vmem>>, vector<1x64x64xbf16>
    %431 = vector.shape_cast %430 : vector<1x64x64xbf16> to vector<64x64xbf16>
    %cst_343 = arith.constant dense<0.000000e+00> : vector<9x64xf32>
    %432 = tpu.matmul %429, %431, %cst_343 {dimension_numbers = #tpu.dot_dimension_numbers<[1], [0], [0], [1], [0, 0, 1, 1], [], []>} : vector<9x64xbf16>, vector<64x64xbf16>, vector<9x64xf32> -> vector<9x64xf32>
    %433 = arith.addf %427, %432 : vector<9x64xf32>
    %434 = vector.extract_strided_slice %386 {offsets = [2, 0, 0], sizes = [3, 3, 64], strides = [1, 1, 1]} : vector<6x6x64xbf16> to vector<3x3x64xbf16>
    %435 = vector.shape_cast %434 : vector<3x3x64xbf16> to vector<9x64xbf16>
    %c8_344 = arith.constant 8 : index
    %c0_345 = arith.constant 0 : index
    %c0_346 = arith.constant 0 : index
    %436 = vector.load %arg10[%c8_344, %c0_345, %c0_346] : memref<16x64x64xbf16, #tpu.memory_space<vmem>>, vector<1x64x64xbf16>
    %437 = vector.shape_cast %436 : vector<1x64x64xbf16> to vector<64x64xbf16>
    %cst_347 = arith.constant dense<0.000000e+00> : vector<9x64xf32>
    %438 = tpu.matmul %435, %437, %cst_347 {dimension_numbers = #tpu.dot_dimension_numbers<[1], [0], [0], [1], [0, 0, 1, 1], [], []>} : vector<9x64xbf16>, vector<64x64xbf16>, vector<9x64xf32> -> vector<9x64xf32>
    %439 = arith.addf %433, %438 : vector<9x64xf32>
    %440 = vector.extract_strided_slice %386 {offsets = [2, 1, 0], sizes = [3, 3, 64], strides = [1, 1, 1]} : vector<6x6x64xbf16> to vector<3x3x64xbf16>
    %441 = vector.shape_cast %440 : vector<3x3x64xbf16> to vector<9x64xbf16>
    %c9_348 = arith.constant 9 : index
    %c0_349 = arith.constant 0 : index
    %c0_350 = arith.constant 0 : index
    %442 = vector.load %arg10[%c9_348, %c0_349, %c0_350] : memref<16x64x64xbf16, #tpu.memory_space<vmem>>, vector<1x64x64xbf16>
    %443 = vector.shape_cast %442 : vector<1x64x64xbf16> to vector<64x64xbf16>
    %cst_351 = arith.constant dense<0.000000e+00> : vector<9x64xf32>
    %444 = tpu.matmul %441, %443, %cst_351 {dimension_numbers = #tpu.dot_dimension_numbers<[1], [0], [0], [1], [0, 0, 1, 1], [], []>} : vector<9x64xbf16>, vector<64x64xbf16>, vector<9x64xf32> -> vector<9x64xf32>
    %445 = arith.addf %439, %444 : vector<9x64xf32>
    %446 = vector.extract_strided_slice %386 {offsets = [2, 2, 0], sizes = [3, 3, 64], strides = [1, 1, 1]} : vector<6x6x64xbf16> to vector<3x3x64xbf16>
    %447 = vector.shape_cast %446 : vector<3x3x64xbf16> to vector<9x64xbf16>
    %c10_352 = arith.constant 10 : index
    %c0_353 = arith.constant 0 : index
    %c0_354 = arith.constant 0 : index
    %448 = vector.load %arg10[%c10_352, %c0_353, %c0_354] : memref<16x64x64xbf16, #tpu.memory_space<vmem>>, vector<1x64x64xbf16>
    %449 = vector.shape_cast %448 : vector<1x64x64xbf16> to vector<64x64xbf16>
    %cst_355 = arith.constant dense<0.000000e+00> : vector<9x64xf32>
    %450 = tpu.matmul %447, %449, %cst_355 {dimension_numbers = #tpu.dot_dimension_numbers<[1], [0], [0], [1], [0, 0, 1, 1], [], []>} : vector<9x64xbf16>, vector<64x64xbf16>, vector<9x64xf32> -> vector<9x64xf32>
    %451 = arith.addf %445, %450 : vector<9x64xf32>
    %452 = vector.extract_strided_slice %386 {offsets = [2, 3, 0], sizes = [3, 3, 64], strides = [1, 1, 1]} : vector<6x6x64xbf16> to vector<3x3x64xbf16>
    %453 = vector.shape_cast %452 : vector<3x3x64xbf16> to vector<9x64xbf16>
    %c11_356 = arith.constant 11 : index
    %c0_357 = arith.constant 0 : index
    %c0_358 = arith.constant 0 : index
    %454 = vector.load %arg10[%c11_356, %c0_357, %c0_358] : memref<16x64x64xbf16, #tpu.memory_space<vmem>>, vector<1x64x64xbf16>
    %455 = vector.shape_cast %454 : vector<1x64x64xbf16> to vector<64x64xbf16>
    %cst_359 = arith.constant dense<0.000000e+00> : vector<9x64xf32>
    %456 = tpu.matmul %453, %455, %cst_359 {dimension_numbers = #tpu.dot_dimension_numbers<[1], [0], [0], [1], [0, 0, 1, 1], [], []>} : vector<9x64xbf16>, vector<64x64xbf16>, vector<9x64xf32> -> vector<9x64xf32>
    %457 = arith.addf %451, %456 : vector<9x64xf32>
    %458 = vector.extract_strided_slice %386 {offsets = [3, 0, 0], sizes = [3, 3, 64], strides = [1, 1, 1]} : vector<6x6x64xbf16> to vector<3x3x64xbf16>
    %459 = vector.shape_cast %458 : vector<3x3x64xbf16> to vector<9x64xbf16>
    %c12_360 = arith.constant 12 : index
    %c0_361 = arith.constant 0 : index
    %c0_362 = arith.constant 0 : index
    %460 = vector.load %arg10[%c12_360, %c0_361, %c0_362] : memref<16x64x64xbf16, #tpu.memory_space<vmem>>, vector<1x64x64xbf16>
    %461 = vector.shape_cast %460 : vector<1x64x64xbf16> to vector<64x64xbf16>
    %cst_363 = arith.constant dense<0.000000e+00> : vector<9x64xf32>
    %462 = tpu.matmul %459, %461, %cst_363 {dimension_numbers = #tpu.dot_dimension_numbers<[1], [0], [0], [1], [0, 0, 1, 1], [], []>} : vector<9x64xbf16>, vector<64x64xbf16>, vector<9x64xf32> -> vector<9x64xf32>
    %463 = arith.addf %457, %462 : vector<9x64xf32>
    %464 = vector.extract_strided_slice %386 {offsets = [3, 1, 0], sizes = [3, 3, 64], strides = [1, 1, 1]} : vector<6x6x64xbf16> to vector<3x3x64xbf16>
    %465 = vector.shape_cast %464 : vector<3x3x64xbf16> to vector<9x64xbf16>
    %c13_364 = arith.constant 13 : index
    %c0_365 = arith.constant 0 : index
    %c0_366 = arith.constant 0 : index
    %466 = vector.load %arg10[%c13_364, %c0_365, %c0_366] : memref<16x64x64xbf16, #tpu.memory_space<vmem>>, vector<1x64x64xbf16>
    %467 = vector.shape_cast %466 : vector<1x64x64xbf16> to vector<64x64xbf16>
    %cst_367 = arith.constant dense<0.000000e+00> : vector<9x64xf32>
    %468 = tpu.matmul %465, %467, %cst_367 {dimension_numbers = #tpu.dot_dimension_numbers<[1], [0], [0], [1], [0, 0, 1, 1], [], []>} : vector<9x64xbf16>, vector<64x64xbf16>, vector<9x64xf32> -> vector<9x64xf32>
    %469 = arith.addf %463, %468 : vector<9x64xf32>
    %470 = vector.extract_strided_slice %386 {offsets = [3, 2, 0], sizes = [3, 3, 64], strides = [1, 1, 1]} : vector<6x6x64xbf16> to vector<3x3x64xbf16>
    %471 = vector.shape_cast %470 : vector<3x3x64xbf16> to vector<9x64xbf16>
    %c14_368 = arith.constant 14 : index
    %c0_369 = arith.constant 0 : index
    %c0_370 = arith.constant 0 : index
    %472 = vector.load %arg10[%c14_368, %c0_369, %c0_370] : memref<16x64x64xbf16, #tpu.memory_space<vmem>>, vector<1x64x64xbf16>
    %473 = vector.shape_cast %472 : vector<1x64x64xbf16> to vector<64x64xbf16>
    %cst_371 = arith.constant dense<0.000000e+00> : vector<9x64xf32>
    %474 = tpu.matmul %471, %473, %cst_371 {dimension_numbers = #tpu.dot_dimension_numbers<[1], [0], [0], [1], [0, 0, 1, 1], [], []>} : vector<9x64xbf16>, vector<64x64xbf16>, vector<9x64xf32> -> vector<9x64xf32>
    %475 = arith.addf %469, %474 : vector<9x64xf32>
    %476 = vector.extract_strided_slice %386 {offsets = [3, 3, 0], sizes = [3, 3, 64], strides = [1, 1, 1]} : vector<6x6x64xbf16> to vector<3x3x64xbf16>
    %477 = vector.shape_cast %476 : vector<3x3x64xbf16> to vector<9x64xbf16>
    %c15_372 = arith.constant 15 : index
    %c0_373 = arith.constant 0 : index
    %c0_374 = arith.constant 0 : index
    %478 = vector.load %arg10[%c15_372, %c0_373, %c0_374] : memref<16x64x64xbf16, #tpu.memory_space<vmem>>, vector<1x64x64xbf16>
    %479 = vector.shape_cast %478 : vector<1x64x64xbf16> to vector<64x64xbf16>
    %cst_375 = arith.constant dense<0.000000e+00> : vector<9x64xf32>
    %480 = tpu.matmul %477, %479, %cst_375 {dimension_numbers = #tpu.dot_dimension_numbers<[1], [0], [0], [1], [0, 0, 1, 1], [], []>} : vector<9x64xbf16>, vector<64x64xbf16>, vector<9x64xf32> -> vector<9x64xf32>
    %481 = arith.addf %475, %480 : vector<9x64xf32>
    %c0_376 = arith.constant 0 : index
    %c0_377 = arith.constant 0 : index
    %482 = vector.load %arg11[%c0_376, %c0_377] : memref<1x64xf32, #tpu.memory_space<vmem>>, vector<1x64xf32>
    %483 = vector.broadcast %482 : vector<1x64xf32> to vector<9x64xf32>
    %484 = arith.addf %481, %483 : vector<9x64xf32>
    %cst_378 = arith.constant 0.000000e+00 : f32
    %485 = vector.broadcast %cst_378 : f32 to vector<9x64xf32>
    %486 = arith.cmpf oge, %484, %485 : vector<9x64xf32>
    %cst_379 = arith.constant 2.000000e-01 : f32
    %487 = vector.broadcast %cst_379 : f32 to vector<9x64xf32>
    %488 = arith.mulf %487, %484 : vector<9x64xf32>
    %489 = arith.select %486, %484, %488 : vector<9x64xi1>, vector<9x64xf32>
    %cst_380 = arith.constant 0.000000e+00 : f32
    %490 = vector.broadcast %cst_380 : f32 to vector<2x7x64xf32>
    %c0_381 = arith.constant 0 : index
    %c0_382 = arith.constant 0 : index
    %c0_383 = arith.constant 0 : index
    %491 = vector.load %arg19[%c0_381, %c0_382, %c0_383] : memref<7x7x64xf32, #tpu.memory_space<vmem>>, vector<2x7x64xf32>
    tpu.vector_store %arg19[%c0_381, %c0_382, %c0_383], %490 {strides = array<i32>} : memref<7x7x64xf32, #tpu.memory_space<vmem>>, vector<2x7x64xf32>,
    %cst_384 = arith.constant 0.000000e+00 : f32
    %492 = vector.broadcast %cst_384 : f32 to vector<2x7x64xf32>
    %c5_385 = arith.constant 5 : index
    %c0_386 = arith.constant 0 : index
    %c0_387 = arith.constant 0 : index
    %493 = vector.load %arg19[%c5_385, %c0_386, %c0_387] : memref<7x7x64xf32, #tpu.memory_space<vmem>>, vector<2x7x64xf32>
    tpu.vector_store %arg19[%c5_385, %c0_386, %c0_387], %492 {strides = array<i32>} : memref<7x7x64xf32, #tpu.memory_space<vmem>>, vector<2x7x64xf32>,
    %cst_388 = arith.constant 0.000000e+00 : f32
    %494 = vector.broadcast %cst_388 : f32 to vector<3x2x64xf32>
    %c2_389 = arith.constant 2 : index
    %c0_390 = arith.constant 0 : index
    %c0_391 = arith.constant 0 : index
    %495 = vector.load %arg19[%c2_389, %c0_390, %c0_391] : memref<7x7x64xf32, #tpu.memory_space<vmem>>, vector<3x2x64xf32>
    tpu.vector_store %arg19[%c2_389, %c0_390, %c0_391], %494 {strides = array<i32>} : memref<7x7x64xf32, #tpu.memory_space<vmem>>, vector<3x2x64xf32>,
    %cst_392 = arith.constant 0.000000e+00 : f32
    %496 = vector.broadcast %cst_392 : f32 to vector<3x2x64xf32>
    %c2_393 = arith.constant 2 : index
    %c5_394 = arith.constant 5 : index
    %c0_395 = arith.constant 0 : index
    %497 = vector.load %arg19[%c2_393, %c5_394, %c0_395] : memref<7x7x64xf32, #tpu.memory_space<vmem>>, vector<3x2x64xf32>
    tpu.vector_store %arg19[%c2_393, %c5_394, %c0_395], %496 {strides = array<i32>} : memref<7x7x64xf32, #tpu.memory_space<vmem>>, vector<3x2x64xf32>,
    %498 = vector.shape_cast %489 : vector<9x64xf32> to vector<3x3x64xf32>
    %c2_396 = arith.constant 2 : index
    %c2_397 = arith.constant 2 : index
    %c0_398 = arith.constant 0 : index
    %499 = vector.load %arg19[%c2_396, %c2_397, %c0_398] : memref<7x7x64xf32, #tpu.memory_space<vmem>>, vector<3x3x64xf32>
    tpu.vector_store %arg19[%c2_396, %c2_397, %c0_398], %498 {strides = array<i32>} : memref<7x7x64xf32, #tpu.memory_space<vmem>>, vector<3x3x64xf32>,
    %c0_399 = arith.constant 0 : index
    %c0_400 = arith.constant 0 : index
    %c0_401 = arith.constant 0 : index
    %500 = vector.load %arg19[%c0_399, %c0_400, %c0_401] : memref<7x7x64xf32, #tpu.memory_space<vmem>>, vector<7x7x64xf32>
    %501 = arith.truncf %500 : vector<7x7x64xf32> to vector<7x7x64xbf16>
    %502 = vector.extract_strided_slice %501 {offsets = [0, 0, 0], sizes = [4, 4, 64], strides = [1, 1, 1]} : vector<7x7x64xbf16> to vector<4x4x64xbf16>
    %503 = vector.shape_cast %502 : vector<4x4x64xbf16> to vector<16x64xbf16>
    %c0_402 = arith.constant 0 : index
    %c0_403 = arith.constant 0 : index
    %c0_404 = arith.constant 0 : index
    %504 = vector.load %arg12[%c0_402, %c0_403, %c0_404] : memref<16x64x1xbf16, #tpu.memory_space<vmem>>, vector<1x64x1xbf16>
    %505 = vector.shape_cast %504 : vector<1x64x1xbf16> to vector<64x1xbf16>
    %cst_405 = arith.constant dense<0.000000e+00> : vector<16x1xf32>
    %506 = tpu.matmul %503, %505, %cst_405 {dimension_numbers = #tpu.dot_dimension_numbers<[1], [0], [0], [1], [0, 0, 1, 1], [], []>} : vector<16x64xbf16>, vector<64x1xbf16>, vector<16x1xf32> -> vector<16x1xf32>
    %507 = vector.extract_strided_slice %501 {offsets = [0, 1, 0], sizes = [4, 4, 64], strides = [1, 1, 1]} : vector<7x7x64xbf16> to vector<4x4x64xbf16>
    %508 = vector.shape_cast %507 : vector<4x4x64xbf16> to vector<16x64xbf16>
    %c1_406 = arith.constant 1 : index
    %c0_407 = arith.constant 0 : index
    %c0_408 = arith.constant 0 : index
    %509 = vector.load %arg12[%c1_406, %c0_407, %c0_408] : memref<16x64x1xbf16, #tpu.memory_space<vmem>>, vector<1x64x1xbf16>
    %510 = vector.shape_cast %509 : vector<1x64x1xbf16> to vector<64x1xbf16>
    %cst_409 = arith.constant dense<0.000000e+00> : vector<16x1xf32>
    %511 = tpu.matmul %508, %510, %cst_409 {dimension_numbers = #tpu.dot_dimension_numbers<[1], [0], [0], [1], [0, 0, 1, 1], [], []>} : vector<16x64xbf16>, vector<64x1xbf16>, vector<16x1xf32> -> vector<16x1xf32>
    %512 = arith.addf %506, %511 : vector<16x1xf32>
    %513 = vector.extract_strided_slice %501 {offsets = [0, 2, 0], sizes = [4, 4, 64], strides = [1, 1, 1]} : vector<7x7x64xbf16> to vector<4x4x64xbf16>
    %514 = vector.shape_cast %513 : vector<4x4x64xbf16> to vector<16x64xbf16>
    %c2_410 = arith.constant 2 : index
    %c0_411 = arith.constant 0 : index
    %c0_412 = arith.constant 0 : index
    %515 = vector.load %arg12[%c2_410, %c0_411, %c0_412] : memref<16x64x1xbf16, #tpu.memory_space<vmem>>, vector<1x64x1xbf16>
    %516 = vector.shape_cast %515 : vector<1x64x1xbf16> to vector<64x1xbf16>
    %cst_413 = arith.constant dense<0.000000e+00> : vector<16x1xf32>
    %517 = tpu.matmul %514, %516, %cst_413 {dimension_numbers = #tpu.dot_dimension_numbers<[1], [0], [0], [1], [0, 0, 1, 1], [], []>} : vector<16x64xbf16>, vector<64x1xbf16>, vector<16x1xf32> -> vector<16x1xf32>
    %518 = arith.addf %512, %517 : vector<16x1xf32>
    %519 = vector.extract_strided_slice %501 {offsets = [0, 3, 0], sizes = [4, 4, 64], strides = [1, 1, 1]} : vector<7x7x64xbf16> to vector<4x4x64xbf16>
    %520 = vector.shape_cast %519 : vector<4x4x64xbf16> to vector<16x64xbf16>
    %c3_414 = arith.constant 3 : index
    %c0_415 = arith.constant 0 : index
    %c0_416 = arith.constant 0 : index
    %521 = vector.load %arg12[%c3_414, %c0_415, %c0_416] : memref<16x64x1xbf16, #tpu.memory_space<vmem>>, vector<1x64x1xbf16>
    %522 = vector.shape_cast %521 : vector<1x64x1xbf16> to vector<64x1xbf16>
    %cst_417 = arith.constant dense<0.000000e+00> : vector<16x1xf32>
    %523 = tpu.matmul %520, %522, %cst_417 {dimension_numbers = #tpu.dot_dimension_numbers<[1], [0], [0], [1], [0, 0, 1, 1], [], []>} : vector<16x64xbf16>, vector<64x1xbf16>, vector<16x1xf32> -> vector<16x1xf32>
    %524 = arith.addf %518, %523 : vector<16x1xf32>
    %525 = vector.extract_strided_slice %501 {offsets = [1, 0, 0], sizes = [4, 4, 64], strides = [1, 1, 1]} : vector<7x7x64xbf16> to vector<4x4x64xbf16>
    %526 = vector.shape_cast %525 : vector<4x4x64xbf16> to vector<16x64xbf16>
    %c4_418 = arith.constant 4 : index
    %c0_419 = arith.constant 0 : index
    %c0_420 = arith.constant 0 : index
    %527 = vector.load %arg12[%c4_418, %c0_419, %c0_420] : memref<16x64x1xbf16, #tpu.memory_space<vmem>>, vector<1x64x1xbf16>
    %528 = vector.shape_cast %527 : vector<1x64x1xbf16> to vector<64x1xbf16>
    %cst_421 = arith.constant dense<0.000000e+00> : vector<16x1xf32>
    %529 = tpu.matmul %526, %528, %cst_421 {dimension_numbers = #tpu.dot_dimension_numbers<[1], [0], [0], [1], [0, 0, 1, 1], [], []>} : vector<16x64xbf16>, vector<64x1xbf16>, vector<16x1xf32> -> vector<16x1xf32>
    %530 = arith.addf %524, %529 : vector<16x1xf32>
    %531 = vector.extract_strided_slice %501 {offsets = [1, 1, 0], sizes = [4, 4, 64], strides = [1, 1, 1]} : vector<7x7x64xbf16> to vector<4x4x64xbf16>
    %532 = vector.shape_cast %531 : vector<4x4x64xbf16> to vector<16x64xbf16>
    %c5_422 = arith.constant 5 : index
    %c0_423 = arith.constant 0 : index
    %c0_424 = arith.constant 0 : index
    %533 = vector.load %arg12[%c5_422, %c0_423, %c0_424] : memref<16x64x1xbf16, #tpu.memory_space<vmem>>, vector<1x64x1xbf16>
    %534 = vector.shape_cast %533 : vector<1x64x1xbf16> to vector<64x1xbf16>
    %cst_425 = arith.constant dense<0.000000e+00> : vector<16x1xf32>
    %535 = tpu.matmul %532, %534, %cst_425 {dimension_numbers = #tpu.dot_dimension_numbers<[1], [0], [0], [1], [0, 0, 1, 1], [], []>} : vector<16x64xbf16>, vector<64x1xbf16>, vector<16x1xf32> -> vector<16x1xf32>
    %536 = arith.addf %530, %535 : vector<16x1xf32>
    %537 = vector.extract_strided_slice %501 {offsets = [1, 2, 0], sizes = [4, 4, 64], strides = [1, 1, 1]} : vector<7x7x64xbf16> to vector<4x4x64xbf16>
    %538 = vector.shape_cast %537 : vector<4x4x64xbf16> to vector<16x64xbf16>
    %c6_426 = arith.constant 6 : index
    %c0_427 = arith.constant 0 : index
    %c0_428 = arith.constant 0 : index
    %539 = vector.load %arg12[%c6_426, %c0_427, %c0_428] : memref<16x64x1xbf16, #tpu.memory_space<vmem>>, vector<1x64x1xbf16>
    %540 = vector.shape_cast %539 : vector<1x64x1xbf16> to vector<64x1xbf16>
    %cst_429 = arith.constant dense<0.000000e+00> : vector<16x1xf32>
    %541 = tpu.matmul %538, %540, %cst_429 {dimension_numbers = #tpu.dot_dimension_numbers<[1], [0], [0], [1], [0, 0, 1, 1], [], []>} : vector<16x64xbf16>, vector<64x1xbf16>, vector<16x1xf32> -> vector<16x1xf32>
    %542 = arith.addf %536, %541 : vector<16x1xf32>
    %543 = vector.extract_strided_slice %501 {offsets = [1, 3, 0], sizes = [4, 4, 64], strides = [1, 1, 1]} : vector<7x7x64xbf16> to vector<4x4x64xbf16>
    %544 = vector.shape_cast %543 : vector<4x4x64xbf16> to vector<16x64xbf16>
    %c7_430 = arith.constant 7 : index
    %c0_431 = arith.constant 0 : index
    %c0_432 = arith.constant 0 : index
    %545 = vector.load %arg12[%c7_430, %c0_431, %c0_432] : memref<16x64x1xbf16, #tpu.memory_space<vmem>>, vector<1x64x1xbf16>
    %546 = vector.shape_cast %545 : vector<1x64x1xbf16> to vector<64x1xbf16>
    %cst_433 = arith.constant dense<0.000000e+00> : vector<16x1xf32>
    %547 = tpu.matmul %544, %546, %cst_433 {dimension_numbers = #tpu.dot_dimension_numbers<[1], [0], [0], [1], [0, 0, 1, 1], [], []>} : vector<16x64xbf16>, vector<64x1xbf16>, vector<16x1xf32> -> vector<16x1xf32>
    %548 = arith.addf %542, %547 : vector<16x1xf32>
    %549 = vector.extract_strided_slice %501 {offsets = [2, 0, 0], sizes = [4, 4, 64], strides = [1, 1, 1]} : vector<7x7x64xbf16> to vector<4x4x64xbf16>
    %550 = vector.shape_cast %549 : vector<4x4x64xbf16> to vector<16x64xbf16>
    %c8_434 = arith.constant 8 : index
    %c0_435 = arith.constant 0 : index
    %c0_436 = arith.constant 0 : index
    %551 = vector.load %arg12[%c8_434, %c0_435, %c0_436] : memref<16x64x1xbf16, #tpu.memory_space<vmem>>, vector<1x64x1xbf16>
    %552 = vector.shape_cast %551 : vector<1x64x1xbf16> to vector<64x1xbf16>
    %cst_437 = arith.constant dense<0.000000e+00> : vector<16x1xf32>
    %553 = tpu.matmul %550, %552, %cst_437 {dimension_numbers = #tpu.dot_dimension_numbers<[1], [0], [0], [1], [0, 0, 1, 1], [], []>} : vector<16x64xbf16>, vector<64x1xbf16>, vector<16x1xf32> -> vector<16x1xf32>
    %554 = arith.addf %548, %553 : vector<16x1xf32>
    %555 = vector.extract_strided_slice %501 {offsets = [2, 1, 0], sizes = [4, 4, 64], strides = [1, 1, 1]} : vector<7x7x64xbf16> to vector<4x4x64xbf16>
    %556 = vector.shape_cast %555 : vector<4x4x64xbf16> to vector<16x64xbf16>
    %c9_438 = arith.constant 9 : index
    %c0_439 = arith.constant 0 : index
    %c0_440 = arith.constant 0 : index
    %557 = vector.load %arg12[%c9_438, %c0_439, %c0_440] : memref<16x64x1xbf16, #tpu.memory_space<vmem>>, vector<1x64x1xbf16>
    %558 = vector.shape_cast %557 : vector<1x64x1xbf16> to vector<64x1xbf16>
    %cst_441 = arith.constant dense<0.000000e+00> : vector<16x1xf32>
    %559 = tpu.matmul %556, %558, %cst_441 {dimension_numbers = #tpu.dot_dimension_numbers<[1], [0], [0], [1], [0, 0, 1, 1], [], []>} : vector<16x64xbf16>, vector<64x1xbf16>, vector<16x1xf32> -> vector<16x1xf32>
    %560 = arith.addf %554, %559 : vector<16x1xf32>
    %561 = vector.extract_strided_slice %501 {offsets = [2, 2, 0], sizes = [4, 4, 64], strides = [1, 1, 1]} : vector<7x7x64xbf16> to vector<4x4x64xbf16>
    %562 = vector.shape_cast %561 : vector<4x4x64xbf16> to vector<16x64xbf16>
    %c10_442 = arith.constant 10 : index
    %c0_443 = arith.constant 0 : index
    %c0_444 = arith.constant 0 : index
    %563 = vector.load %arg12[%c10_442, %c0_443, %c0_444] : memref<16x64x1xbf16, #tpu.memory_space<vmem>>, vector<1x64x1xbf16>
    %564 = vector.shape_cast %563 : vector<1x64x1xbf16> to vector<64x1xbf16>
    %cst_445 = arith.constant dense<0.000000e+00> : vector<16x1xf32>
    %565 = tpu.matmul %562, %564, %cst_445 {dimension_numbers = #tpu.dot_dimension_numbers<[1], [0], [0], [1], [0, 0, 1, 1], [], []>} : vector<16x64xbf16>, vector<64x1xbf16>, vector<16x1xf32> -> vector<16x1xf32>
    %566 = arith.addf %560, %565 : vector<16x1xf32>
    %567 = vector.extract_strided_slice %501 {offsets = [2, 3, 0], sizes = [4, 4, 64], strides = [1, 1, 1]} : vector<7x7x64xbf16> to vector<4x4x64xbf16>
    %568 = vector.shape_cast %567 : vector<4x4x64xbf16> to vector<16x64xbf16>
    %c11_446 = arith.constant 11 : index
    %c0_447 = arith.constant 0 : index
    %c0_448 = arith.constant 0 : index
    %569 = vector.load %arg12[%c11_446, %c0_447, %c0_448] : memref<16x64x1xbf16, #tpu.memory_space<vmem>>, vector<1x64x1xbf16>
    %570 = vector.shape_cast %569 : vector<1x64x1xbf16> to vector<64x1xbf16>
    %cst_449 = arith.constant dense<0.000000e+00> : vector<16x1xf32>
    %571 = tpu.matmul %568, %570, %cst_449 {dimension_numbers = #tpu.dot_dimension_numbers<[1], [0], [0], [1], [0, 0, 1, 1], [], []>} : vector<16x64xbf16>, vector<64x1xbf16>, vector<16x1xf32> -> vector<16x1xf32>
    %572 = arith.addf %566, %571 : vector<16x1xf32>
    %573 = vector.extract_strided_slice %501 {offsets = [3, 0, 0], sizes = [4, 4, 64], strides = [1, 1, 1]} : vector<7x7x64xbf16> to vector<4x4x64xbf16>
    %574 = vector.shape_cast %573 : vector<4x4x64xbf16> to vector<16x64xbf16>
    %c12_450 = arith.constant 12 : index
    %c0_451 = arith.constant 0 : index
    %c0_452 = arith.constant 0 : index
    %575 = vector.load %arg12[%c12_450, %c0_451, %c0_452] : memref<16x64x1xbf16, #tpu.memory_space<vmem>>, vector<1x64x1xbf16>
    %576 = vector.shape_cast %575 : vector<1x64x1xbf16> to vector<64x1xbf16>
    %cst_453 = arith.constant dense<0.000000e+00> : vector<16x1xf32>
    %577 = tpu.matmul %574, %576, %cst_453 {dimension_numbers = #tpu.dot_dimension_numbers<[1], [0], [0], [1], [0, 0, 1, 1], [], []>} : vector<16x64xbf16>, vector<64x1xbf16>, vector<16x1xf32> -> vector<16x1xf32>
    %578 = arith.addf %572, %577 : vector<16x1xf32>
    %579 = vector.extract_strided_slice %501 {offsets = [3, 1, 0], sizes = [4, 4, 64], strides = [1, 1, 1]} : vector<7x7x64xbf16> to vector<4x4x64xbf16>
    %580 = vector.shape_cast %579 : vector<4x4x64xbf16> to vector<16x64xbf16>
    %c13_454 = arith.constant 13 : index
    %c0_455 = arith.constant 0 : index
    %c0_456 = arith.constant 0 : index
    %581 = vector.load %arg12[%c13_454, %c0_455, %c0_456] : memref<16x64x1xbf16, #tpu.memory_space<vmem>>, vector<1x64x1xbf16>
    %582 = vector.shape_cast %581 : vector<1x64x1xbf16> to vector<64x1xbf16>
    %cst_457 = arith.constant dense<0.000000e+00> : vector<16x1xf32>
    %583 = tpu.matmul %580, %582, %cst_457 {dimension_numbers = #tpu.dot_dimension_numbers<[1], [0], [0], [1], [0, 0, 1, 1], [], []>} : vector<16x64xbf16>, vector<64x1xbf16>, vector<16x1xf32> -> vector<16x1xf32>
    %584 = arith.addf %578, %583 : vector<16x1xf32>
    %585 = vector.extract_strided_slice %501 {offsets = [3, 2, 0], sizes = [4, 4, 64], strides = [1, 1, 1]} : vector<7x7x64xbf16> to vector<4x4x64xbf16>
    %586 = vector.shape_cast %585 : vector<4x4x64xbf16> to vector<16x64xbf16>
    %c14_458 = arith.constant 14 : index
    %c0_459 = arith.constant 0 : index
    %c0_460 = arith.constant 0 : index
    %587 = vector.load %arg12[%c14_458, %c0_459, %c0_460] : memref<16x64x1xbf16, #tpu.memory_space<vmem>>, vector<1x64x1xbf16>
    %588 = vector.shape_cast %587 : vector<1x64x1xbf16> to vector<64x1xbf16>
    %cst_461 = arith.constant dense<0.000000e+00> : vector<16x1xf32>
    %589 = tpu.matmul %586, %588, %cst_461 {dimension_numbers = #tpu.dot_dimension_numbers<[1], [0], [0], [1], [0, 0, 1, 1], [], []>} : vector<16x64xbf16>, vector<64x1xbf16>, vector<16x1xf32> -> vector<16x1xf32>
    %590 = arith.addf %584, %589 : vector<16x1xf32>
    %591 = vector.extract_strided_slice %501 {offsets = [3, 3, 0], sizes = [4, 4, 64], strides = [1, 1, 1]} : vector<7x7x64xbf16> to vector<4x4x64xbf16>
    %592 = vector.shape_cast %591 : vector<4x4x64xbf16> to vector<16x64xbf16>
    %c15_462 = arith.constant 15 : index
    %c0_463 = arith.constant 0 : index
    %c0_464 = arith.constant 0 : index
    %593 = vector.load %arg12[%c15_462, %c0_463, %c0_464] : memref<16x64x1xbf16, #tpu.memory_space<vmem>>, vector<1x64x1xbf16>
    %594 = vector.shape_cast %593 : vector<1x64x1xbf16> to vector<64x1xbf16>
    %cst_465 = arith.constant dense<0.000000e+00> : vector<16x1xf32>
    %595 = tpu.matmul %592, %594, %cst_465 {dimension_numbers = #tpu.dot_dimension_numbers<[1], [0], [0], [1], [0, 0, 1, 1], [], []>} : vector<16x64xbf16>, vector<64x1xbf16>, vector<16x1xf32> -> vector<16x1xf32>
    %596 = arith.addf %590, %595 : vector<16x1xf32>
    %c0_466 = arith.constant 0 : index
    %c0_467 = arith.constant 0 : index
    %597 = vector.load %arg13[%c0_466, %c0_467] : memref<1x1xf32, #tpu.memory_space<vmem>>, vector<1x1xf32>
    %598 = vector.broadcast %597 : vector<1x1xf32> to vector<16x1xf32>
    %599 = arith.addf %596, %598 : vector<16x1xf32>
    %600 = arith.negf %599 : vector<16x1xf32>
    %601 = math.exp %600 : vector<16x1xf32>
    %cst_468 = arith.constant 1.000000e+00 : f32
    %602 = vector.broadcast %cst_468 : f32 to vector<16x1xf32>
    %603 = arith.addf %602, %601 : vector<16x1xf32>
    %604 = arith.divf %602, %603 : vector<16x1xf32>
    %605 = vector.shape_cast %604 : vector<16x1xf32> to vector<1x4x4xf32>
    %c0_469 = arith.constant 0 : index
    %c0_470 = arith.constant 0 : index
    %c0_471 = arith.constant 0 : index
    %606 = vector.load %arg14[%c0_469, %c0_470, %c0_471] : memref<1x4x4xf32, #tpu.memory_space<vmem>>, vector<1x4x4xf32>
    tpu.vector_store %arg14[%c0_469, %c0_470, %c0_471], %605 {strides = array<i32>} : memref<1x4x4xf32, #tpu.memory_space<vmem>>, vector<1x4x4xf32>,
    return
  }
  func.func @transform_0(%arg0: i32) -> (i32, i32, i32) {
    %c0_i32 = arith.constant 0 : i32
    %c0_i32_0 = arith.constant 0 : i32
    %c0_i32_1 = arith.constant 0 : i32
    return %arg0, %c0_i32, %c0_i32_0 : i32, i32, i32
  }
  func.func @transform_1(%arg0: i32) -> (i32, i32) {
    %c0_i32 = arith.constant 0 : i32
    %c0_i32_0 = arith.constant 0 : i32
    %c0_i32_1 = arith.constant 0 : i32
    return %c0_i32, %c0_i32_0 : i32, i32
  }
  func.func @transform_2(%arg0: i32) -> (i32, i32) {
    %c0_i32 = arith.constant 0 : i32
    %c0_i32_0 = arith.constant 0 : i32
    %c0_i32_1 = arith.constant 0 : i32
    return %c0_i32, %c0_i32_0 : i32, i32
  }
  func.func @transform_3(%arg0: i32) -> (i32, i32, i32) {
    %c0_i32 = arith.constant 0 : i32
    %c0_i32_0 = arith.constant 0 : i32
    %c0_i32_1 = arith.constant 0 : i32
    %c0_i32_2 = arith.constant 0 : i32
    return %c0_i32, %c0_i32_0, %c0_i32_1 : i32, i32, i32
  }
  func.func @transform_4(%arg0: i32) -> (i32, i32) {
    %c0_i32 = arith.constant 0 : i32
    %c0_i32_0 = arith.constant 0 : i32
    %c0_i32_1 = arith.constant 0 : i32
    return %c0_i32, %c0_i32_0 : i32, i32
  }
  func.func @transform_5(%arg0: i32) -> (i32, i32, i32) {
    %c0_i32 = arith.constant 0 : i32
    %c0_i32_0 = arith.constant 0 : i32
    %c0_i32_1 = arith.constant 0 : i32
    %c0_i32_2 = arith.constant 0 : i32
    return %c0_i32, %c0_i32_0, %c0_i32_1 : i32, i32, i32
  }
  func.func @transform_6(%arg0: i32) -> (i32, i32) {
    %c0_i32 = arith.constant 0 : i32
    %c0_i32_0 = arith.constant 0 : i32
    %c0_i32_1 = arith.constant 0 : i32
    return %c0_i32, %c0_i32_0 : i32, i32
  }
  func.func @transform_7(%arg0: i32) -> (i32, i32, i32) {
    %c0_i32 = arith.constant 0 : i32
    %c0_i32_0 = arith.constant 0 : i32
    %c0_i32_1 = arith.constant 0 : i32
    %c0_i32_2 = arith.constant 0 : i32
    return %c0_i32, %c0_i32_0, %c0_i32_1 : i32, i32, i32
  }
  func.func @transform_8(%arg0: i32) -> (i32, i32) {
    %c0_i32 = arith.constant 0 : i32
    %c0_i32_0 = arith.constant 0 : i32
    %c0_i32_1 = arith.constant 0 : i32
    return %c0_i32, %c0_i32_0 : i32, i32
  }
  func.func @transform_9(%arg0: i32) -> (i32, i32, i32) {
    %c0_i32 = arith.constant 0 : i32
    %c0_i32_0 = arith.constant 0 : i32
    %c0_i32_1 = arith.constant 0 : i32
    %c0_i32_2 = arith.constant 0 : i32
    return %c0_i32, %c0_i32_0, %c0_i32_1 : i32, i32, i32
  }
  func.func @transform_10(%arg0: i32) -> (i32, i32) {
    %c0_i32 = arith.constant 0 : i32
    %c0_i32_0 = arith.constant 0 : i32
    %c0_i32_1 = arith.constant 0 : i32
    return %c0_i32, %c0_i32_0 : i32, i32
  }
  func.func @transform_11(%arg0: i32) -> (i32, i32, i32) {
    %c0_i32 = arith.constant 0 : i32
    %c0_i32_0 = arith.constant 0 : i32
    %c0_i32_1 = arith.constant 0 : i32
    %c0_i32_2 = arith.constant 0 : i32
    return %c0_i32, %c0_i32_0, %c0_i32_1 : i32, i32, i32
  }
  func.func @transform_12(%arg0: i32) -> (i32, i32) {
    %c0_i32 = arith.constant 0 : i32
    %c0_i32_0 = arith.constant 0 : i32
    %c0_i32_1 = arith.constant 0 : i32
    return %c0_i32, %c0_i32_0 : i32, i32
  }
  func.func @transform_13(%arg0: i32) -> (i32, i32, i32) {
    %c0_i32 = arith.constant 0 : i32
    %c0_i32_0 = arith.constant 0 : i32
    %c0_i32_1 = arith.constant 0 : i32
    return %arg0, %c0_i32, %c0_i32_0 : i32, i32, i32
  }
}

</mosaic_0001>

<bundles_post_ra>
// kernel: tpu_custom_call.1
= control target key start
LH: loop header
LB: loop body
LE: loop exit
PB: predicated region body
PF: predicated region fallthrough
CT: control target
= control target key end

     0   :  { %s19585_s0 = inlined_call_operand.vmem [shape: bf16[2,81,48], index: 0, kind: input, shape index: {}]   ;;  %s19586_s1 = inlined_call_operand.vmem [shape: bf16[48,8], index: 1, kind: input, shape index: {}]   ;;  %s19587_s2 = inlined_call_operand.vmem [shape: f32[1,8], index: 2, kind: input, shape index: {}]   ;;  %s19588_s3 = inlined_call_operand.vmem [shape: bf16[16,8,16], index: 3, kind: input, shape index: {}]   ;;  %s19589_s4 = inlined_call_operand.vmem [shape: f32[1,16], index: 4, kind: input, shape index: {}]   ;;  %s19590_s5 = inlined_call_operand.vmem [shape: bf16[16,16,32], index: 5, kind: input, shape index: {}]   ;;  %s19591_s6 = inlined_call_operand.vmem [shape: f32[1,32], index: 6, kind: input, shape index: {}]   ;;  %s19592_s7 = inlined_call_operand.hbm [shape: bf16[16,32,64], index: 7, kind: input, shape index: {}]   ;;  %s19593_s8 = inlined_call_operand.vmem [shape: f32[1,64], index: 8, kind: input, shape index: {}]   ;;  %s19594_s9 = inlined_call_operand.vmem [shape: bf16[16,64,64], index: 9, kind: input, shape index: {}]   ;;  %s19595_s10 = inlined_call_operand.vmem [shape: f32[1,64], index: 10, kind: input, shape index: {}]   ;;  %s19596_s11 = inlined_call_operand.vmem [shape: bf16[16,64,1], index: 11, kind: input, shape index: {}]   ;;  %s19597_s12 = inlined_call_operand.<no memory space> [shape: f32[1,1], index: 12, kind: input, shape index: {}]   ;;  %s19598_s13 = inlined_call_operand.hbm [shape: f32[2,4,4], index: 13, kind: output, shape index: {}]  }
   0x1   :  { %v18_v0 = vstv %s19597_s12 }
   0x2   :  { %19 = vst [vmem:[#allocation7] sm:$0x1] %v18_v0 }
   0x3   :  { %20 = vsyncpa [#allocation9], 0 }
   0x4   :  { %21 = vsyncpa [#allocation10], 0 }
   0x5   :  { %23 = vsyncpa [#allocation10 + $0x1], 0  ;;  %s15967_s27 = smov 0   ;;  %s15969_s28 = smov 0  }
   0x6   :  { %s15971_s29 = smov 0   ;;  %s15973_s30 = smov 0  }
   0x7 LB: > { %19654 = sst [smem:[#allocation14_spill]] %s15879_s29  ;;  %s15988_s12 = sadd.s32 4294967295, %s15883_s30   ;;  %s15883_s30 = sphi %s15973_s30, %s19773_s30   ;;  %s15879_s29 = sphi %s15971_s29, %s19770_s29   ;;  %s15875_s28 = sphi %s15969_s28, %s19772_s28   ;;  %s15871_s27 = sphi %s15967_s27, %s19771_s27  }
   0x8   : > { %s13686_s14 = sadd.s32 4294967294, %s15883_s30   ;;  %s15992_s15 = sadd.s32 1, %s15883_s30  }
   0x9   : > { %s314_s16 = sadd.s32 1, %s15879_s29  ;;  %s311_s17 = ssub.s32 %s15883_s30, %s15992_s15 }
   0xa   : > { %p324_p0 = scmp.ne.s32.totalorder %s15879_s29, %s15875_s28  ;;  %p312_p1 = scmp.eq.s32.totalorder %s311_s17, 0 }
   0xb   : > { %p325_p2 = scmp.eq.s32.totalorder %s15988_s12, 1  ;;  %p330_p3 = scmp.ne.s32.totalorder %s15875_s28, %s15871_s27 }
   0xc   : > { %p331_p4 = scmp.eq.s32.totalorder %s13686_s14, 1  ;;  %p13687_p7 = scmp.ge.s32.totalorder %s15883_s30, 1 }
   0xd   : > { %s16003_s18 = scalar_select %p312_p1, %s15879_s29, %s314_s16  }
   0xe   : > { %p16005_p5 = por %p325_p2, %p324_p0  ;;  %p16009_p6 = por %p331_p4, %p330_p3 }
   0xf   : > { %19655 = sst [smem:[#allocation15_spill]] %s16003_s18  ;;  %p338_p8 = scmp.lt.s32.totalorder %s15883_s30, 3 }
  0x10   : > { %s19656_s19 = scalar_select %p16005_p5, 1, 0 }
  0x11   : > { %s19657_s20 = scalar_select %p16009_p6, 1, 0 }
  0x12   : > { %p19600_p9 = scmp.eq.s32.totalorder %s15988_s12, 0  ;;  %p16016_p10 = pnand %p13687_p7, %p338_p8 }
  0x13   : > { %s15885_s22 = smov [#allocation8]   ;;  %s15789_s14 = scalar_lea.hbm %s19592_s7, 4096 }
  0x14   : > { %s19658_s21 = scalar_select %p16016_p10, 1, 0 }
  0x15   : > { %s368_s23 = sshll.u32 %s15885_s22, 4  ;;  %p15543_p11 = pneg %p16016_p10  ;;  %s369_s23 = int_to_ptr.vmem [resolvable:$true] %s368_s23 }
  0x16   : > { %p15790_p13 = scmp.ne.s32.totalorder %s19592_s7, %s15789_s14  ;;  %p15796_p3 = scmp.lt.u32.totalorder %s15789_s14, %s19592_s7 }
  0x17   : > { %p16024_p12 = pnand %p19600_p9, %p15543_p11 }
  0x19   : > { %p15791_p0 = pneg %p16024_p12 }
  0x1b   : > { %p15792_p1 = pnand %p15791_p0, %p15790_p13 }
  0x1d   : > { %p15793_p2 = pneg %p15792_p1 }
  0x1f   : > { %p15798_p4 = pnand %p15796_p3, %p15793_p2 }
  0x21   : > { %15801 = shalt.err (!%p15798_p4)
}
  0x22   : > { %s15802_s29 = scalar_lea.vmem %s369_s23, 4096  ;;  %p15810_p9 = scmp.lt.s32.totalorder %s369_s23, %s369_s23 }
  0x23   : > { %p15803_p7 = scmp.ne.s32.totalorder %s369_s23, %s15802_s29  ;;  %p15811_p6 = scmp.lt.s32.totalorder %s15802_s29, %s15802_s29 }
  0x25   : > { %p15805_p8 = pnand %p15803_p7, %p15791_p0  ;;  %p15812_p5 = por %p15811_p6, %p15810_p9 }
  0x27   : > { %p15806_p11 = pneg %p15805_p8 }
  0x29   : > { %p15813_p10 = pnand %p15812_p5, %p15806_p11 }
  0x2b   : > { %15816 = shalt.err (!%p15813_p10)
}
  0x2c   : > { %s15886_s25 = smov 64   ;;  %s15887_s26 = smov 4  }
  0x2d   : > { %15546 = dma.hbm_to_vmem [thread:$0]  (!%p16024_p12), %s19592_s7, 4096, %s369_s23, [#allocation9], %s15886_s25, %s15886_s25, %s15887_s26  }
  0x2e   : > { %p19660_p13 = scmp.ne.s32.totalorder %s19658_s21, 0 }
  0x30   : > { %407 = sbr.rel (%p19660_p13) target bundleno = 2380 (0x94c), region = 72 }
  0x37   : > { %p19661_p1 = scmp.eq.s32.totalorder %s15988_s12, 0 }
  0x39   : > { %15862 = dma.done.wait (%p19661_p1), [#allocation9], 4096   ;;  %p19662_p0 = pmov %p19661_p1 }
  0x3a   : > { %vm659_vm0 = vcmask 64512   ;;  %p451_p5 = scmp.lt.s32.totalorder %s15988_s12, 1  ;;  %v19604_v1 = vmov 0.0   ;;  %v15596_v2 = vld [vmem:[%s19586_s1] sm:$0xff]   ;;  %v15597_v3 = vld [vmem:[%s19586_s1 + $0x8] sm:$0xff]   ;;  %vm527_vm1 = vcmask 392192   ;;  %v19603_v15 = vlaneseq }
  0x3b   : > { %15864 = vsyncadd (%p19662_p0), [#allocation9], 4294963200  ;;  %660 = vst.msk [vmem:[#allocation2] sm:$0xff] %vm659_vm0, %v19604_v1  ;;  %14738 = vmatprep.subr.bf16.mxu0 %v15596_v2  ;;  %v15598_v5 = vld [vmem:[%s19586_s1 + $0x10] sm:$0xff]   ;;  %vm661_vm2 = vcmask 61440   ;;  %vm671_vm3 = vcmask 58368  }
  0x3c   : > { %663 = vst.msk [vmem:[#allocation2 + $0x10] sm:$0xff] %vm659_vm0, %v19604_v1  ;;  %666 = vst.msk [vmem:[#allocation2 + $0xb0] sm:$0xff] %vm659_vm0, %v19604_v1  ;;  %s452_s29 = scalar_select %p451_p5, %s15988_s12, 1  ;;  %14739 = vmatpush3.bf16.msra.mxu0 %v15596_v2  ;;  %v13720_v11 = vld [vmem:[%s19588_s3 + $0x4] sm:$0xf]  ;;  %vm2280_vm4 = vcmask 1043456  }
  0x3d   : > { %14740 = vmatprep.subr.bf16.mxu0 %v15597_v3  ;;  %662 = vst.msk [vmem:[#allocation2 + $0x8] sm:$0x1f] %vm661_vm2, %v19604_v1  ;;  %667 = vst.msk [vmem:[#allocation2 + $0xb8] sm:$0x1f] %vm661_vm2, %v19604_v1  ;;  %15520 = vmatprep.subr.msk.bf16.mxu1 %vm2280_vm4, %v13720_v11  ;;  %v2282_v12 = vsel %vm2280_vm4, %v13720_v11, 0  ;;  %v16126_v19 = vshrl.u32 %v19603_v15, 7 }
  0x3e   : > { %s15536_s18 = smul.u32 44, %s452_s29  ;;  %664 = vst.msk [vmem:[#allocation2 + $0x18] sm:$0x1f] %vm661_vm2, %v19604_v1  ;;  %14757 = vmatpush3.bf16.msra.mxu1 %v2282_v12  ;;  %v15889_v13 = vmov 1966171168   ;;  %vm1791_vm7 = vcmask 57344  }
  0x3f   : > { %672 = vst.msk [vmem:[#allocation2 + $0x20] sm:$0x3] %vm671_vm3, %v19604_v1  ;;  %674 = vst.msk [vmem:[#allocation2 + $0x40] sm:$0x3] %vm671_vm3, %v19604_v1  ;;  %v703_v14 = vunpack.c.l.s4 %v15889_v13  ;;  %v2025_v16 = vld [vmem:[%s19588_s3] sm:$0xf] }
  0x40   : > { %s455_s22 = scalar_lea.vmem %s19585_s0, %s15536_s18  ;;  %14741 = vmatpush3.bf16.msra.mxu0 %v15597_v3  ;;  %676 = vst.msk [vmem:[#allocation2 + $0x60] sm:$0x3] %vm671_vm3, %v19604_v1  ;;  %681 = vst.msk [vmem:[#allocation2 + $0x2b] sm:$0x3] %vm671_vm3, %v19604_v1  ;;  %15521 = vmatprep.subr.msk.bf16.mxu1 %vm2280_vm4, %v2025_v16  ;;  %v16147_v51 = vld [vmem:[%s19587_s2] ss:$0 sm:$0xff] }
  0x41   : > { %v15599_v4 = vld [vmem:[%s455_s22] sm:$0xff]   ;;  %14742 = vmatprep.subr.bf16.mxu0 %v15598_v5  ;;  %v15600_v6 = vld [vmem:[%s455_s22 + $0x8] sm:$0xff]   ;;  %v15601_v7 = vld [vmem:[%s455_s22 + $0x10] sm:$0xff]   ;;  %683 = vst.msk [vmem:[#allocation2 + $0x4b] sm:$0x3] %vm671_vm3, %v19604_v1  ;;  %v704_v18 = vunpack.c.0.s8 %v703_v14  ;;  %v16163_v59 = vsel %vm2280_vm4, %v2025_v16, 0 }
  0x42   : > { %14744 = vmatprep.mubr.msk.bf16.mxu0 %vm527_vm1, %v15599_v4  ;;  %v15602_v8 = vld [vmem:[%s455_s22 + $0x18] sm:$0xff]   ;;  %v15603_v9 = vld [vmem:[%s455_s22 + $0x20] sm:$0xff]   ;;  %v15604_v10 = vld [vmem:[%s455_s22 + $0x28] ss:$0 sps:$4 sm:$0x11]   ;;  %19663 = vst [vmem:[#allocation16_spill] sm:$0xff] %v16126_v19 }
  0x43   : > { %685 = vst.msk [vmem:[#allocation2 + $0x6b] sm:$0x3] %vm671_vm3, %v19604_v1  ;;  %673 = vst.msk [vmem:[#allocation2 + $0x30] sm:$0x3] %vm671_vm3, %v19604_v1  ;;  %v16129_v23 = vsub.s32 %v704_v18, %v16126_v19  ;;  %v16152_v52 = vld [vmem:[%s19588_s3 + $0x8] sm:$0xf] }
  0x44   : > { %14743 = vmatpush3.bf16.msra.mxu0 %v15598_v5  ;;  %675 = vst.msk [vmem:[#allocation2 + $0x50] sm:$0x3] %vm671_vm3, %v19604_v1  ;;  %677 = vst.msk [vmem:[#allocation2 + $0x70] sm:$0x3] %vm671_vm3, %v19604_v1  ;;  %v16175_v63 = vld [vmem:[%s19588_s3 + $0xc] sm:$0xf] }
  0x45   : > { %14852 = vmatprep.subr.bf16.mxu0 %v19604_v1  ;;  %678 = vst.msk [vmem:[#allocation2 + $0x80] sm:$0x3] %vm671_vm3, %v19604_v1  ;;  %679 = vst.msk [vmem:[#allocation2 + $0x90] sm:$0x3] %vm671_vm3, %v19604_v1  ;;  %v16180_v3 = vsel %vm2280_vm4, %v16152_v52, 0  ;;  %v16199_v14 = vsel %vm2280_vm4, %v16175_v63, 0 }
  0x46   : > { %680 = vst.msk [vmem:[#allocation2 + $0xa0] sm:$0x3] %vm671_vm3, %v19604_v1  ;;  %682 = vst.msk [vmem:[#allocation2 + $0x3b] sm:$0x3] %vm671_vm3, %v19604_v1  ;;  %vm5175_vm2 = vcmask 130048   ;;  %s448_s29 = sand.u32 1, %s15875_s28  }
  0x47   : > { %14745 = vmatmul.mubr.msk.bf16.vlgmr.msra.gmra.mrb[0].mxu0 %vm527_vm1, %v15600_v6  ;;  %684 = vst.msk [vmem:[#allocation2 + $0x5b] sm:$0x3] %vm671_vm3, %v19604_v1  ;;  %686 = vst.msk [vmem:[#allocation2 + $0x7b] sm:$0x3] %vm671_vm3, %v19604_v1  ;;  %s13692_s18 = sshll.u32 %s448_s29, 2  ;;  %s14438_s21 = sshll.u32 %s15988_s12, 6 }
  0x48   : > { %14748 = vmatprep.mubr.msk.bf16.mxu0 %vm527_vm1, %v15601_v7  ;;  %687 = vst.msk [vmem:[#allocation2 + $0x8b] sm:$0x3] %vm671_vm3, %v19604_v1  ;;  %688 = vst.msk [vmem:[#allocation2 + $0x9b] sm:$0x3] %vm671_vm3, %v19604_v1  ;;  %s450_s23 = scalar_lea.vmem [#allocation11], %s13692_s18  ;;  %s19543_s25 = scalar_lea.hbm %s19598_s13, %s14438_s21 }
  0x49   : > { %689 = vst.msk [vmem:[#allocation2 + $0xab] sm:$0x3] %vm671_vm3, %v19604_v1  ;;  %v1809_v17 = vld [vmem:[#allocation2] ss:$2 sm:$0x3f]  ;;  %vm5187_vm3 = vcmask 123904  }
  0x4a   : > { %v1827_v20 = vld [vmem:[#allocation2 + $0x1] ss:$2 sm:$0x3f]  ;;  %v1820_v21 = vpack.c.bf16 %v1809_v17, %v1809_v17  ;;  %v1845_v32 = vld [vmem:[#allocation2 + $0x10] ss:$2 sm:$0x3f] }
  0x4b   : > { %v1838_v22 = vpack.c.bf16 %v1827_v20, %v1827_v20  ;;  %v1856_v38 = vpack.c.bf16 %v1845_v32, %v1845_v32  ;;  %v1863_v40 = vld [vmem:[#allocation2 + $0x11] ss:$2 sm:$0x3f]  ;;  %s13592_s24 = sshll.u32 %s450_s23, 4  ;;  %s13579_s12 = scalar_lea.sflag [#allocation10], %s448_s29  ;;  %s19545_s24 = int_to_ptr.vmem [resolvable:$true] %s13592_s24 }
  0x4c   : > { %v1891_v24 = vrot.slane %v1820_v21, %v16129_v23  ;;  %v1874_v46 = vpack.c.bf16 %v1863_v40, %v1863_v40  ;;  %s15817_s26 = scalar_lea.vmem %s19545_s24, 64  ;;  %p19767_p9 = scmp.ne.s32.totalorder %s19656_s19, 0 }
  0x4d   : > { %v2037_v25 = vrot.slane %v1838_v22, %v16129_v23  ;;  %v2843_v45 = vrot.slane %v1856_v38, %v16129_v23  ;;  %p15818_p6 = scmp.ne.s32.totalorder %s19545_s24, %s15817_s26  ;;  %s15893_s16 = smov [#allocation11]  }
  0x4e   : > { %v1892_v26 = vcombine.high %v1891_v24, %v1891_v24  ;;  %v1899_v30 = vrot.slane %v1891_v24, %v16129_v23  ;;  %v3153_v55 = vrot.slane %v1874_v46, %v16129_v23  ;;  %s15821_s17 = sshll.u32 %s15893_s16, 4  ;;  %s15822_s17 = int_to_ptr.vmem [resolvable:$false] %s15821_s17 }
  0x4f   : > { %14749 = vmatmul.mubr.msk.bf16.gmra.mrb[4].mxu0 %vm527_vm1, %v15602_v8  ;;  %v2038_v27 = vcombine.high %v2037_v25, %v2037_v25  ;;  %v2045_v31 = vrot.slane %v2037_v25, %v16129_v23  ;;  %v2844_v53 = vcombine.high %v2843_v45, %v2843_v45  ;;  %v16155_v54 = vrot.slane %v2843_v45, %v16129_v23  ;;  %p15819_p10 = pnand %p15818_p6, %p19767_p9  ;;  %s15823_s18 = scalar_lea.vmem %s15822_s17, 128 }
  0x50   : > { %14752 = vmatprep.mubr.msk.bf16.mxu0 %vm527_vm1, %v15603_v9  ;;  %v1906_v28 = vrot.slane %v1892_v26, %v16129_v23  ;;  %v2001_v33 = vunpack.i.h.s16 %v1899_v30  ;;  %v16137_v37 = vcombine.high %v1899_v30, %v1899_v30  ;;  %v3154_v5 = vcombine.high %v3153_v55, %v3153_v55  ;;  %p15824_p2 = scmp.lt.s32.totalorder %s19545_s24, %s15822_s17  ;;  %p15825_p3 = scmp.lt.s32.totalorder %s15823_s18, %s15817_s26 }
  0x51   : > { %v2052_v29 = vrot.slane %v2038_v27, %v16129_v23  ;;  %v2147_v35 = vunpack.i.h.s16 %v2045_v31  ;;  %v16139_v39 = vcombine.high %v2045_v31, %v2045_v31  ;;  %v16187_v8 = vrot.slane %v2844_v53, %v16129_v23  ;;  %p15820_p12 = pneg %p15819_p10 }
  0x52   : > { %v2003_v34 = vunpack.i.h.s16 %v1906_v28  ;;  %v13738_v41 = vpack.i.b16 %v1906_v28, %v2001_v33  ;;  %v2346_v48 = vcombine.low %v1899_v30, %v1906_v28  ;;  %v2492_v61 = vunpack.i.h.s16 %v16137_v37  ;;  %p15826_p4 = por %p15825_p3, %p15824_p2 }
  0x53   : > { %v2149_v36 = vunpack.i.h.s16 %v2052_v29  ;;  %v13747_v43 = vpack.i.b16 %v2052_v29, %v2147_v35  ;;  %v2186_v47 = vcombine.low %v2045_v31, %v2052_v29  ;;  %v2662_v57 = vunpack.i.h.s16 %v16139_v39 }
  0x54   : > { %v13739_v42 = vpack.i.b16 %v16137_v37, %v2003_v34  ;;  %v16166_v60 = vrot.slane %v2346_v48, %v16129_v23  ;;  %v16191_v9 = vcombine.high %v16155_v54, %v16155_v54  ;;  %v16207_v22 = vrot.slane %v3154_v5, %v16129_v23  ;;  %p15827_p7 = pnand %p15826_p4, %p15820_p12 }
  0x55   : > { %v13748_v44 = vpack.i.b16 %v16139_v39, %v2149_v36  ;;  %v16159_v56 = vrot.slane %v2186_v47, %v16129_v23 }
  0x56   : > { %v2512_v49 = vcombine.low %v13738_v41, %v13739_v42 }
  0x57   : > { %14753 = vmatmul.mubr.msk.bf16.gmra.mrb[8].mxu0 %vm527_vm1, %v15604_v10  ;;  %v2682_v50 = vcombine.low %v13747_v43, %v13748_v44  ;;  %v16194_v10 = vrot.slane %v3153_v55, %v16129_v23 }
  0x58   : > { %v16170_v62 = vrot.slane %v2512_v49, %v16129_v23 }
  0x59   : > { %v16183_v4 = vrot.slane %v2682_v50, %v16129_v23  ;;  %v16212_v27 = vcombine.high %v16194_v10, %v16194_v10 }
 0x11a   : > { %v14746_v58 = vpop.f32.mrb[0].mxu0 }
 0x11b   : > { %v589_v0 = vadd.f32 %v14746_v58, %v16147_v51  ;;  %v580_v2 = vpop.f32.mrb[1].mxu0 }
 0x11c   : > { %v581_v6 = vadd.f32 %v16147_v51, %v580_v2  ;;  %v14747_v7 = vpop.f32.mrb[2].mxu0 }
 0x11d   : > { %vm628_vm5 = vcmp.ge.f32.partialorder %v589_v0, 0.0  ;;  %v639_v11 = vmul.f32 0.2, %v589_v0  ;;  %v592_v12 = vadd.f32 %v14747_v7, %v16147_v51  ;;  %v583_v13 = vpop.f32.mrb[3].mxu0 }
 0x11e   : > { %vm626_vm6 = vcmp.ge.f32.partialorder %v581_v6, 0.0  ;;  %v637_v16 = vmul.f32 0.2, %v581_v6  ;;  %v16202_v17 = vadd.f32 %v16147_v51, %v583_v13 }
 0x11f   : > { %v650_v20 = vsel %vm628_vm5, %v589_v0, %v639_v11  ;;  %vm629_vm8 = vcmp.ge.f32.partialorder %v592_v12, 0.0  ;;  %v640_v21 = vmul.f32 0.2, %v592_v12 }
 0x120   : > { %v799_v24 = vcombine.high %v650_v20, %v650_v20  ;;  %v806_v25 = vrot.slane %v650_v20, %v16129_v23  ;;  %v648_v26 = vsel %vm626_vm6, %v581_v6, %v637_v16  ;;  %v638_v31 = vmul.f32 0.2, %v16202_v17 }
 0x121   : > { %v701_v28 = vcombine.high %v648_v26, %v648_v26  ;;  %v708_v29 = vrot.slane %v648_v26, %v16129_v23  ;;  %v651_v30 = vsel %vm629_vm8, %v592_v12, %v640_v21  ;;  %vm627_vm9 = vcmp.ge.f32.partialorder %v16202_v17, 0.0 }
 0x122   : > { %v813_v32 = vrot.slane %v799_v24, %v16129_v23  ;;  %v814_v33 = vcombine.high %v806_v25, %v806_v25  ;;  %v16218_v34 = vrot.slane %v806_v25, %v16129_v23  ;;  %v848_v35 = vcombine.high %v651_v30, %v651_v30  ;;  %v16221_v36 = vpop.f32.mrb[4].mxu0 }
 0x123   : > { %v715_v38 = vrot.slane %v701_v28, %v16129_v23  ;;  %v716_v40 = vcombine.high %v708_v29, %v708_v29  ;;  %v724_v41 = vrot.slane %v708_v29, %v16129_v23  ;;  %v855_v42 = vrot.slane %v651_v30, %v16129_v23  ;;  %v16226_v43 = vpop.f32.mrb[5].mxu0 }
 0x124   : > { %v815_v44 = vcombine.high %v813_v32, %v813_v32  ;;  %v829_v45 = vrot.slane %v813_v32, %v16129_v23  ;;  %v836_v46 = vrot.slane %v814_v33, %v16129_v23  ;;  %v862_v47 = vrot.slane %v848_v35, %v16129_v23  ;;  %v16231_v48 = vpop.f32.mrb[6].mxu0 }
 0x125   : > { %v717_v49 = vcombine.high %v715_v38, %v715_v38  ;;  %v731_v50 = vrot.slane %v715_v38, %v16129_v23  ;;  %v738_v53 = vrot.slane %v716_v40, %v16129_v23  ;;  %v863_v55 = vcombine.high %v855_v42, %v855_v42  ;;  %v16235_v58 = vpop.f32.mrb[7].mxu0 }
 0x126   : > { %v843_v0 = vrot.slane %v815_v44, %v16129_v23  ;;  %v1323_v2 = vrot.slane %v836_v46, %v16129_v23  ;;  %v13712_v5 = vcombine.high %v16218_v34, %v836_v46  ;;  %v864_v6 = vcombine.high %v862_v47, %v862_v47 }
 0x127   : > { %v745_v7 = vrot.slane %v717_v49, %v16129_v23  ;;  %v1205_v11 = vcombine.low %v724_v41, %v738_v53  ;;  %v13710_v12 = vcombine.high %v724_v41, %v738_v53  ;;  %v871_v13 = vrot.slane %v855_v42, %v16129_v23 }
 0x128   : > { %v1330_v16 = vrot.slane %v1323_v2, %v16129_v23  ;;  %v1332_v20 = vcombine.low %v829_v45, %v843_v0  ;;  %v13713_v21 = vcombine.high %v829_v45, %v843_v0  ;;  %v1341_v24 = vrot.slane %v13712_v5, %v16129_v23 }
 0x129   : > { %v1207_v25 = vcombine.low %v731_v50, %v745_v7  ;;  %v13711_v26 = vcombine.high %v731_v50, %v745_v7  ;;  %v1215_v28 = vrot.slane %v1205_v11, %v16129_v23  ;;  %v1222_v29 = vrot.slane %v13710_v12, %v16129_v23 }
 0x12a   : > { %v1348_v30 = vrot.slane %v1332_v20, %v16129_v23  ;;  %v1355_v32 = vrot.slane %v13713_v21, %v16129_v23  ;;  %1794 = vst.msk [vmem:[#allocation2 + $0x3a] sm:$0x1] %vm1791_vm7, %v1330_v16  ;;  %v878_v33 = vrot.slane %v862_v47, %v16129_v23  ;;  %v885_v35 = vrot.slane %v863_v55, %v16129_v23  ;;  %v16251_v38 = vpop.f32.mrb[8].mxu0 }
 0x12b   : > { %v1229_v40 = vrot.slane %v1207_v25, %v16129_v23  ;;  %v1236_v41 = vrot.slane %v13711_v26, %v16129_v23  ;;  %v1237_v42 = vcombine.low %v1215_v28, %v1222_v29  ;;  %v16256_v44 = vrot.slane %v864_v6, %v16129_v23  ;;  %v16258_v45 = vpop.f32.mrb[9].mxu0 }
 0x12c   : > { %v1363_v46 = vcombine.low %v1341_v24, %v1348_v30  ;;  %v893_v49 = vcombine.high %v871_v13, %v871_v13  ;;  %v894_v50 = vcombine.high %v878_v33, %v878_v33  ;;  %v895_v53 = vcombine.high %v885_v35, %v885_v35  ;;  %v14755_v0 = vpop.f32.mrb[10].mxu0 }
 0x12d   : > { %v1238_v47 = vcombine.low %v1229_v40, %v1236_v41  ;;  %v1245_v55 = vrot.slane %v1237_v42, %v16129_v23  ;;  %v1334_v2 = vcombine.low %v871_v13, %v885_v35  ;;  %v649_v5 = vsel %vm627_vm9, %v16202_v17, %v638_v31  ;;  %v16264_v7 = vpop.f32.mrb[11].mxu0 }
 0x12e   : > { %v1371_v6 = vrot.slane %v1363_v46, %v16129_v23  ;;  %v1386_v11 = vrot.slane %v893_v49, %v16129_v23  ;;  %v1394_v12 = vcombine.low %v895_v53, %v878_v33  ;;  %v1395_v16 = vcombine.low %v16256_v44, %v894_v50 }
 0x12f   : > { %v1252_v20 = vrot.slane %v1238_v47, %v16129_v23  ;;  %v1362_v21 = vrot.slane %v1334_v2, %v16129_v23  ;;  %v750_v24 = vcombine.high %v649_v5, %v649_v5  ;;  %v757_v13 = vrot.slane %v649_v5, %v16129_v23 }
 0x130   : > { %v1393_v25 = vrot.slane %v1386_v11, %v16129_v23  ;;  %v1404_v17 = vrot.slane %v1394_v12, %v16129_v23  ;;  %v1411_v31 = vrot.slane %v1395_v16, %v16129_v23  ;;  %v605_v26 = vadd.f32 %v16221_v36, %v16147_v51 }
 0x131   : > { %v1253_v28 = vcombine.low %v1245_v55, %v1252_v20  ;;  %v1364_v29 = vcombine.low %v1355_v32, %v1362_v21  ;;  %v764_v30 = vrot.slane %v750_v24, %v16129_v23  ;;  %v765_v33 = vcombine.high %v757_v13, %v757_v13 }
 0x132   : > { %v16278_v35 = vcombine.low %v1404_v17, %v1411_v31  ;;  %1796 = vst.msk [vmem:[#allocation2 + $0x4a] sm:$0x1] %vm1791_vm7, %v1393_v25  ;;  %v773_v40 = vrot.slane %v757_v13, %v16129_v23  ;;  %vm632_vm10 = vcmp.ge.f32.partialorder %v605_v26, 0.0  ;;  %v643_v41 = vmul.f32 0.2, %v605_v26 }
 0x133   : > { %1790 = vst.msk [vmem:[#allocation2 + $0x22] sm:$0xff] %vm659_vm0, %v1253_v28  ;;  %v1378_v42 = vrot.slane %v1364_v29, %v16129_v23  ;;  %v766_v46 = vcombine.high %v764_v30, %v764_v30  ;;  %v780_v36 = vrot.slane %v764_v30, %v16129_v23  ;;  %v787_v32 = vrot.slane %v765_v33, %v16129_v23 }
 0x134   : > { %v1434_v49 = vrot.slane %v16278_v35, %v16129_v23  ;;  %v795_v50 = vcombine.high %v773_v40, %v773_v40  ;;  %v1260_v53 = vrot.slane %v773_v40, %v16129_v23  ;;  %v654_v0 = vsel %vm632_vm10, %v605_v26, %v643_v41 }
 0x135   : > { %v1379_v47 = vcombine.low %v1371_v6, %v1378_v42  ;;  %v794_v55 = vrot.slane %v766_v46, %v16129_v23  ;;  %v796_v2 = vcombine.high %v780_v36, %v780_v36  ;;  %v797_v5 = vcombine.high %v787_v32, %v787_v32 }
 0x136   : > { %v1267_v11 = vrot.slane %v1260_v53, %v16129_v23  ;;  %v1268_v12 = vcombine.low %v787_v32, %v795_v50  ;;  %v995_v16 = vcombine.high %v654_v0, %v654_v0  ;;  %v1002_v20 = vrot.slane %v654_v0, %v16129_v23 }
 0x137   : > { %1795 = vst.msk [vmem:[#allocation2 + $0x42] sm:$0xff] %vm659_vm0, %v1379_v47  ;;  %v798_v21 = vcombine.high %v794_v55, %v794_v55  ;;  %v1269_v24 = vcombine.low %v797_v5, %v780_v36  ;;  %v1270_v13 = vcombine.low %v794_v55, %v796_v2  ;;  %v597_v25 = vadd.f32 %v16147_v51, %v16226_v43 }
 0x138   : > { %v1278_v6 = vrot.slane %v1268_v12, %v16129_v23  ;;  %1792 = vst.msk [vmem:[#allocation2 + $0x2a] sm:$0x1] %vm1791_vm7, %v1267_v11  ;;  %v1009_v17 = vrot.slane %v995_v16, %v16129_v23  ;;  %v1010_v31 = vcombine.high %v1002_v20, %v1002_v20  ;;  %v16299_v26 = vrot.slane %v1002_v20, %v16129_v23 }
 0x139   : > { %v1271_v28 = vcombine.low %v798_v21, %v16218_v34  ;;  %v1285_v29 = vrot.slane %v1269_v24, %v16129_v23  ;;  %v1292_v30 = vrot.slane %v1270_v13, %v16129_v23  ;;  %vm630_vm11 = vcmp.ge.f32.partialorder %v597_v25, 0.0 }
 0x13a   : > { %v1011_v33 = vcombine.high %v1009_v17, %v1009_v17  ;;  %v1025_v43 = vrot.slane %v1009_v17, %v16129_v23  ;;  %v1032_v40 = vrot.slane %v1010_v31, %v16129_v23  ;;  %v1040_v41 = vcombine.high %v16299_v26, %v16299_v26 }
 0x13b   : > { %v1299_v42 = vrot.slane %v1271_v28, %v16129_v23  ;;  %v1300_v46 = vcombine.low %v1278_v6, %v1285_v29  ;;  %v641_v36 = vmul.f32 0.2, %v597_v25  ;;  %v896_v34 = vcombine.high %v16256_v44, %v16256_v44 }
 0x13c   : > { %v1039_v32 = vrot.slane %v1011_v33, %v16129_v23  ;;  %v1042_v50 = vcombine.high %v1032_v40, %v1032_v40  ;;  %v1522_v53 = vcombine.low %v1032_v40, %v1040_v41  ;;  %v608_v0 = vadd.f32 %v16231_v48, %v16147_v51 }
 0x13d   : > { %v1301_v47 = vcombine.low %v1292_v30, %v1299_v42  ;;  %v1308_v55 = vrot.slane %v1300_v46, %v16129_v23  ;;  %v652_v2 = vsel %vm630_vm11, %v597_v25, %v641_v36  ;;  %v600_v5 = vadd.f32 %v16147_v51, %v16235_v58 }
 0x13e   : > { %v1523_v11 = vcombine.low %v1042_v50, %v1025_v43  ;;  %v1544_v12 = vrot.slane %v1522_v53, %v16129_v23  ;;  %v1575_v16 = vrot.slane %v1039_v32, %v16129_v23  ;;  %v13716_v44 = vcombine.high %v1025_v43, %v1039_v32 }
 0x13f   : > { %v1315_v20 = vrot.slane %v1301_v47, %v16129_v23  ;;  %v897_v21 = vcombine.high %v652_v2, %v652_v2  ;;  %v904_v24 = vrot.slane %v652_v2, %v16129_v23  ;;  %vm633_vm12 = vcmp.ge.f32.partialorder %v608_v0, 0.0 }
 0x140   : > { %v1551_v48 = vrot.slane %v1523_v11, %v16129_v23  ;;  %v1582_v13 = vrot.slane %v1575_v16, %v16129_v23  ;;  %v16324_v25 = vrot.slane %v13716_v44, %v16129_v23  ;;  %v644_v58 = vmul.f32 0.2, %v608_v0 }
 0x141   : > { %v1316_v6 = vcombine.low %v1308_v55, %v1315_v20  ;;  %v911_v17 = vrot.slane %v897_v21, %v16129_v23  ;;  %v912_v31 = vcombine.high %v904_v24, %v904_v24  ;;  %v920_v28 = vrot.slane %v904_v24, %v16129_v23 }
 0x142   : > { %v16328_v29 = vcombine.low %v1544_v12, %v1551_v48  ;;  %1802 = vst.msk [vmem:[#allocation2 + $0x7a] sm:$0x1] %vm1791_vm7, %v1582_v13  ;;  %v655_v30 = vsel %vm633_vm12, %v608_v0, %v644_v58  ;;  %vm631_vm13 = vcmp.ge.f32.partialorder %v600_v5, 0.0  ;;  %v642_v33 = vmul.f32 0.2, %v600_v5 }
 0x143   : > { %1793 = vst.msk [vmem:[#allocation2 + $0x32] sm:$0xff] %vm659_vm0, %v1316_v6  ;;  %v913_v43 = vcombine.high %v911_v17, %v911_v17  ;;  %v927_v40 = vrot.slane %v911_v17, %v16129_v23  ;;  %v934_v41 = vrot.slane %v912_v31, %v16129_v23  ;;  %v942_v42 = vcombine.high %v920_v28, %v920_v28 }
 0x144   : > { %v1567_v46 = vrot.slane %v16328_v29, %v16129_v23  ;;  %v1396_v36 = vcombine.low %v896_v34, %v920_v28  ;;  %v1044_v32 = vcombine.high %v655_v30, %v655_v30  ;;  %v1051_v50 = vrot.slane %v655_v30, %v16129_v23 }
 0x145   : > { %v941_v53 = vrot.slane %v913_v43, %v16129_v23  ;;  %v944_v0 = vcombine.high %v934_v41, %v934_v41  ;;  %v1397_v47 = vcombine.low %v934_v41, %v942_v42  ;;  %v653_v55 = vsel %vm631_vm13, %v600_v5, %v642_v33 }
 0x146   : > { %v1418_v2 = vrot.slane %v1396_v36, %v16129_v23  ;;  %v1058_v11 = vrot.slane %v1044_v32, %v16129_v23  ;;  %v1059_v12 = vcombine.high %v1051_v50, %v1051_v50  ;;  %v1067_v16 = vrot.slane %v1051_v50, %v16129_v23 }
 0x147   : > { %v1425_v44 = vrot.slane %v1397_v47, %v16129_v23  ;;  %v1449_v20 = vrot.slane %v944_v0, %v16129_v23  ;;  %v1457_v34 = vcombine.low %v927_v40, %v941_v53  ;;  %v13714_v21 = vcombine.high %v927_v40, %v941_v53 }
 0x148   : > { %v1060_v24 = vcombine.high %v1058_v11, %v1058_v11  ;;  %v1074_v48 = vrot.slane %v1058_v11, %v16129_v23  ;;  %v1081_v13 = vrot.slane %v1059_v12, %v16129_v23  ;;  %v946_v58 = vcombine.high %v653_v55, %v653_v55 }
 0x149   : > { %v1427_v5 = vcombine.low %v1418_v2, %v1425_v44  ;;  %v1456_v6 = vrot.slane %v1449_v20, %v16129_v23  ;;  %v1467_v17 = vrot.slane %v1457_v34, %v16129_v23  ;;  %v1474_v31 = vrot.slane %v13714_v21, %v16129_v23 }
 0x14a   : > { %v16349_v28 = vrot.slane %v1060_v24, %v16129_v23  ;;  %v1090_v30 = vcombine.high %v1074_v48, %v1074_v48  ;;  %v1584_v33 = vcombine.low %v1067_v16, %v1081_v13  ;;  %v13717_v43 = vcombine.high %v1067_v16, %v1081_v13 }
 0x14b   : > { %v1441_v40 = vrot.slane %v1427_v5, %v16129_v23  ;;  %v1489_v41 = vcombine.low %v1467_v17, %v1474_v31  ;;  %1798 = vst.msk [vmem:[#allocation2 + $0x5a] sm:$0x1] %vm1791_vm7, %v1456_v6  ;;  %v953_v42 = vrot.slane %v653_v55, %v16129_v23  ;;  %v960_v36 = vrot.slane %v946_v58, %v16129_v23 }
 0x14c   : > { %v1586_v32 = vcombine.low %v1074_v48, %v16349_v28  ;;  %v1600_v50 = vrot.slane %v1584_v33, %v16129_v23  ;;  %v1607_v53 = vrot.slane %v13717_v43, %v16129_v23  ;;  %v1638_v0 = vrot.slane %v1090_v30, %v16129_v23 }
 0x14d   : > { %v1442_v47 = vcombine.low %v1434_v49, %v1441_v40  ;;  %v16363_v2 = vrot.slane %v1489_v41, %v16129_v23  ;;  %v961_v11 = vcombine.high %v953_v42, %v953_v42  ;;  %v962_v12 = vcombine.high %v960_v36, %v960_v36  ;;  %v1829_v41 = vld [vmem:[#allocation2 + $0x21] ss:$2 sm:$0x3f] }
 0x14e   : > { %v1614_v55 = vrot.slane %v1586_v32, %v16129_v23  ;;  %v1615_v16 = vcombine.low %v16324_v25, %v1600_v50  ;;  %v1645_v44 = vrot.slane %v1638_v0, %v16129_v23  ;;  %v969_v20 = vrot.slane %v953_v42, %v16129_v23  ;;  %v16386_v42 = vld [vmem:[#allocation2 + $0x41] ss:$2 sm:$0x3f] }
 0x14f   : > { %1797 = vst.msk [vmem:[#allocation2 + $0x52] sm:$0xff] %vm659_vm0, %v1442_v47  ;;  %v976_v34 = vrot.slane %v960_v36, %v16129_v23  ;;  %v983_v35 = vrot.slane %v961_v11, %v16129_v23  ;;  %v990_v49 = vrot.slane %v962_v12, %v16129_v23  ;;  %v621_v21 = vadd.f32 %v16251_v38, %v16147_v51 }
 0x150   : > { %v1616_v24 = vcombine.low %v1607_v53, %v1614_v55  ;;  %v1623_v48 = vrot.slane %v1615_v16, %v16129_v23  ;;  %1804 = vst.msk [vmem:[#allocation2 + $0x8a] sm:$0x1] %vm1791_vm7, %v1645_v44  ;;  %v613_v25 = vadd.f32 %v16147_v51, %v16258_v45  ;;  %v1092_v13 = vcombine.high %v16349_v28, %v16349_v28  ;;  %v16389_v53 = vld [vmem:[#allocation2 + $0x20] ss:$2 sm:$0x3f] }
 0x151   : > { %v992_v58 = vcombine.high %v976_v34, %v976_v34  ;;  %v994_v5 = vcombine.high %v990_v49, %v990_v49  ;;  %v1459_v6 = vcombine.low %v969_v20, %v983_v35  ;;  %v13715_v17 = vcombine.high %v969_v20, %v983_v35 }
 0x152   : > { %v1630_v31 = vrot.slane %v1616_v24, %v16129_v23  ;;  %v1512_v30 = vrot.slane %v976_v34, %v16129_v23  ;;  %vm636_vm14 = vcmp.ge.f32.partialorder %v621_v21, 0.0  ;;  %v647_v38 = vmul.f32 0.2, %v621_v21 }
 0x153   : > { %v1481_v33 = vrot.slane %v1459_v6, %v16129_v23  ;;  %v1488_v43 = vrot.slane %v13715_v17, %v16129_v23  ;;  %v1520_v40 = vcombine.low %v990_v49, %v992_v58  ;;  %v1521_v45 = vcombine.low %v994_v5, %v16299_v26 }
 0x154   : > { %v1631_v36 = vcombine.low %v1623_v48, %v1630_v31  ;;  %v1519_v32 = vrot.slane %v1512_v30, %v16129_v23  ;;  %v658_v50 = vsel %vm636_vm14, %v621_v21, %v647_v38  ;;  %vm634_vm15 = vcmp.ge.f32.partialorder %v613_v25, 0.0 }
 0x155   : > { %v1490_v0 = vcombine.low %v1481_v33, %v1488_v43  ;;  %v1530_v47 = vrot.slane %v1520_v40, %v16129_v23  ;;  %v1537_v11 = vrot.slane %v1521_v45, %v16129_v23  ;;  %v1197_v12 = vrot.slane %v658_v50, %v16129_v23 }
 0x156   : > { %1803 = vst.msk [vmem:[#allocation2 + $0x82] sm:$0xff] %vm659_vm0, %v1631_v36  ;;  %v645_v26 = vmul.f32 0.2, %v613_v25  ;;  %v616_v55 = vadd.f32 %v16147_v51, %v16264_v7  ;;  %v1839_v16 = vpack.c.bf16 %v1829_v41, %v1829_v41  ;;  %v1840_v44 = vpack.c.bf16 %v16386_v42, %v16386_v42 }
 0x157   : > { %1800 = vst.msk [vmem:[#allocation2 + $0x6a] sm:$0x1] %vm1791_vm7, %v1519_v32  ;;  %v1504_v20 = vrot.slane %v1490_v0, %v16129_v23  ;;  %v1552_v34 = vcombine.low %v1530_v47, %v1537_v11  ;;  %v1204_v35 = vrot.slane %v1197_v12, %v16129_v23  ;;  %v1821_v49 = vpack.c.bf16 %v16389_v53, %v16389_v53 }
 0x158   : > { %v656_v21 = vsel %vm634_vm15, %v613_v25, %v645_v26  ;;  %vm635_vm1 = vcmp.ge.f32.partialorder %v616_v55, 0.0  ;;  %v646_v24 = vmul.f32 0.2, %v616_v55  ;;  %v2060_v48 = vrot.slane %v1839_v16, %v16129_v23 }
 0x159   : > { %v1505_v51 = vcombine.low %v16363_v2, %v1504_v20  ;;  %v1560_v7 = vrot.slane %v1552_v34, %v16129_v23  ;;  %v1764_v58 = vrot.slane %v1204_v35, %v16129_v23  ;;  %v1093_v5 = vcombine.high %v656_v21, %v656_v21 }
 0x15a   : > { %v1100_v6 = vrot.slane %v656_v21, %v16129_v23  ;;  %v657_v17 = vsel %vm635_vm1, %v616_v55, %v646_v24  ;;  %v2061_v31 = vcombine.high %v2060_v48, %v2060_v48  ;;  %v16411_v30 = vrot.slane %v2060_v48, %v16129_v23 }
 0x15b   : > { %v1568_v25 = vcombine.low %v1560_v7, %v1567_v46  ;;  %1799 = vst.msk [vmem:[#allocation2 + $0x62] sm:$0xff] %vm659_vm0, %v1505_v51  ;;  %v1771_v2 = vrot.slane %v1764_v58, %v16129_v23  ;;  %v1107_v38 = vrot.slane %v1093_v5, %v16129_v23  ;;  %v1142_v33 = vcombine.high %v657_v17, %v657_v17 }
 0x15c   : > { %19664 = vst [vmem:[#allocation17_spill] sm:$0xff] %v16411_v30  ;;  %v1108_v43 = vcombine.high %v1100_v6, %v1100_v6  ;;  %v1116_v40 = vrot.slane %v1100_v6, %v16129_v23  ;;  %v1149_v45 = vrot.slane %v657_v17, %v16129_v23  ;;  %v16422_v41 = vrot.slane %v2061_v31, %v16129_v23 }
 0x15d   : > { %1801 = vst.msk [vmem:[#allocation2 + $0x72] sm:$0xff] %vm659_vm0, %v1568_v25  ;;  %v1109_v29 = vcombine.high %v1107_v38, %v1107_v38  ;;  %v1123_v46 = vrot.slane %v1107_v38, %v16129_v23  ;;  %v1156_v42 = vrot.slane %v1142_v33, %v16129_v23  ;;  %v16430_v36 = vcombine.high %v16411_v30, %v16411_v30 }
 0x15e   : > { %19665 = vst [vmem:[#allocation18_spill] sm:$0xff] %v16422_v41  ;;  %1808 = vst.msk [vmem:[#allocation2 + $0xaa] sm:$0x1] %vm1791_vm7, %v1771_v2  ;;  %v1130_v32 = vrot.slane %v1108_v43, %v16129_v23  ;;  %v1138_v50 = vcombine.high %v1116_v40, %v1116_v40  ;;  %v1646_v0 = vcombine.low %v1092_v13, %v1116_v40  ;;  %v2152_v5 = vunpack.i.h.s16 %v16411_v30 }
 0x15f   : > { %v1157_v47 = vcombine.high %v1149_v45, %v1149_v45  ;;  %v1137_v11 = vrot.slane %v1109_v29, %v16129_v23  ;;  %v1139_v12 = vcombine.high %v1123_v46, %v1123_v46  ;;  %v1158_v26 = vcombine.high %v1156_v42, %v1156_v42 }
 0x160   : > { %v1165_v55 = vrot.slane %v1149_v45, %v16129_v23  ;;  %v1140_v16 = vcombine.high %v1130_v32, %v1130_v32  ;;  %v1647_v20 = vcombine.low %v1130_v32, %v1138_v50  ;;  %v1656_v34 = vrot.slane %v1646_v0, %v16129_v23 }
 0x161   : > { %v1172_v35 = vrot.slane %v1156_v42, %v16129_v23  ;;  %v1141_v21 = vcombine.high %v1137_v11, %v1137_v11  ;;  %v1649_v24 = vcombine.low %v1137_v11, %v1139_v12  ;;  %v1179_v48 = vrot.slane %v1157_v47, %v16129_v23 }
 0x162   : > { %v1186_v28 = vrot.slane %v1158_v26, %v16129_v23  ;;  %v1648_v13 = vcombine.low %v1140_v16, %v1123_v46  ;;  %v1663_v51 = vrot.slane %v1647_v20, %v16129_v23  ;;  %v1833_v7 = vld [vmem:[#allocation2 + $0x61] ss:$2 sm:$0x3f]  ;;  %v2083_v58 = vrot.slane %v1840_v44, %v16129_v23 }
 0x163   : > { %v1677_v6 = vrot.slane %v1649_v24, %v16129_v23  ;;  %v1701_v17 = vrot.slane %v1141_v21, %v16129_v23  ;;  %v1709_v31 = vcombine.low %v1165_v55, %v1179_v48  ;;  %v13718_v25 = vcombine.high %v1165_v55, %v1179_v48 }
 0x164   : > { %v1670_v2 = vrot.slane %v1648_v13, %v16129_v23  ;;  %v1678_v38 = vcombine.low %v1656_v34, %v1663_v51  ;;  %v1711_v33 = vcombine.low %v1172_v35, %v1186_v28  ;;  %v13719_v43 = vcombine.high %v1172_v35, %v1186_v28  ;;  %v1835_v34 = vld [vmem:[#allocation2 + $0x81] ss:$2 sm:$0x3f] }
 0x165   : > { %v1708_v40 = vrot.slane %v1701_v17, %v16129_v23  ;;  %v1719_v45 = vrot.slane %v1709_v31, %v16129_v23  ;;  %v1726_v29 = vrot.slane %v13718_v25, %v16129_v23  ;;  %v1841_v44 = vpack.c.bf16 %v1833_v7, %v1833_v7  ;;  %v1813_v25 = vld [vmem:[#allocation2 + $0x40] ss:$2 sm:$0x3f] }
 0x166   : > { %v1679_v46 = vcombine.low %v1670_v2, %v1677_v6  ;;  %v1686_v42 = vrot.slane %v1678_v38, %v16129_v23  ;;  %v1733_v32 = vrot.slane %v1711_v33, %v16129_v23  ;;  %v1740_v50 = vrot.slane %v13719_v43, %v16129_v23 }
 0x167   : > { %1806 = vst.msk [vmem:[#allocation2 + $0x9a] sm:$0x1] %vm1791_vm7, %v1708_v40  ;;  %v1741_v0 = vcombine.low %v1719_v45, %v1726_v29  ;;  %v2084_v47 = vcombine.high %v2083_v58, %v2083_v58  ;;  %v16456_v11 = vrot.slane %v2083_v58, %v16129_v23  ;;  %v2106_v12 = vrot.slane %v1841_v44, %v16129_v23  ;;  %v1815_v45 = vld [vmem:[#allocation2 + $0x60] ss:$2 sm:$0x3f] }
 0x168   : > { %v1693_v26 = vrot.slane %v1679_v46, %v16129_v23  ;;  %v1742_v55 = vcombine.low %v1733_v32, %v1740_v50  ;;  %v2154_v16 = vunpack.i.h.s16 %v16422_v41  ;;  %v13721_v20 = vpack.i.b16 %v16411_v30, %v16139_v39 }
 0x169   : > { %v1749_v35 = vrot.slane %v1741_v0, %v16129_v23  ;;  %v16465_v21 = vrot.slane %v2084_v47, %v16129_v23  ;;  %v16469_v24 = vcombine.high %v16456_v11, %v16456_v11  ;;  %v2107_v48 = vcombine.high %v2106_v12, %v2106_v12 }
 0x16a   : > { %v1694_v28 = vcombine.low %v1686_v42, %v1693_v26  ;;  %v1756_v13 = vrot.slane %v1742_v55, %v16129_v23  ;;  %v16473_v51 = vrot.slane %v2106_v12, %v16129_v23  ;;  %v16476_v7 = vpack.i.b16 %v16422_v41, %v2152_v5 }
 0x16b   : > { %19666 = vst [vmem:[#allocation19_spill] sm:$0xff] %v16465_v21  ;;  %19667 = vst [vmem:[#allocation20_spill] sm:$0xff] %v16469_v24  ;;  %v16479_v58 = vpack.i.b16 %v16430_v36, %v2154_v16  ;;  %v16483_v6 = vpack.i.b16 %v2152_v5, %v2662_v57  ;;  %v1842_v17 = vpack.c.bf16 %v1835_v34, %v1835_v34  ;;  %vm5563_vm8 = vcmask 126976  }
 0x16c   : > { %19668 = vst [vmem:[#allocation21_spill] sm:$0xff] %v16473_v51  ;;  %19669 = vst [vmem:[#allocation22_spill] sm:$0xff] %v16476_v7  ;;  %v16486_v31 = vrot.slane %v2107_v48, %v16129_v23  ;;  %v1757_v2 = vcombine.low %v1749_v35, %v1756_v13  ;;  %v13724_v38 = vpack.i.b16 %v16473_v51, %v16469_v24  ;;  %v19606_v40 = vunpack.i.h.s16 %v16473_v51 }
 0x16d   : > { %19670 = vst [vmem:[#allocation23_spill] sm:$0xff] %v16479_v58  ;;  %1805 = vst.msk [vmem:[#allocation2 + $0x92] sm:$0xff] %vm659_vm0, %v1694_v28  ;;  %v2187_v33 = vcombine.low %v13721_v20, %v16476_v7  ;;  %v16494_v43 = vcombine.high %v16473_v51, %v16473_v51  ;;  %v2188_v39 = vcombine.low %v16479_v58, %v16456_v11  ;;  %vm7634_vm9 = vcmask 260096  }
 0x16e   : > { %19671 = vst [vmem:[#allocation24_spill] sm:$0xff] %v16486_v31  ;;  %v2129_v5 = vrot.slane %v1842_v17, %v16129_v23  ;;  %1807 = vst.msk [vmem:[#allocation2 + $0xa2] sm:$0xff] %vm659_vm0, %v1757_v2  ;;  %v2189_v29 = vcombine.low %v16465_v21, %v13724_v38  ;;  %v2164_v46 = vunpack.i.h.s16 %v16486_v31  ;;  %v1822_v42 = vpack.c.bf16 %v1813_v25, %v1813_v25 }
 0x16f   : > { %v2203_v44 = vrot.slane %v2187_v33, %v16129_v23  ;;  %v2210_v32 = vrot.slane %v2188_v39, %v16129_v23  ;;  %v16513_v47 = vpack.i.b16 %v16486_v31, %v19606_v40  ;;  %v1823_v16 = vpack.c.bf16 %v1815_v45, %v1815_v45 }
 0x170   : > { %v2130_v50 = vcombine.high %v2129_v5, %v2129_v5  ;;  %v16508_v0 = vrot.slane %v2129_v5, %v16129_v23  ;;  %v2217_v12 = vrot.slane %v2189_v29, %v16129_v23  ;;  %v16518_v55 = vpack.i.b16 %v16494_v43, %v2164_v46 }
 0x171   : > { %19673 = vst [vmem:[#allocation26_spill] sm:$0xff] %v16513_v47  ;;  %v2218_v26 = vcombine.low %v16159_v56, %v2203_v44  ;;  %v1914_v35 = vrot.slane %v1821_v49, %v16129_v23  ;;  %v1937_v48 = vrot.slane %v1822_v42, %v16129_v23  ;;  %v1960_v17 = vrot.slane %v1823_v16, %v16129_v23  ;;  %v1817_v42 = vld [vmem:[#allocation2 + $0x80] ss:$2 sm:$0x3f] }
 0x172   : > { %19672 = vst [vmem:[#allocation25_spill] sm:$0xff] %v16508_v0  ;;  %19674 = vst [vmem:[#allocation27_spill] sm:$0xff] %v16518_v55  ;;  %v16521_v20 = vrot.slane %v2130_v50, %v16129_v23  ;;  %v16525_v34 = vcombine.high %v16508_v0, %v16508_v0  ;;  %v2219_v28 = vcombine.low %v2210_v32, %v2217_v12  ;;  %vm7641_vm10 = vcmask 254976  }
 0x173   : > { %v2226_v56 = vrot.slane %v2218_v26, %v16129_v23  ;;  %v2235_v13 = vcombine.low %v16513_v47, %v16518_v55  ;;  %v1915_v38 = vcombine.high %v1914_v35, %v1914_v35  ;;  %v16540_v33 = vrot.slane %v1914_v35, %v16129_v23  ;;  %v1865_v47 = vld [vmem:[#allocation2 + $0x31] ss:$2 sm:$0x3f] }
 0x174   : > { %19675 = vst [vmem:[#allocation28_spill] sm:$0xff] %v16521_v20  ;;  %19676 = vst [vmem:[#allocation29_spill] sm:$0xff] %v16525_v34  ;;  %v2170_v25 = vunpack.i.l.s16 %v16525_v34  ;;  %v2236_v2 = vcombine.low %v16508_v0, %v16521_v20  ;;  %v2233_v53 = vrot.slane %v2219_v28, %v16129_v23  ;;  %v1938_v39 = vcombine.high %v1937_v48, %v1937_v48 }
 0x175   : > { %v2243_v49 = vrot.slane %v2235_v13, %v16129_v23  ;;  %v16545_v5 = vrot.slane %v1937_v48, %v16129_v23  ;;  %v16550_v44 = vrot.slane %v1915_v38, %v16129_v23  ;;  %v16554_v46 = vcombine.high %v16540_v33, %v16540_v33 }
 0x176   : > { %v2250_v45 = vrot.slane %v2236_v2, %v16129_v23  ;;  %v2257_v29 = vrot.slane %v2170_v25, %v16129_v23  ;;  %v2234_v32 = vcombine.low %v2226_v56, %v2233_v53  ;;  %v16557_v50 = vrot.slane %v1938_v39, %v16129_v23 }
 0x177   : > { %v16561_v12 = vcombine.high %v16545_v5, %v16545_v5  ;;  %v1961_v26 = vcombine.high %v1960_v17, %v1960_v17  ;;  %v16565_v48 = vrot.slane %v1960_v17, %v16129_v23  ;;  %v2006_v28 = vunpack.i.h.s16 %v16540_v33 }
 0x178   : > { %19677 = vst [vmem:[#allocation30_spill] sm:$0xff] %v16557_v50  ;;  %v2258_v16 = vcombine.low %v2243_v49, %v2250_v45  ;;  %v2272_v35 = vrot.slane %v2257_v29, %v16129_v23  ;;  %14758 = vmatprep.mubr.msk.bf16.mxu1 %vm659_vm0, %v2234_v32  ;;  %v2008_v56 = vunpack.i.h.s16 %v16550_v44  ;;  %v13729_v13 = vpack.i.b16 %v16540_v33, %v16137_v37 }
 0x179   : > { %19678 = vst [vmem:[#allocation31_spill] sm:$0xff] %v16561_v12  ;;  %v1824_v25 = vpack.c.bf16 %v1817_v42, %v1817_v42  ;;  %v16573_v2 = vrot.slane %v1961_v26, %v16129_v23  ;;  %v16577_v53 = vpack.i.b16 %v16550_v44, %v2006_v28  ;;  %v13732_v17 = vpack.i.b16 %v16565_v48, %v16561_v12 }
 0x17a   : > { %v2265_v38 = vrot.slane %v2258_v16, %v16129_v23  ;;  %v16583_v49 = vcombine.high %v16565_v48, %v16565_v48  ;;  %v16586_v39 = vpack.i.b16 %v16554_v46, %v2008_v56  ;;  %v2016_v29 = vunpack.i.h.s16 %v16565_v48 }
 0x17b   : > { %19679 = vst [vmem:[#allocation32_spill] sm:$0xff] %v16577_v53  ;;  %v1983_v45 = vrot.slane %v1824_v25, %v16129_v23  ;;  %v2018_v42 = vunpack.i.h.s16 %v16573_v2  ;;  %v2347_v26 = vcombine.low %v13729_v13, %v16577_v53  ;;  %v2349_v16 = vcombine.low %v16557_v50, %v13732_v17 }
 0x17c   : > { %19680 = vst [vmem:[#allocation33_spill] sm:$0xff] %v16586_v39  ;;  %v2273_v32 = vcombine.low %v2265_v38, %v2272_v35  ;;  %v19609_v15 = vunpack.i.h.s16 %v16545_v5  ;;  %v2348_v1 = vcombine.low %v16586_v39, %v16545_v5  ;;  %v16600_v25 = vpack.i.b16 %v16573_v2, %v2016_v29 }
 0x17d   : > { %v1984_v57 = vcombine.high %v1983_v45, %v1983_v45  ;;  %v16597_v56 = vrot.slane %v1983_v45, %v16129_v23  ;;  %v2363_v35 = vrot.slane %v2347_v26, %v16129_v23  ;;  %v2377_v13 = vrot.slane %v2349_v16, %v16129_v23 }
 0x17e   : > { %19681 = vst [vmem:[#allocation34_spill] sm:$0xff] %v16600_v25  ;;  %14759 = vmatmul.mubr.msk.bf16.vlgmr.msra.gmra.mrb[0].mxu1 %vm659_vm0, %v2273_v32  ;;  %v16606_v38 = vpack.i.b16 %v16583_v49, %v2018_v42  ;;  %v2013_v17 = vunpack.i.h.s16 %v16557_v50  ;;  %v2370_v40 = vrot.slane %v2348_v1, %v16129_v23  ;;  %v2494_v32 = vunpack.i.h.s16 %v16561_v12 }
 0x17f   : > { %14763 = vmatpush3.bf16.msra.mxu1 %v16163_v59  ;;  %v16612_v45 = vrot.slane %v1984_v57, %v16129_v23  ;;  %v16616_v18 = vcombine.high %v16597_v56, %v16597_v56  ;;  %v2378_v26 = vcombine.low %v16166_v60, %v2363_v35  ;;  %v2501_v1 = vpack.i.b16 %v2006_v28, %v2492_v61 }
 0x180   : > { %19682 = vst [vmem:[#allocation35_spill] sm:$0xff] %v16606_v38  ;;  %15522 = vmatprep.subr.msk.bf16.mxu1 %vm2280_vm4, %v16152_v52  ;;  %v2395_v42 = vcombine.low %v16600_v25, %v16606_v38  ;;  %v16629_v59 = vpack.i.b16 %v16557_v50, %v19609_v15  ;;  %v2379_v57 = vcombine.low %v2370_v40, %v2377_v13  ;;  %vm8022_vm13 = vsmask.f32 256 }
 0x181   : > { %19683 = vst [vmem:[#allocation36_spill] sm:$0xff] %v16612_v45  ;;  %19684 = vst [vmem:[#allocation37_spill] sm:$0xff] %v16616_v18  ;;  %v2024_v16 = vunpack.i.l.s16 %v16616_v18  ;;  %v2396_v60 = vcombine.low %v16597_v56, %v16612_v45  ;;  %v16635_v35 = vpack.i.b16 %v16561_v12, %v2013_v17  ;;  %v2386_v52 = vrot.slane %v2378_v26, %v16129_v23 }
 0x182   : > { %v2403_v19 = vrot.slane %v2395_v42, %v16129_v23  ;;  %v2506_v37 = vpack.i.b16 %v2016_v29, %v2494_v32  ;;  %v2513_v61 = vcombine.low %v2501_v1, %v16550_v44  ;;  %v2393_v28 = vrot.slane %v2379_v57, %v16129_v23 }
 0x183   : > { %v2410_v15 = vrot.slane %v2396_v60, %v16129_v23  ;;  %v2417_v40 = vrot.slane %v2024_v16, %v16129_v23  ;;  %v2514_v13 = vcombine.low %v16554_v46, %v16629_v59  ;;  %v19612_v26 = vunpack.i.h.s16 %v16597_v56 }
 0x184   : > { %v2515_v58 = vcombine.low %v16635_v35, %v2506_v37  ;;  %v2529_v17 = vrot.slane %v2513_v61, %v16129_v23  ;;  %v2023_v42 = vunpack.i.h.s16 %v16612_v45  ;;  %v2394_v29 = vcombine.low %v2386_v52, %v2393_v28 }
 0x185   : > { %v2418_v32 = vcombine.low %v2403_v19, %v2410_v15  ;;  %v2432_v1 = vrot.slane %v2417_v40, %v16129_v23  ;;  %v2536_v57 = vrot.slane %v2514_v13, %v16129_v23  ;;  %v2496_v7 = vunpack.i.h.s16 %v16616_v18 }
 0x186   : > { %v2543_v60 = vrot.slane %v2515_v58, %v16129_v23  ;;  %v2544_v16 = vcombine.low %v16170_v62, %v2529_v17  ;;  %v13742_v37 = vpack.i.b16 %v16612_v45, %v19612_v26  ;;  %14764 = vmatprep.mubr.msk.bf16.mxu1 %vm659_vm0, %v2394_v29  ;;  %v13743_v15 = vpack.i.b16 %v16616_v18, %v2023_v42 }
 0x187   : > { %v2425_v61 = vrot.slane %v2418_v32, %v16129_v23  ;;  %v2561_v19 = vcombine.low %v16573_v2, %v16583_v49  ;;  %v19613_v52 = vunpack.i.h.s16 %v16456_v11  ;;  %v2159_v28 = vunpack.i.h.s16 %v16465_v21 }
 0x188   : > { %v2545_v58 = vcombine.low %v2536_v57, %v2543_v60  ;;  %v2552_v62 = vrot.slane %v2544_v16, %v16129_v23  ;;  %v19685_v40 = vcombine.low %v16155_v54, %v16187_v8  ;;  %v2562_v29 = vcombine.low %v13742_v37, %v13743_v15 }
 0x189   : > { %v2433_v17 = vcombine.low %v2425_v61, %v2432_v1  ;;  %v2583_v42 = vrot.slane %v2496_v7, %v16129_v23  ;;  %v2664_v32 = vunpack.i.h.s16 %v16469_v24  ;;  %v2569_v57 = vrot.slane %v2561_v19, %v16129_v23 }
 0x18a   : > { %v16669_v13 = vrot.slane %v19685_v40, %v16129_v23  ;;  %v2559_v26 = vrot.slane %v2545_v58, %v16129_v23  ;;  %v16678_v60 = vpack.i.b16 %v16465_v21, %v19613_v52  ;;  %v16681_v16 = vpack.i.b16 %v16469_v24, %v2159_v28  ;;  %v1851_v21 = vld [vmem:[#allocation2 + $0x70] ss:$2 sm:$0x3f] }
 0x18b   : > { %14765 = vmatmul.mubr.msk.bf16.vlgmr.msra.gmra.mrb[0].mxu1 %vm659_vm0, %v2433_v17  ;;  %v16685_v1 = vrot.slane %v2562_v29, %v16129_v23  ;;  %v19689_v7 = vunpack.i.h.s16 %v16473_v51  ;;  %v2683_v61 = vcombine.low %v16483_v6, %v16422_v41  ;;  %v19616_v15 = vunpack.i.h.s16 %v16508_v0  ;;  %v1853_v24 = vld [vmem:[#allocation2 + $0x90] ss:$2 sm:$0x3f] }
 0x18c   : > { %19686 = vst [vmem:[#allocation38_spill] sm:$0xff] %v16678_v60  ;;  %19687 = vst [vmem:[#allocation39_spill] sm:$0xff] %v16681_v16  ;;  %14769 = vmatpush3.bf16.msra.mxu1 %v16180_v3  ;;  %v2560_v19 = vcombine.low %v2552_v62, %v2559_v26  ;;  %v2684_v58 = vcombine.low %v16430_v36, %v16678_v60  ;;  %v2169_v28 = vunpack.i.h.s16 %v16521_v20  ;;  %v2666_v40 = vunpack.i.h.s16 %v16525_v34  ;;  %v13755_v3 = vld [vmem:[%s19588_s3 + $0x10] sm:$0xf] }
 0x18d   : > { %19688 = vst [vmem:[#allocation40_spill] sm:$0xff] %v16685_v1  ;;  %v2676_v37 = vpack.i.b16 %v19689_v7, %v2664_v32  ;;  %15523 = vmatprep.subr.msk.bf16.mxu1 %vm2280_vm4, %v16175_v63  ;;  %v2584_v17 = vcombine.low %v2569_v57, %v16685_v1  ;;  %v2598_v29 = vrot.slane %v2583_v42, %v16129_v23  ;;  %v1847_v26 = vld [vmem:[#allocation2 + $0x30] ss:$2 sm:$0x3f]  ;;  %vm8023_vm14 = vsmask.f32 1284 }
 0x18e   : > { %v2699_v32 = vrot.slane %v2683_v61, %v16129_v23  ;;  %14770 = vmatprep.mubr.msk.bf16.mxu1 %vm659_vm0, %v2560_v19  ;;  %v13751_v62 = vpack.i.b16 %v16521_v20, %v19616_v15  ;;  %v13752_v63 = vpack.i.b16 %v16525_v34, %v2169_v28  ;;  %v2731_v42 = vcombine.low %v16486_v31, %v16494_v43  ;;  %v1849_v7 = vld [vmem:[#allocation2 + $0x50] ss:$2 sm:$0x3f]  ;;  %vm8024_vm1 = vmor %vm8022_vm13, %vm8023_vm14 }
 0x18f   : > { %v2685_v6 = vcombine.low %v16681_v16, %v2676_v37  ;;  %v16714_v57 = vrot.slane %v2666_v40, %v16129_v23  ;;  %v2591_v37 = vrot.slane %v2584_v17, %v16129_v23  ;;  %v2706_v61 = vrot.slane %v2684_v58, %v16129_v23  ;;  %v16727_v40 = vld [vmem:[%s19588_s3 + $0x14] sm:$0xf] }
 0x190   : > { %v2714_v19 = vcombine.low %v16183_v4, %v2699_v32  ;;  %v2732_v15 = vcombine.low %v13751_v62, %v13752_v63  ;;  %v2739_v28 = vrot.slane %v2731_v42, %v16129_v23  ;;  %v16722_v20 = vsel %vm2280_vm4, %v13755_v3, 0 }
 0x191   : > { %v2713_v52 = vrot.slane %v2685_v6, %v16129_v23  ;;  %v1857_v34 = vpack.c.bf16 %v1847_v26, %v1847_v26  ;;  %v2599_v17 = vcombine.low %v2591_v37, %v2598_v29  ;;  %v1858_v4 = vpack.c.bf16 %v1849_v7, %v1849_v7 }
 0x192   : > { %v16732_v32 = vrot.slane %v2732_v15, %v16129_v23  ;;  %v1859_v62 = vpack.c.bf16 %v1851_v21, %v1851_v21  ;;  %v1860_v42 = vpack.c.bf16 %v1853_v24, %v1853_v24  ;;  %v2722_v26 = vrot.slane %v2714_v19, %v16129_v23 }
 0x193   : > { %v2715_v58 = vcombine.low %v2706_v61, %v2713_v52  ;;  %v2866_v63 = vrot.slane %v1857_v34, %v16129_v23  ;;  %v2889_v45 = vrot.slane %v1858_v4, %v16129_v23  ;;  %v16740_v52 = vsel %vm2280_vm4, %v16727_v40, 0 }
 0x194   : > { %19690 = vst [vmem:[#allocation41_spill] sm:$0xff] %v16732_v32  ;;  %v2754_v29 = vcombine.low %v2739_v28, %v16732_v32  ;;  %v2912_v21 = vrot.slane %v1859_v62, %v16129_v23  ;;  %v2935_v37 = vrot.slane %v1860_v42, %v16129_v23  ;;  %v1875_v61 = vpack.c.bf16 %v1865_v47, %v1865_v47 }
 0x195   : > { %v2729_v55 = vrot.slane %v2715_v58, %v16129_v23  ;;  %v2867_v7 = vcombine.high %v2866_v63, %v2866_v63  ;;  %v16744_v15 = vrot.slane %v2866_v63, %v16129_v23  ;;  %v2890_v24 = vcombine.high %v2889_v45, %v2889_v45 }
 0x196   : > { %v16748_v34 = vrot.slane %v2889_v45, %v16129_v23  ;;  %v2761_v58 = vrot.slane %v2754_v29, %v16129_v23  ;;  %v2913_v28 = vcombine.high %v2912_v21, %v2912_v21  ;;  %v16765_v62 = vrot.slane %v2912_v21, %v16129_v23  ;;  %v1867_v29 = vld [vmem:[#allocation2 + $0x51] ss:$2 sm:$0x3f] }
 0x197   : > { %v2730_v19 = vcombine.low %v2722_v26, %v2729_v55  ;;  %v16753_v4 = vrot.slane %v2867_v7, %v16129_v23  ;;  %14771 = vmatmul.mubr.msk.bf16.vlgmr.msra.gmra.mrb[0].mxu1 %vm659_vm0, %v2599_v17  ;;  %v16758_v63 = vcombine.high %v16744_v15, %v16744_v15  ;;  %v19622_v47 = vunpack.i.h.s16 %v16744_v15 }
 0x198   : > { %v16762_v45 = vcombine.high %v16748_v34, %v16748_v34  ;;  %14775 = vmatpush3.bf16.msra.mxu1 %v16199_v14  ;;  %v16771_v55 = vrot.slane %v2890_v24, %v16129_v23  ;;  %v13756_v42 = vpack.i.b16 %v16744_v15, %v16191_v9  ;;  %v16777_v26 = vrot.slane %v2913_v28, %v16129_v23 }
 0x199   : > { %14776 = vmatprep.mubr.msk.bf16.mxu1 %vm659_vm0, %v2730_v19  ;;  %v2960_v17 = vunpack.i.h.s16 %v16753_v4  ;;  %15524 = vmatprep.subr.msk.bf16.mxu1 %vm2280_vm4, %v13755_v3  ;;  %v16783_v14 = vpack.i.b16 %v16753_v4, %v19622_v47  ;;  %v16789_v21 = vcombine.high %v16765_v62, %v16765_v62  ;;  %v2936_v24 = vcombine.high %v2935_v37, %v2935_v37  ;;  %v1869_v47 = vld [vmem:[#allocation2 + $0x71] ss:$2 sm:$0x3f] }
 0x19a   : > { %v13759_v7 = vpack.i.b16 %v16765_v62, %v16762_v45  ;;  %v16795_v28 = vrot.slane %v2935_v37, %v16129_v23  ;;  %v19632_v3 = vunpack.i.h.s16 %v16765_v62  ;;  %v2970_v6 = vunpack.i.h.s16 %v16777_v26 }
 0x19b   : > { %19691 = vst [vmem:[#allocation42_spill] sm:$0xff] %v16783_v14  ;;  %v16792_v19 = vpack.i.b16 %v16758_v63, %v2960_v17  ;;  %v2993_v18 = vcombine.low %v13756_v42, %v16783_v14  ;;  %v16802_v12 = vrot.slane %v2936_v24, %v16129_v23  ;;  %v1876_v25 = vpack.c.bf16 %v1867_v29, %v1867_v29 }
 0x19c   : > { %v2995_v32 = vcombine.low %v16771_v55, %v13759_v7  ;;  %v16808_v37 = vcombine.high %v16795_v28, %v16795_v28  ;;  %v16813_v50 = vpack.i.b16 %v16777_v26, %v19632_v3  ;;  %v16816_v42 = vpack.i.b16 %v16789_v21, %v2970_v6 }
 0x19d   : > { %19692 = vst [vmem:[#allocation43_spill] sm:$0xff] %v16792_v19  ;;  %19693 = vst [vmem:[#allocation44_spill] sm:$0xff] %v16802_v12  ;;  %v2994_v17 = vcombine.low %v16792_v19, %v16748_v34  ;;  %v3009_v7 = vrot.slane %v2993_v18, %v16129_v23  ;;  %v3042_v29 = vcombine.low %v16795_v28, %v16802_v12  ;;  %v2965_v51 = vunpack.i.h.s16 %v16771_v55 }
 0x19e   : > { %19694 = vst [vmem:[#allocation45_spill] sm:$0xff] %v16813_v50  ;;  %19695 = vst [vmem:[#allocation46_spill] sm:$0xff] %v16816_v42  ;;  %v3023_v24 = vrot.slane %v2995_v32, %v16129_v23  ;;  %v1877_v14 = vpack.c.bf16 %v1869_v47, %v1869_v47  ;;  %v2976_v53 = vunpack.i.l.s16 %v16808_v37  ;;  %v3041_v39 = vcombine.low %v16813_v50, %v16816_v42 }
 0x19f   : > { %v3016_v19 = vrot.slane %v2994_v17, %v16129_v23  ;;  %v3176_v3 = vrot.slane %v1875_v61, %v16129_v23  ;;  %v3024_v6 = vcombine.low %v16669_v13, %v3009_v7  ;;  %v3056_v1 = vrot.slane %v3042_v29, %v16129_v23 }
 0x1a0   : > { %v3199_v18 = vrot.slane %v1876_v25, %v16129_v23  ;;  %v3222_v32 = vrot.slane %v1877_v14, %v16129_v23  ;;  %v3049_v47 = vrot.slane %v3041_v39, %v16129_v23  ;;  %v3063_v17 = vrot.slane %v2976_v53, %v16129_v23  ;;  %v1871_v53 = vld [vmem:[#allocation2 + $0x91] ss:$2 sm:$0x3f] }
 0x1a1   : > { %v3025_v38 = vcombine.low %v3016_v19, %v3023_v24  ;;  %v3177_v31 = vcombine.high %v3176_v3, %v3176_v3  ;;  %v19696_v60 = vrot.slane %v16714_v57, %v16129_v23  ;;  %v16837_v61 = vrot.slane %v3176_v3, %v16129_v23 }
 0x1a2   : > { %v3200_v13 = vcombine.high %v3199_v18, %v3199_v18  ;;  %v16840_v7 = vrot.slane %v3199_v18, %v16129_v23  ;;  %v3032_v25 = vrot.slane %v3024_v6, %v16129_v23  ;;  %v3064_v19 = vcombine.low %v3049_v47, %v3056_v1 }
 0x1a3   : > { %v2769_v42 = vcombine.low %v2761_v58, %v19696_v60  ;;  %v3039_v14 = vrot.slane %v3025_v38, %v16129_v23  ;;  %v16845_v39 = vrot.slane %v3177_v31, %v16129_v23  ;;  %v3078_v60 = vrot.slane %v3063_v17, %v16129_v23 }
 0x1a4   : > { %v16851_v57 = vcombine.high %v16837_v61, %v16837_v61  ;;  %v16854_v58 = vrot.slane %v3200_v13, %v16129_v23  ;;  %v3223_v3 = vcombine.high %v3222_v32, %v3222_v32  ;;  %v16859_v31 = vcombine.high %v16840_v7, %v16840_v7 }
 0x1a5   : > { %14777 = vmatmul.mubr.msk.bf16.vlgmr.msra.gmra.mrb[0].mxu1 %vm659_vm0, %v2769_v42  ;;  %v3040_v38 = vcombine.low %v3032_v25, %v3039_v14  ;;  %v16862_v1 = vrot.slane %v3222_v32, %v16129_v23  ;;  %v19638_v42 = vunpack.i.h.s16 %v16837_v61  ;;  %v3071_v24 = vrot.slane %v3064_v19, %v16129_v23 }
 0x1a6   : > { %14781 = vmatpush3.bf16.msra.mxu1 %v16722_v20  ;;  %v3270_v29 = vunpack.i.h.s16 %v16845_v39  ;;  %v3302_v20 = vcombine.low %v16194_v10, %v16207_v22  ;;  %v1878_v6 = vpack.c.bf16 %v1871_v53, %v1871_v53  ;;  %v13765_v18 = vpack.i.b16 %v16837_v61, %v16212_v27 }
 0x1a7   : > { %15525 = vmatprep.subr.msk.bf16.mxu1 %vm2280_vm4, %v16727_v40  ;;  %14782 = vmatprep.mubr.msk.bf16.mxu1 %vm659_vm0, %v3040_v38  ;;  %v16877_v32 = vpack.i.b16 %v16845_v39, %v19638_v42  ;;  %v13768_v40 = vpack.i.b16 %v16862_v1, %v16859_v31  ;;  %v16882_v47 = vrot.slane %v3223_v3, %v16129_v23  ;;  %v19642_v38 = vunpack.i.h.s16 %v16862_v1 }
 0x1a8   : > { %v16885_v17 = vpack.i.b16 %v16851_v57, %v3270_v29  ;;  %v3312_v13 = vrot.slane %v3302_v20, %v16129_v23  ;;  %v16890_v25 = vcombine.high %v16862_v1, %v16862_v1  ;;  %v3245_v14 = vrot.slane %v1878_v6, %v16129_v23 }
 0x1a9   : > { %19697 = vst [vmem:[#allocation47_spill] sm:$0xff] %v16877_v32  ;;  %v3303_v19 = vcombine.low %v13765_v18, %v16877_v32  ;;  %v3305_v53 = vcombine.low %v16854_v58, %v13768_v40  ;;  %v3280_v3 = vunpack.i.h.s16 %v16882_v47  ;;  %v3079_v42 = vcombine.low %v3071_v24, %v3078_v60 }
 0x1aa   : > { %19698 = vst [vmem:[#allocation48_spill] sm:$0xff] %v16885_v17  ;;  %v3304_v29 = vcombine.low %v16885_v17, %v16840_v7  ;;  %v3246_v50 = vcombine.high %v3245_v14, %v3245_v14  ;;  %v16900_v20 = vrot.slane %v3245_v14, %v16129_v23  ;;  %v16907_v18 = vpack.i.b16 %v16882_v47, %v19642_v38 }
 0x1ab   : > { %v3319_v16 = vrot.slane %v3303_v19, %v16129_v23  ;;  %v3333_v6 = vrot.slane %v3305_v53, %v16129_v23  ;;  %v16910_v40 = vpack.i.b16 %v16890_v25, %v3280_v3  ;;  %v2953_v19 = vunpack.i.h.s16 %v16155_v54  ;;  %v13773_v54 = vld [vmem:[%s19588_s3 + $0x18] sm:$0xf] }
 0x1ac   : > { %19699 = vst [vmem:[#allocation49_spill] sm:$0xff] %v16907_v18  ;;  %v3326_v60 = vrot.slane %v3304_v29, %v16129_v23  ;;  %v16914_v24 = vrot.slane %v3246_v50, %v16129_v23  ;;  %v16918_v14 = vcombine.high %v16900_v20, %v16900_v20  ;;  %v2955_v38 = vunpack.i.h.s16 %v16187_v8 }
 0x1ad   : > { %19700 = vst [vmem:[#allocation50_spill] sm:$0xff] %v16910_v40  ;;  %v3334_v53 = vcombine.low %v3312_v13, %v3319_v16  ;;  %v3351_v32 = vcombine.low %v16907_v18, %v16910_v40  ;;  %v3452_v13 = vunpack.i.h.s16 %v16191_v9  ;;  %v3454_v3 = vunpack.i.h.s16 %v16762_v45 }
 0x1ae   : > { %v3335_v17 = vcombine.low %v3326_v60, %v3333_v6  ;;  %v3286_v29 = vunpack.i.l.s16 %v16918_v14  ;;  %v3352_v50 = vcombine.low %v16900_v20, %v16914_v24  ;;  %v13774_v40 = vpack.i.b16 %v16187_v8, %v2953_v19 }
 0x1af   : > { %v3342_v30 = vrot.slane %v3334_v53, %v16129_v23  ;;  %v3359_v16 = vrot.slane %v3351_v32, %v16129_v23  ;;  %v13775_v18 = vpack.i.b16 %v16191_v9, %v2955_v38  ;;  %v19701_v32 = vunpack.i.h.s16 %v16744_v15 }
 0x1b0   : > { %v3349_v6 = vrot.slane %v3335_v17, %v16129_v23  ;;  %v3366_v60 = vrot.slane %v3352_v50, %v16129_v23  ;;  %v3373_v53 = vrot.slane %v3286_v29, %v16129_v23  ;;  %v19702_v0 = vunpack.i.h.s16 %v16748_v34 }
 0x1b1   : > { %14783 = vmatmul.mubr.msk.bf16.vlgmr.msra.gmra.mrb[0].mxu1 %vm659_vm0, %v3079_v42  ;;  %v3461_v41 = vpack.i.b16 %v19701_v32, %v3452_v13  ;;  %v16952_v8 = vpack.i.b16 %v16762_v45, %v2965_v51  ;;  %v3472_v29 = vcombine.low %v13774_v40, %v13775_v18  ;;  %v19651_v13 = vunpack.i.h.s16 %v16795_v28 }
 0x1b2   : > { %14787 = vmatpush3.bf16.msra.mxu1 %v16740_v52  ;;  %v16948_v42 = vpack.i.b16 %v16771_v55, %v19702_v0  ;;  %v3350_v17 = vcombine.low %v3342_v30, %v3349_v6  ;;  %v3374_v50 = vcombine.low %v3359_v16, %v3366_v60  ;;  %v19703_v52 = vunpack.i.h.s16 %v16765_v62 }
 0x1b3   : > { %15526 = vmatprep.subr.msk.bf16.mxu1 %vm2280_vm4, %v13773_v54  ;;  %v3473_v9 = vcombine.low %v3461_v41, %v16753_v4  ;;  %v2975_v51 = vunpack.i.h.s16 %v16802_v12  ;;  %v3388_v16 = vrot.slane %v3373_v53, %v16129_v23  ;;  %v13778_v6 = vpack.i.b16 %v16802_v12, %v19651_v13 }
 0x1b4   : > { %v3466_v19 = vpack.i.b16 %v19703_v52, %v3454_v3  ;;  %v3474_v38 = vcombine.low %v16758_v63, %v16948_v42  ;;  %14788 = vmatprep.mubr.msk.bf16.mxu1 %vm659_vm0, %v3350_v17  ;;  %v3381_v30 = vrot.slane %v3374_v50, %v16129_v23  ;;  %v3482_v3 = vrot.slane %v3472_v29, %v16129_v23 }
 0x1b5   : > { %v3489_v18 = vrot.slane %v3473_v9, %v16129_v23  ;;  %v13779_v60 = vpack.i.b16 %v16808_v37, %v2975_v51  ;;  %v3521_v32 = vcombine.low %v16777_v26, %v16789_v21  ;;  %v3567_v17 = vsel %vm2280_vm4, %v13773_v54, 0 }
 0x1b6   : > { %v3475_v0 = vcombine.low %v16952_v8, %v3466_v19  ;;  %v3496_v41 = vrot.slane %v3474_v38, %v16129_v23  ;;  %v3456_v50 = vunpack.i.h.s16 %v16808_v37  ;;  %v3263_v52 = vunpack.i.h.s16 %v16194_v10 }
 0x1b7   : > { %v3504_v53 = vcombine.low %v3482_v3, %v3489_v18  ;;  %v3389_v19 = vcombine.low %v3381_v30, %v3388_v16  ;;  %v3522_v9 = vcombine.low %v13778_v6, %v13779_v60  ;;  %v3265_v38 = vunpack.i.h.s16 %v16207_v22  ;;  %v13782_v16 = vld [vmem:[%s19588_s3 + $0x1c] sm:$0xf] }
 0x1b8   : > { %v3503_v40 = vrot.slane %v3475_v0, %v16129_v23  ;;  %v3529_v13 = vrot.slane %v3521_v32, %v16129_v23  ;;  %v3273_v51 = vunpack.i.h.s16 %v16840_v7  ;;  %v3275_v12 = vunpack.i.h.s16 %v16854_v58 }
 0x1b9   : > { %v3512_v0 = vrot.slane %v3504_v53, %v16129_v23  ;;  %v16985_v3 = vrot.slane %v3522_v9, %v16129_v23  ;;  %v3622_v10 = vunpack.i.h.s16 %v16212_v27  ;;  %v3624_v30 = vunpack.i.h.s16 %v16859_v31 }
 0x1ba   : > { %v3505_v29 = vcombine.low %v3496_v41, %v3503_v40  ;;  %v13783_v18 = vpack.i.b16 %v16207_v22, %v3263_v52  ;;  %v13784_v41 = vpack.i.b16 %v16212_v27, %v3265_v38  ;;  %v16997_v40 = vpack.i.b16 %v16854_v58, %v3273_v51 }
 0x1bb   : > { %v17000_v6 = vpack.i.b16 %v16859_v31, %v3275_v12  ;;  %v3544_v32 = vcombine.low %v3529_v13, %v16985_v3  ;;  %v19704_v53 = vunpack.i.h.s16 %v16837_v61  ;;  %v19705_v22 = vunpack.i.h.s16 %v16862_v1 }
 0x1bc   : > { %v3519_v54 = vrot.slane %v3505_v29, %v16129_v23  ;;  %v3642_v27 = vcombine.low %v13783_v18, %v13784_v41  ;;  %v3644_v9 = vcombine.low %v16851_v57, %v16997_v40  ;;  %v19653_v38 = vunpack.i.h.s16 %v16900_v20 }
 0x1bd   : > { %14789 = vmatmul.mubr.msk.bf16.vlgmr.msra.gmra.mrb[0].mxu1 %vm659_vm0, %v3389_v19  ;;  %v3631_v29 = vpack.i.b16 %v19704_v53, %v3622_v10  ;;  %v3636_v52 = vpack.i.b16 %v19705_v22, %v3624_v30  ;;  %v3285_v12 = vunpack.i.h.s16 %v16914_v24  ;;  %v3737_v53 = vsel %vm2280_vm4, %v13782_v16, 0 }
 0x1be   : > { %v3520_v60 = vcombine.low %v3512_v0, %v3519_v54  ;;  %14793 = vmatpush3.bf16.msra.mxu1 %v3567_v17  ;;  %v3543_v0 = vrot.slane %v3456_v50, %v16129_v23  ;;  %v3652_v17 = vrot.slane %v3642_v27, %v16129_v23  ;;  %v13787_v54 = vpack.i.b16 %v16914_v24, %v19653_v38 }
 0x1bf   : > { %15527 = vmatprep.subr.msk.bf16.mxu1 %vm2280_vm4, %v13782_v16  ;;  %v3643_v13 = vcombine.low %v3631_v29, %v16845_v39  ;;  %v3645_v19 = vcombine.low %v17000_v6, %v3636_v52  ;;  %v13788_v10 = vpack.i.b16 %v16918_v14, %v3285_v12  ;;  %v3666_v18 = vrot.slane %v3644_v9, %v16129_v23 }
 0x1c0   : > { %14794 = vmatprep.mubr.msk.bf16.mxu1 %vm659_vm0, %v3520_v60  ;;  %v3551_v60 = vrot.slane %v3544_v32, %v16129_v23  ;;  %v13792_v50 = vpack.i.b16 %v16545_v5, %v16554_v46  ;;  %v3691_v27 = vcombine.low %v16882_v47, %v16890_v25  ;;  %v13793_v12 = vpack.i.b16 %v16597_v56, %v16583_v49 }
 0x1c1   : > { %v3659_v30 = vrot.slane %v3643_v13, %v16129_v23  ;;  %v3673_v41 = vrot.slane %v3645_v19, %v16129_v23  ;;  %v3692_v29 = vcombine.low %v13787_v54, %v13788_v10  ;;  %v1819_v13 = vld [vmem:[#allocation2 + $0xa0] ss:$2 sm:$0x3f]  ;;  %v3558_v9 = vrot.slane %v3543_v0, %v16129_v23 }
 0x1c2   : > { %v3626_v19 = vunpack.i.h.s16 %v16918_v14  ;;  %v3830_v16 = vcombine.low %v16540_v33, %v16550_v44  ;;  %v3831_v32 = vcombine.low %v13792_v50, %v16629_v59  ;;  %v3832_v10 = vcombine.low %v16635_v35, %v16565_v48  ;;  %v13791_v48 = vld [vmem:[%s19588_s3 + $0x20] sm:$0xf] }
 0x1c3   : > { %v3674_v22 = vcombine.low %v3652_v17, %v3659_v30  ;;  %v3675_v52 = vcombine.low %v3666_v18, %v3673_v41  ;;  %v17040_v17 = vrot.slane %v3692_v29, %v16129_v23  ;;  %v3833_v30 = vcombine.low %v16573_v2, %v13793_v12  ;;  %v19707_v12 = vld [vmem:[#allocation18_spill] sm:$0xff] }
 0x1c4   : > { %v3840_v0 = vrot.slane %v3830_v16, %v16129_v23  ;;  %v3847_v41 = vrot.slane %v3831_v32, %v16129_v23  ;;  %v1825_v38 = vpack.c.bf16 %v1819_v13, %v1819_v13  ;;  %v3559_v33 = vcombine.low %v3551_v60, %v3558_v9  ;;  %v19708_v13 = vld [vmem:[#allocation17_spill] sm:$0xff]  ;;  %v19710_v32 = vld [vmem:[#allocation39_spill] sm:$0xff] }
 0x1c5   : > { %v3689_v54 = vrot.slane %v3675_v52, %v16129_v23  ;;  %v3682_v18 = vrot.slane %v3674_v22, %v16129_v23  ;;  %v3699_v44 = vrot.slane %v3691_v27, %v16129_v23  ;;  %v3854_v59 = vrot.slane %v3832_v10, %v16129_v23  ;;  %v19706_v52 = vld [vmem:[#allocation25_spill] sm:$0xff]  ;;  %v1837_v10 = vld [vmem:[#allocation2 + $0xa1] ss:$2 sm:$0x3f] }
 0x1c6   : > { %v3861_v29 = vrot.slane %v3833_v30, %v16129_v23  ;;  %v3862_v2 = vcombine.low %v3840_v0, %v3847_v41  ;;  %v3799_v35 = vrot.slane %v1825_v38, %v16129_v23  ;;  %v13797_v22 = vpack.i.b16 %v16456_v11, %v16430_v36  ;;  %v19709_v16 = vld [vmem:[#allocation21_spill] sm:$0xff] }
 0x1c7   : > { %v3690_v50 = vcombine.low %v3682_v18, %v3689_v54  ;;  %v13798_v27 = vpack.i.b16 %v19706_v52, %v16494_v43  ;;  %v4010_v9 = vcombine.low %v19708_v13, %v19707_v12  ;;  %v4012_v54 = vcombine.low %v19710_v32, %v19709_v16 }
 0x1c8   : > { %v3863_v60 = vcombine.low %v3854_v59, %v3861_v29  ;;  %v3714_v38 = vcombine.low %v3699_v44, %v17040_v17  ;;  %v3870_v30 = vrot.slane %v3862_v2, %v16129_v23  ;;  %v3800_v18 = vcombine.high %v3799_v35, %v3799_v35  ;;  %v19712_v29 = vld [vmem:[#allocation24_spill] sm:$0xff] }
 0x1c9   : > { %14795 = vmatmul.mubr.msk.bf16.vlgmr.msra.gmra.mrb[0].mxu1 %vm659_vm0, %v3559_v33  ;;  %v17070_v41 = vrot.slane %v3799_v35, %v16129_v23  ;;  %v19711_v33 = vld [vmem:[#allocation38_spill] sm:$0xff]  ;;  %v4013_v12 = vcombine.low %v19712_v29, %v13798_v27  ;;  %v4020_v44 = vrot.slane %v4010_v9, %v16129_v23  ;;  %v1843_v2 = vpack.c.bf16 %v1837_v10, %v1837_v10 }
 0x1ca   : > { %14799 = vmatpush3.bf16.msra.mxu1 %v3737_v53  ;;  %14800 = vmatprep.mubr.msk.bf16.mxu1 %vm659_vm0, %v3690_v50  ;;  %v3877_v0 = vrot.slane %v3863_v60, %v16129_v23  ;;  %v4011_v59 = vcombine.low %v13797_v22, %v19711_v33  ;;  %v3713_v53 = vrot.slane %v3626_v19, %v16129_v23  ;;  %v2495_v27 = vunpack.i.h.s16 %v16583_v49 }
 0x1cb   : > { %15528 = vmatprep.subr.msk.bf16.mxu1 %vm2280_vm4, %v13791_v48  ;;  %v17076_v50 = vrot.slane %v3800_v18, %v16129_v23  ;;  %v4034_v60 = vrot.slane %v4012_v54, %v16129_v23  ;;  %v4041_v35 = vrot.slane %v4013_v12, %v16129_v23  ;;  %v3721_v32 = vrot.slane %v3714_v38, %v16129_v23 }
 0x1cc   : > { %v3878_v13 = vcombine.low %v3870_v30, %v3877_v0  ;;  %v4027_v16 = vrot.slane %v4011_v59, %v16129_v23  ;;  %v17085_v22 = vcombine.high %v17070_v41, %v17070_v41  ;;  %v3979_v19 = vrot.slane %v1843_v2, %v16129_v23 }
 0x1cd   : > { %v3879_v9 = vcombine.low %v17070_v41, %v17076_v50  ;;  %v4043_v30 = vcombine.low %v4034_v60, %v4041_v35  ;;  %v2493_v18 = vunpack.i.h.s16 %v16554_v46  ;;  %v3728_v54 = vrot.slane %v3713_v53, %v16129_v23  ;;  %v13796_v35 = vld [vmem:[%s19588_s3 + $0x24] sm:$0xf] }
 0x1ce   : > { %v4042_v10 = vcombine.low %v4020_v44, %v4027_v16  ;;  %v3980_v0 = vcombine.high %v3979_v19, %v3979_v19  ;;  %v3917_v29 = vsel %vm2280_vm4, %v13791_v48, 0  ;;  %v17097_v12 = vrot.slane %v3979_v19, %v16129_v23 }
 0x1cf   : > { %v4057_v33 = vrot.slane %v4043_v30, %v16129_v23  ;;  %v3729_v59 = vcombine.low %v3721_v32, %v3728_v54  ;;  %v19713_v49 = vunpack.i.h.s16 %v16597_v56  ;;  %v3820_v44 = vunpack.i.l.s16 %v17085_v22  ;;  %v19715_v32 = vld [vmem:[#allocation35_spill] sm:$0xff]  ;;  %v19718_v30 = vld [vmem:[#allocation32_spill] sm:$0xff]  ;;  %v19719_v54 = vld [vmem:[#allocation30_spill] sm:$0xff] }
 0x1d0   : > { %v4050_v38 = vrot.slane %v4042_v10, %v16129_v23  ;;  %v3886_v46 = vrot.slane %v3879_v9, %v16129_v23  ;;  %v19714_v53 = vunpack.i.h.s16 %v16545_v5  ;;  %v17109_v48 = vrot.slane %v3980_v0, %v16129_v23  ;;  %v19717_v10 = vld [vmem:[#allocation33_spill] sm:$0xff] }
 0x1d1   : > { %v4157_v2 = vpack.i.b16 %v19713_v49, %v2495_v27  ;;  %v17115_v56 = vcombine.high %v17097_v12, %v17097_v12  ;;  %v3893_v5 = vrot.slane %v3820_v44, %v16129_v23  ;;  %v19716_v27 = vld [vmem:[#allocation40_spill] sm:$0xff]  ;;  %vm8025_vm15 = vsmask.f32 2312 }
 0x1d2   : > { %v4058_v16 = vcombine.low %v4050_v38, %v4057_v33  ;;  %v4155_v60 = vpack.i.b16 %v19714_v53, %v2493_v18  ;;  %v3894_v9 = vcombine.low %v19716_v27, %v3886_v46  ;;  %v4162_v18 = vcombine.low %v19718_v30, %v19717_v10  ;;  %v19720_v38 = vld [vmem:[#allocation34_spill] sm:$0xff]  ;;  %v19721_v33 = vld [vmem:[#allocation31_spill] sm:$0xff] }
 0x1d3   : > { %v4165_v19 = vcombine.low %v19715_v32, %v4157_v2  ;;  %v3908_v44 = vrot.slane %v3893_v5, %v16129_v23  ;;  %v3817_v27 = vunpack.i.h.s16 %v17070_v41  ;;  %v3819_v10 = vunpack.i.h.s16 %v17076_v50  ;;  %v13801_v5 = vld [vmem:[%s19588_s3 + $0x28] sm:$0xf] }
 0x1d4   : > { %v4163_v0 = vcombine.low %v4155_v60, %v19719_v54  ;;  %v3901_v2 = vrot.slane %v3894_v9, %v16129_v23  ;;  %v4172_v46 = vrot.slane %v4162_v18, %v16129_v23  ;;  %v4097_v9 = vsel %vm2280_vm4, %v13796_v35, 0 }
 0x1d5   : > { %14801 = vmatmul.mubr.msk.bf16.vlgmr.msra.gmra.mrb[0].mxu1 %vm659_vm0, %v3729_v59  ;;  %v4164_v59 = vcombine.low %v19721_v33, %v19720_v38  ;;  %v4193_v49 = vrot.slane %v4165_v19, %v16129_v23  ;;  %v4152_v33 = vunpack.i.h.s16 %v17085_v22  ;;  %v13802_v41 = vpack.i.b16 %v17076_v50, %v3817_v27 }
 0x1d6   : > { %14805 = vmatpush3.bf16.msra.mxu1 %v3917_v29  ;;  %14806 = vmatprep.mubr.msk.bf16.mxu1 %vm659_vm0, %v3878_v13  ;;  %v4059_v13 = vcombine.low %v17097_v12, %v17109_v48  ;;  %v4000_v29 = vunpack.i.l.s16 %v17115_v56  ;;  %v4179_v53 = vrot.slane %v4163_v0, %v16129_v23  ;;  %v3909_v19 = vcombine.low %v3901_v2, %v3908_v44 }
 0x1d7   : > { %15529 = vmatprep.subr.msk.bf16.mxu1 %vm2280_vm4, %v13796_v35  ;;  %v4186_v32 = vrot.slane %v4164_v59, %v16129_v23  ;;  %v2665_v0 = vunpack.i.h.s16 %v16494_v43  ;;  %v13803_v59 = vpack.i.b16 %v17085_v22, %v3819_v10  ;;  %v13812_v2 = vpack.i.b16 %v16748_v34, %v16758_v63 }
 0x1d8   : > { %v4066_v60 = vrot.slane %v4059_v13, %v16129_v23  ;;  %v4073_v30 = vrot.slane %v4000_v29, %v16129_v23  ;;  %v4194_v18 = vcombine.low %v4172_v46, %v4179_v53  ;;  %v19722_v13 = vld [vmem:[#allocation41_spill] sm:$0xff]  ;;  %v13813_v44 = vpack.i.b16 %v16795_v28, %v16789_v21 }
 0x1d9   : > { %v4195_v54 = vcombine.low %v4186_v32, %v4193_v49  ;;  %v19723_v29 = vld [vmem:[#allocation37_spill] sm:$0xff]  ;;  %v19724_v49 = vld [vmem:[#allocation36_spill] sm:$0xff]  ;;  %v4257_v50 = vsel %vm2280_vm4, %v13801_v5, 0  ;;  %v2663_v22 = vunpack.i.h.s16 %v16430_v36  ;;  %v4510_v27 = vcombine.low %v16744_v15, %v16753_v4 }
 0x1da   : > { %v4074_v38 = vcombine.low %v19722_v13, %v4066_v60  ;;  %v4211_v35 = vcombine.low %v19724_v49, %v19723_v29  ;;  %v4088_v43 = vrot.slane %v4073_v30, %v16129_v23  ;;  %v4202_v53 = vrot.slane %v4194_v18, %v16129_v23  ;;  %v19727_v13 = vld [vmem:[#allocation27_spill] sm:$0xff] }
 0x1db   : > { %v4209_v46 = vrot.slane %v4195_v54, %v16129_v23  ;;  %v19725_v60 = vunpack.i.h.s16 %v19706_v52  ;;  %v17169_v30 = vrot.slane %v4152_v33, %v16129_v23  ;;  %v4512_v36 = vcombine.low %v16952_v8, %v16765_v62 }
 0x1dc   : > { %v4081_v10 = vrot.slane %v4074_v38, %v16129_v23  ;;  %v4513_v54 = vcombine.low %v16777_v26, %v13813_v44  ;;  %v4520_v52 = vrot.slane %v4510_v27, %v16129_v23  ;;  %v19726_v4 = vunpack.i.h.s16 %v16456_v11 }
 0x1dd   : > { %v4317_v32 = vpack.i.b16 %v19725_v60, %v2665_v0  ;;  %v4210_v15 = vcombine.low %v4202_v53, %v4209_v46  ;;  %v4534_v18 = vrot.slane %v4512_v36, %v16129_v23  ;;  %v13817_v26 = vpack.i.b16 %v16840_v7, %v16851_v57 }
 0x1de   : > { %v4541_v0 = vrot.slane %v4513_v54, %v16129_v23  ;;  %v13818_v8 = vpack.i.b16 %v16900_v20, %v16890_v25  ;;  %v4089_v33 = vcombine.low %v4081_v10, %v4088_v43  ;;  %v4690_v11 = vcombine.low %v16837_v61, %v16845_v39  ;;  %v1855_v54 = vld [vmem:[#allocation2 + $0xb0] ss:$2 sm:$0x3f] }
 0x1df   : > { %v4325_v38 = vcombine.low %v19727_v13, %v4317_v32  ;;  %v4691_v44 = vcombine.low %v13817_v26, %v16997_v40  ;;  %v4692_v46 = vcombine.low %v17000_v6, %v16862_v1  ;;  %v13806_v1 = vld [vmem:[%s19588_s3 + $0x2c] sm:$0xf]  ;;  %v19734_v26 = vunpack.i.h.s16 %v16748_v34 }
 0x1e0   : > { %v4543_v49 = vcombine.low %v4534_v18, %v4541_v0  ;;  %v4693_v32 = vcombine.low %v16882_v47, %v13818_v8  ;;  %v4700_v39 = vrot.slane %v4690_v11, %v16129_v23 }
 0x1e1   : > { %14807 = vmatmul.mubr.msk.bf16.vlgmr.msra.gmra.mrb[0].mxu1 %vm659_vm0, %v3909_v19  ;;  %v4212_v19 = vcombine.low %v13802_v41, %v13803_v59  ;;  %v19728_v41 = vld [vmem:[#allocation26_spill] sm:$0xff]  ;;  %v19729_v59 = vld [vmem:[#allocation20_spill] sm:$0xff]  ;;  %v4353_v61 = vrot.slane %v4325_v38, %v16129_v23  ;;  %v3455_v38 = vunpack.i.h.s16 %v16789_v21  ;;  %v19736_v21 = vld [vmem:[#allocation43_spill] sm:$0xff] }
 0x1e2   : > { %14811 = vmatpush3.bf16.msra.mxu1 %v4097_v9  ;;  %14812 = vmatprep.mubr.msk.bf16.mxu1 %vm659_vm0, %v4058_v16  ;;  %v4511_v16 = vcombine.low %v13812_v2, %v16948_v42  ;;  %v4219_v9 = vrot.slane %v4211_v35, %v16129_v23  ;;  %v4315_v42 = vpack.i.b16 %v19726_v4, %v2663_v22  ;;  %v3997_v35 = vunpack.i.h.s16 %v17097_v12  ;;  %v19730_v22 = vld [vmem:[#allocation19_spill] sm:$0xff] }
 0x1e3   : > { %15530 = vmatprep.subr.msk.bf16.mxu1 %vm2280_vm4, %v13801_v5  ;;  %v4324_v29 = vcombine.low %v19729_v59, %v19728_v41  ;;  %v3999_v2 = vunpack.i.h.s16 %v17109_v48  ;;  %v4557_v60 = vrot.slane %v4543_v49, %v16129_v23  ;;  %v4226_v27 = vrot.slane %v4212_v19, %v16129_v23  ;;  %v19732_v4 = vld [vmem:[#allocation23_spill] sm:$0xff]  ;;  %v19737_v49 = vld [vmem:[#allocation42_spill] sm:$0xff] }
 0x1e4   : > { %v4527_v5 = vrot.slane %v4511_v16, %v16129_v23  ;;  %v4323_v53 = vcombine.low %v4315_v42, %v19730_v22  ;;  %v4707_v12 = vrot.slane %v4691_v44, %v16129_v23  ;;  %v4714_v16 = vrot.slane %v4692_v46, %v16129_v23  ;;  %v19739_v46 = vld [vmem:[#allocation46_spill] sm:$0xff] }
 0x1e5   : > { %v4346_v40 = vrot.slane %v4324_v29, %v16129_v23  ;;  %v4721_v47 = vrot.slane %v4693_v32, %v16129_v23  ;;  %v13807_v10 = vpack.i.b16 %v17109_v48, %v3997_v35  ;;  %v13808_v36 = vpack.i.b16 %v17115_v56, %v3999_v2  ;;  %v19738_v2 = vld [vmem:[#allocation45_spill] sm:$0xff] }
 0x1e6   : > { %v4542_v62 = vcombine.low %v4520_v52, %v4527_v5  ;;  %v4722_v19 = vcombine.low %v4700_v39, %v4707_v12  ;;  %v3453_v52 = vunpack.i.h.s16 %v16758_v63  ;;  %v19731_v5 = vld [vmem:[#allocation22_spill] sm:$0xff]  ;;  %v4339_v0 = vrot.slane %v4323_v53, %v16129_v23  ;;  %v19740_v53 = vld [vmem:[#allocation29_spill] sm:$0xff] }
 0x1e7   : > { %v19733_v42 = vcombine.low %v19731_v5, %v19732_v4  ;;  %v4723_v13 = vcombine.low %v4714_v16, %v4721_v47  ;;  %v4234_v48 = vcombine.low %v4219_v9, %v4226_v27  ;;  %v4248_v59 = vrot.slane %v17169_v30, %v16129_v23 }
 0x1e8   : > { %v4550_v43 = vrot.slane %v4542_v62, %v16129_v23  ;;  %v4355_v62 = vcombine.low %v4346_v40, %v4353_v61  ;;  %v4835_v63 = vpack.i.b16 %v19734_v26, %v3453_v52  ;;  %v4372_v29 = vcombine.low %v13807_v10, %v13808_v36  ;;  %v13811_v52 = vld [vmem:[%s19588_s3 + $0x30] sm:$0xf] }
 0x1e9   : > { %v4332_v18 = vrot.slane %v19733_v42, %v16129_v23  ;;  %v4737_v8 = vrot.slane %v4723_v13, %v16129_v23  ;;  %v4842_v11 = vcombine.low %v19737_v49, %v19736_v21  ;;  %v4844_v44 = vcombine.low %v16762_v45, %v19738_v2  ;;  %v1873_v13 = vld [vmem:[#allocation2 + $0xb1] ss:$2 sm:$0x3f] }
 0x1ea   : > { %v17207_v6 = vcombine.low %v4550_v43, %v4557_v60  ;;  %v4843_v9 = vcombine.low %v4835_v63, %v16771_v55  ;;  %v19741_v43 = vld [vmem:[#allocation28_spill] sm:$0xff]  ;;  %v4369_v27 = vrot.slane %v4355_v62, %v16129_v23  ;;  %v4312_v45 = vunpack.i.h.s16 %v17115_v56  ;;  %v19743_v62 = vld [vmem:[#allocation47_spill] sm:$0xff] }
 0x1eb   : > { %v4354_v35 = vcombine.low %v4332_v18, %v4339_v0  ;;  %v4371_v60 = vcombine.low %v19741_v43, %v19740_v53  ;;  %v4852_v30 = vrot.slane %v4842_v11, %v16129_v23  ;;  %v4866_v61 = vrot.slane %v4844_v44, %v16129_v23 }
 0x1ec   : > { %v4859_v32 = vrot.slane %v4843_v9, %v16129_v23  ;;  %v4386_v16 = vrot.slane %v4372_v29, %v16129_v23  ;;  %v4417_v36 = vsel %vm2280_vm4, %v13806_v1, 0  ;;  %v4393_v42 = vrot.slane %v4312_v45, %v16129_v23  ;;  %v19746_v29 = vld [vmem:[#allocation50_spill] sm:$0xff] }
 0x1ed   : > { %14813 = vmatmul.mubr.msk.bf16.vlgmr.msra.gmra.mrb[0].mxu1 %vm659_vm0, %v4089_v33  ;;  %v19735_v33 = vunpack.i.h.s16 %v16795_v28  ;;  %v4241_v28 = vrot.slane %v4234_v48, %v16129_v23  ;;  %v4362_v40 = vrot.slane %v4354_v35, %v16129_v23  ;;  %v3625_v18 = vunpack.i.h.s16 %v16890_v25  ;;  %v19742_v48 = vld [vmem:[#allocation48_spill] sm:$0xff] }
 0x1ee   : > { %14817 = vmatpush3.bf16.msra.mxu1 %v4257_v50  ;;  %14818 = vmatprep.mubr.msk.bf16.mxu1 %vm659_vm0, %v4210_v15  ;;  %v1861_v50 = vpack.c.bf16 %v1855_v54, %v1855_v54  ;;  %v4730_v15 = vrot.slane %v4722_v19, %v16129_v23  ;;  %v4874_v12 = vcombine.low %v4852_v30, %v4859_v32  ;;  %v13816_v30 = vld [vmem:[%s19588_s3 + $0x34] sm:$0xf] }
 0x1ef   : > { %15531 = vmatprep.subr.msk.bf16.mxu1 %vm2280_vm4, %v13806_v1  ;;  %v4837_v41 = vpack.i.b16 %v19735_v33, %v3455_v38  ;;  %v4249_v10 = vcombine.low %v4241_v28, %v4248_v59  ;;  %v4379_v54 = vrot.slane %v4371_v60, %v16129_v23  ;;  %v4370_v19 = vcombine.low %v4362_v40, %v4369_v27 }
 0x1f0   : > { %v17234_v34 = vcombine.low %v4730_v15, %v4737_v8  ;;  %v4479_v55 = vrot.slane %v1861_v50, %v16129_v23  ;;  %v17257_v4 = vrot.slane %v4874_v12, %v16129_v23  ;;  %v3623_v1 = vunpack.i.h.s16 %v16851_v57  ;;  %v19745_v8 = vld [vmem:[#allocation49_spill] sm:$0xff] }
 0x1f1   : > { %v4845_v22 = vcombine.low %v19739_v46, %v4837_v41  ;;  %v4394_v0 = vcombine.low %v4379_v54, %v4386_v16  ;;  %v5002_v26 = vcombine.low %v19743_v62, %v19742_v48  ;;  %v19744_v57 = vunpack.i.h.s16 %v16900_v20 }
 0x1f2   : > { %v4480_v5 = vcombine.high %v4479_v55, %v4479_v55  ;;  %v4995_v63 = vpack.i.b16 %v3273_v51, %v3623_v1  ;;  %v4487_v25 = vrot.slane %v4479_v55, %v16129_v23  ;;  %v5004_v33 = vcombine.low %v16859_v31, %v19745_v8 }
 0x1f3   : > { %v4873_v39 = vrot.slane %v4845_v22, %v16129_v23  ;;  %v4997_v50 = vpack.i.b16 %v19744_v57, %v3625_v18  ;;  %v1879_v41 = vpack.c.bf16 %v1873_v13, %v1873_v13  ;;  %v5012_v49 = vrot.slane %v5002_v26, %v16129_v23 }
 0x1f4   : > { %v4494_v15 = vrot.slane %v4480_v5, %v16129_v23  ;;  %v5003_v59 = vcombine.low %v4995_v63, %v16854_v58  ;;  %v4401_v7 = vrot.slane %v4394_v0, %v16129_v23  ;;  %v4408_v51 = vrot.slane %v4393_v42, %v16129_v23  ;;  %v19747_v0 = vld [vmem:[#allocation44_spill] sm:$0xff] }
 0x1f5   : > { %v4875_v47 = vcombine.low %v4866_v61, %v4873_v39  ;;  %v5005_v21 = vcombine.low %v19746_v29, %v4997_v50  ;;  %v5026_v9 = vrot.slane %v5004_v33, %v16129_v23  ;;  %v4495_v2 = vcombine.high %v4487_v25, %v4487_v25 }
 0x1f6   : > { %v4559_v20 = vcombine.low %v4487_v25, %v4494_v15  ;;  %v5019_v11 = vrot.slane %v5003_v59, %v16129_v23  ;;  %v4659_v31 = vrot.slane %v1879_v41, %v16129_v23  ;;  %v4409_v46 = vcombine.low %v4401_v7, %v4408_v51 }
 0x1f7   : > { %v17260_v56 = vrot.slane %v4875_v47, %v16129_v23  ;;  %v5033_v35 = vrot.slane %v5005_v21, %v16129_v23  ;;  %v4597_v22 = vsel %vm2280_vm4, %v13811_v52, 0  ;;  %v4500_v28 = vunpack.i.l.s16 %v4495_v2 }
 0x1f8   : > { %v5034_v44 = vcombine.low %v5012_v49, %v5019_v11  ;;  %v4566_v53 = vrot.slane %v4559_v20, %v16129_v23  ;;  %v4660_v32 = vcombine.high %v4659_v31, %v4659_v31  ;;  %v4667_v39 = vrot.slane %v4659_v31, %v16129_v23  ;;  %v15605_v31 = vld [vmem:[%s19590_s5 + $0x8] sm:$0xff]  }
 0x1f9   : > { %14819 = vmatmul.mubr.msk.bf16.vlgmr.msra.gmra.mrb[0].mxu1 %vm659_vm0, %v4249_v10  ;;  %v4890_v38 = vcombine.low %v17257_v4, %v17260_v56  ;;  %v5035_v58 = vcombine.low %v5026_v9, %v5033_v35  ;;  %v4573_v55 = vrot.slane %v4500_v28, %v16129_v23  ;;  %v4777_v10 = vsel %vm2280_vm4, %v13816_v30, 0  ;;  %14853 = vmatpush3.bf16.msra.mxu0 %v15605_v31 }
 0x1fa   : > { %14823 = vmatpush3.bf16.msra.mxu1 %v4417_v36  ;;  %14824 = vmatprep.mubr.msk.bf16.mxu1 %vm659_vm0, %v4370_v19  ;;  %v17292_v43 = vrot.slane %v5034_v44, %v16129_v23  ;;  %v4574_v61 = vcombine.low %v16985_v3, %v4566_v53  ;;  %v4674_v45 = vrot.slane %v4660_v32, %v16129_v23  ;;  %v4497_v19 = vunpack.i.h.s16 %v4487_v25  ;;  %v13821_v3 = vld [vmem:[%s19588_s3 + $0x38] sm:$0xf]  ;;  %v15607_v44 = vld [vmem:[%s19590_s5 + $0x68] sm:$0xff]  }
 0x1fb   : > { %15532 = vmatprep.subr.msk.bf16.mxu1 %vm2280_vm4, %v13811_v52  ;;  %v17295_v60 = vrot.slane %v5035_v58, %v16129_v23  ;;  %v4588_v40 = vrot.slane %v4573_v55, %v16129_v23  ;;  %v4675_v47 = vcombine.high %v4667_v39, %v4667_v39  ;;  %v4499_v52 = vunpack.i.h.s16 %v4494_v15  ;;  %v13831_v58 = vld [vmem:[%s19589_s4] ss:$0 sm:$0xff] }
 0x1fc   : > { %v4581_v12 = vrot.slane %v4574_v61, %v16129_v23  ;;  %v4739_v16 = vcombine.low %v4667_v39, %v4674_v45  ;;  %v13822_v1 = vpack.i.b16 %v4494_v15, %v4497_v19  ;;  %v4891_v13 = vcombine.low %v19747_v0, %v16808_v37  ;;  %v13826_v15 = vld [vmem:[%s19588_s3 + $0x3c] sm:$0xf] }
 0x1fd   : > { %v5050_v27 = vcombine.low %v17292_v43, %v17295_v60  ;;  %v4680_v36 = vunpack.i.l.s16 %v4675_v47  ;;  %v13823_v18 = vpack.i.b16 %v4495_v2, %v4499_v52  ;;  %v4937_v63 = vsel %vm2280_vm4, %v13821_v3, 0 }
 0x1fe   : > { %v4746_v54 = vrot.slane %v4739_v16, %v16129_v23  ;;  %v4832_v57 = vunpack.i.h.s16 %v4495_v2  ;;  %v4677_v8 = vunpack.i.h.s16 %v4667_v39  ;;  %v5051_v49 = vcombine.low %v16914_v24, %v16918_v14 }
 0x1ff   : > { %v4753_v5 = vrot.slane %v4680_v36, %v16129_v23  ;;  %v4892_v26 = vcombine.low %v13822_v1, %v13823_v18  ;;  %v5097_v51 = vsel %vm2280_vm4, %v13826_v15, 0  ;;  %v4992_v56 = vunpack.i.h.s16 %v4675_v47 }
 0x200   : > { %v4754_v42 = vcombine.low %v17040_v17, %v4746_v54  ;;  %v4679_v17 = vunpack.i.h.s16 %v4674_v45  ;;  %v4913_v37 = vrot.slane %v4832_v57, %v16129_v23  ;;  %v13827_v41 = vpack.i.b16 %v4674_v45, %v4677_v8 }
 0x201   : > { %v4768_v62 = vrot.slane %v4753_v5, %v16129_v23  ;;  %v4906_v25 = vrot.slane %v4892_v26, %v16129_v23  ;;  %v5073_v11 = vrot.slane %v4992_v56, %v16129_v23  ;;  %v19748_v35 = vmov 0.0  }
 0x202   : > { %v4761_v48 = vrot.slane %v4754_v42, %v16129_v23  ;;  %v13828_v59 = vpack.i.b16 %v4675_v47, %v4679_v17  ;;  %v4928_v21 = vrot.slane %v4913_v37, %v16129_v23  ;;  %5176 = vst.msk [vmem:[#allocation3] sm:$0xff] %vm5175_vm2, %v19748_v35  ;;  %5179 = vst.msk [vmem:[#allocation3 + $0x10] sm:$0xff] %vm5175_vm2, %v19748_v35  ;;  %14858 = vmatprep.subr.bf16.mxu0 %v19748_v35 }
 0x203   : > { %v5088_v14 = vrot.slane %v5073_v11, %v16129_v23  ;;  %5188 = vst.msk [vmem:[#allocation3 + $0x20] sm:$0x3] %vm5187_vm3, %v19748_v35  ;;  %5190 = vst.msk [vmem:[#allocation3 + $0x40] sm:$0x3] %vm5187_vm3, %v19748_v35 }
 0x204   : > { %v4769_v50 = vcombine.low %v4761_v48, %v4768_v62  ;;  %v5052_v7 = vcombine.low %v13827_v41, %v13828_v59  ;;  %5193 = vst.msk [vmem:[#allocation3 + $0x27] sm:$0x3] %vm5187_vm3, %v19748_v35  ;;  %5195 = vst.msk [vmem:[#allocation3 + $0x47] sm:$0x3] %vm5187_vm3, %v19748_v35 }
 0x205   : > { %14825 = vmatmul.mubr.msk.bf16.vlgmr.msra.gmra.mrb[0].mxu1 %vm659_vm0, %v4409_v46  ;;  %5182 = vst.msk [vmem:[#allocation3 + $0x70] sm:$0xff] %vm5175_vm2, %v19748_v35 }
 0x206   : > { %14829 = vmatpush3.bf16.msra.mxu1 %v4597_v22  ;;  %14830 = vmatprep.mubr.msk.bf16.mxu1 %vm659_vm0, %v17207_v6  ;;  %v4589_v6 = vcombine.low %v4581_v12, %v4588_v40  ;;  %v5066_v20 = vrot.slane %v5052_v7, %v16129_v23  ;;  %5189 = vst.msk [vmem:[#allocation3 + $0x30] sm:$0x3] %vm5187_vm3, %v19748_v35  ;;  %5191 = vst.msk [vmem:[#allocation3 + $0x50] sm:$0x3] %vm5187_vm3, %v19748_v35 }
 0x207   : > { %15533 = vmatprep.subr.msk.bf16.mxu1 %vm2280_vm4, %v13816_v30  ;;  %5192 = vst.msk [vmem:[#allocation3 + $0x60] sm:$0x3] %vm5187_vm3, %v19748_v35  ;;  %5194 = vst.msk [vmem:[#allocation3 + $0x37] sm:$0x3] %vm5187_vm3, %v19748_v35 }
 0x208   : > { %5196 = vst.msk [vmem:[#allocation3 + $0x57] sm:$0x3] %vm5187_vm3, %v19748_v35  ;;  %5197 = vst.msk [vmem:[#allocation3 + $0x67] sm:$0x3] %vm5187_vm3, %v19748_v35 }
 0x209   : > { %7635 = vst.msk [vmem:[#allocation4] sm:$0x7f] %vm7634_vm9, %v19748_v35  ;;  %7636 = vst.msk [vmem:[#allocation4 + $0x8] sm:$0x7f] %vm7634_vm9, %v19748_v35 }
 0x20a   : > { %7642 = vst.msk [vmem:[#allocation4 + $0x10] sm:$0x3] %vm7641_vm10, %v19748_v35  ;;  %7645 = vst.msk [vmem:[#allocation4 + $0x15] sm:$0x3] %vm7641_vm10, %v19748_v35 }
 0x20b   : > { %7638 = vst.msk [vmem:[#allocation4 + $0x28] sm:$0x7f] %vm7634_vm9, %v19748_v35  ;;  %vm8026_vm3 = vmor %vm8024_vm1, %vm8025_vm15  ;;  %vm7862_vm9 = vcmask 261120  }
 0x20c   : > { %7643 = vst.msk [vmem:[#allocation4 + $0x18] sm:$0x3] %vm7641_vm10, %v19748_v35  ;;  %7644 = vst.msk [vmem:[#allocation4 + $0x20] sm:$0x3] %vm7641_vm10, %v19748_v35 }
 0x20d   : > { %7646 = vst.msk [vmem:[#allocation4 + $0x1d] sm:$0x3] %vm7641_vm10, %v19748_v35  ;;  %7647 = vst.msk [vmem:[#allocation4 + $0x25] sm:$0x3] %vm7641_vm10, %v19748_v35  ;;  %vm8033_vm10 = vsmask.f32 6424 }
 0x211   : > { %14831 = vmatmul.mubr.msk.bf16.vlgmr.msra.gmra.mrb[0].mxu1 %vm659_vm0, %v4589_v6 }
 0x212   : > { %14835 = vmatpush3.bf16.msra.mxu1 %v4777_v10  ;;  %14836 = vmatprep.mubr.msk.bf16.mxu1 %vm659_vm0, %v17234_v34  ;;  %v4899_v34 = vrot.slane %v4891_v13, %v16129_v23 }
 0x213   : > { %15534 = vmatprep.subr.msk.bf16.mxu1 %vm2280_vm4, %v13821_v3 }
 0x214   : > { %v4914_v33 = vcombine.low %v4899_v34, %v4906_v25  ;;  %v5611_v25 = vld [vmem:[#allocation3 + $0x71] ss:$2 sm:$0xf] }
 0x215   : > { %v5615_v7 = vpack.c.bf16 %v5611_v25, %v5611_v25 }
 0x216   : > { %v4921_v29 = vrot.slane %v4914_v33, %v16129_v23 }
 0x218   : > { %v4929_v4 = vcombine.low %v4921_v29, %v4928_v21 }
 0x21d   : > { %14837 = vmatmul.mubr.msk.bf16.vlgmr.msra.gmra.mrb[0].mxu1 %vm659_vm0, %v4769_v50 }
 0x21e   : > { %14841 = vmatpush3.bf16.msra.mxu1 %v4937_v63  ;;  %14842 = vmatprep.mubr.msk.bf16.mxu1 %vm659_vm0, %v4890_v38  ;;  %v5059_v38 = vrot.slane %v5051_v49, %v16129_v23 }
 0x21f   : > { %15535 = vmatprep.subr.msk.bf16.mxu1 %vm2280_vm4, %v13826_v15  ;;  %vm15890_vm4 = vmmov 0  }
 0x220   : > { %v5074_v9 = vcombine.low %v5059_v38, %v5066_v20  ;;  %14854 = vmatprep.mubr.msk.bf16.mxu0 %vm15890_vm4, %v19748_v35 }
 0x222   : > { %v5081_v24 = vrot.slane %v5074_v9, %v16129_v23 }
 0x224   : > { %v5089_v2 = vcombine.low %v5081_v24, %v5088_v14 }
 0x229   : > { %14843 = vmatmul.mubr.msk.bf16.vlgmr.msra.gmra.mrb[0].mxu1 %vm659_vm0, %v4929_v4 }
 0x22a   : > { %14847 = vmatpush3.bf16.msra.mxu1 %v5097_v51  ;;  %14848 = vmatprep.mubr.msk.bf16.mxu1 %vm659_vm0, %v5050_v27 }
 0x22b   : > { %14930 = vmatprep.subr.bf16.mxu1 %v19748_v35 }
 0x235   : > { %14849 = vmatmul.mubr.msk.bf16.vlgmr.msra.gmra.mrb[0].mxu1 %vm659_vm0, %v5089_v2 }
 0x236   : > { %14932 = vmatprep.mubr.msk.bf16.mxu1 %vm15890_vm4, %v19748_v35  ;;  %14931 = vmatpush3.bf16.msra.mxu1 %v15607_v44 }
 0x237   : > { %14942 = vmatprep.subr.bf16.mxu1 %v19748_v35 }
 0x308   : > { %v14850_v46 = vpop.f32.mrb[0].mxu1 }
 0x309   : > { %v5161_v22 = vadd.f32 %v14850_v46, %v13831_v58  ;;  %v5133_v28 = vpop.f32.mrb[1].mxu1 }
 0x30a   : > { %v5159_v53 = vadd.f32 %v13831_v58, %v5133_v28  ;;  %v14851_v43 = vpop.f32.mrb[2].mxu1 }
 0x30b   : > { %vm5165_vm0 = vcmp.ge.f32.partialorder %v5161_v22, 0.0  ;;  %v5169_v60 = vmul.f32 0.2, %v5161_v22  ;;  %v5162_v30 = vadd.f32 %v14851_v43, %v13831_v58  ;;  %v5136_v32 = vpop.f32.mrb[3].mxu1 }
 0x30c   : > { %vm5163_vm5 = vcmp.ge.f32.partialorder %v5159_v53, 0.0  ;;  %v5167_v27 = vmul.f32 0.2, %v5159_v53  ;;  %v5160_v55 = vadd.f32 %v13831_v58, %v5136_v32  ;;  %v5569_v58 = vld [vmem:[#allocation3] ss:$2 sm:$0xf]  ;;  %v7304_v32 = vrot.slane %v5615_v7, %v16129_v23 }
 0x30d   : > { %v5173_v61 = vsel %vm5165_vm0, %v5161_v22, %v5169_v60  ;;  %vm5166_vm6 = vcmp.ge.f32.partialorder %v5162_v30, 0.0  ;;  %v5170_v39 = vmul.f32 0.2, %v5162_v30  ;;  %vm8027_vm0 = vsmask.f32 3340 }
 0x30e   : > { %v5300_v45 = vcombine.high %v5173_v61, %v5173_v61  ;;  %v5171_v12 = vsel %vm5163_vm5, %v5159_v53, %v5167_v27  ;;  %v5168_v10 = vmul.f32 0.2, %v5160_v55  ;;  %v5307_v36 = vrot.slane %v5173_v61, %v16129_v23  ;;  %vm8028_vm5 = vmor %vm8026_vm3, %vm8027_vm0 }
 0x30f   : > { %v5202_v40 = vcombine.high %v5171_v12, %v5171_v12  ;;  %v5209_v16 = vrot.slane %v5171_v12, %v16129_v23  ;;  %v5174_v47 = vsel %vm5166_vm6, %v5162_v30, %v5170_v39  ;;  %vm5164_vm7 = vcmp.ge.f32.partialorder %v5160_v55, 0.0  ;;  %v5581_v39 = vld [vmem:[#allocation3 + $0x1] ss:$2 sm:$0xf] }
 0x310   : > { %v5314_v6 = vrot.slane %v5300_v45, %v16129_v23  ;;  %v5355_v54 = vrot.slane %v5174_v47, %v16129_v23  ;;  %v5172_v0 = vsel %vm5164_vm7, %v5160_v55, %v5168_v10  ;;  %v5315_v13 = vcombine.high %v5307_v36, %v5307_v36 }
 0x311   : > { %v5216_v19 = vrot.slane %v5202_v40, %v16129_v23  ;;  %v5217_v52 = vcombine.high %v5209_v16, %v5209_v16  ;;  %v5225_v5 = vrot.slane %v5209_v16, %v16129_v23  ;;  %v5323_v63 = vrot.slane %v5307_v36, %v16129_v23 }
 0x312   : > { %v5316_v3 = vcombine.high %v5314_v6, %v5314_v6  ;;  %v5330_v48 = vrot.slane %v5314_v6, %v16129_v23  ;;  %v5362_v26 = vrot.slane %v5355_v54, %v16129_v23  ;;  %v5251_v37 = vcombine.high %v5172_v0, %v5172_v0 }
 0x313   : > { %v5218_v42 = vcombine.high %v5216_v19, %v5216_v19  ;;  %v5232_v1 = vrot.slane %v5216_v19, %v16129_v23  ;;  %v5239_v18 = vrot.slane %v5217_v52, %v16129_v23  ;;  %v5337_v51 = vrot.slane %v5315_v13, %v16129_v23 }
 0x314   : > { %v5344_v62 = vrot.slane %v5316_v3, %v16129_v23  ;;  %v5541_v49 = vrot.slane %v5362_v26, %v16129_v23  ;;  %v5258_v38 = vrot.slane %v5172_v0, %v16129_v23  ;;  %v5345_v20 = vcombine.high %v5323_v63, %v5323_v63 }
 0x315   : > { %v5246_v57 = vrot.slane %v5218_v42, %v16129_v23  ;;  %v5363_v34 = vcombine.low %v5225_v5, %v5239_v18  ;;  %v13832_v50 = vcombine.high %v5225_v5, %v5239_v18  ;;  %v5248_v15 = vcombine.high %v5232_v1, %v5232_v1 }
 0x316   : > { %v5519_v8 = vcombine.low %v5330_v48, %v5344_v62  ;;  %v13834_v17 = vcombine.high %v5330_v48, %v5344_v62  ;;  %v5385_v59 = vrot.slane %v5232_v1, %v16129_v23  ;;  %v5265_v24 = vrot.slane %v5251_v37, %v16129_v23 }
 0x317   : > { %v5371_v33 = vrot.slane %v5363_v34, %v16129_v23  ;;  %v5378_v41 = vrot.slane %v13832_v50, %v16129_v23  ;;  %v5250_v56 = vcombine.high %v5246_v57, %v5246_v57  ;;  %v5402_v9 = vcombine.low %v5246_v57, %v5248_v15 }
 0x318   : > { %v5527_v29 = vrot.slane %v5519_v8, %v16129_v23  ;;  %v5534_v21 = vrot.slane %v13834_v17, %v16129_v23  ;;  %v5400_v2 = vrot.slane %v5385_v59, %v16129_v23  ;;  %v5266_v31 = vcombine.high %v5258_v38, %v5258_v38 }
 0x319   : > { %v5386_v4 = vcombine.low %v5371_v33, %v5378_v41  ;;  %v5274_v44 = vrot.slane %v5258_v38, %v16129_v23  ;;  %v5556_v22 = vrot.slane %v5541_v49, %v16129_v23  ;;  %v5267_v28 = vcombine.high %v5265_v24, %v5265_v24 }
 0x31a   : > { %v5542_v11 = vcombine.low %v5527_v29, %v5534_v21  ;;  %v5281_v53 = vrot.slane %v5265_v24, %v16129_v23  ;;  %v5288_v60 = vrot.slane %v5266_v31, %v16129_v23  ;;  %v5576_v45 = vpack.c.bf16 %v5569_v58, %v5569_v58 }
 0x31b   : > { %v5393_v14 = vrot.slane %v5386_v4, %v16129_v23  ;;  %v5403_v30 = vcombine.low %v5250_v56, %v5274_v44  ;;  %v5295_v55 = vrot.slane %v5267_v28, %v16129_v23  ;;  %v5410_v12 = vrot.slane %v5402_v9, %v16129_v23 }
 0x31c   : > { %v5549_v46 = vrot.slane %v5542_v11, %v16129_v23  ;;  %v5297_v61 = vcombine.high %v5281_v53, %v5281_v53  ;;  %v5424_v16 = vrot.slane %v5288_v60, %v16129_v23  ;;  %v13833_v47 = vcombine.high %v5274_v44, %v5288_v60 }
 0x31d   : > { %v5401_v43 = vcombine.low %v5393_v14, %v5400_v2  ;;  %v5417_v40 = vrot.slane %v5403_v30, %v16129_v23  ;;  %v5347_v10 = vcombine.high %v5337_v51, %v5337_v51  ;;  %v5481_v36 = vcombine.low %v5337_v51, %v5345_v20 }
 0x31e   : > { %v5557_v27 = vcombine.low %v5549_v46, %v5556_v22  ;;  %v5299_v6 = vcombine.high %v5295_v55, %v5295_v55  ;;  %v5442_v54 = vcombine.low %v5281_v53, %v5295_v55  ;;  %v5588_v52 = vpack.c.bf16 %v5581_v39, %v5581_v39 }
 0x31f   : > { %5564 = vst.msk [vmem:[#allocation3 + $0x22] sm:$0x1f] %vm5563_vm8, %v5401_v43  ;;  %v5425_v19 = vcombine.low %v5410_v12, %v5417_v40  ;;  %v7305_v3 = vcombine.high %v7304_v32, %v7304_v32  ;;  %v5449_v5 = vrot.slane %v13833_v47, %v16129_v23  ;;  %v5463_v1 = vrot.slane %v5297_v61, %v16129_v23  ;;  %v17476_v12 = vld [vmem:[#allocation3 + $0x10] ss:$2 sm:$0xf] }
 0x320   : > { %5568 = vst.msk [vmem:[#allocation3 + $0x62] sm:$0x1f] %vm5563_vm8, %v5557_v27  ;;  %v5456_v42 = vrot.slane %v5442_v54, %v16129_v23  ;;  %v5480_v18 = vcombine.low %v5299_v6, %v5323_v63  ;;  %v5439_v13 = vrot.slane %v5424_v16, %v16129_v23  ;;  %v5625_v48 = vrot.slane %v5576_v45, %v16129_v23 }
 0x321   : > { %v5432_v0 = vrot.slane %v5425_v19, %v16129_v23  ;;  %v5495_v62 = vrot.slane %v5481_v36, %v16129_v23  ;;  %v5502_v26 = vrot.slane %v5347_v10, %v16129_v23  ;;  %v5705_v25 = vrot.slane %v5588_v52, %v16129_v23 }
 0x322   : > { %v5464_v57 = vcombine.low %v5449_v5, %v5456_v42  ;;  %v5488_v34 = vrot.slane %v5480_v18, %v16129_v23  ;;  %v7319_v8 = vrot.slane %v7305_v3, %v16129_v23  ;;  %v5478_v17 = vrot.slane %v5463_v1, %v16129_v23 }
 0x323   : > { %v5440_v50 = vcombine.low %v5432_v0, %v5439_v13  ;;  %v17436_v59 = vrot.slane %v7304_v32, %v16129_v23  ;;  %v5517_v49 = vrot.slane %v5502_v26, %v16129_v23  ;;  %v5626_v4 = vcombine.high %v5625_v48, %v5625_v48 }
 0x324   : > { %v5471_v63 = vrot.slane %v5464_v57, %v16129_v23  ;;  %v5503_v15 = vcombine.low %v5488_v34, %v5495_v62  ;;  %v7322_v29 = vunpack.i.l.s16 %v7319_v8  ;;  %v5706_v56 = vcombine.high %v5705_v25, %v5705_v25 }
 0x325   : > { %5565 = vst.msk [vmem:[#allocation3 + $0x32] sm:$0x1f] %vm5563_vm8, %v5440_v50  ;;  %v5633_v9 = vrot.slane %v5625_v48, %v16129_v23  ;;  %v7321_v24 = vunpack.i.h.s16 %v17436_v59  ;;  %v7520_v14 = vunpack.i.h.s16 %v7319_v8  ;;  %v17453_v58 = vrot.slane %v5626_v4, %v16129_v23 }
 0x326   : > { %v5583_v37 = vld [vmem:[#allocation3 + $0x21] ss:$2 sm:$0xf]  ;;  %v5571_v33 = vld [vmem:[#allocation3 + $0x20] ss:$2 sm:$0xf]  ;;  %v5479_v7 = vcombine.low %v5471_v63, %v5478_v17  ;;  %v5510_v51 = vrot.slane %v5503_v15, %v16129_v23  ;;  %v17450_v44 = vrot.slane %v7322_v29, %v16129_v23  ;;  %v17456_v46 = vrot.slane %v5706_v56, %v16129_v23 }
 0x327   : > { %v5589_v41 = vpack.c.bf16 %v5583_v37, %v5583_v37  ;;  %v5577_v21 = vpack.c.bf16 %v5571_v33, %v5571_v33  ;;  %v17462_v53 = vrot.slane %v5705_v25, %v16129_v23  ;;  %v5686_v60 = vunpack.i.h.s16 %v5633_v9 }
 0x328   : > { %v5518_v11 = vcombine.low %v5510_v51, %v5517_v49  ;;  %5566 = vst.msk [vmem:[#allocation3 + $0x42] sm:$0x1f] %vm5563_vm8, %v5479_v7  ;;  %v17464_v32 = vpack.i.b16 %v7319_v8, %v7321_v24  ;;  %v17467_v27 = vrot.slane %v7520_v14, %v16129_v23  ;;  %v7367_v39 = vrot.slane %v17450_v44, %v16129_v23 }
 0x329   : > { %v5727_v38 = vrot.slane %v5589_v41, %v16129_v23  ;;  %v5647_v20 = vrot.slane %v5577_v21, %v16129_v23  ;;  %v5965_v45 = vunpack.i.h.s16 %v17453_v58  ;;  %v17486_v52 = vpack.i.b16 %v17453_v58, %v5686_v60 }
 0x32a   : > { %5567 = vst.msk [vmem:[#allocation3 + $0x52] sm:$0x1f] %vm5563_vm8, %v5518_v11  ;;  %v5766_v3 = vunpack.i.h.s16 %v17462_v53  ;;  %v5600_v0 = vpack.c.bf16 %v17476_v12, %v17476_v12  ;;  %vm8029_vm6 = vsmask.f32 4368  ;;  %vm8031_vm8 = vsmask.f32 5396 }
 0x32b   : > { %v5728_v2 = vcombine.high %v5727_v38, %v5727_v38  ;;  %v17447_v31 = vrot.slane %v5727_v38, %v16129_v23  ;;  %v5648_v22 = vcombine.high %v5647_v20, %v5647_v20  ;;  %v17459_v28 = vrot.slane %v5647_v20, %v16129_v23  ;;  %vm8030_vm7 = vmor %vm8028_vm5, %vm8029_vm6 }
 0x32c   : > { %v5607_v43 = vld [vmem:[#allocation3 + $0x31] ss:$2 sm:$0xf]  ;;  %v5595_v57 = vld [vmem:[#allocation3 + $0x30] ss:$2 sm:$0xf] }
 0x32d   : > { %v5613_v30 = vpack.c.bf16 %v5607_v43, %v5607_v43  ;;  %v17470_v55 = vrot.slane %v5728_v2, %v16129_v23  ;;  %v5769_v61 = vunpack.i.h.s16 %v17447_v31  ;;  %v13837_v16 = vpack.i.b16 %v17447_v31, %v17456_v46 }
 0x32e   : > { %v17482_v36 = vrot.slane %v5648_v22, %v16129_v23  ;;  %v5689_v6 = vunpack.i.h.s16 %v17459_v28  ;;  %v13841_v18 = vpack.i.b16 %v17459_v28, %v17453_v58  ;;  %v5601_v21 = vpack.c.bf16 %v5595_v57, %v5595_v57 }
 0x32f   : > { %v5585_v40 = vld [vmem:[#allocation3 + $0x41] ss:$2 sm:$0xf]  ;;  %v6377_v47 = vrot.slane %v5613_v30, %v16129_v23  ;;  %v5573_v10 = vld [vmem:[#allocation3 + $0x40] ss:$2 sm:$0xf]  ;;  %v17500_v48 = vpack.i.b16 %v17470_v55, %v5769_v61  ;;  %v5782_v34 = vcombine.low %v17462_v53, %v13837_v16 }
 0x330   : > { %v5590_v54 = vpack.c.bf16 %v5585_v40, %v5585_v40  ;;  %v5578_v19 = vpack.c.bf16 %v5573_v10, %v5573_v10  ;;  %v17508_v25 = vpack.i.b16 %v17482_v36, %v5689_v6  ;;  %v5876_v41 = vcombine.low %v5633_v9, %v13841_v18  ;;  %v15608_v53 = vld [vmem:[%s19590_s5 + $0x10] sm:$0xff]  }
 0x331   : > { %v5609_v5 = vld [vmem:[#allocation3 + $0x51] ss:$2 sm:$0xf]  ;;  %v6378_v42 = vcombine.high %v6377_v47, %v6377_v47  ;;  %v17490_v1 = vrot.slane %v6377_v47, %v16129_v23  ;;  %v5790_v56 = vrot.slane %v5782_v34, %v16129_v23  ;;  %vm9448_vm3 = vcmask 521216  }
 0x332   : > { %v5749_v13 = vrot.slane %v5590_v54, %v16129_v23  ;;  %v5614_v62 = vpack.c.bf16 %v5609_v5, %v5609_v5  ;;  %v5669_v26 = vrot.slane %v5578_v19, %v16129_v23  ;;  %v5884_v10 = vrot.slane %v5876_v41, %v16129_v23  ;;  %9449 = vst.msk [vmem:[#allocation5] sm:$0x3f] %vm9448_vm3, %v19748_v35 }
 0x333   : > { %v17505_v50 = vrot.slane %v6378_v42, %v16129_v23  ;;  %v6419_v8 = vunpack.i.h.s16 %v17490_v1  ;;  %v5972_v54 = vpack.i.b16 %v5689_v6, %v5965_v45  ;;  %v6200_v19 = vrot.slane %v5601_v21, %v16129_v23  ;;  %9450 = vst.msk [vmem:[#allocation5 + $0x8] sm:$0x3f] %vm9448_vm3, %v19748_v35  ;;  %9452 = vst.msk [vmem:[#allocation5 + $0x20] sm:$0x3f] %vm9448_vm3, %v19748_v35 }
 0x334   : > { %v5750_v63 = vcombine.high %v5749_v13, %v5749_v13  ;;  %v17512_v17 = vrot.slane %v5749_v13, %v16129_v23  ;;  %v6399_v15 = vrot.slane %v5614_v62, %v16129_v23  ;;  %v5670_v37 = vcombine.high %v5669_v26, %v5669_v26  ;;  %v5605_v62 = vld [vmem:[#allocation3 + $0x11] ss:$2 sm:$0xf]  ;;  %9453 = vst.msk [vmem:[#allocation5 + $0x28] sm:$0x3f] %vm9448_vm3, %v19748_v35 }
 0x335   : > { %v17516_v33 = vrot.slane %v5669_v26, %v16129_v23  ;;  %v6626_v29 = vunpack.i.h.s16 %v17505_v50  ;;  %v17536_v11 = vpack.i.b16 %v17505_v50, %v6419_v8  ;;  %v15606_v26 = vld [vmem:[%s19590_s5] sm:$0xff]   ;;  %v5976_v41 = vcombine.low %v17486_v52, %v5972_v54 }
 0x336   : > { %v17520_v49 = vrot.slane %v5750_v63, %v16129_v23  ;;  %v5783_v7 = vcombine.low %v17500_v48, %v17512_v17  ;;  %v6400_v51 = vcombine.high %v6399_v15, %v6399_v15  ;;  %v17525_v4 = vrot.slane %v6399_v15, %v16129_v23 }
 0x337   : > { %v17529_v38 = vrot.slane %v5670_v37, %v16129_v23  ;;  %v5877_v20 = vcombine.low %v17508_v25, %v17516_v33  ;;  %v5692_v60 = vunpack.i.h.s16 %v17516_v33  ;;  %v5772_v6 = vunpack.i.h.s16 %v17512_v17 }
 0x338   : > { %v5773_v9 = vunpack.i.l.s16 %v17520_v49  ;;  %v5797_v24 = vrot.slane %v5783_v7, %v16129_v23  ;;  %v17541_v14 = vrot.slane %v6400_v51, %v16129_v23  ;;  %v6422_v2 = vunpack.i.h.s16 %v17525_v4 }
 0x339   : > { %v13908_v58 = vpack.i.b16 %v17525_v4, %v17505_v50  ;;  %v5693_v22 = vunpack.i.l.s16 %v17529_v38  ;;  %v5891_v43 = vrot.slane %v5877_v20, %v16129_v23  ;;  %v17573_v37 = vpack.i.b16 %v17529_v38, %v5692_v60 }
 0x33a   : > { %v5804_v30 = vrot.slane %v5773_v9, %v16129_v23  ;;  %v5805_v12 = vcombine.low %v5790_v56, %v5797_v24  ;;  %v17551_v40 = vpack.i.b16 %v17541_v14, %v6422_v2  ;;  %v7524_v16 = vpack.i.b16 %v6422_v2, %v6626_v29  ;;  %v5597_v24 = vld [vmem:[#allocation3 + $0x50] ss:$2 sm:$0xf] }
 0x33b   : > { %v7330_v47 = vcombine.low %v17490_v1, %v13908_v58  ;;  %v5898_v57 = vrot.slane %v5693_v22, %v16129_v23  ;;  %v5899_v34 = vcombine.low %v5884_v10, %v5891_v43  ;;  %v7529_v45 = vcombine.low %v17541_v14, %v17464_v32 }
 0x33c   : > { %v5812_v5 = vrot.slane %v5805_v12, %v16129_v23  ;;  %v5819_v42 = vrot.slane %v5804_v30, %v16129_v23  ;;  %v7331_v18 = vcombine.low %v17551_v40, %v17436_v59  ;;  %v7528_v13 = vcombine.low %v17536_v11, %v7524_v16  ;;  %v5599_v30 = vld [vmem:[#allocation3 + $0x70] ss:$2 sm:$0xf]  ;;  %v15609_v12 = vld [vmem:[%s19590_s5 + $0x78] sm:$0xff]  }
 0x33d   : > { %v7338_v15 = vrot.slane %v7330_v47, %v16129_v23  ;;  %v6067_v29 = vunpack.i.h.s16 %v17456_v46  ;;  %v6178_v21 = vrot.slane %v5600_v0, %v16129_v23  ;;  %v5612_v7 = vpack.c.bf16 %v5605_v62, %v5605_v62 }
 0x33e   : > { %v5820_v63 = vcombine.low %v5812_v5, %v5819_v42  ;;  %v7345_v59 = vrot.slane %v7331_v18, %v16129_v23  ;;  %v7536_v51 = vrot.slane %v7528_v13, %v16129_v23  ;;  %v5977_v56 = vcombine.low %v17482_v36, %v17573_v37  ;;  %v5575_v13 = vld [vmem:[#allocation3 + $0x60] ss:$2 sm:$0xf] }
 0x33f   : > { %v6201_v20 = vcombine.high %v6200_v19, %v6200_v19  ;;  %v5906_v52 = vrot.slane %v5899_v34, %v16129_v23  ;;  %v5913_v9 = vrot.slane %v5898_v57, %v16129_v23  ;;  %v17587_v0 = vrot.slane %v6200_v19, %v16129_v23  ;;  %v5587_v34 = vld [vmem:[#allocation3 + $0x61] ss:$2 sm:$0xf] }
 0x340   : > { %14855 = vmatmul.mubr.msk.bf16.vlgmr.msra.gmra.mrb[12].mxu0 %vm5175_vm2, %v5820_v63  ;;  %v7353_v32 = vcombine.low %v7338_v15, %v7345_v59  ;;  %v7543_v58 = vrot.slane %v7529_v45, %v16129_v23  ;;  %v5991_v22 = vrot.slane %v5977_v56, %v16129_v23  ;;  %v17596_v43 = vpack.i.b16 %v17520_v49, %v5772_v6 }
 0x341   : > { %14859 = vmatpush3.bf16.msra.mxu0 %v15606_v26  ;;  %14860 = vmatprep.mubr.msk.bf16.mxu0 %vm15890_vm4, %v19748_v35  ;;  %v5967_v16 = vunpack.i.h.s16 %v17529_v38  ;;  %v13853_v47 = vpack.i.b16 %v17456_v46, %v5766_v3  ;;  %v6074_v10 = vpack.i.b16 %v5769_v61, %v6067_v29  ;;  %v6179_v54 = vcombine.high %v6178_v21, %v6178_v21 }
 0x342   : > { %v7360_v2 = vrot.slane %v7353_v32, %v16129_v23  ;;  %14864 = vmatprep.subr.bf16.mxu0 %v19748_v35  ;;  %v7551_v5 = vcombine.low %v7536_v51, %v7543_v58  ;;  %v5984_v42 = vrot.slane %v5976_v41, %v16129_v23  ;;  %v5602_v18 = vpack.c.bf16 %v5597_v24, %v5597_v24 }
 0x343   : > { %v5914_v62 = vcombine.low %v5906_v52, %v5913_v9  ;;  %v7565_v46 = vrot.slane %v17467_v27, %v16129_v23  ;;  %v6355_v61 = vrot.slane %v5612_v7, %v16129_v23  ;;  %v5603_v3 = vpack.c.bf16 %v5599_v30, %v5599_v30 }
 0x344   : > { %v7368_v19 = vcombine.low %v7360_v2, %v7367_v39  ;;  %v5999_v44 = vcombine.low %v5984_v42, %v5991_v22  ;;  %v6079_v39 = vcombine.low %v17470_v55, %v17596_v43  ;;  %v17621_v26 = vrot.slane %v6201_v20, %v16129_v23 }
 0x345   : > { %v6242_v57 = vunpack.i.h.s16 %v17587_v0  ;;  %v5998_v27 = vrot.slane %v5967_v16, %v16129_v23  ;;  %v6078_v45 = vcombine.low %v13853_v47, %v6074_v10  ;;  %v5579_v63 = vpack.c.bf16 %v5575_v13, %v5575_v13  ;;  %v15610_v16 = vld [vmem:[%s19590_s5 + $0x18] sm:$0xff]  }
 0x346   : > { %14933 = vmatmul.mubr.msk.bf16.vlgmr.msra.gmra.mrb[4].mxu1 %vm5175_vm2, %v7368_v19  ;;  %v7558_v15 = vrot.slane %v7551_v5, %v16129_v23  ;;  %v17630_v59 = vrot.slane %v6179_v54, %v16129_v23  ;;  %v6222_v41 = vrot.slane %v5602_v18, %v16129_v23  ;;  %v6186_v29 = vrot.slane %v6178_v21, %v16129_v23 }
 0x347   : > { %14943 = vmatpush3.bf16.msra.mxu1 %v15609_v12  ;;  %14944 = vmatprep.mubr.msk.bf16.mxu1 %vm15890_vm4, %v19748_v35  ;;  %v5591_v7 = vpack.c.bf16 %v5587_v34, %v5587_v34  ;;  %v7180_v32 = vrot.slane %v5603_v3, %v16129_v23  ;;  %v6006_v51 = vrot.slane %v5999_v44, %v16129_v23  ;;  %v6069_v24 = vunpack.i.h.s16 %v17520_v49 }
 0x348   : > { %14861 = vmatmul.mubr.msk.bf16.vlgmr.msra.gmra.mrb[16].mxu0 %vm5175_vm2, %v5914_v62  ;;  %14956 = vmatprep.subr.bf16.mxu1 %v19748_v35  ;;  %v6093_v56 = vrot.slane %v6079_v39, %v16129_v23  ;;  %v17644_v20 = vpack.i.b16 %v17621_v26, %v6242_v57  ;;  %v6356_v52 = vcombine.high %v6355_v61, %v6355_v61  ;;  %v6239_v44 = vunpack.i.h.s16 %v6186_v29 }
 0x349   : > { %14865 = vmatpush3.bf16.msra.mxu0 %v15608_v53  ;;  %14866 = vmatprep.mubr.msk.bf16.mxu0 %vm15890_vm4, %v19748_v35  ;;  %v6013_v9 = vrot.slane %v5998_v27, %v16129_v23  ;;  %v6086_v21 = vrot.slane %v6078_v45, %v16129_v23  ;;  %v6734_v2 = vrot.slane %v5579_v63, %v16129_v23  ;;  %v6523_v39 = vunpack.i.h.s16 %v17630_v59 }
 0x34a   : > { %14870 = vmatprep.subr.bf16.mxu0 %v19748_v35  ;;  %v7566_v58 = vcombine.low %v7558_v15, %v7565_v46  ;;  %v6223_v22 = vcombine.high %v6222_v41, %v6222_v41  ;;  %v17651_v30 = vrot.slane %v6222_v41, %v16129_v23  ;;  %v13859_v12 = vpack.i.b16 %v17587_v0, %v17630_v59 }
 0x34b   : > { %v6858_v47 = vrot.slane %v5591_v7, %v16129_v23  ;;  %v7181_v10 = vcombine.high %v7180_v32, %v7180_v32  ;;  %v17660_v54 = vrot.slane %v7180_v32, %v16129_v23  ;;  %v6014_v19 = vcombine.low %v6006_v51, %v6013_v9 }
 0x34c   : > { %v6101_v5 = vcombine.low %v6086_v21, %v6093_v56  ;;  %v6256_v42 = vcombine.low %v17644_v20, %v17651_v30  ;;  %v17666_v18 = vrot.slane %v6356_v52, %v16129_v23  ;;  %v6100_v13 = vrot.slane %v6069_v24, %v16129_v23 }
 0x34d   : > { %v17670_v62 = vrot.slane %v6355_v61, %v16129_v23  ;;  %v6735_v53 = vcombine.high %v6734_v2, %v6734_v2  ;;  %v17676_v46 = vrot.slane %v6223_v22, %v16129_v23  ;;  %v6255_v3 = vcombine.low %v6186_v29, %v13859_v12 }
 0x34e   : > { %14945 = vmatmul.mubr.msk.bf16.vlgmr.msra.gmra.mrb[8].mxu1 %vm5175_vm2, %v7566_v58  ;;  %v17682_v61 = vrot.slane %v6734_v2, %v16129_v23  ;;  %v6859_v34 = vcombine.high %v6858_v47, %v6858_v47  ;;  %v17685_v27 = vrot.slane %v7181_v10, %v16129_v23  ;;  %v7197_v45 = vunpack.i.h.s16 %v17660_v54  ;;  %v15611_v2 = vld [vmem:[%s19590_s5 + $0x20] sm:$0xff]  }
 0x34f   : > { %14960 = vmatprep.mubr.msk.bf16.mxu1 %vm15890_vm4, %v19748_v35  ;;  %v6108_v63 = vrot.slane %v6101_v5, %v16129_v23  ;;  %v6270_v15 = vrot.slane %v6256_v42, %v16129_v23  ;;  %v13865_v41 = vpack.i.b16 %v17490_v1, %v17666_v18  ;;  %v13888_v29 = vpack.i.b16 %v17512_v17, %v17470_v55 }
 0x350   : > { %14867 = vmatmul.mubr.msk.bf16.vlgmr.msra.gmra.mrb[20].mxu0 %vm5175_vm2, %v6014_v19  ;;  %v6115_v7 = vrot.slane %v6100_v13, %v16129_v23  ;;  %v6433_v32 = vcombine.low %v17536_v11, %v17525_v4  ;;  %v17699_v51 = vrot.slane %v6735_v53, %v16129_v23  ;;  %v17702_v56 = vrot.slane %v6858_v47, %v16129_v23 }
 0x351   : > { %14871 = vmatpush3.bf16.msra.mxu0 %v15610_v16  ;;  %14872 = vmatprep.mubr.msk.bf16.mxu0 %vm15890_vm4, %v19748_v35  ;;  %v6246_v52 = vunpack.i.l.s16 %v17676_v46  ;;  %v6263_v9 = vrot.slane %v6255_v3, %v16129_v23  ;;  %v17707_v24 = vcombine.low %v17447_v31, %v13888_v29  ;;  %v5966_v21 = vunpack.i.h.s16 %v17482_v36 }
 0x352   : > { %14876 = vmatprep.subr.bf16.mxu0 %v19748_v35  ;;  %v6245_v4 = vunpack.i.h.s16 %v17651_v30  ;;  %v13871_v11 = vpack.i.b16 %v17630_v59, %v6239_v44  ;;  %v17716_v58 = vrot.slane %v6859_v34, %v16129_v23  ;;  %v6751_v22 = vunpack.i.h.s16 %v17682_v61 }
 0x353   : > { %v6116_v12 = vcombine.low %v6108_v63, %v6115_v7  ;;  %v6278_v16 = vcombine.low %v6263_v9, %v6270_v15  ;;  %v6432_v31 = vcombine.low %v17670_v62, %v13865_v41  ;;  %v6979_v47 = vpack.i.b16 %v5692_v60, %v5966_v21  ;;  %v15612_v9 = vld [vmem:[%s19590_s5 + $0x28] sm:$0xff]  }
 0x354   : > { %v13893_v10 = vpack.i.b16 %v17699_v51, %v6751_v22  ;;  %v6068_v19 = vunpack.i.h.s16 %v17470_v55  ;;  %v6875_v5 = vunpack.i.h.s16 %v17702_v56  ;;  %v13913_v59 = vpack.i.b16 %v17685_v27, %v7197_v45 }
 0x355   : > { %v6277_v42 = vrot.slane %v6246_v52, %v16129_v23  ;;  %v6423_v13 = vunpack.i.l.s16 %v17541_v14  ;;  %v6447_v53 = vrot.slane %v6433_v32, %v16129_v23  ;;  %v6983_v3 = vcombine.low %v17508_v25, %v6979_v47 }
 0x356   : > { %v17734_v55 = vpack.i.b16 %v17676_v46, %v6245_v4  ;;  %v6984_v60 = vcombine.low %v17529_v38, %v13893_v10  ;;  %v7078_v44 = vpack.i.b16 %v5772_v6, %v6068_v19  ;;  %v6524_v34 = vunpack.i.h.s16 %v17621_v26 }
 0x357   : > { %v6285_v45 = vrot.slane %v6278_v16, %v16129_v23  ;;  %v6440_v25 = vrot.slane %v6432_v31, %v16129_v23  ;;  %v17744_v63 = vrot.slane %v6983_v3, %v16129_v23  ;;  %v13898_v15 = vpack.i.b16 %v17716_v58, %v6875_v5 }
 0x358   : > { %14873 = vmatmul.mubr.msk.bf16.vlgmr.msra.gmra.mrb[24].mxu0 %vm5175_vm2, %v6116_v12  ;;  %v6530_v41 = vpack.i.b16 %v6242_v57, %v6523_v39  ;;  %v17750_v38 = vrot.slane %v6984_v60, %v16129_v23  ;;  %v7082_v17 = vcombine.low %v17500_v48, %v7078_v44  ;;  %v13903_v6 = vpack.i.b16 %v17651_v30, %v17621_v26 }
 0x359   : > { %14877 = vmatpush3.bf16.msra.mxu0 %v15611_v2  ;;  %14878 = vmatprep.mubr.msk.bf16.mxu0 %vm15890_vm4, %v19748_v35  ;;  %v6292_v29 = vrot.slane %v6277_v42, %v16129_v23  ;;  %v6455_v7 = vcombine.low %v6440_v25, %v6447_v53  ;;  %v7083_v32 = vcombine.low %v17520_v49, %v13898_v15  ;;  %v6625_v12 = vunpack.i.h.s16 %v17666_v18 }
 0x35a   : > { %14882 = vmatprep.subr.bf16.mxu0 %v19748_v35  ;;  %v7425_v52 = vpack.i.b16 %v6245_v4, %v6524_v34  ;;  %v6535_v57 = vcombine.low %v17621_v26, %v17734_v55  ;;  %v7006_v39 = vcombine.low %v17744_v63, %v17750_v38  ;;  %v17765_v48 = vrot.slane %v7082_v17, %v16129_v23 }
 0x35b   : > { %v17768_v30 = vcombine.low %v17587_v0, %v13903_v6  ;;  %v6293_v21 = vcombine.low %v6285_v45, %v6292_v29  ;;  %v17771_v49 = vrot.slane %v7083_v32, %v16129_v23  ;;  %v7430_v4 = vcombine.low %v17676_v46, %v13913_v59  ;;  %v15614_v45 = vld [vmem:[%s19590_s5 + $0x38] sm:$0xff]  }
 0x35c   : > { %v7429_v2 = vcombine.low %v17644_v20, %v7425_v52  ;;  %v6454_v22 = vrot.slane %v6423_v13, %v16129_v23  ;;  %v6416_v26 = vunpack.i.h.s16 %v17670_v62  ;;  %v6534_v16 = vcombine.low %v13871_v11, %v6530_v41  ;;  %v15613_v13 = vld [vmem:[%s19590_s5 + $0x30] sm:$0xff]  }
 0x35d   : > { %v7105_v0 = vcombine.low %v17765_v48, %v17771_v49  ;;  %v17785_v47 = vrot.slane %v7430_v4, %v16129_v23  ;;  %v6462_v20 = vrot.slane %v6455_v7, %v16129_v23  ;;  %v6549_v62 = vrot.slane %v6535_v57, %v16129_v23 }
 0x35e   : > { %v17782_v31 = vrot.slane %v7429_v2, %v16129_v23  ;;  %v13877_v10 = vpack.i.b16 %v17666_v18, %v6416_v26  ;;  %v6469_v19 = vrot.slane %v6454_v22, %v16129_v23  ;;  %v6525_v5 = vunpack.i.h.s16 %v17676_v46 }
 0x35f   : > { %v6542_v59 = vrot.slane %v6534_v16, %v16129_v23  ;;  %v6632_v42 = vpack.i.b16 %v6419_v8, %v6625_v12  ;;  %v6637_v60 = vcombine.low %v17505_v50, %v17551_v40  ;;  %v6627_v34 = vunpack.i.h.s16 %v17541_v14 }
 0x360   : > { %14879 = vmatmul.mubr.msk.bf16.vlgmr.msra.gmra.mrb[28].mxu0 %vm5175_vm2, %v6293_v21  ;;  %v7452_v11 = vcombine.low %v17782_v31, %v17785_v47  ;;  %v6470_v53 = vcombine.low %v6462_v20, %v6469_v19  ;;  %v6556_v18 = vrot.slane %v6525_v5, %v16129_v23  ;;  %v13883_v40 = vpack.i.b16 %v17516_v33, %v17482_v36  ;;  %v15617_v20 = vld [vmem:[%s19590_s5 + $0x50] sm:$0xff]   ;;  %v15623_v31 = vld [vmem:[#allocation8 + $0x18] sm:$0xff]  }
 0x361   : > { %14883 = vmatpush3.bf16.msra.mxu0 %v15612_v9  ;;  %14884 = vmatprep.mubr.msk.bf16.mxu0 %vm15890_vm4, %v19748_v35  ;;  %v6557_v3 = vcombine.low %v6542_v59, %v6549_v62  ;;  %v6636_v44 = vcombine.low %v13877_v10, %v6632_v42  ;;  %v6651_v8 = vrot.slane %v6637_v60, %v16129_v23  ;;  %v6876_v2 = vunpack.i.l.s16 %v17716_v58  ;;  %v15618_v59 = vld [vmem:[%s19590_s5 + $0x58] sm:$0xff]   ;;  %v15624_v47 = vld [vmem:[#allocation8 + $0x8] sm:$0xff]  }
 0x362   : > { %14888 = vmatprep.subr.bf16.mxu0 %v19748_v35  ;;  %v6571_v46 = vrot.slane %v6556_v18, %v16129_v23  ;;  %v6761_v41 = vcombine.low %v17573_v37, %v17682_v61  ;;  %v6658_v17 = vrot.slane %v6627_v34, %v16129_v23  ;;  %v6760_v14 = vcombine.low %v17459_v28, %v13883_v40  ;;  %v15615_v28 = vld [vmem:[%s19590_s5 + $0x40] sm:$0xff]  }
 0x363   : > { %v6564_v1 = vrot.slane %v6557_v3, %v16129_v23  ;;  %v6644_v50 = vrot.slane %v6636_v44, %v16129_v23  ;;  %v6752_v37 = vunpack.i.l.s16 %v17699_v51  ;;  %v6885_v32 = vcombine.low %v17596_v43, %v17702_v56  ;;  %v15616_v56 = vld [vmem:[%s19590_s5 + $0x48] sm:$0xff]  }
 0x364   : > { %v6775_v33 = vrot.slane %v6761_v41, %v16129_v23  ;;  %v6673_v6 = vrot.slane %v6658_v17, %v16129_v23  ;;  %v6768_v61 = vrot.slane %v6760_v14, %v16129_v23  ;;  %v6892_v43 = vrot.slane %v17707_v24, %v16129_v23 }
 0x365   : > { %v6572_v25 = vcombine.low %v6564_v1, %v6571_v46  ;;  %v6659_v15 = vcombine.low %v6644_v50, %v6651_v8  ;;  %v6782_v52 = vrot.slane %v6752_v37, %v16129_v23  ;;  %v6899_v57 = vrot.slane %v6885_v32, %v16129_v23 }
 0x366   : > { %v6783_v7 = vcombine.low %v6768_v61, %v6775_v33  ;;  %v6906_v26 = vrot.slane %v6876_v2, %v16129_v23  ;;  %v6975_v16 = vunpack.i.h.s16 %v17699_v51  ;;  %v7013_v51 = vrot.slane %v7006_v39, %v16129_v23  ;;  %v15619_v39 = vld [vmem:[%s19590_s5 + $0x60] sm:$0xff]  }
 0x367   : > { %v6666_v36 = vrot.slane %v6659_v15, %v16129_v23  ;;  %v6797_v21 = vrot.slane %v6782_v52, %v16129_v23  ;;  %v6907_v22 = vcombine.low %v6892_v43, %v6899_v57  ;;  %v7074_v5 = vunpack.i.h.s16 %v17716_v58 }
 0x368   : > { %14885 = vmatmul.mubr.msk.bf16.vlgmr.msra.gmra.mrb[32].mxu0 %vm5175_vm2, %v6470_v53  ;;  %v6790_v9 = vrot.slane %v6783_v7, %v16129_v23  ;;  %v6921_v24 = vrot.slane %v6906_v26, %v16129_v23  ;;  %v7005_v10 = vrot.slane %v6975_v16, %v16129_v23  ;;  %v7112_v58 = vrot.slane %v7105_v0, %v16129_v23  ;;  %v15620_v0 = vld [vmem:[%s19590_s5 + $0x70] sm:$0xff]  }
 0x369   : > { %14889 = vmatpush3.bf16.msra.mxu0 %v15613_v13  ;;  %14890 = vmatprep.mubr.msk.bf16.mxu0 %vm15890_vm4, %v19748_v35  ;;  %v6674_v29 = vcombine.low %v6666_v36, %v6673_v6  ;;  %v6914_v12 = vrot.slane %v6907_v22, %v16129_v23  ;;  %v7207_v13 = vcombine.low %v17734_v55, %v17660_v54  ;;  %v7198_v63 = vunpack.i.l.s16 %v17685_v27 }
 0x36a   : > { %14894 = vmatprep.subr.bf16.mxu0 %v19748_v35  ;;  %v6798_v4 = vcombine.low %v6790_v9, %v6797_v21  ;;  %v7020_v19 = vrot.slane %v7005_v10, %v16129_v23  ;;  %v7104_v53 = vrot.slane %v7074_v5, %v16129_v23  ;;  %v7214_v55 = vrot.slane %v17768_v30, %v16129_v23 }
 0x36b   : > { %v6922_v62 = vcombine.low %v6914_v12, %v6921_v24  ;;  %v7221_v38 = vrot.slane %v7207_v13, %v16129_v23  ;;  %v7228_v60 = vrot.slane %v7198_v63, %v16129_v23  ;;  %v7421_v49 = vunpack.i.h.s16 %v17685_v27 }
 0x36c   : > { %v7021_v42 = vcombine.low %v7013_v51, %v7020_v19  ;;  %v7119_v54 = vrot.slane %v7104_v53, %v16129_v23  ;;  %v7459_v8 = vrot.slane %v7452_v11, %v16129_v23  ;;  %vm9651_vm5 = vcmask 523264  }
 0x36d   : > { %v7229_v18 = vcombine.low %v7214_v55, %v7221_v38  ;;  %v7243_v30 = vrot.slane %v7228_v60, %v16129_v23  ;;  %v7451_v1 = vrot.slane %v7421_v49, %v16129_v23  ;;  %vm11839_vm3 = vsmask.f32 5392 }
 0x36e   : > { %v7120_v3 = vcombine.low %v7112_v58, %v7119_v54 }
 0x36f   : > { %v7236_v48 = vrot.slane %v7229_v18, %v16129_v23  ;;  %v7466_v27 = vrot.slane %v7451_v1, %v16129_v23 }
 0x370   : > { %14891 = vmatmul.mubr.msk.bf16.vlgmr.msra.gmra.mrb[36].mxu0 %vm5175_vm2, %v6572_v25  ;;  %v15622_v25 = vld [vmem:[#allocation8] sm:$0xff]  }
 0x371   : > { %14895 = vmatpush3.bf16.msra.mxu0 %v15614_v45  ;;  %14896 = vmatprep.mubr.msk.bf16.mxu0 %vm15890_vm4, %v19748_v35  ;;  %v7244_v44 = vcombine.low %v7236_v48, %v7243_v30  ;;  %v7467_v46 = vcombine.low %v7459_v8, %v7466_v27  ;;  %v15621_v45 = vld [vmem:[#allocation8 + $0x10] sm:$0xff]  }
 0x372   : > { %14900 = vmatprep.subr.bf16.mxu0 %v19748_v35  ;;  %14957 = vmatpush3.bf16.msra.mxu1 %v15622_v25 }
 0x373   : > { %14958 = vmatprep.subr.bf16.mxu1 %v19748_v35 }
 0x376   : > { %14959 = vmatpush3.bf16.msra.mxu1 %v15624_v47 }
 0x377   : > { %14972 = vmatprep.subr.bf16.mxu1 %v19748_v35 }
 0x378   : > { %14897 = vmatmul.mubr.msk.bf16.vlgmr.msra.gmra.mrb[40].mxu0 %vm5175_vm2, %v6674_v29 }
 0x379   : > { %14901 = vmatpush3.bf16.msra.mxu0 %v15615_v28  ;;  %14902 = vmatprep.mubr.msk.bf16.mxu0 %vm15890_vm4, %v19748_v35 }
 0x37a   : > { %14906 = vmatprep.subr.bf16.mxu0 %v19748_v35 }
 0x380   : > { %14903 = vmatmul.mubr.msk.bf16.vlgmr.msra.gmra.mrb[44].mxu0 %vm5175_vm2, %v6798_v4 }
 0x381   : > { %14907 = vmatpush3.bf16.msra.mxu0 %v15616_v56  ;;  %14908 = vmatprep.mubr.msk.bf16.mxu0 %vm15890_vm4, %v19748_v35 }
 0x382   : > { %14912 = vmatprep.subr.bf16.mxu0 %v19748_v35 }
 0x388   : > { %14909 = vmatmul.mubr.msk.bf16.vlgmr.msra.gmra.mrb[48].mxu0 %vm5175_vm2, %v6922_v62 }
 0x389   : > { %14913 = vmatpush3.bf16.msra.mxu0 %v15617_v20  ;;  %14914 = vmatprep.mubr.msk.bf16.mxu0 %vm15890_vm4, %v19748_v35 }
 0x38a   : > { %14918 = vmatprep.subr.bf16.mxu0 %v19748_v35 }
 0x390   : > { %14915 = vmatmul.mubr.msk.bf16.vlgmr.msra.gmra.mrb[52].mxu0 %vm5175_vm2, %v7021_v42 }
 0x391   : > { %14919 = vmatpush3.bf16.msra.mxu0 %v15618_v59  ;;  %14920 = vmatprep.mubr.msk.bf16.mxu0 %vm15890_vm4, %v19748_v35 }
 0x392   : > { %14924 = vmatprep.subr.bf16.mxu0 %v19748_v35 }
 0x398   : > { %14921 = vmatmul.mubr.msk.bf16.vlgmr.msra.gmra.mrb[56].mxu0 %vm5175_vm2, %v7120_v3 }
 0x399   : > { %14925 = vmatpush3.bf16.msra.mxu0 %v15619_v39  ;;  %14926 = vmatprep.mubr.msk.bf16.mxu0 %vm15890_vm4, %v19748_v35 }
 0x39a   : > { %14936 = vmatprep.subr.bf16.mxu0 %v19748_v35 }
 0x3a0   : > { %14927 = vmatmul.mubr.msk.bf16.vlgmr.msra.gmra.mrb[60].mxu0 %vm5175_vm2, %v7244_v44 }
 0x3a1   : > { %14937 = vmatpush3.bf16.msra.mxu0 %v15620_v0  ;;  %14938 = vmatprep.mubr.msk.bf16.mxu0 %vm15890_vm4, %v19748_v35 }
 0x3a2   : > { %14948 = vmatprep.subr.bf16.mxu0 %v19748_v35 }
 0x3a8   : > { %14939 = vmatmul.mubr.msk.bf16.vlgmr.msra.gmra.mrb[64].mxu0 %vm5175_vm2, %v7467_v46  ;;  %vm7785_vm2 = vcmask 256000  }
 0x3a9   : > { %14952 = vmatprep.mubr.msk.bf16.mxu0 %vm15890_vm4, %v19748_v35  ;;  %14949 = vmatpush3.bf16.msra.mxu0 %v15621_v45 }
 0x3aa   : > { %14950 = vmatprep.subr.bf16.mxu0 %v19748_v35 }
 0x3ad   : > { %14951 = vmatpush3.bf16.msra.mxu0 %v15623_v31 }
 0x3ae   : > { %14964 = vmatprep.subr.bf16.mxu0 %v19748_v35 }
 0x413   : > { %v5864_v34 = vpop.f32.mrb[12].mxu0 }
 0x414   : > { %v14856_v50 = vpop.f32.mrb[13].mxu0 }
 0x415   : > { %v5867_v40 = vpop.f32.mrb[14].mxu0 }
 0x416   : > { %v14857_v15 = vpop.f32.mrb[15].mxu0 }
 0x419   : > { %v17931_v11 = vpop.f32.mrb[4].mxu1 }
 0x41a   : > { %v14934_v41 = vpop.f32.mrb[5].mxu1 }
 0x41b   : > { %v5958_v17 = vpop.f32.mrb[16].mxu0  ;;  %v17933_v14 = vpop.f32.mrb[6].mxu1 }
 0x41c   : > { %v5959_v36 = vadd.f32 %v5958_v17, %v5864_v34  ;;  %v14862_v33 = vpop.f32.mrb[17].mxu0  ;;  %v14935_v6 = vpop.f32.mrb[7].mxu1 }
 0x41d   : > { %v5961_v37 = vpop.f32.mrb[18].mxu0 }
 0x41e   : > { %v5962_v61 = vadd.f32 %v5961_v37, %v5867_v40  ;;  %v14863_v28 = vpop.f32.mrb[19].mxu0 }
 0x421   : > { %v17937_v29 = vpop.f32.mrb[8].mxu1 }
 0x422   : > { %v14946_v7 = vpop.f32.mrb[9].mxu1 }
 0x423   : > { %v6058_v32 = vpop.f32.mrb[20].mxu0  ;;  %v17939_v52 = vpop.f32.mrb[10].mxu1 }
 0x424   : > { %v6065_v9 = vadd.f32 %v6058_v32, %v5959_v36  ;;  %v14868_v57 = vpop.f32.mrb[21].mxu0  ;;  %v14947_v21 = vpop.f32.mrb[11].mxu1 }
 0x425   : > { %v6061_v2 = vpop.f32.mrb[22].mxu0 }
 0x426   : > { %v6066_v43 = vadd.f32 %v6061_v2, %v5962_v61  ;;  %v14869_v56 = vpop.f32.mrb[23].mxu0 }
 0x42b   : > { %v6160_v4 = vpop.f32.mrb[24].mxu0 }
 0x42c   : > { %v6167_v22 = vadd.f32 %v6160_v4, %v6065_v9  ;;  %v14874_v26 = vpop.f32.mrb[25].mxu0 }
 0x42d   : > { %v6163_v12 = vpop.f32.mrb[26].mxu0 }
 0x42e   : > { %v6168_v24 = vadd.f32 %v6163_v12, %v6066_v43  ;;  %v14875_v16 = vpop.f32.mrb[27].mxu0 }
 0x433   : > { %v6337_v20 = vpop.f32.mrb[28].mxu0 }
 0x434   : > { %v6344_v62 = vadd.f32 %v6337_v20, %v6167_v22  ;;  %v14880_v10 = vpop.f32.mrb[29].mxu0 }
 0x435   : > { %v6340_v51 = vpop.f32.mrb[30].mxu0 }
 0x436   : > { %v6345_v19 = vadd.f32 %v6340_v51, %v6168_v24  ;;  %v14881_v5 = vpop.f32.mrb[31].mxu0 }
 0x43b   : > { %v6514_v59 = vpop.f32.mrb[32].mxu0 }
 0x43c   : > { %v6521_v42 = vadd.f32 %v6514_v59, %v6344_v62  ;;  %v14886_v13 = vpop.f32.mrb[33].mxu0  ;;  %v13921_v62 = vld [vmem:[%s19591_s6] ss:$0 sm:$0xff] }
 0x43d   : > { %v6517_v53 = vpop.f32.mrb[34].mxu0 }
 0x43e   : > { %v6522_v58 = vadd.f32 %v6517_v53, %v6345_v19  ;;  %v14887_v63 = vpop.f32.mrb[35].mxu0 }
 0x443   : > { %v6616_v38 = vpop.f32.mrb[36].mxu0 }
 0x444   : > { %v6623_v54 = vadd.f32 %v6616_v38, %v6521_v42  ;;  %v14892_v55 = vpop.f32.mrb[37].mxu0  ;;  %v17949_v38 = vld [vmem:[#allocation4] ss:$2 sm:$0x7] }
 0x445   : > { %v6619_v39 = vpop.f32.mrb[38].mxu0 }
 0x446   : > { %v6624_v3 = vadd.f32 %v6619_v39, %v6522_v58  ;;  %v14893_v60 = vpop.f32.mrb[39].mxu0 }
 0x44b   : > { %v6718_v18 = vpop.f32.mrb[40].mxu0 }
 0x44c   : > { %v6725_v48 = vadd.f32 %v6718_v18, %v6623_v54  ;;  %v14898_v30 = vpop.f32.mrb[41].mxu0 }
 0x44d   : > { %v6721_v49 = vpop.f32.mrb[42].mxu0 }
 0x44e   : > { %v6726_v0 = vadd.f32 %v6721_v49, %v6624_v3  ;;  %v14899_v44 = vpop.f32.mrb[43].mxu0 }
 0x453   : > { %v6842_v1 = vpop.f32.mrb[44].mxu0 }
 0x454   : > { %v6849_v8 = vadd.f32 %v6842_v1, %v6725_v48  ;;  %v14904_v27 = vpop.f32.mrb[45].mxu0 }
 0x455   : > { %v6845_v46 = vpop.f32.mrb[46].mxu0 }
 0x456   : > { %v6850_v34 = vadd.f32 %v6845_v46, %v6726_v0  ;;  %v14905_v50 = vpop.f32.mrb[47].mxu0 }
 0x45b   : > { %v6966_v40 = vpop.f32.mrb[48].mxu0 }
 0x45c   : > { %v6973_v45 = vadd.f32 %v6966_v40, %v6849_v8  ;;  %v14910_v25 = vpop.f32.mrb[49].mxu0  ;;  %v7798_v8 = vld [vmem:[#allocation4 + $0x1] ss:$2 sm:$0x7] }
 0x45d   : > { %v6969_v15 = vpop.f32.mrb[50].mxu0  ;;  %v7803_v25 = vpack.c.bf16 %v7798_v8, %v7798_v8 }
 0x45e   : > { %v6974_v31 = vadd.f32 %v6969_v15, %v6850_v34  ;;  %v14911_v47 = vpop.f32.mrb[51].mxu0 }
 0x463   : > { %v7065_v41 = vpop.f32.mrb[52].mxu0 }
 0x464   : > { %v7072_v17 = vadd.f32 %v7065_v41, %v6973_v45  ;;  %v14916_v36 = vpop.f32.mrb[53].mxu0 }
 0x465   : > { %v7068_v33 = vpop.f32.mrb[54].mxu0 }
 0x466   : > { %v7073_v6 = vadd.f32 %v7068_v33, %v6974_v31  ;;  %v14917_v37 = vpop.f32.mrb[55].mxu0 }
 0x467   : > { %v8137_v37 = vrot.slane %v7803_v25, %v16129_v23 }
 0x46b   : > { %v7164_v61 = vpop.f32.mrb[56].mxu0 }
 0x46c   : > { %v7171_v28 = vadd.f32 %v7164_v61, %v7072_v17  ;;  %v14922_v7 = vpop.f32.mrb[57].mxu0 }
 0x46d   : > { %v7167_v32 = vpop.f32.mrb[58].mxu0 }
 0x46e   : > { %v7172_v9 = vadd.f32 %v7167_v32, %v7073_v6  ;;  %v14923_v57 = vpop.f32.mrb[59].mxu0 }
 0x46f   : > { %v8138_v57 = vcombine.high %v8137_v37, %v8137_v37 }
 0x473   : > { %v7288_v21 = vpop.f32.mrb[60].mxu0 }
 0x474   : > { %v7295_v2 = vadd.f32 %v7288_v21, %v7171_v28  ;;  %v14928_v43 = vpop.f32.mrb[61].mxu0  ;;  %v17977_v21 = vld [vmem:[#allocation4 + $0x8] ss:$2 sm:$0x7] }
 0x475   : > { %v7291_v56 = vpop.f32.mrb[62].mxu0 }
 0x476   : > { %v7296_v4 = vadd.f32 %v7291_v56, %v7172_v9  ;;  %v14929_v22 = vpop.f32.mrb[63].mxu0  ;;  %v7419_v26 = vadd.f32 %v17931_v11, %v7295_v2  ;;  %v8145_v9 = vrot.slane %v8137_v37, %v16129_v23 }
 0x478   : > { %v7420_v12 = vadd.f32 %v17933_v14, %v7296_v4  ;;  %v8176_v56 = vshrl.u32 %v8145_v9, 16  ;;  %v17979_v4 = vld [vmem:[#allocation4 + $0x9] ss:$2 sm:$0x7] }
 0x47b   : > { %v7511_v24 = vpop.f32.mrb[64].mxu0 }
 0x47c   : > { %v7518_v16 = vadd.f32 %v7511_v24, %v7419_v26  ;;  %v14940_v20 = vpop.f32.mrb[65].mxu0  ;;  %v7812_v24 = vpack.c.bf16 %v17977_v21, %v17977_v21 }
 0x47d   : > { %v7514_v10 = vpop.f32.mrb[66].mxu0 }
 0x47e   : > { %v7617_v51 = vadd.f32 %v17937_v29, %v7518_v16  ;;  %v7519_v19 = vadd.f32 %v7514_v10, %v7420_v12  ;;  %v14941_v5 = vpop.f32.mrb[67].mxu0  ;;  %v8152_v12 = vrot.slane %v8138_v57, %v16129_v23 }
 0x480   : > { %v7626_v59 = vadd.f32 %v13921_v62, %v7617_v51  ;;  %v7618_v42 = vadd.f32 %v17939_v52, %v7519_v19  ;;  %v7794_v52 = vpack.c.bf16 %v17949_v38, %v17949_v38 }
 0x482   : > { %vm7628_vm11 = vcmp.ge.f32.partialorder %v7626_v59, 0.0  ;;  %v7630_v13 = vmul.f32 0.2, %v7626_v59  ;;  %v7627_v11 = vadd.f32 %v13921_v62, %v7618_v42  ;;  %v7984_v27 = vrot.slane %v7794_v52, %v16129_v23 }
 0x484   : > { %v7632_v53 = vsel %vm7628_vm11, %v7626_v59, %v7630_v13  ;;  %vm7629_vm12 = vcmp.ge.f32.partialorder %v7627_v11, 0.0  ;;  %v7631_v14 = vmul.f32 0.2, %v7627_v11  ;;  %v7985_v6 = vcombine.high %v7984_v27, %v7984_v27 }
 0x485   : > { %v7650_v58 = vcombine.high %v7632_v53, %v7632_v53  ;;  %v7657_v63 = vrot.slane %v7632_v53, %v16129_v23  ;;  %v7992_v7 = vrot.slane %v7984_v27, %v16129_v23  ;;  %vm8035_vm11 = vsmask.f32 7452 }
 0x486   : > { %v7633_v54 = vsel %vm7629_vm12, %v7627_v11, %v7631_v14  ;;  %v7999_v32 = vrot.slane %v7985_v6, %v16129_v23  ;;  %vm8032_vm12 = vmor %vm8030_vm7, %vm8031_vm8  ;;  %v7821_v59 = vpack.c.bf16 %v17979_v4, %v17979_v4  ;;  %v15625_v14 = vld [vmem:[#allocation8 + $0x20] sm:$0xff]   ;;  %vm11624_vm7 = vcmask 522240  }
 0x487   : > { %v7664_v55 = vrot.slane %v7650_v58, %v16129_v23  ;;  %v7665_v29 = vcombine.high %v7657_v63, %v7657_v63  ;;  %v7673_v39 = vrot.slane %v7657_v63, %v16129_v23  ;;  %v7705_v3 = vrot.slane %v7633_v54, %v16129_v23  ;;  %vm17996_vm14 = vmor %vm8032_vm12, %vm8033_vm10  ;;  %v15626_v58 = vld [vmem:[#allocation8 + $0x30] sm:$0xff]   ;;  %11625 = vst.msk [vmem:[#allocation6] sm:$0x7f] %vm11624_vm7, %v19748_v35 }
 0x488   : > { %v8038_v2 = vshrl.u32 %v7992_v7, 16  ;;  %v8043_v43 = vshll.u32 %v7999_v32, 16  ;;  %v8181_v63 = vshll.u32 %v8152_v12, 16  ;;  %v8431_v54 = vrot.slane %v7812_v24, %v16129_v23  ;;  %vm18021_vm1 = vmor %vm17996_vm14, %vm8035_vm11  ;;  %11626 = vst.msk [vmem:[#allocation6 + $0x8] sm:$0x7f] %vm11624_vm7, %v19748_v35 }
 0x489   : > { %v7666_v60 = vcombine.high %v7664_v55, %v7664_v55  ;;  %v7687_v18 = vrot.slane %v7665_v29, %v16129_v23  ;;  %v7695_v48 = vcombine.high %v7673_v39, %v7673_v39  ;;  %v7712_v30 = vrot.slane %v7705_v3, %v16129_v23  ;;  %11628 = vst.msk [vmem:[#allocation6 + $0x28] sm:$0x7f] %vm11624_vm7, %v19748_v35 }
 0x48a   : > { %v7680_v49 = vrot.slane %v7664_v55, %v16129_v23  ;;  %v8045_v27 = vsel %vm18021_vm1, %v8038_v2, %v8043_v43  ;;  %11629 = vst.msk [vmem:[#allocation6 + $0x30] sm:$0x7f] %vm11624_vm7, %v19748_v35  ;;  %vm11774_vm11 = vcmask 518144   ;;  %vm11836_vm12 = vsmask.f32 1280 }
 0x48b   : > { %v7694_v0 = vrot.slane %v7666_v60, %v16129_v23  ;;  %v7697_v44 = vcombine.high %v7687_v18, %v7687_v18  ;;  %v7713_v1 = vcombine.low %v7673_v39, %v7687_v18  ;;  %v7727_v34 = vrot.slane %v7695_v48, %v16129_v23  ;;  %v15651_v60 = vld [vmem:[#allocation8 + $0xe8] sm:$0xff]  }
 0x48c   : > { %v7773_v45 = vrot.slane %v7712_v30, %v16129_v23  ;;  %vm11837_vm14 = vsmask.f32 3336 }
 0x48d   : > { %v7720_v46 = vrot.slane %v7713_v1, %v16129_v23  ;;  %v7736_v50 = vcombine.low %v7697_v44, %v7680_v49  ;;  %v13922_v40 = vcombine.high %v7680_v49, %v7694_v0  ;;  %v7750_v47 = vrot.slane %v7694_v0, %v16129_v23  ;;  %v15627_v1 = vld [vmem:[#allocation8 + $0x28] sm:$0xff]  }
 0x48e   : > { %v8569_v49 = vrot.slane %v7821_v59, %v16129_v23 }
 0x48f   : > { %v7728_v15 = vcombine.low %v7720_v46, %v7727_v34  ;;  %v7743_v31 = vrot.slane %v7736_v50, %v16129_v23  ;;  %v7766_v41 = vrot.slane %v13922_v40, %v16129_v23  ;;  %v8432_v34 = vcombine.high %v8431_v54, %v8431_v54 }
 0x490   : > { %v8577_v32 = vrot.slane %v8569_v49, %v16129_v23 }
 0x491   : > { %v7735_v17 = vrot.slane %v7728_v15, %v16129_v23  ;;  %v7751_v36 = vcombine.low %v7743_v31, %v7750_v47  ;;  %v7774_v33 = vcombine.low %v7766_v41, %v7773_v45  ;;  %v8183_v45 = vsel %vm18021_vm1, %v8176_v56, %v8181_v63  ;;  %v15629_v56 = vld [vmem:[#allocation8 + $0x40] sm:$0xff]  }
 0x492   : > { %v8570_v47 = vcombine.high %v8569_v49, %v8569_v49  ;;  %v8446_v37 = vrot.slane %v8432_v34, %v16129_v23 }
 0x493   : > { %v7758_v61 = vrot.slane %v7751_v36, %v16129_v23  ;;  %7786 = vst.msk [vmem:[#allocation4 + $0x12] sm:$0x7] %vm7785_vm2, %v7735_v17  ;;  %v7781_v28 = vrot.slane %v7774_v33, %v16129_v23  ;;  %v8439_v36 = vrot.slane %v8431_v54, %v16129_v23 }
 0x494   : > { %v8584_v9 = vrot.slane %v8570_v47, %v16129_v23  ;;  %v8475_v51 = vshll.u32 %v8446_v37, 16  ;;  %v18134_v37 = vld [vmem:[#allocation4 + $0x29] ss:$2 sm:$0x7] }
 0x495   : > { %7787 = vst.msk [vmem:[#allocation4 + $0x1a] sm:$0x7] %vm7785_vm2, %v7758_v61  ;;  %7788 = vst.msk [vmem:[#allocation4 + $0x22] sm:$0x7] %vm7785_vm2, %v7781_v28  ;;  %v8470_v24 = vshrl.u32 %v8439_v36, 16  ;;  %v15637_v36 = vld [vmem:[#allocation8 + $0x80] sm:$0xff]  }
 0x496   : > { %vm9455_vm2 = vcmask 517120  }
 0x497   : > { %9457 = vst.msk [vmem:[#allocation5 + $0x18] sm:$0x3] %vm9455_vm2, %v19748_v35  ;;  %9459 = vst.msk [vmem:[#allocation5 + $0x1c] sm:$0x3] %vm9455_vm2, %v19748_v35 }
 0x498   : > { %9456 = vst.msk [vmem:[#allocation5 + $0x10] sm:$0x3] %vm9455_vm2, %v19748_v35  ;;  %9458 = vst.msk [vmem:[#allocation5 + $0x14] sm:$0x3] %vm9455_vm2, %v19748_v35 }
 0x499   : > { %11631 = vst.msk [vmem:[#allocation6 + $0x10] sm:$0x3] %vm9455_vm2, %v19748_v35  ;;  %11632 = vst.msk [vmem:[#allocation6 + $0x18] sm:$0x3] %vm9455_vm2, %v19748_v35 }
 0x49a   : > { %v17981_v22 = vld [vmem:[#allocation4 + $0x11] ss:$2 sm:$0x7]  ;;  %v17983_v26 = vld [vmem:[#allocation4 + $0x10] ss:$2 sm:$0x7] }
 0x49b   : > { %v7804_v16 = vpack.c.bf16 %v17981_v22, %v17981_v22  ;;  %v13923_v20 = vpack.c.bf16 %v17981_v22, %v7798_v8  ;;  %v7795_v62 = vpack.c.bf16 %v17983_v26, %v17983_v26  ;;  %v13927_v10 = vpack.c.bf16 %v17983_v26, %v17949_v38  ;;  %v15628_v8 = vld [vmem:[#allocation8 + $0x38] sm:$0xff]   ;;  %11633 = vst.msk [vmem:[#allocation6 + $0x20] sm:$0x3] %vm9455_vm2, %v19748_v35 }
 0x49c   : > { %v18000_v19 = vld [vmem:[#allocation4 + $0x18] ss:$2 sm:$0x7]  ;;  %v18002_v5 = vld [vmem:[#allocation4 + $0x19] ss:$2 sm:$0x7] }
 0x49d   : > { %v7842_v42 = vrot.slane %v13923_v20, %v16129_v23  ;;  %v8159_v13 = vrot.slane %v7804_v16, %v16129_v23  ;;  %v7915_v11 = vrot.slane %v13927_v10, %v16129_v23  ;;  %v8006_v53 = vrot.slane %v7795_v62, %v16129_v23  ;;  %v18070_v2 = vld [vmem:[#allocation4 + $0x20] ss:$2 sm:$0x7]  ;;  %v18075_v16 = vld [vmem:[#allocation4 + $0x21] ss:$2 sm:$0x7] }
 0x49e   : > { %v7813_v38 = vpack.c.bf16 %v18000_v19, %v18000_v19  ;;  %v7822_v55 = vpack.c.bf16 %v18002_v5, %v18002_v5  ;;  %v15630_v62 = vld [vmem:[#allocation8 + $0x50] sm:$0xff]   ;;  %v13941_v10 = vpack.c.bf16 %v18000_v19, %v17977_v21  ;;  %v7805_v21 = vpack.c.bf16 %v18075_v16, %v18075_v16  ;;  %11634 = vst.msk [vmem:[#allocation6 + $0x15] sm:$0x3] %vm9455_vm2, %v19748_v35 }
 0x49f   : > { %v7849_v29 = vrot.slane %v7842_v42, %v16129_v23  ;;  %v7922_v39 = vrot.slane %v7915_v11, %v16129_v23  ;;  %v8007_v3 = vcombine.high %v8006_v53, %v8006_v53  ;;  %v8014_v52 = vrot.slane %v8006_v53, %v16129_v23  ;;  %11635 = vst.msk [vmem:[#allocation6 + $0x1d] sm:$0x3] %vm9455_vm2, %v19748_v35 }
 0x4a0   : > { %v8160_v18 = vcombine.high %v8159_v13, %v8159_v13  ;;  %v8167_v48 = vrot.slane %v8159_v13, %v16129_v23  ;;  %v18027_v30 = vrot.slane %v7813_v38, %v16129_v23  ;;  %v18034_v44 = vrot.slane %v7822_v55, %v16129_v23  ;;  %v15631_v38 = vld [vmem:[#allocation8 + $0x48] sm:$0xff]   ;;  %11636 = vst.msk [vmem:[#allocation6 + $0x25] sm:$0x3] %vm9455_vm2, %v19748_v35 }
 0x4a1   : > { %14953 = vmatmul.mubr.msk.bf16.vlgmr.msra.gmra.mrb[68].mxu0 %vm7862_vm9, %v7849_v29  ;;  %14961 = vmatmul.mubr.msk.bf16.vlgmr.msra.gmra.mrb[12].mxu1 %vm7862_vm9, %v7922_v39  ;;  %v8021_v0 = vrot.slane %v8007_v3, %v16129_v23  ;;  %v8047_v50 = vshrl.u32 %v8014_v52, 16  ;;  %v13945_v13 = vpack.c.bf16 %v18002_v5, %v17979_v4  ;;  %v7796_v53 = vpack.c.bf16 %v18070_v2, %v18070_v2  ;;  %v15632_v4 = vld [vmem:[#allocation8 + $0x58] sm:$0xff]  }
 0x4a2   : > { %14965 = vmatpush3.bf16.msra.mxu0 %v15625_v14  ;;  %14973 = vmatpush3.bf16.msra.mxu1 %v15626_v58  ;;  %v8174_v46 = vrot.slane %v8160_v18, %v16129_v23  ;;  %v8454_v25 = vcombine.high %v18027_v30, %v18027_v30  ;;  %v8185_v15 = vshrl.u32 %v8167_v48, 16  ;;  %v8592_v41 = vcombine.high %v18034_v44, %v18034_v44 }
 0x4a3   : > { %14966 = vmatprep.subr.bf16.mxu0 %v19748_v35  ;;  %14974 = vmatprep.subr.bf16.mxu1 %v19748_v35  ;;  %v8052_v40 = vshll.u32 %v8021_v0, 16  ;;  %v8461_v12 = vrot.slane %v18027_v30, %v16129_v23  ;;  %v8599_v59 = vrot.slane %v18034_v44, %v16129_v23  ;;  %v8608_v14 = vshrl.u32 %v8577_v32, 16  ;;  %v15633_v0 = vld [vmem:[#allocation8 + $0x60] sm:$0xff]  }
 0x4a4   : > { %14968 = vmatprep.mubr.msk.bf16.mxu0 %vm15890_vm4, %v19748_v35  ;;  %14976 = vmatprep.mubr.msk.bf16.mxu1 %vm15890_vm4, %v19748_v35  ;;  %v8190_v31 = vshll.u32 %v8174_v46, 16  ;;  %v8468_v28 = vrot.slane %v8454_v25, %v16129_v23  ;;  %v8606_v57 = vrot.slane %v8592_v41, %v16129_v23  ;;  %v8613_v58 = vshll.u32 %v8584_v9, 16  ;;  %v18131_v41 = vld [vmem:[#allocation4 + $0x28] ss:$2 sm:$0x7] }
 0x4a5   : > { %v18053_v17 = vsel %vm18021_vm1, %v8047_v50, %v8052_v40  ;;  %v8479_v54 = vshrl.u32 %v8461_v12, 16  ;;  %v8283_v55 = vrot.slane %v13941_v10, %v16129_v23  ;;  %v8477_v29 = vsel %vm18021_vm1, %v8470_v24, %v8475_v51  ;;  %v15635_v40 = vld [vmem:[#allocation8 + $0x68] sm:$0xff]  }
 0x4a6   : > { %14967 = vmatpush3.bf16.msra.mxu0 %v15627_v1  ;;  %14975 = vmatpush3.bf16.msra.mxu1 %v15628_v8  ;;  %v8060_v33 = vcombine.low %v8045_v27, %v18053_v17  ;;  %v18059_v6 = vsel %vm18021_vm1, %v8185_v15, %v8190_v31  ;;  %v8484_v11 = vshll.u32 %v8468_v28, 16  ;;  %v8622_v63 = vshll.u32 %v8606_v57, 16  ;;  %v15634_v1 = vld [vmem:[#allocation8 + $0x70] sm:$0xff]  }
 0x4a7   : > { %14980 = vmatprep.subr.bf16.mxu0 %v19748_v35  ;;  %v8198_v61 = vcombine.low %v8183_v45, %v18059_v6  ;;  %14988 = vmatprep.subr.bf16.mxu1 %v19748_v35  ;;  %v8617_v39 = vshrl.u32 %v8599_v59, 16  ;;  %v8361_v3 = vrot.slane %v13945_v13, %v16129_v23  ;;  %v8861_v18 = vrot.slane %v7796_v53, %v16129_v23  ;;  %v15636_v45 = vld [vmem:[#allocation8 + $0x78] sm:$0xff]   ;;  %v15638_v28 = vld [vmem:[#allocation8 + $0x90] sm:$0xff]   ;;  %v15641_v13 = vld [vmem:[#allocation8 + $0xa0] sm:$0xff]  }
 0x4a8   : > { %v8067_v7 = vrot.slane %v8060_v33, %v16129_v23  ;;  %v18101_v52 = vsel %vm18021_vm1, %v8479_v54, %v8484_v11  ;;  %v8615_v48 = vsel %vm18021_vm1, %v8608_v14, %v8613_v58  ;;  %v8968_v49 = vrot.slane %v7805_v21, %v16129_v23  ;;  %v15642_v53 = vld [vmem:[#allocation8 + $0xb0] sm:$0xff]   ;;  %v15643_v54 = vld [vmem:[#allocation8 + $0xa8] sm:$0xff]  }
 0x4a9   : > { %v8205_v43 = vrot.slane %v8198_v61, %v16129_v23  ;;  %v18110_v30 = vsel %vm18021_vm1, %v8617_v39, %v8622_v63  ;;  %v8290_v44 = vrot.slane %v8283_v55, %v16129_v23  ;;  %v8492_v8 = vcombine.low %v8477_v29, %v18101_v52 }
 0x4aa   : > { %v8074_v20 = vrot.slane %v8067_v7, %v16129_v23  ;;  %v8368_v27 = vrot.slane %v8361_v3, %v16129_v23  ;;  %v8630_v46 = vcombine.low %v8615_v48, %v18110_v30  ;;  %v8862_v34 = vcombine.high %v8861_v18, %v8861_v18 }
 0x4ab   : > { %v8212_v42 = vrot.slane %v8205_v43, %v16129_v23  ;;  %v8969_v50 = vcombine.high %v8968_v49, %v8968_v49  ;;  %v8499_v25 = vrot.slane %v8492_v8, %v16129_v23  ;;  %v8869_v33 = vrot.slane %v8861_v18, %v16129_v23  ;;  %v15645_v18 = vld [vmem:[#allocation8 + $0xc0] sm:$0xff]  }
 0x4ac   : > { %14969 = vmatmul.mubr.msk.bf16.vlgmr.msra.gmra.mrb[72].mxu0 %vm7862_vm9, %v8074_v20  ;;  %v8637_v15 = vrot.slane %v8630_v46, %v16129_v23  ;;  %v8876_v31 = vrot.slane %v8862_v34, %v16129_v23  ;;  %v13959_v7 = vpack.c.bf16 %v18070_v2, %v17983_v26  ;;  %v8976_v32 = vrot.slane %v8968_v49, %v16129_v23  ;;  %v15639_v26 = vld [vmem:[#allocation8 + $0x88] sm:$0xff]   ;;  %v15640_v20 = vld [vmem:[#allocation8 + $0x98] sm:$0xff]   ;;  %v15646_v49 = vld [vmem:[#allocation8 + $0xd0] sm:$0xff]  }
 0x4ad   : > { %14977 = vmatmul.mubr.msk.bf16.vlgmr.msra.gmra.mrb[16].mxu1 %vm7862_vm9, %v8212_v42  ;;  %14981 = vmatpush3.bf16.msra.mxu0 %v15629_v56  ;;  %v8983_v47 = vrot.slane %v8969_v50, %v16129_v23  ;;  %v8506_v61 = vrot.slane %v8499_v25, %v16129_v23  ;;  %v13963_v57 = vpack.c.bf16 %v18075_v16, %v17981_v22  ;;  %v8878_v2 = vshrl.u32 %v8869_v33, 16  ;;  %v15647_v50 = vld [vmem:[#allocation8 + $0xc8] sm:$0xff]  }
 0x4ae   : > { %14989 = vmatpush3.bf16.msra.mxu1 %v15630_v62  ;;  %14982 = vmatprep.subr.bf16.mxu0 %v19748_v35  ;;  %v8644_v9 = vrot.slane %v8637_v15, %v16129_v23  ;;  %v8883_v43 = vshll.u32 %v8876_v31, 16  ;;  %v7814_v56 = vpack.c.bf16 %v18131_v41, %v18131_v41  ;;  %v7823_v24 = vpack.c.bf16 %v18134_v37, %v18134_v37  ;;  %v15649_v15 = vld [vmem:[#allocation8 + $0xe0] sm:$0xff]  }
 0x4af   : > { %14990 = vmatprep.subr.bf16.mxu1 %v19748_v35  ;;  %14984 = vmatprep.mubr.msk.bf16.mxu0 %vm15890_vm4, %v19748_v35  ;;  %v8990_v12 = vshll.u32 %v8983_v47, 16  ;;  %v8714_v22 = vrot.slane %v13959_v7, %v16129_v23  ;;  %v8985_v16 = vshrl.u32 %v8976_v32, 16  ;;  %v8791_v62 = vrot.slane %v13963_v57, %v16129_v23  ;;  %v15650_v47 = vld [vmem:[#allocation8 + $0xf0] sm:$0xff]   ;;  %v15653_v7 = vld [vmem:[%s19594_s9] sm:$0xff]   ;;  %v15656_v57 = vld [vmem:[%s19594_s9 + $0x28] sm:$0xff]  }
 0x4b0   : > { %14992 = vmatprep.mubr.msk.bf16.mxu1 %vm15890_vm4, %v19748_v35  ;;  %v8885_v10 = vsel %vm18021_vm1, %v8878_v2, %v8883_v43  ;;  %v9229_v51 = vrot.slane %v7814_v56, %v16129_v23  ;;  %v9336_v42 = vrot.slane %v7823_v24, %v16129_v23  ;;  %v15654_v32 = vld [vmem:[%s19594_s9 + $0x20] sm:$0xff]   ;;  %v15657_v43 = vld [vmem:[%s19594_s9 + $0x10] sm:$0xff]   ;;  %v15660_v24 = vld [vmem:[%s19594_s9 + $0x38] sm:$0xff]  }
 0x4b1   : > { %14983 = vmatpush3.bf16.msra.mxu0 %v15631_v38  ;;  %v8992_v59 = vsel %vm18021_vm1, %v8985_v16, %v8990_v12  ;;  %v8721_v11 = vrot.slane %v8714_v22, %v16129_v23  ;;  %v8891_v14 = vcombine.low %v18053_v17, %v8885_v10  ;;  %v8798_v58 = vrot.slane %v8791_v62, %v16129_v23  ;;  %v15658_v56 = vld [vmem:[%s19594_s9 + $0x30] sm:$0xff]   ;;  %v15659_v12 = vld [vmem:[%s19594_s9 + $0x18] sm:$0xff]  }
 0x4b2   : > { %14991 = vmatpush3.bf16.msra.mxu1 %v15632_v4  ;;  %14996 = vmatprep.subr.bf16.mxu0 %v19748_v35  ;;  %v8998_v63 = vcombine.low %v18059_v6, %v8992_v59  ;;  %v9230_v21 = vcombine.high %v9229_v51, %v9229_v51  ;;  %v9337_v38 = vcombine.high %v9336_v42, %v9336_v42  ;;  %v15644_v4 = vld [vmem:[#allocation8 + $0xb8] sm:$0xff]  }
 0x4b3   : > { %15004 = vmatprep.subr.bf16.mxu1 %v19748_v35  ;;  %v8898_v17 = vrot.slane %v8891_v14, %v16129_v23  ;;  %v9237_v55 = vrot.slane %v9229_v51, %v16129_v23  ;;  %v9344_v39 = vrot.slane %v9336_v42, %v16129_v23 }
 0x4b4   : > { %14985 = vmatmul.mubr.msk.bf16.vlgmr.msra.gmra.mrb[76].mxu0 %vm7862_vm9, %v8290_v44  ;;  %v9005_v6 = vrot.slane %v8998_v63, %v16129_v23  ;;  %v9244_v29 = vrot.slane %v9230_v21, %v16129_v23  ;;  %v9351_v3 = vrot.slane %v9337_v38, %v16129_v23 }
 0x4b5   : > { %14993 = vmatmul.mubr.msk.bf16.vlgmr.msra.gmra.mrb[20].mxu1 %vm7862_vm9, %v8368_v27  ;;  %14997 = vmatpush3.bf16.msra.mxu0 %v15633_v0  ;;  %v8905_v48 = vrot.slane %v8898_v17, %v16129_v23  ;;  %v13975_v0 = vpack.c.bf16 %v18131_v41, %v18000_v19  ;;  %v9246_v8 = vshrl.u32 %v9237_v55, 16  ;;  %v9353_v46 = vshrl.u32 %v9344_v39, 16  ;;  %v15648_v19 = vld [vmem:[#allocation8 + $0xd8] sm:$0xff]  }
 0x4b6   : > { %15005 = vmatpush3.bf16.msra.mxu1 %v15634_v1  ;;  %14998 = vmatprep.subr.bf16.mxu0 %v19748_v35  ;;  %v9012_v44 = vrot.slane %v9005_v6, %v16129_v23  ;;  %v13979_v1 = vpack.c.bf16 %v18134_v37, %v18002_v5  ;;  %v9251_v27 = vshll.u32 %v9244_v29, 16  ;;  %v9358_v34 = vshll.u32 %v9351_v3, 16  ;;  %v15652_v37 = vld [vmem:[#allocation8 + $0xf8] sm:$0xff]  }
 0x4b7   : > { %15006 = vmatprep.subr.bf16.mxu1 %v19748_v35  ;;  %15000 = vmatprep.mubr.msk.bf16.mxu0 %vm15890_vm4, %v19748_v35 }
 0x4b8   : > { %15008 = vmatprep.mubr.msk.bf16.mxu1 %vm15890_vm4, %v19748_v35  ;;  %v9159_v5 = vrot.slane %v13979_v1, %v16129_v23  ;;  %v9360_v25 = vsel %vm18021_vm1, %v9353_v46, %v9358_v34 }
 0x4b9   : > { %14999 = vmatpush3.bf16.msra.mxu0 %v15635_v40  ;;  %v9082_v40 = vrot.slane %v13975_v0, %v16129_v23  ;;  %v9366_v33 = vcombine.low %v18110_v30, %v9360_v25 }
 0x4ba   : > { %15007 = vmatpush3.bf16.msra.mxu1 %v15636_v45  ;;  %15012 = vmatprep.subr.bf16.mxu0 %v19748_v35  ;;  %v9253_v45 = vsel %vm18021_vm1, %v9246_v8, %v9251_v27  ;;  %vm12197_vm1 = vmor %vm8022_vm13, %vm8025_vm15 }
 0x4bb   : > { %15020 = vmatprep.subr.bf16.mxu1 %v19748_v35  ;;  %v9089_v31 = vrot.slane %v9082_v40, %v16129_v23  ;;  %v9259_v41 = vcombine.low %v18101_v52, %v9253_v45  ;;  %v9373_v52 = vrot.slane %v9366_v33, %v16129_v23  ;;  %vm18975_vm13 = vmor %vm12197_vm1, %vm8029_vm6 }
 0x4bc   : > { %15001 = vmatmul.mubr.msk.bf16.vlgmr.msra.gmra.mrb[80].mxu0 %vm7862_vm9, %v8506_v61  ;;  %vm19007_vm6 = vmor %vm18975_vm13, %vm8033_vm10  ;;  %vm12078_vm10 = vcmask 1040384  }
 0x4bd   : > { %15009 = vmatmul.mubr.msk.bf16.vlgmr.msra.gmra.mrb[24].mxu1 %vm7862_vm9, %v8644_v9  ;;  %15013 = vmatpush3.bf16.msra.mxu0 %v15637_v36  ;;  %v9166_v36 = vrot.slane %v9159_v5, %v16129_v23  ;;  %v9266_v61 = vrot.slane %v9259_v41, %v16129_v23  ;;  %v15655_v9 = vld [vmem:[%s19594_s9 + $0x8] sm:$0xff]  }
 0x4be   : > { %15021 = vmatpush3.bf16.msra.mxu1 %v15638_v28  ;;  %15014 = vmatprep.subr.bf16.mxu0 %v19748_v35  ;;  %v9380_v28 = vrot.slane %v9373_v52, %v16129_v23 }
 0x4bf   : > { %15022 = vmatprep.subr.bf16.mxu1 %v19748_v35  ;;  %15016 = vmatprep.mubr.msk.bf16.mxu0 %vm15890_vm4, %v19748_v35  ;;  %v9273_v30 = vrot.slane %v9266_v61, %v16129_v23 }
 0x4c0   : > { %15024 = vmatprep.mubr.msk.bf16.mxu1 %vm15890_vm4, %v19748_v35 }
 0x4c1   : > { %15015 = vmatpush3.bf16.msra.mxu0 %v15639_v26 }
 0x4c2   : > { %15023 = vmatpush3.bf16.msra.mxu1 %v15640_v20  ;;  %15028 = vmatprep.subr.bf16.mxu0 %v19748_v35 }
 0x4c3   : > { %15036 = vmatprep.subr.bf16.mxu1 %v19748_v35 }
 0x4c4   : > { %15017 = vmatmul.mubr.msk.bf16.vlgmr.msra.gmra.mrb[84].mxu0 %vm7862_vm9, %v8721_v11 }
 0x4c5   : > { %15025 = vmatmul.mubr.msk.bf16.vlgmr.msra.gmra.mrb[28].mxu1 %vm7862_vm9, %v8798_v58  ;;  %15029 = vmatpush3.bf16.msra.mxu0 %v15641_v13 }
 0x4c6   : > { %15037 = vmatpush3.bf16.msra.mxu1 %v15642_v53  ;;  %15030 = vmatprep.subr.bf16.mxu0 %v19748_v35 }
 0x4c7   : > { %15038 = vmatprep.subr.bf16.mxu1 %v19748_v35  ;;  %15032 = vmatprep.mubr.msk.bf16.mxu0 %vm15890_vm4, %v19748_v35 }
 0x4c8   : > { %15040 = vmatprep.mubr.msk.bf16.mxu1 %vm15890_vm4, %v19748_v35 }
 0x4c9   : > { %15031 = vmatpush3.bf16.msra.mxu0 %v15643_v54 }
 0x4ca   : > { %15039 = vmatpush3.bf16.msra.mxu1 %v15644_v4  ;;  %15044 = vmatprep.subr.bf16.mxu0 %v19748_v35 }
 0x4cb   : > { %15052 = vmatprep.subr.bf16.mxu1 %v19748_v35 }
 0x4cc   : > { %15033 = vmatmul.mubr.msk.bf16.vlgmr.msra.gmra.mrb[88].mxu0 %vm7862_vm9, %v8905_v48 }
 0x4cd   : > { %15041 = vmatmul.mubr.msk.bf16.vlgmr.msra.gmra.mrb[32].mxu1 %vm7862_vm9, %v9012_v44  ;;  %15045 = vmatpush3.bf16.msra.mxu0 %v15645_v18 }
 0x4ce   : > { %15053 = vmatpush3.bf16.msra.mxu1 %v15646_v49  ;;  %15046 = vmatprep.subr.bf16.mxu0 %v19748_v35 }
 0x4cf   : > { %15054 = vmatprep.subr.bf16.mxu1 %v19748_v35  ;;  %15048 = vmatprep.mubr.msk.bf16.mxu0 %vm15890_vm4, %v19748_v35 }
 0x4d0   : > { %15056 = vmatprep.mubr.msk.bf16.mxu1 %vm15890_vm4, %v19748_v35 }
 0x4d1   : > { %15047 = vmatpush3.bf16.msra.mxu0 %v15647_v50 }
 0x4d2   : > { %15055 = vmatpush3.bf16.msra.mxu1 %v15648_v19  ;;  %15060 = vmatprep.subr.bf16.mxu0 %v19748_v35 }
 0x4d3   : > { %15068 = vmatprep.subr.bf16.mxu1 %v19748_v35 }
 0x4d4   : > { %15049 = vmatmul.mubr.msk.bf16.vlgmr.msra.gmra.mrb[92].mxu0 %vm7862_vm9, %v9089_v31 }
 0x4d5   : > { %15057 = vmatmul.mubr.msk.bf16.vlgmr.msra.gmra.mrb[36].mxu1 %vm7862_vm9, %v9166_v36  ;;  %15061 = vmatpush3.bf16.msra.mxu0 %v15649_v15 }
 0x4d6   : > { %15069 = vmatpush3.bf16.msra.mxu1 %v15650_v47  ;;  %15062 = vmatprep.subr.bf16.mxu0 %v19748_v35 }
 0x4d7   : > { %15070 = vmatprep.subr.bf16.mxu1 %v19748_v35  ;;  %15064 = vmatprep.mubr.msk.bf16.mxu0 %vm15890_vm4, %v19748_v35 }
 0x4d8   : > { %15072 = vmatprep.mubr.msk.bf16.mxu1 %vm15890_vm4, %v19748_v35 }
 0x4d9   : > { %15063 = vmatpush3.bf16.msra.mxu0 %v15651_v60 }
 0x4da   : > { %15071 = vmatpush3.bf16.msra.mxu1 %v15652_v37  ;;  %15076 = vmatprep.subr.bf16.mxu0 %v19748_v35 }
 0x4db   : > { %15088 = vmatprep.subr.bf16.mxu1 %v19748_v35 }
 0x4dc   : > { %15065 = vmatmul.mubr.msk.bf16.vlgmr.msra.gmra.mrb[96].mxu0 %vm7862_vm9, %v9273_v30 }
 0x4dd   : > { %15073 = vmatmul.mubr.msk.bf16.vlgmr.msra.gmra.mrb[40].mxu1 %vm7862_vm9, %v9380_v28  ;;  %15084 = vmatprep.mubr.msk.bf16.mxu0 %vm15890_vm4, %v19748_v35 }
 0x4de   : > { %15096 = vmatprep.mubr.msk.bf16.mxu1 %vm15890_vm4, %v19748_v35  ;;  %15089 = vmatpush3.bf16.msra.mxu1 %v15653_v7 }
 0x4df   : > { %15077 = vmatpush3.bf16.msra.mxu0 %v15654_v32  ;;  %15090 = vmatprep.subr.bf16.mxu1 %v19748_v35 }
 0x4e0   : > { %15078 = vmatprep.subr.bf16.mxu0 %v19748_v35 }
 0x4e2   : > { %15091 = vmatpush3.bf16.msra.mxu1 %v15655_v9 }
 0x4e3   : > { %15079 = vmatpush3.bf16.msra.mxu0 %v15656_v57  ;;  %15092 = vmatprep.subr.bf16.mxu1 %v19748_v35 }
 0x4e4   : > { %15080 = vmatprep.subr.bf16.mxu0 %v19748_v35 }
 0x4e6   : > { %15093 = vmatpush3.bf16.msra.mxu1 %v15657_v43 }
 0x4e7   : > { %15081 = vmatpush3.bf16.msra.mxu0 %v15658_v56  ;;  %15094 = vmatprep.subr.bf16.mxu1 %v19748_v35 }
 0x4e8   : > { %15082 = vmatprep.subr.bf16.mxu0 %v19748_v35 }
 0x4ea   : > { %15095 = vmatpush3.bf16.msra.mxu1 %v15659_v12 }
 0x4eb   : > { %15083 = vmatpush3.bf16.msra.mxu0 %v15660_v24  ;;  %15112 = vmatprep.subr.bf16.mxu1 %v19748_v35 }
 0x4ec   : > { %15100 = vmatprep.subr.bf16.mxu0 %v19748_v35 }
 0x574   : > { %v7900_v26 = vpop.f32.mrb[68].mxu0  ;;  %v7972_v2 = vpop.f32.mrb[12].mxu1 }
 0x575   : > { %v7973_v20 = vadd.f32 %v7972_v2, %v7900_v26  ;;  %v14954_v22 = vpop.f32.mrb[69].mxu0  ;;  %v14962_v16 = vpop.f32.mrb[13].mxu1 }
 0x576   : > { %v7903_v62 = vpop.f32.mrb[70].mxu0  ;;  %v7975_v10 = vpop.f32.mrb[14].mxu1 }
 0x577   : > { %v14955_v51 = vpop.f32.mrb[71].mxu0  ;;  %v14963_v59 = vpop.f32.mrb[15].mxu1 }
 0x578   : > { %v15891_v51 = vmov 1983009808  }
 0x579   : > { %v9462_v59 = vunpack.c.l.s4 %v15891_v51 }
 0x57f   : > { %v8124_v42 = vpop.f32.mrb[72].mxu0 }
 0x580   : > { %v8130_v13 = vadd.f32 %v8124_v42, %v7973_v20  ;;  %v8262_v11 = vpop.f32.mrb[16].mxu1  ;;  %v14970_v53 = vpop.f32.mrb[73].mxu0  ;;  %v9473_v42 = vld [vmem:[#allocation5] sm:$0x3f] }
 0x581   : > { %v14978_v14 = vpop.f32.mrb[17].mxu1  ;;  %v8127_v58 = vpop.f32.mrb[74].mxu0 }
 0x582   : > { %v8268_v63 = vadd.f32 %v8262_v11, %v8130_v13  ;;  %v8265_v21 = vpop.f32.mrb[18].mxu1  ;;  %v14971_v38 = vpop.f32.mrb[75].mxu0  ;;  %v13991_v58 = vld [vmem:[%s19593_s8] ss:$0 sm:$0xff] }
 0x583   : > { %v14979_v54 = vpop.f32.mrb[19].mxu1 }
 0x584   : > { %v9479_v54 = vpack.c.bf16 %v9473_v42, %v9473_v42 }
 0x587   : > { %v8340_v4 = vpop.f32.mrb[76].mxu0 }
 0x588   : > { %v8346_v17 = vadd.f32 %v8340_v4, %v8268_v63  ;;  %v8418_v6 = vpop.f32.mrb[20].mxu1  ;;  %v14986_v55 = vpop.f32.mrb[77].mxu0  ;;  %v9463_v63 = vunpack.c.0.s8 %v9462_v59 }
 0x589   : > { %v14994_v29 = vpop.f32.mrb[21].mxu1  ;;  %v8343_v39 = vpop.f32.mrb[78].mxu0  ;;  %v9474_v55 = vld [vmem:[#allocation5 + $0x8] sm:$0x3f] }
 0x58a   : > { %v8424_v3 = vadd.f32 %v8418_v6, %v8346_v17  ;;  %v8421_v18 = vpop.f32.mrb[22].mxu1  ;;  %v14987_v48 = vpop.f32.mrb[79].mxu0 }
 0x58b   : > { %v14995_v49 = vpop.f32.mrb[23].mxu1  ;;  %v9480_v48 = vpack.c.bf16 %v9474_v55, %v9474_v55 }
 0x58c   : > { %v9494_v49 = vrot.slane %v9479_v54, %v16129_v23 }
 0x58f   : > { %v8556_v0 = vpop.f32.mrb[80].mxu0 }
 0x590   : > { %v8562_v44 = vadd.f32 %v8556_v0, %v8424_v3  ;;  %v8694_v1 = vpop.f32.mrb[24].mxu1  ;;  %v15002_v8 = vpop.f32.mrb[81].mxu0  ;;  %v19753_v3 = vld [vmem:[#allocation16_spill] sm:$0xff] }
 0x591   : > { %v15010_v27 = vpop.f32.mrb[25].mxu1  ;;  %v8559_v46 = vpop.f32.mrb[82].mxu0  ;;  %v18293_v18 = vsub.s32 %v9463_v63, %v19753_v3  ;;  %v9495_v8 = vcombine.high %v9494_v49, %v9494_v49 }
 0x592   : > { %v8700_v34 = vadd.f32 %v8694_v1, %v8562_v44  ;;  %v8697_v50 = vpop.f32.mrb[26].mxu1  ;;  %v15003_v19 = vpop.f32.mrb[83].mxu0  ;;  %v9516_v27 = vrot.slane %v9480_v48, %v16129_v23 }
 0x593   : > { %v15011_v40 = vpop.f32.mrb[27].mxu1 }
 0x594   : > { %v9517_v50 = vcombine.high %v9516_v27, %v9516_v27  ;;  %v18304_v19 = vrot.slane %v9516_v27, %v16129_v23  ;;  %v9502_v40 = vrot.slane %v9494_v49, %v16129_v23 }
 0x597   : > { %v8771_v5 = vpop.f32.mrb[84].mxu0 }
 0x598   : > { %v8777_v45 = vadd.f32 %v8771_v5, %v8700_v34  ;;  %v8848_v25 = vpop.f32.mrb[28].mxu1  ;;  %v15018_v15 = vpop.f32.mrb[85].mxu0  ;;  %v18301_v34 = vrot.slane %v9495_v8, %v16129_v23  ;;  %v18308_v5 = vrot.slane %v9517_v50, %v16129_v23  ;;  %v15662_v8 = vld [vmem:[%s19594_s9 + $0x40] sm:$0xff]  }
 0x599   : > { %v15026_v31 = vpop.f32.mrb[29].mxu1  ;;  %v8774_v47 = vpop.f32.mrb[86].mxu0 }
 0x59a   : > { %v8854_v41 = vadd.f32 %v8848_v25, %v8777_v45  ;;  %v8851_v36 = vpop.f32.mrb[30].mxu1  ;;  %v15019_v33 = vpop.f32.mrb[87].mxu0  ;;  %v9558_v45 = vunpack.i.h.s16 %v18304_v19  ;;  %v14007_v25 = vpack.i.b16 %v18304_v19, %v18301_v34  ;;  %v9555_v31 = vunpack.i.h.s16 %v9502_v40 }
 0x59b   : > { %v15027_v60 = vpop.f32.mrb[31].mxu1  ;;  %v9571_v47 = vunpack.i.h.s16 %v18301_v34 }
 0x59c   : > { %v18316_v33 = vpack.i.b16 %v18308_v5, %v9558_v45  ;;  %v9701_v60 = vcombine.low %v9502_v40, %v14007_v25 }
 0x59f   : > { %v8955_v37 = vpop.f32.mrb[88].mxu0 }
 0x5a0   : > { %v8961_v61 = vadd.f32 %v8955_v37, %v8854_v41  ;;  %v9062_v52 = vpop.f32.mrb[32].mxu1  ;;  %v15034_v30 = vpop.f32.mrb[89].mxu0  ;;  %v14000_v37 = vpack.i.b16 %v18301_v34, %v9555_v31  ;;  %v15665_v31 = vld [vmem:[%s19594_s9 + $0x70] sm:$0xff]  }
 0x5a1   : > { %v15042_v28 = vpop.f32.mrb[33].mxu1  ;;  %v8958_v7 = vpop.f32.mrb[90].mxu0 }
 0x5a2   : > { %v9068_v32 = vadd.f32 %v9062_v52, %v8961_v61  ;;  %v9065_v9 = vpop.f32.mrb[34].mxu1  ;;  %v15035_v57 = vpop.f32.mrb[91].mxu0  ;;  %v9584_v61 = vpack.i.b16 %v9558_v45, %v9571_v47  ;;  %v9808_v52 = vcombine.high %v9502_v40, %v9502_v40 }
 0x5a3   : > { %v15043_v43 = vpop.f32.mrb[35].mxu1  ;;  %v9709_v57 = vrot.slane %v9701_v60, %v16129_v23 }
 0x5a4   : > { %v9937_v7 = vunpack.i.h.s16 %v9808_v52 }
 0x5a7   : > { %v9139_v56 = vpop.f32.mrb[92].mxu0 }
 0x5a8   : > { %v9145_v12 = vadd.f32 %v9139_v56, %v9068_v32  ;;  %v9216_v24 = vpop.f32.mrb[36].mxu1  ;;  %v15050_v26 = vpop.f32.mrb[93].mxu0 }
 0x5a9   : > { %v15058_v2 = vpop.f32.mrb[37].mxu1  ;;  %v9142_v20 = vpop.f32.mrb[94].mxu0 }
 0x5aa   : > { %v9222_v22 = vadd.f32 %v9216_v24, %v9145_v12  ;;  %v9219_v16 = vpop.f32.mrb[38].mxu1  ;;  %v15051_v62 = vpop.f32.mrb[95].mxu0  ;;  %v9588_v12 = vcombine.low %v14000_v37, %v9584_v61  ;;  %v18330_v24 = vunpack.i.h.s16 %v18308_v5  ;;  %v9477_v61 = vld [vmem:[#allocation5 + $0x20] sm:$0x3f] }
 0x5ab   : > { %v15059_v10 = vpop.f32.mrb[39].mxu1  ;;  %v14037_v62 = vpack.i.b16 %v9808_v52, %v9571_v47 }
 0x5ac   : > { %v9950_v10 = vpack.i.b16 %v18330_v24, %v9937_v7 }
 0x5af   : > { %v9323_v13 = vpop.f32.mrb[96].mxu0 }
 0x5b0   : > { %v9329_v11 = vadd.f32 %v9323_v13, %v9222_v22  ;;  %v9430_v53 = vpop.f32.mrb[40].mxu1  ;;  %v15066_v14 = vpop.f32.mrb[97].mxu0 }
 0x5b1   : > { %v15074_v21 = vpop.f32.mrb[41].mxu1  ;;  %v9326_v38 = vpop.f32.mrb[98].mxu0  ;;  %v18357_v14 = vcombine.high %v18304_v19, %v18304_v19 }
 0x5b2   : > { %v9436_v4 = vadd.f32 %v9430_v53, %v9329_v11  ;;  %v9433_v17 = vpop.f32.mrb[42].mxu1  ;;  %v15067_v6 = vpop.f32.mrb[99].mxu0  ;;  %v9596_v53 = vrot.slane %v9588_v12, %v16129_v23  ;;  %v15661_v21 = vld [vmem:[%s19594_s9 + $0x60] sm:$0xff]   ;;  %v9483_v12 = vpack.c.bf16 %v9477_v61, %v9477_v61 }
 0x5b3   : > { %v15075_v29 = vpop.f32.mrb[43].mxu1  ;;  %v9954_v6 = vcombine.low %v14037_v62, %v9950_v10  ;;  %v18373_v48 = vpack.i.b16 %v18357_v14, %v18330_v24 }
 0x5b4   : > { %v9444_v39 = vadd.f32 %v13991_v58, %v9436_v4 }
 0x5b5   : > { %v9962_v27 = vrot.slane %v9954_v6, %v16129_v23 }
 0x5b6   : > { %vm9445_vm0 = vcmp.ge.f32.partialorder %v9444_v39, 0.0  ;;  %v9446_v0 = vmul.f32 0.2, %v9444_v39 }
 0x5b8   : > { %v9447_v44 = vsel %vm9445_vm0, %v9444_v39, %v9446_v0  ;;  %v14022_v39 = vpack.i.b16 %v18308_v5, %v9808_v52  ;;  %vm11841_vm0 = vsmask.f32 7448 }
 0x5b9   : > { %v9467_v1 = vrot.slane %v9447_v44, %v18293_v18  ;;  %v15663_v44 = vld [vmem:[%s19594_s9 + $0x68] sm:$0xff]  }
 0x5ba   : > { %v9828_v45 = vcombine.low %v18301_v34, %v14022_v39  ;;  %v15664_v34 = vld [vmem:[%s19594_s9 + $0x48] sm:$0xff]  }
 0x5bb   : > { %v9468_v46 = vcombine.high %v9467_v1, %v9467_v1  ;;  %9471 = vst.msk [vmem:[#allocation5 + $0x12] sm:$0x3] %vm9455_vm2, %v9467_v1 }
 0x5bc   : > { %v9836_v60 = vrot.slane %v9828_v45, %v16129_v23 }
 0x5bd   : > { %9472 = vst.msk [vmem:[#allocation5 + $0x1a] sm:$0x3] %vm9455_vm2, %v9468_v46  ;;  %vm18964_vm2 = vmor %vm11836_vm12, %vm11837_vm14  ;;  %vm12083_vm12 = vcmask 1046534  }
 0x5be   : > { %vm11840_vm15 = vmor %vm18964_vm2, %vm11839_vm3  ;;  %vm13576_vm2 = vcmask 27648  }
 0x5bf   : > { %vm19015_vm7 = vmor %vm11840_vm15, %vm11841_vm0 }
 0x5c2   : > { %v9475_v15 = vld [vmem:[#allocation5 + $0x10] sm:$0x3f] }
 0x5c3   : > { %v9481_v41 = vpack.c.bf16 %v9475_v15, %v9475_v15 }
 0x5c4   : > { %v9476_v56 = vld [vmem:[#allocation5 + $0x18] sm:$0x3f] }
 0x5c5   : > { %v9538_v36 = vrot.slane %v9481_v41, %v16129_v23  ;;  %v9482_v51 = vpack.c.bf16 %v9476_v56, %v9476_v56 }
 0x5c7   : > { %v9539_v30 = vcombine.high %v9538_v36, %v9538_v36  ;;  %v18320_v28 = vrot.slane %v9538_v36, %v16129_v23  ;;  %v10070_v4 = vrot.slane %v9482_v51, %v16129_v23  ;;  %v15669_v51 = vld [vmem:[%s19594_s9 + $0xa0] sm:$0xff]  }
 0x5c9   : > { %v18323_v32 = vrot.slane %v9539_v30, %v16129_v23  ;;  %v9702_v9 = vcombine.low %v18316_v33, %v18320_v28  ;;  %v9561_v43 = vunpack.i.h.s16 %v18320_v28  ;;  %v18339_v22 = vcombine.high %v18320_v28, %v18320_v28  ;;  %v15667_v30 = vld [vmem:[%s19594_s9 + $0x78] sm:$0xff]  }
 0x5ca   : > { %v10071_v1 = vcombine.high %v10070_v4, %v10070_v4  ;;  %v18390_v50 = vrot.slane %v10070_v4, %v16129_v23  ;;  %v14052_v4 = vpack.i.b16 %v18320_v28, %v18308_v5 }
 0x5cb   : > { %v9562_v26 = vunpack.i.l.s16 %v18323_v32  ;;  %v9716_v2 = vrot.slane %v9702_v9, %v16129_v23  ;;  %v18335_v20 = vunpack.i.h.s16 %v18323_v32  ;;  %v18344_v16 = vpack.i.b16 %v18323_v32, %v9561_v43  ;;  %v15666_v9 = vld [vmem:[%s19594_s9 + $0x50] sm:$0xff]  }
 0x5cc   : > { %v9829_v25 = vcombine.low %v18373_v48, %v18323_v32  ;;  %v9939_v15 = vunpack.i.h.s16 %v18339_v22  ;;  %v18401_v47 = vrot.slane %v10071_v1, %v16129_v23  ;;  %v10087_v36 = vunpack.i.h.s16 %v18390_v50 }
 0x5cd   : > { %v9723_v59 = vrot.slane %v9562_v26, %v16129_v23  ;;  %v9724_v42 = vcombine.low %v9709_v57, %v9716_v2  ;;  %v18350_v13 = vpack.i.b16 %v18339_v22, %v18335_v20  ;;  %v9589_v11 = vcombine.low %v18308_v5, %v18344_v16 }
 0x5ce   : > { %v9610_v54 = vrot.slane %v18335_v20, %v16129_v23  ;;  %v9843_v37 = vrot.slane %v9829_v25, %v16129_v23  ;;  %v9976_v52 = vrot.slane %v9939_v15, %v16129_v23  ;;  %v9813_v7 = vunpack.i.l.s16 %v18339_v22 }
 0x5cf   : > { %v9731_v58 = vrot.slane %v9724_v42, %v16129_v23  ;;  %v9738_v63 = vrot.slane %v9723_v59, %v16129_v23  ;;  %v9603_v38 = vrot.slane %v9589_v11, %v16129_v23  ;;  %v9955_v55 = vcombine.low %v18357_v14, %v18350_v13  ;;  %v15668_v11 = vld [vmem:[%s19594_s9 + $0x58] sm:$0xff]  }
 0x5d0   : > { %v9625_v0 = vrot.slane %v9610_v54, %v16129_v23  ;;  %v18428_v56 = vpack.i.b16 %v18401_v47, %v10087_v36  ;;  %v9851_v26 = vcombine.low %v9836_v60, %v9843_v37  ;;  %v9991_v2 = vrot.slane %v9976_v52, %v16129_v23  ;;  %v15671_v54 = vld [vmem:[%s19594_s9 + $0xa8] sm:$0xff]   ;;  %v15675_v60 = vld [vmem:[%s19594_s9 + $0xb8] sm:$0xff]   ;;  %v15674_v52 = vld [vmem:[%s19594_s9 + $0x90] sm:$0xff]  }
 0x5d1   : > { %v9739_v17 = vcombine.low %v9731_v58, %v9738_v63  ;;  %v9611_v29 = vcombine.low %v9596_v53, %v9603_v38  ;;  %v9969_v46 = vrot.slane %v9955_v55, %v16129_v23  ;;  %v10221_v62 = vpack.i.b16 %v9561_v43, %v18330_v24 }
 0x5d2   : > { %v14108_v10 = vpack.i.b16 %v18390_v50, %v18323_v32  ;;  %v9850_v59 = vrot.slane %v9813_v7, %v16129_v23  ;;  %v10225_v43 = vcombine.low %v18323_v32, %v18428_v56  ;;  %v10586_v24 = vrot.slane %v9483_v12, %v16129_v23 }
 0x5d3   : > { %15097 = vmatmul.mubr.msk.bf16.vlgmr.msra.gmra.mrb[44].mxu1 %vm9651_vm5, %v9739_v17  ;;  %v9618_v49 = vrot.slane %v9611_v29, %v16129_v23  ;;  %v9977_v41 = vcombine.low %v9962_v27, %v9969_v46  ;;  %v9858_v53 = vrot.slane %v9851_v26, %v16129_v23  ;;  %v10224_v63 = vcombine.low %v18316_v33, %v10221_v62  ;;  %v15670_v33 = vld [vmem:[%s19594_s9 + $0x80] sm:$0xff]   ;;  %v15672_v46 = vld [vmem:[%s19594_s9 + $0x88] sm:$0xff]  }
 0x5d4   : > { %15113 = vmatpush3.bf16.msra.mxu1 %v15661_v21  ;;  %15120 = vmatprep.mubr.msk.bf16.mxu1 %vm15890_vm4, %v19748_v35  ;;  %v18451_v58 = vcombine.low %v18320_v28, %v14108_v10  ;;  %v14136_v21 = vpack.i.b16 %v18401_v47, %v18339_v22  ;;  %v9865_v38 = vrot.slane %v9850_v59, %v16129_v23  ;;  %v10088_v37 = vunpack.i.l.s16 %v18401_v47 }
 0x5d5   : > { %15114 = vmatprep.subr.bf16.mxu1 %v19748_v35  ;;  %v9626_v40 = vcombine.low %v9618_v49, %v9625_v0  ;;  %v9984_v57 = vrot.slane %v9977_v41, %v16129_v23  ;;  %v18466_v17 = vrot.slane %v10586_v24, %v16129_v23  ;;  %v10239_v6 = vrot.slane %v10225_v43, %v16129_v23 }
 0x5d6   : > { %v10587_v55 = vcombine.high %v10586_v24, %v10586_v24  ;;  %v18474_v29 = vcombine.low %v18323_v32, %v14136_v21  ;;  %v9866_v39 = vcombine.low %v9858_v53, %v9865_v38  ;;  %v10103_v28 = vcombine.low %v18344_v16, %v18390_v50  ;;  %v15679_v24 = vld [vmem:[%s19594_s9 + $0xe8] sm:$0xff]  }
 0x5d7   : > { %15085 = vmatmul.mubr.msk.bf16.vlgmr.msra.gmra.mrb[100].mxu0 %vm9651_vm5, %v9626_v40  ;;  %v9992_v42 = vcombine.low %v9984_v57, %v9991_v2  ;;  %v14164_v49 = vpack.i.b16 %v18466_v17, %v18401_v47  ;;  %v18482_v0 = vunpack.i.h.s16 %v18401_v47  ;;  %v18487_v1 = vcombine.high %v18390_v50, %v18390_v50  ;;  %v15677_v2 = vld [vmem:[%s19594_s9 + $0xe0] sm:$0xff]  }
 0x5d8   : > { %15115 = vmatpush3.bf16.msra.mxu1 %v15663_v44  ;;  %15101 = vmatpush3.bf16.msra.mxu0 %v15662_v8  ;;  %v10232_v44 = vrot.slane %v10224_v63, %v16129_v23  ;;  %v15673_v8 = vld [vmem:[%s19594_s9 + $0xb0] sm:$0xff]   ;;  %v10102_v27 = vcombine.low %v18304_v19, %v14052_v4  ;;  %v18499_v45 = vrot.slane %v10587_v55, %v16129_v23 }
 0x5d9   : > { %15116 = vmatprep.subr.bf16.mxu1 %v19748_v35  ;;  %15102 = vmatprep.subr.bf16.mxu0 %v19748_v35  ;;  %v18502_v25 = vcombine.low %v18390_v50, %v14164_v49  ;;  %v10117_v19 = vrot.slane %v10103_v28, %v16129_v23  ;;  %v18525_v7 = vpack.i.b16 %v18487_v1, %v18482_v0  ;;  %v15683_v28 = vld [vmem:[%s19594_s9 + $0xf8] sm:$0xff]   ;;  %v10334_v49 = vunpack.i.l.s16 %v18487_v1 }
 0x5da   : > { %15108 = vmatprep.mubr.msk.bf16.mxu0 %vm15890_vm4, %v19748_v35  ;;  %v10247_v40 = vcombine.low %v10232_v44, %v10239_v6  ;;  %v14192_v41 = vpack.i.b16 %v18499_v45, %v18487_v1  ;;  %v10110_v61 = vrot.slane %v10102_v27, %v16129_v23  ;;  %v10124_v62 = vrot.slane %v10088_v37, %v16129_v23 }
 0x5db   : > { %v10471_v59 = vcombine.low %v18339_v22, %v18525_v7  ;;  %v14080_v53 = vpack.i.b16 %v18323_v32, %v18357_v14  ;;  %v10348_v38 = vcombine.low %v18350_v13, %v18401_v47  ;;  %v15681_v32 = vld [vmem:[%s19594_s9 + $0xf0] sm:$0xff]  }
 0x5dc   : > { %15117 = vmatpush3.bf16.msra.mxu1 %v15665_v31  ;;  %15103 = vmatpush3.bf16.msra.mxu0 %v15664_v34  ;;  %v10246_v31 = vrot.slane %v18482_v0, %v16129_v23  ;;  %v9938_v34 = vunpack.i.h.s16 %v18357_v14  ;;  %v18529_v57 = vcombine.low %v18401_v47, %v14192_v41  ;;  %v10139_v43 = vrot.slane %v10124_v62, %v16129_v23  ;;  %v15688_v62 = vld [vmem:[%s19594_s9 + $0x108] sm:$0xff]  }
 0x5dd   : > { %15118 = vmatprep.subr.bf16.mxu1 %v19748_v35  ;;  %15104 = vmatprep.subr.bf16.mxu0 %v19748_v35  ;;  %v10485_v63 = vrot.slane %v10471_v59, %v16129_v23  ;;  %v10347_v14 = vcombine.low %v18308_v5, %v14080_v53  ;;  %v10362_v55 = vrot.slane %v10348_v38, %v16129_v23  ;;  %v10603_v5 = vunpack.i.h.s16 %v18466_v17  ;;  %v9478_v53 = vld [vmem:[#allocation5 + $0x28] sm:$0x3f] }
 0x5de   : > { %v10261_v12 = vrot.slane %v10246_v31, %v16129_v23  ;;  %v10466_v26 = vpack.i.b16 %v18335_v20, %v9938_v34  ;;  %v15685_v34 = vld [vmem:[%s19594_s9 + $0x120] sm:$0xff]   ;;  %v10369_v41 = vrot.slane %v10334_v49, %v16129_v23  ;;  %v10604_v59 = vunpack.i.l.s16 %v18499_v45 }
 0x5df   : > { %v10355_v44 = vrot.slane %v10347_v14, %v16129_v23  ;;  %v18600_v31 = vpack.i.b16 %v18499_v45, %v10603_v5 }
 0x5e0   : > { %15119 = vmatpush3.bf16.msra.mxu1 %v15667_v30  ;;  %15105 = vmatpush3.bf16.msra.mxu0 %v15666_v9  ;;  %v10254_v30 = vrot.slane %v10247_v40, %v16129_v23  ;;  %v10125_v9 = vcombine.low %v10110_v61, %v10117_v19  ;;  %v10384_v61 = vrot.slane %v10369_v41, %v16129_v23 }
 0x5e1   : > { %15136 = vmatprep.subr.bf16.mxu1 %v19748_v35  ;;  %15106 = vmatprep.subr.bf16.mxu0 %v19748_v35  ;;  %v10370_v40 = vcombine.low %v10355_v44, %v10362_v55  ;;  %v10740_v37 = vcombine.low %v18401_v47, %v18600_v31  ;;  %v15695_v44 = vld [vmem:[%s19594_s9 + $0x168] sm:$0xff]  }
 0x5e2   : > { %v10262_v10 = vcombine.low %v10254_v30, %v10261_v12  ;;  %v18631_v12 = vunpack.i.h.s16 %v18499_v45 }
 0x5e3   : > { %15121 = vmatmul.mubr.msk.bf16.vlgmr.msra.gmra.mrb[48].mxu1 %vm9651_vm5, %v9992_v42  ;;  %v10132_v42 = vrot.slane %v10125_v9, %v16129_v23  ;;  %v10618_v9 = vcombine.low %v18428_v56, %v18466_v17 }
 0x5e4   : > { %15137 = vmatpush3.bf16.msra.mxu1 %v15669_v51  ;;  %15144 = vmatprep.mubr.msk.bf16.mxu1 %vm15890_vm4, %v19748_v35  ;;  %v15676_v51 = vld [vmem:[%s19594_s9 + $0x98] sm:$0xff]  }
 0x5e5   : > { %15107 = vmatpush3.bf16.msra.mxu0 %v15668_v11  ;;  %15138 = vmatprep.subr.bf16.mxu1 %v19748_v35  ;;  %v10470_v11 = vcombine.low %v18373_v48, %v10466_v26  ;;  %v15678_v48 = vld [vmem:[%s19594_s9 + $0xc0] sm:$0xff]   ;;  %v10140_v21 = vcombine.low %v10132_v42, %v10139_v43  ;;  %v10754_v26 = vrot.slane %v10740_v37, %v16129_v23  ;;  %v15691_v43 = vld [vmem:[%s19594_s9 + $0x138] sm:$0xff]  }
 0x5e6   : > { %15124 = vmatprep.subr.bf16.mxu0 %v19748_v35  ;;  %v10632_v42 = vrot.slane %v10618_v9, %v16129_v23  ;;  %v10870_v9 = vrot.slane %v18474_v29, %v16129_v23 }
 0x5e7   : > { %v10478_v4 = vrot.slane %v10470_v11, %v16129_v23  ;;  %v18651_v11 = vcombine.high %v18466_v17, %v18466_v17  ;;  %v15700_v17 = vld [vmem:[%s19594_s9 + $0x158] sm:$0xff]  }
 0x5e8   : > { %15109 = vmatmul.mubr.msk.bf16.vlgmr.msra.gmra.mrb[104].mxu0 %vm9651_vm5, %v9866_v39  ;;  %15139 = vmatpush3.bf16.msra.mxu1 %v15671_v54  ;;  %v10456_v54 = vunpack.i.h.s16 %v18487_v1 }
 0x5e9   : > { %15125 = vmatpush3.bf16.msra.mxu0 %v15670_v33  ;;  %15140 = vmatprep.subr.bf16.mxu1 %v19748_v35  ;;  %v15680_v33 = vld [vmem:[%s19594_s9 + $0xc8] sm:$0xff]   ;;  %v10493_v6 = vcombine.low %v10478_v4, %v10485_v63  ;;  %v15690_v63 = vld [vmem:[%s19594_s9 + $0x110] sm:$0xff]   ;;  %v18671_v22 = vpack.i.b16 %v18651_v11, %v18631_v12 }
 0x5ea   : > { %15126 = vmatprep.subr.bf16.mxu0 %v19748_v35  ;;  %15132 = vmatprep.mubr.msk.bf16.mxu0 %vm15890_vm4, %v19748_v35  ;;  %v10492_v39 = vrot.slane %v10456_v54, %v16129_v23 }
 0x5eb   : > { %v10500_v27 = vrot.slane %v10493_v6, %v16129_v23 }
 0x5ec   : > { %15141 = vmatpush3.bf16.msra.mxu1 %v15673_v8  ;;  %v15682_v8 = vld [vmem:[%s19594_s9 + $0xd0] sm:$0xff]   ;;  %v10507_v19 = vrot.slane %v10492_v39, %v16129_v23 }
 0x5ed   : > { %15127 = vmatpush3.bf16.msra.mxu0 %v15672_v46  ;;  %15142 = vmatprep.subr.bf16.mxu1 %v19748_v35  ;;  %v10736_v46 = vpack.i.b16 %v10087_v36, %v18335_v20  ;;  %v15684_v20 = vld [vmem:[%s19594_s9 + $0xd8] sm:$0xff]  }
 0x5ee   : > { %15128 = vmatprep.subr.bf16.mxu0 %v19748_v35  ;;  %v10508_v50 = vcombine.low %v10500_v27, %v10507_v19  ;;  %v10863_v19 = vcombine.low %v18525_v7, %v18499_v45 }
 0x5ef   : > { %v10739_v36 = vcombine.low %v18344_v16, %v10736_v46  ;;  %v15686_v16 = vld [vmem:[%s19594_s9 + $0x100] sm:$0xff]  }
 0x5f0   : > { %15143 = vmatpush3.bf16.msra.mxu1 %v15675_v60  ;;  %v10377_v60 = vrot.slane %v10370_v40, %v16129_v23 }
 0x5f1   : > { %15129 = vmatpush3.bf16.msra.mxu0 %v15674_v52  ;;  %15160 = vmatprep.subr.bf16.mxu1 %v19748_v35  ;;  %v15687_v52 = vld [vmem:[%s19594_s9 + $0x128] sm:$0xff]   ;;  %v10747_v30 = vrot.slane %v10739_v36, %v16129_v23 }
 0x5f2   : > { %15130 = vmatprep.subr.bf16.mxu0 %v19748_v35  ;;  %v10385_v47 = vcombine.low %v10377_v60, %v10384_v61  ;;  %v15696_v36 = vld [vmem:[%s19594_s9 + $0x148] sm:$0xff]   ;;  %v10849_v61 = vunpack.i.l.s16 %v18651_v11 }
 0x5f3   : > { %15145 = vmatmul.mubr.msk.bf16.vlgmr.msra.gmra.mrb[52].mxu1 %vm9651_vm5, %v10262_v10  ;;  %v10761_v10 = vrot.slane %v18631_v12, %v16129_v23 }
 0x5f4   : > { %15161 = vmatpush3.bf16.msra.mxu1 %v15677_v2  ;;  %15168 = vmatprep.mubr.msk.bf16.mxu1 %vm15890_vm4, %v19748_v35  ;;  %v15689_v2 = vld [vmem:[%s19594_s9 + $0x130] sm:$0xff]  }
 0x5f5   : > { %15131 = vmatpush3.bf16.msra.mxu0 %v15676_v51  ;;  %15162 = vmatprep.subr.bf16.mxu1 %v19748_v35  ;;  %v10762_v51 = vcombine.low %v10747_v30, %v10754_v26  ;;  %v10776_v38 = vrot.slane %v10761_v10, %v16129_v23  ;;  %v15699_v30 = vld [vmem:[%s19594_s9 + $0x178] sm:$0xff]   ;;  %v15698_v26 = vld [vmem:[%s19594_s9 + $0x150] sm:$0xff]  }
 0x5f6   : > { %15148 = vmatprep.subr.bf16.mxu0 %v19748_v35 }
 0x5f8   : > { %15133 = vmatmul.mubr.msk.bf16.vlgmr.msra.gmra.mrb[108].mxu0 %vm9651_vm5, %v10140_v21  ;;  %15163 = vmatpush3.bf16.msra.mxu1 %v15679_v24  ;;  %v10625_v24 = vrot.slane %v18451_v58, %v16129_v23  ;;  %v10769_v21 = vrot.slane %v10762_v51, %v16129_v23  ;;  %v10639_v58 = vrot.slane %v10604_v59, %v16129_v23  ;;  %v15701_v59 = vld [vmem:[%s19594_s9 + $0x1a0] sm:$0xff]  }
 0x5f9   : > { %15149 = vmatpush3.bf16.msra.mxu0 %v15678_v48  ;;  %15164 = vmatprep.subr.bf16.mxu1 %v19748_v35  ;;  %v10981_v48 = vpack.i.b16 %v18482_v0, %v9939_v15  ;;  %v9484_v15 = vpack.c.bf16 %v9478_v53, %v9478_v53  ;;  %v10884_v51 = vrot.slane %v10849_v61, %v16129_v23  ;;  %v15703_v53 = vld [vmem:[%s19594_s9 + $0x1a8] sm:$0xff]  }
 0x5fa   : > { %15150 = vmatprep.subr.bf16.mxu0 %v19748_v35  ;;  %15156 = vmatprep.mubr.msk.bf16.mxu0 %vm15890_vm4, %v19748_v35  ;;  %v10640_v4 = vcombine.low %v10625_v24, %v10632_v42  ;;  %v10777_v14 = vcombine.low %v10769_v21, %v10776_v38  ;;  %v10654_v39 = vrot.slane %v10639_v58, %v16129_v23  ;;  %v15705_v58 = vld [vmem:[%s19594_s9 + $0x1b0] sm:$0xff]  }
 0x5fb   : > { %v10985_v6 = vcombine.low %v18350_v13, %v10981_v48  ;;  %v11101_v49 = vrot.slane %v9484_v15, %v16129_v23  ;;  %v10971_v13 = vunpack.i.h.s16 %v18651_v11  ;;  %v10899_v24 = vrot.slane %v10884_v51, %v16129_v23  ;;  %v15716_v51 = vld [vmem:[%s19594_s9 + $0x1d8] sm:$0xff]  }
 0x5fc   : > { %15165 = vmatpush3.bf16.msra.mxu1 %v15681_v32  ;;  %v15693_v32 = vld [vmem:[%s19594_s9 + $0x160] sm:$0xff]   ;;  %v10647_v55 = vrot.slane %v10640_v4, %v16129_v23 }
 0x5fd   : > { %15151 = vmatpush3.bf16.msra.mxu0 %v15680_v33  ;;  %15166 = vmatprep.subr.bf16.mxu1 %v19748_v35  ;;  %v15692_v33 = vld [vmem:[%s19594_s9 + $0x118] sm:$0xff]   ;;  %v10993_v27 = vrot.slane %v10985_v6, %v16129_v23  ;;  %v18700_v46 = vrot.slane %v11101_v49, %v16129_v23  ;;  %v11102_v41 = vcombine.high %v11101_v49, %v11101_v49 }
 0x5fe   : > { %15152 = vmatprep.subr.bf16.mxu0 %v19748_v35  ;;  %v10655_v40 = vcombine.low %v10647_v55, %v10654_v39  ;;  %v15707_v55 = vld [vmem:[%s19594_s9 + $0x1b8] sm:$0xff]  }
 0x5ff   : > { %v11118_v37 = vunpack.i.h.s16 %v18700_v46  ;;  %v11133_v21 = vcombine.low %v18600_v31, %v18700_v46  ;;  %v18775_v4 = vcombine.high %v18700_v46, %v18700_v46  ;;  %v15704_v31 = vld [vmem:[%s19594_s9 + $0x188] sm:$0xff]  }
 0x600   : > { %15167 = vmatpush3.bf16.msra.mxu1 %v15683_v28  ;;  %v10986_v28 = vcombine.low %v18487_v1, %v18671_v22  ;;  %v15709_v1 = vld [vmem:[%s19594_s9 + $0x1e0] sm:$0xff]  }
 0x601   : > { %15153 = vmatpush3.bf16.msra.mxu0 %v15682_v8  ;;  %15184 = vmatprep.subr.bf16.mxu1 %v19748_v35  ;;  %v15694_v8 = vld [vmem:[%s19594_s9 + $0x140] sm:$0xff]   ;;  %v11147_v6 = vrot.slane %v11133_v21, %v16129_v23 }
 0x602   : > { %15154 = vmatprep.subr.bf16.mxu0 %v19748_v35  ;;  %v15717_v21 = vld [vmem:[%s19596_s11] sm:$0xff]  }
 0x603   : > { %15169 = vmatmul.mubr.msk.bf16.vlgmr.msra.gmra.mrb[56].mxu1 %vm9651_vm5, %v10508_v50  ;;  %v15697_v50 = vld [vmem:[%s19594_s9 + $0x170] sm:$0xff]  }
 0x604   : > { %15185 = vmatpush3.bf16.msra.mxu1 %v15685_v34  ;;  %15192 = vmatprep.mubr.msk.bf16.mxu1 %vm15890_vm4, %v19748_v35  ;;  %v11000_v34 = vrot.slane %v10986_v28, %v16129_v23  ;;  %v11496_v28 = vpack.i.b16 %v18631_v12, %v10456_v54  ;;  %v15708_v12 = vld [vmem:[%s19594_s9 + $0x198] sm:$0xff]  }
 0x605   : > { %15155 = vmatpush3.bf16.msra.mxu0 %v15684_v20  ;;  %15186 = vmatprep.subr.bf16.mxu1 %v19748_v35  ;;  %v11007_v20 = vrot.slane %v10971_v13, %v16129_v23 }
 0x606   : > { %15172 = vmatprep.subr.bf16.mxu0 %v19748_v35  ;;  %v11008_v60 = vcombine.low %v10993_v27, %v11000_v34  ;;  %v11500_v27 = vcombine.low %v18525_v7, %v11496_v28  ;;  %v15711_v34 = vld [vmem:[%s19594_s9 + $0x1e8] sm:$0xff]   ;;  %v15710_v7 = vld [vmem:[%s19594_s9 + $0x1c0] sm:$0xff]  }
 0x608   : > { %15157 = vmatmul.mubr.msk.bf16.vlgmr.msra.gmra.mrb[112].mxu0 %vm9651_vm5, %v10385_v47  ;;  %15187 = vmatpush3.bf16.msra.mxu1 %v15687_v52  ;;  %v10877_v52 = vrot.slane %v10863_v19, %v16129_v23  ;;  %v11022_v47 = vrot.slane %v11007_v20, %v16129_v23 }
 0x609   : > { %15173 = vmatpush3.bf16.msra.mxu0 %v15686_v16  ;;  %15188 = vmatprep.subr.bf16.mxu1 %v19748_v35  ;;  %v18722_v16 = vrot.slane %v11102_v41, %v16129_v23  ;;  %v11508_v41 = vrot.slane %v11500_v27, %v16129_v23  ;;  %v15725_v27 = vld [vmem:[%s19596_s11 + $0x30] sm:$0xff]  }
 0x60a   : > { %15174 = vmatprep.subr.bf16.mxu0 %v19748_v35  ;;  %15180 = vmatprep.mubr.msk.bf16.mxu0 %vm15890_vm4, %v19748_v35  ;;  %v10885_v29 = vcombine.low %v10870_v9, %v10877_v52  ;;  %v15714_v9 = vld [vmem:[%s19594_s9 + $0x1d0] sm:$0xff]  }
 0x60b   : > { %v14178_v10 = vpack.i.b16 %v18722_v16, %v11118_v37  ;;  %v11241_v38 = vunpack.i.h.s16 %v18722_v16  ;;  %v15712_v37 = vld [vmem:[%s19594_s9 + $0x1c8] sm:$0xff]  }
 0x60c   : > { %15189 = vmatpush3.bf16.msra.mxu1 %v15689_v2  ;;  %v11015_v2 = vrot.slane %v11008_v60, %v16129_v23  ;;  %v15713_v60 = vld [vmem:[%s19594_s9 + $0x1f0] sm:$0xff]  }
 0x60d   : > { %15175 = vmatpush3.bf16.msra.mxu0 %v15688_v62  ;;  %15190 = vmatprep.subr.bf16.mxu1 %v19748_v35  ;;  %v11251_v62 = vpack.i.b16 %v10603_v5, %v18482_v0  ;;  %v11255_v5 = vcombine.low %v18499_v45, %v14178_v10  ;;  %v11276_v15 = vrot.slane %v11241_v38, %v16129_v23 }
 0x60e   : > { %15176 = vmatprep.subr.bf16.mxu0 %v19748_v35  ;;  %v11023_v42 = vcombine.low %v11015_v2, %v11022_v47  ;;  %v14206_v39 = vpack.i.b16 %v18775_v4, %v11241_v38  ;;  %v15715_v47 = vld [vmem:[%s19594_s9 + $0x1f8] sm:$0xff]  }
 0x60f   : > { %v11254_v0 = vcombine.low %v18428_v56, %v11251_v62  ;;  %v15702_v56 = vld [vmem:[%s19594_s9 + $0x180] sm:$0xff]   ;;  %v11269_v48 = vrot.slane %v11255_v5, %v16129_v23 }
 0x610   : > { %15191 = vmatpush3.bf16.msra.mxu1 %v15691_v43  ;;  %v10892_v43 = vrot.slane %v10885_v29, %v16129_v23  ;;  %v11501_v46 = vcombine.low %v18651_v11, %v14206_v39  ;;  %v11486_v11 = vunpack.i.h.s16 %v18775_v4 }
 0x611   : > { %15177 = vmatpush3.bf16.msra.mxu0 %v15690_v63  ;;  %15208 = vmatprep.subr.bf16.mxu1 %v19748_v35  ;;  %v11262_v45 = vrot.slane %v11254_v0, %v16129_v23 }
 0x612   : > { %15178 = vmatprep.subr.bf16.mxu0 %v19748_v35  ;;  %v10900_v63 = vcombine.low %v10892_v43, %v10899_v24  ;;  %v11522_v61 = vrot.slane %v11486_v11, %v16129_v23 }
 0x613   : > { %15193 = vmatmul.mubr.msk.bf16.vlgmr.msra.gmra.mrb[60].mxu1 %vm9651_vm5, %v10777_v14  ;;  %v11119_v14 = vunpack.i.l.s16 %v18722_v16 }
 0x614   : > { %15209 = vmatpush3.bf16.msra.mxu1 %v15693_v32  ;;  %15216 = vmatprep.mubr.msk.bf16.mxu1 %vm15890_vm4, %v19748_v35  ;;  %v11277_v32 = vcombine.low %v11262_v45, %v11269_v48  ;;  %v11537_v2 = vrot.slane %v11522_v61, %v16129_v23 }
 0x615   : > { %15179 = vmatpush3.bf16.msra.mxu0 %v15692_v33  ;;  %15210 = vmatprep.subr.bf16.mxu1 %v19748_v35  ;;  %v11140_v33 = vrot.slane %v18502_v25, %v16129_v23  ;;  %v15706_v25 = vld [vmem:[%s19594_s9 + $0x190] sm:$0xff]   ;;  %v11154_v13 = vrot.slane %v11119_v14, %v16129_v23 }
 0x616   : > { %15196 = vmatprep.subr.bf16.mxu0 %v19748_v35  ;;  %v11284_v49 = vrot.slane %v11277_v32, %v16129_v23 }
 0x617   : > { %v11169_v19 = vrot.slane %v11154_v13, %v16129_v23 }
 0x618   : > { %15181 = vmatmul.mubr.msk.bf16.vlgmr.msra.gmra.mrb[116].mxu0 %vm9651_vm5, %v10655_v40  ;;  %15211 = vmatpush3.bf16.msra.mxu1 %v15695_v44  ;;  %v11291_v44 = vrot.slane %v11276_v15, %v16129_v23 }
 0x619   : > { %15197 = vmatpush3.bf16.msra.mxu0 %v15694_v8  ;;  %15212 = vmatprep.subr.bf16.mxu1 %v19748_v35  ;;  %v11155_v8 = vcombine.low %v11140_v33, %v11147_v6  ;;  %v15719_v33 = vld [vmem:[%s19596_s11 + $0x10] sm:$0xff]  }
 0x61a   : > { %15198 = vmatprep.subr.bf16.mxu0 %v19748_v35  ;;  %15204 = vmatprep.mubr.msk.bf16.mxu0 %vm15890_vm4, %v19748_v35  ;;  %v11292_v54 = vcombine.low %v11284_v49, %v11291_v44  ;;  %v15720_v44 = vld [vmem:[%s19596_s11 + $0x18] sm:$0xff]  }
 0x61b   : > { %v11162_v40 = vrot.slane %v11155_v8, %v16129_v23  ;;  %v15723_v8 = vld [vmem:[%s19596_s11 + $0x28] sm:$0xff]  }
 0x61c   : > { %15213 = vmatpush3.bf16.msra.mxu1 %v15697_v50  ;;  %v11515_v50 = vrot.slane %v11501_v46, %v16129_v23 }
 0x61d   : > { %15199 = vmatpush3.bf16.msra.mxu0 %v15696_v36  ;;  %15214 = vmatprep.subr.bf16.mxu1 %v19748_v35  ;;  %v11170_v20 = vcombine.low %v11162_v40, %v11169_v19  ;;  %v11378_v36 = vcombine.low %v18671_v22, %v18722_v16  ;;  %v11364_v22 = vunpack.i.l.s16 %v18775_v4  ;;  %v11385_v16 = vrot.slane %v18529_v57, %v16129_v23 }
 0x61e   : > { %15200 = vmatprep.subr.bf16.mxu0 %v19748_v35  ;;  %v11523_v52 = vcombine.low %v11508_v41, %v11515_v50 }
 0x61f   : > { %v11399_v57 = vrot.slane %v11364_v22, %v16129_v23 }
 0x620   : > { %15215 = vmatpush3.bf16.msra.mxu1 %v15699_v30  ;;  %v11392_v30 = vrot.slane %v11378_v36, %v16129_v23 }
 0x621   : > { %15201 = vmatpush3.bf16.msra.mxu0 %v15698_v26  ;;  %15232 = vmatprep.subr.bf16.mxu1 %v19748_v35  ;;  %v11530_v26 = vrot.slane %v11523_v52, %v16129_v23 }
 0x622   : > { %15202 = vmatprep.subr.bf16.mxu0 %v19748_v35  ;;  %v11400_v62 = vcombine.low %v11385_v16, %v11392_v30 }
 0x623   : > { %15217 = vmatmul.mubr.msk.bf16.vlgmr.msra.gmra.mrb[64].mxu1 %vm9651_vm5, %v11023_v42  ;;  %v11538_v10 = vcombine.low %v11530_v26, %v11537_v2 }
 0x624   : > { %15233 = vmatpush3.bf16.msra.mxu1 %v15701_v59  ;;  %15240 = vmatprep.mubr.msk.bf16.mxu1 %vm15890_vm4, %v19748_v35  ;;  %v11407_v29 = vrot.slane %v11400_v62, %v16129_v23  ;;  %v11414_v59 = vrot.slane %v11399_v57, %v16129_v23 }
 0x625   : > { %15203 = vmatpush3.bf16.msra.mxu0 %v15700_v17  ;;  %15234 = vmatprep.subr.bf16.mxu1 %v19748_v35 }
 0x626   : > { %15220 = vmatprep.subr.bf16.mxu0 %v19748_v35  ;;  %v11415_v42 = vcombine.low %v11407_v29, %v11414_v59 }
 0x628   : > { %15205 = vmatmul.mubr.msk.bf16.vlgmr.msra.gmra.mrb[120].mxu0 %vm9651_vm5, %v10900_v63  ;;  %15235 = vmatpush3.bf16.msra.mxu1 %v15703_v53 }
 0x629   : > { %15221 = vmatpush3.bf16.msra.mxu0 %v15702_v56  ;;  %15236 = vmatprep.subr.bf16.mxu1 %v19748_v35 }
 0x62a   : > { %15222 = vmatprep.subr.bf16.mxu0 %v19748_v35  ;;  %15228 = vmatprep.mubr.msk.bf16.mxu0 %vm15890_vm4, %v19748_v35 }
 0x62c   : > { %15237 = vmatpush3.bf16.msra.mxu1 %v15705_v58  ;;  %v15721_v58 = vld [vmem:[%s19596_s11 + $0x20] sm:$0xff]  }
 0x62d   : > { %15223 = vmatpush3.bf16.msra.mxu0 %v15704_v31  ;;  %15238 = vmatprep.subr.bf16.mxu1 %v19748_v35  ;;  %v15718_v31 = vld [vmem:[%s19596_s11 + $0x8] sm:$0xff]  }
 0x62e   : > { %15224 = vmatprep.subr.bf16.mxu0 %v19748_v35 }
 0x630   : > { %15239 = vmatpush3.bf16.msra.mxu1 %v15707_v55 }
 0x631   : > { %15225 = vmatpush3.bf16.msra.mxu0 %v15706_v25  ;;  %15256 = vmatprep.subr.bf16.mxu1 %v19748_v35 }
 0x632   : > { %15226 = vmatprep.subr.bf16.mxu0 %v19748_v35 }
 0x633   : > { %15241 = vmatmul.mubr.msk.bf16.vlgmr.msra.gmra.mrb[68].mxu1 %vm9651_vm5, %v11292_v54 }
 0x634   : > { %15257 = vmatpush3.bf16.msra.mxu1 %v15709_v1  ;;  %15264 = vmatprep.mubr.msk.bf16.mxu1 %vm15890_vm4, %v19748_v35 }
 0x635   : > { %15227 = vmatpush3.bf16.msra.mxu0 %v15708_v12  ;;  %15258 = vmatprep.subr.bf16.mxu1 %v19748_v35 }
 0x636   : > { %15244 = vmatprep.subr.bf16.mxu0 %v19748_v35 }
 0x638   : > { %15229 = vmatmul.mubr.msk.bf16.vlgmr.msra.gmra.mrb[124].mxu0 %vm9651_vm5, %v11170_v20  ;;  %15259 = vmatpush3.bf16.msra.mxu1 %v15711_v34 }
 0x639   : > { %15245 = vmatpush3.bf16.msra.mxu0 %v15710_v7  ;;  %15260 = vmatprep.subr.bf16.mxu1 %v19748_v35  ;;  %v15727_v7 = vld [vmem:[%s19596_s11 + $0x38] sm:$0xff]  }
 0x63a   : > { %15246 = vmatprep.subr.bf16.mxu0 %v19748_v35  ;;  %15252 = vmatprep.mubr.msk.bf16.mxu0 %vm15890_vm4, %v19748_v35 }
 0x63c   : > { %15261 = vmatpush3.bf16.msra.mxu1 %v15713_v60 }
 0x63d   : > { %15247 = vmatpush3.bf16.msra.mxu0 %v15712_v37  ;;  %15262 = vmatprep.subr.bf16.mxu1 %v19748_v35 }
 0x63e   : > { %15248 = vmatprep.subr.bf16.mxu0 %v19748_v35 }
 0x640   : > { %15263 = vmatpush3.bf16.msra.mxu1 %v15715_v47 }
 0x641   : > { %15249 = vmatpush3.bf16.msra.mxu0 %v15714_v9  ;;  %15280 = vmatprep.subr.bf16.mxu1 %v19748_v35 }
 0x642   : > { %15250 = vmatprep.subr.bf16.mxu0 %v19748_v35 }
 0x643   : > { %15265 = vmatmul.mubr.msk.bf16.vlgmr.msra.gmra.mrb[72].mxu1 %vm9651_vm5, %v11538_v10 }
 0x644   : > { %15288 = vmatprep.mubr.msk.bf16.mxu1 %vm15890_vm4, %v19748_v35  ;;  %15281 = vmatpush3.bf16.msra.mxu1 %v15717_v21 }
 0x645   : > { %15251 = vmatpush3.bf16.msra.mxu0 %v15716_v51  ;;  %15282 = vmatprep.subr.bf16.mxu1 %v19748_v35 }
 0x646   : > { %15268 = vmatprep.subr.bf16.mxu0 %v19748_v35 }
 0x648   : > { %15253 = vmatmul.mubr.msk.bf16.vlgmr.msra.gmra.mrb[128].mxu0 %vm9651_vm5, %v11415_v42  ;;  %15283 = vmatpush3.bf16.msra.mxu1 %v15718_v31 }
 0x649   : > { %15276 = vmatprep.mubr.msk.bf16.mxu0 %vm15890_vm4, %v19748_v35  ;;  %15269 = vmatpush3.bf16.msra.mxu0 %v15721_v58 }
 0x64a   : > { %15270 = vmatprep.subr.bf16.mxu0 %v19748_v35  ;;  %15284 = vmatprep.subr.bf16.mxu1 %v19748_v35 }
 0x64c   : > { %15285 = vmatpush3.bf16.msra.mxu1 %v15719_v33 }
 0x64d   : > { %15286 = vmatprep.subr.bf16.mxu1 %v19748_v35  ;;  %15271 = vmatpush3.bf16.msra.mxu0 %v15723_v8 }
 0x64e   : > { %15272 = vmatprep.subr.bf16.mxu0 %v19748_v35 }
 0x650   : > { %15287 = vmatpush3.bf16.msra.mxu1 %v15720_v44 }
 0x651   : > { %15304 = vmatprep.subr.bf16.mxu1 %v19748_v35  ;;  %15273 = vmatpush3.bf16.msra.mxu0 %v15725_v27 }
 0x652   : > { %15274 = vmatprep.subr.bf16.mxu0 %v19748_v35 }
 0x655   : > { %15275 = vmatpush3.bf16.msra.mxu0 %v15727_v7 }
 0x656   : > { %15292 = vmatprep.subr.bf16.mxu0 %v19748_v35 }
 0x6a6   : > { %v9801_v17 = vpop.f32.mrb[44].mxu1 }
 0x6a7   : > { %v15098_v0 = vpop.f32.mrb[45].mxu1 }
 0x6a8   : > { %v9804_v5 = vpop.f32.mrb[46].mxu1 }
 0x6a9   : > { %v15099_v43 = vpop.f32.mrb[47].mxu1 }
 0x6aa   : > { %v9689_v24 = vpop.f32.mrb[100].mxu0 }
 0x6ab   : > { %v9802_v53 = vadd.f32 %v9801_v17, %v9689_v24  ;;  %v15086_v56 = vpop.f32.mrb[101].mxu0 }
 0x6ac   : > { %v9692_v45 = vpop.f32.mrb[102].mxu0 }
 0x6ad   : > { %v9805_v48 = vadd.f32 %v9804_v5, %v9692_v45  ;;  %v15087_v63 = vpop.f32.mrb[103].mxu0 }
 0x6b6   : > { %v10054_v38 = vpop.f32.mrb[48].mxu1 }
 0x6b7   : > { %v15122_v4 = vpop.f32.mrb[49].mxu1 }
 0x6b8   : > { %v10057_v15 = vpop.f32.mrb[50].mxu1 }
 0x6b9   : > { %v15123_v32 = vpop.f32.mrb[51].mxu1 }
 0x6bb   : > { %v9928_v14 = vpop.f32.mrb[104].mxu0 }
 0x6bc   : > { %v9935_v6 = vadd.f32 %v9928_v14, %v9802_v53  ;;  %v15110_v55 = vpop.f32.mrb[105].mxu0 }
 0x6bd   : > { %v9931_v39 = vpop.f32.mrb[106].mxu0 }
 0x6be   : > { %v9936_v28 = vadd.f32 %v9931_v39, %v9805_v48  ;;  %v15111_v25 = vpop.f32.mrb[107].mxu0  ;;  %v10061_v49 = vadd.f32 %v10054_v38, %v9935_v6 }
 0x6c0   : > { %v10062_v13 = vadd.f32 %v10057_v15, %v9936_v28 }
 0x6c6   : > { %v10324_v1 = vpop.f32.mrb[52].mxu1 }
 0x6c7   : > { %v15146_v54 = vpop.f32.mrb[53].mxu1 }
 0x6c8   : > { %v10327_v12 = vpop.f32.mrb[54].mxu1 }
 0x6c9   : > { %v15147_v46 = vpop.f32.mrb[55].mxu1 }
 0x6cb   : > { %v10202_v40 = vpop.f32.mrb[108].mxu0 }
 0x6cc   : > { %v10209_v19 = vadd.f32 %v10202_v40, %v10061_v49  ;;  %v15134_v34 = vpop.f32.mrb[109].mxu0 }
 0x6cd   : > { %v10205_v11 = vpop.f32.mrb[110].mxu0 }
 0x6ce   : > { %v10210_v41 = vadd.f32 %v10205_v11, %v10062_v13  ;;  %v15135_v50 = vpop.f32.mrb[111].mxu0  ;;  %v10331_v20 = vadd.f32 %v10324_v1, %v10209_v19  ;;  %v14212_v11 = vld [vmem:[%s19595_s10] ss:$0 sm:$0xff] }
 0x6d0   : > { %v10332_v36 = vadd.f32 %v10327_v12, %v10210_v41 }
 0x6d6   : > { %v10570_v60 = vpop.f32.mrb[56].mxu1 }
 0x6d7   : > { %v15170_v37 = vpop.f32.mrb[57].mxu1 }
 0x6d8   : > { %v10573_v61 = vpop.f32.mrb[58].mxu1 }
 0x6d9   : > { %v15171_v52 = vpop.f32.mrb[59].mxu1 }
 0x6db   : > { %v10447_v22 = vpop.f32.mrb[112].mxu0 }
 0x6dc   : > { %v10454_v16 = vadd.f32 %v10447_v22, %v10331_v20  ;;  %v15158_v30 = vpop.f32.mrb[113].mxu0 }
 0x6dd   : > { %v10450_v47 = vpop.f32.mrb[114].mxu0 }
 0x6de   : > { %v10455_v9 = vadd.f32 %v10450_v47, %v10332_v36  ;;  %v15159_v26 = vpop.f32.mrb[115].mxu0  ;;  %v10577_v2 = vadd.f32 %v10570_v60, %v10454_v16 }
 0x6e0   : > { %v10578_v57 = vadd.f32 %v10573_v61, %v10455_v9  ;;  %v18913_v9 = vld [vmem:[#allocation6] sm:$0x7f] }
 0x6e6   : > { %v10839_v62 = vpop.f32.mrb[60].mxu1 }
 0x6e7   : > { %v15194_v10 = vpop.f32.mrb[61].mxu1 }
 0x6e8   : > { %v10842_v51 = vpop.f32.mrb[62].mxu1 }
 0x6e9   : > { %v15195_v29 = vpop.f32.mrb[63].mxu1 }
 0x6ea   : > { %v11785_v29 = vpack.c.bf16 %v18913_v9, %v18913_v9 }
 0x6eb   : > { %v10717_v59 = vpop.f32.mrb[116].mxu0 }
 0x6ec   : > { %v10724_v42 = vadd.f32 %v10717_v59, %v10577_v2  ;;  %v15182_v17 = vpop.f32.mrb[117].mxu0 }
 0x6ed   : > { %v10720_v0 = vpop.f32.mrb[118].mxu0 }
 0x6ee   : > { %v10725_v5 = vadd.f32 %v10720_v0, %v10578_v57  ;;  %v15183_v43 = vpop.f32.mrb[119].mxu0  ;;  %v10846_v24 = vadd.f32 %v10839_v62, %v10724_v42 }
 0x6f0   : > { %v10847_v53 = vadd.f32 %v10842_v51, %v10725_v5  ;;  %v18918_v51 = vld [vmem:[#allocation6 + $0x8] sm:$0x7f] }
 0x6f1   : > { %v11786_v5 = vpack.c.bf16 %v18918_v51, %v18918_v51 }
 0x6f6   : > { %v11085_v56 = vpop.f32.mrb[64].mxu1 }
 0x6f7   : > { %v15218_v45 = vpop.f32.mrb[65].mxu1 }
 0x6f8   : > { %v11088_v48 = vpop.f32.mrb[66].mxu1  ;;  %v18929_v45 = vrot.slane %v11785_v29, %v18293_v18 }
 0x6f9   : > { %v15219_v63 = vpop.f32.mrb[67].mxu1 }
 0x6fb   : > { %v10962_v21 = vpop.f32.mrb[120].mxu0 }
 0x6fc   : > { %v10969_v38 = vadd.f32 %v10962_v21, %v10846_v24  ;;  %v15206_v58 = vpop.f32.mrb[121].mxu0 }
 0x6fd   : > { %v10965_v4 = vpop.f32.mrb[122].mxu0 }
 0x6fe   : > { %v10970_v31 = vadd.f32 %v10965_v4, %v10847_v53  ;;  %v15207_v15 = vpop.f32.mrb[123].mxu0  ;;  %v11092_v32 = vadd.f32 %v11085_v56, %v10969_v38  ;;  %v18935_v4 = vrot.slane %v11786_v5, %v18293_v18 }
 0x700   : > { %v11093_v14 = vadd.f32 %v11088_v48, %v10970_v31 }
 0x706   : > { %v11354_v33 = vpop.f32.mrb[68].mxu1 }
 0x707   : > { %v15242_v6 = vpop.f32.mrb[69].mxu1 }
 0x708   : > { %v11357_v55 = vpop.f32.mrb[70].mxu1  ;;  %v11844_v6 = vshrl.u32 %v18929_v45, 16 }
 0x709   : > { %v15243_v39 = vpop.f32.mrb[71].mxu1 }
 0x70b   : > { %v11232_v28 = vpop.f32.mrb[124].mxu0 }
 0x70c   : > { %v11239_v25 = vadd.f32 %v11232_v28, %v11092_v32  ;;  %v15230_v49 = vpop.f32.mrb[125].mxu0 }
 0x70d   : > { %v11235_v44 = vpop.f32.mrb[126].mxu0  ;;  %v18949_v49 = vcombine.high %v18935_v4, %v18935_v4 }
 0x70e   : > { %v11240_v13 = vadd.f32 %v11235_v44, %v11093_v14  ;;  %v15231_v8 = vpop.f32.mrb[127].mxu0  ;;  %v11361_v1 = vadd.f32 %v11354_v33, %v11239_v25  ;;  %v18942_v33 = vcombine.high %v18929_v45, %v18929_v45  ;;  %v11847_v25 = vshll.u32 %v18929_v45, 16 }
 0x70f   : > { %v11858_v8 = vshrl.u32 %v18935_v4, 16 }
 0x710   : > { %v11362_v54 = vadd.f32 %v11357_v55, %v11240_v13 }
 0x716   : > { %v11600_v12 = vpop.f32.mrb[72].mxu1 }
 0x717   : > { %v15266_v27 = vpop.f32.mrb[73].mxu1 }
 0x718   : > { %v11603_v46 = vpop.f32.mrb[74].mxu1  ;;  %v11849_v27 = vrot.slane %v11847_v25, 7 }
 0x719   : > { %v15267_v40 = vpop.f32.mrb[75].mxu1 }
 0x71a   : > { %v14227_v40 = vpack.c.bf16 %v18918_v51, %v18913_v9 }
 0x71b   : > { %v11477_v19 = vpop.f32.mrb[128].mxu0 }
 0x71c   : > { %v11484_v34 = vadd.f32 %v11477_v19, %v11361_v1  ;;  %v15254_v7 = vpop.f32.mrb[129].mxu0  ;;  %v11861_v1 = vshll.u32 %v18935_v4, 16  ;;  %v11853_v19 = vshll.u32 %v18942_v33, 16 }
 0x71d   : > { %v11480_v41 = vpop.f32.mrb[130].mxu0 }
 0x71e   : > { %v11607_v50 = vadd.f32 %v11600_v12, %v11484_v34  ;;  %v11485_v20 = vadd.f32 %v11480_v41, %v11362_v54  ;;  %v15255_v36 = vpop.f32.mrb[131].mxu0  ;;  %v12202_v54 = vshrl.u32 %v18942_v33, 16  ;;  %v11846_v12 = vrot.slane %v11844_v6, 6 }
 0x71f   : > { %v11863_v34 = vrot.slane %v11861_v1, 7 }
 0x720   : > { %v11616_v60 = vadd.f32 %v14212_v11, %v11607_v50  ;;  %v11608_v37 = vadd.f32 %v11603_v46, %v11485_v20  ;;  %v12209_v46 = vshrl.u32 %v18949_v49, 16  ;;  %v12204_v7 = vrot.slane %v12202_v54, 7 }
 0x721   : > { %v11867_v20 = vshll.u32 %v18949_v49, 16 }
 0x722   : > { %vm11618_vm8 = vcmp.ge.f32.partialorder %v11616_v60, 0.0  ;;  %v11620_v61 = vmul.f32 0.2, %v11616_v60  ;;  %v11617_v52 = vadd.f32 %v14212_v11, %v11608_v37  ;;  %v11850_v11 = vor.u32 %v11849_v27, %v11846_v12 }
 0x723   : > { %v12211_v36 = vrot.slane %v12209_v46, 7  ;;  %v12001_v37 = vrot.slane %v14227_v40, %v18293_v18 }
 0x724   : > { %v11622_v22 = vsel %vm11618_vm8, %v11616_v60, %v11620_v61  ;;  %vm11619_vm9 = vcmp.ge.f32.partialorder %v11617_v52, 0.0  ;;  %v11621_v16 = vmul.f32 0.2, %v11617_v52  ;;  %vm12079_vm8 = vcmask 1042434  }
 0x725   : > { %v11639_v30 = vcombine.high %v11622_v22, %v11622_v22  ;;  %v11646_v47 = vrot.slane %v11622_v22, %v16129_v23  ;;  %v12212_v29 = vor.u32 %v12211_v36, %v11867_v20 }
 0x726   : > { %v11623_v26 = vsel %vm11619_vm9, %v11617_v52, %v11621_v16  ;;  %v11855_v52 = vrot.slane %v11853_v19, 7  ;;  %vm12080_vm9 = vmor %vm12078_vm10, %vm12079_vm8 }
 0x727   : > { %v11653_v2 = vrot.slane %v11639_v30, %v16129_v23  ;;  %v11654_v57 = vcombine.high %v11646_v47, %v11646_v47  ;;  %v11662_v62 = vrot.slane %v11646_v47, %v16129_v23  ;;  %v11694_v10 = vrot.slane %v11623_v26, %v16129_v23 }
 0x728   : > { %v14251_v30 = vrot.slane %v11844_v6, 9  ;;  %v12205_v47 = vor.u32 %v12204_v7, %v11853_v19 }
 0x729   : > { %v11655_v59 = vcombine.high %v11653_v2, %v11653_v2  ;;  %v11676_v42 = vrot.slane %v11654_v57, %v16129_v23  ;;  %v11684_v17 = vcombine.high %v11662_v62, %v11662_v62  ;;  %v11701_v0 = vrot.slane %v11694_v10, %v16129_v23 }
 0x72a   : > { %v11669_v43 = vrot.slane %v11653_v2, %v16129_v23  ;;  %v14252_v10 = vrot.slane %v11858_v8, 9 }
 0x72b   : > { %v11683_v24 = vrot.slane %v11655_v59, %v16129_v23  ;;  %v11686_v53 = vcombine.high %v11676_v42, %v11676_v42  ;;  %v11702_v56 = vcombine.low %v11662_v62, %v11676_v42  ;;  %v11716_v63 = vrot.slane %v11684_v17, %v16129_v23 }
 0x72c   : > { %v11762_v58 = vrot.slane %v11701_v0, %v16129_v23  ;;  %v11851_v62 = vrot.slane %v11850_v11, 2 }
 0x72d   : > { %v11709_v48 = vrot.slane %v11702_v56, %v16129_v23  ;;  %v11725_v21 = vcombine.low %v11686_v53, %v11669_v43  ;;  %v14213_v38 = vcombine.high %v11669_v43, %v11683_v24  ;;  %v11739_v32 = vrot.slane %v11683_v24, %v16129_v23  ;;  %v15722_v24 = vld [vmem:[%s19596_s11 + $0x60] sm:$0xff]   ;;  %v15767_v53 = vld [vmem:[%s19596_s11 + $0x158] sm:$0xff]  }
 0x72e   : > { %v15775_v43 = vld [vmem:[%s19596_s11 + $0x198] sm:$0xff]  }
 0x72f   : > { %v11717_v31 = vcombine.low %v11709_v48, %v11716_v63  ;;  %v11732_v15 = vrot.slane %v11725_v21, %v16129_v23  ;;  %v11755_v14 = vrot.slane %v14213_v38, %v16129_v23  ;;  %v11869_v48 = vrot.slane %v11867_v20, 7 }
 0x730   : > { %v12206_v21 = vsel %vm19007_vm6, %v14251_v30, %v12205_v47 }
 0x731   : > { %v11724_v55 = vrot.slane %v11717_v31, %v16129_v23  ;;  %v11740_v39 = vcombine.low %v11732_v15, %v11739_v32  ;;  %v11763_v28 = vcombine.low %v11755_v14, %v11762_v58  ;;  %v11856_v31 = vsel %vm19015_vm7, %v11851_v62, %v11855_v52 }
 0x733   : > { %v11747_v44 = vrot.slane %v11740_v39, %v16129_v23  ;;  %11775 = vst.msk [vmem:[#allocation6 + $0x12] sm:$0x7] %vm11774_vm11, %v11724_v55  ;;  %v11770_v13 = vrot.slane %v11763_v28, %v16129_v23  ;;  %v11860_v23 = vrot.slane %v11858_v8, 6  ;;  %v19033_v55 = vsel %vm19007_vm6, %v14252_v10, %v12212_v29 }
 0x734   : > { %v12237_v19 = vcombine.low %v12206_v21, %v19033_v55 }
 0x735   : > { %11776 = vst.msk [vmem:[#allocation6 + $0x1a] sm:$0x7] %vm11774_vm11, %v11747_v44  ;;  %11777 = vst.msk [vmem:[#allocation6 + $0x22] sm:$0x7] %vm11774_vm11, %v11770_v13  ;;  %v11864_v22 = vor.u32 %v11863_v34, %v11860_v23  ;;  %v15724_v13 = vld [vmem:[%s19596_s11 + $0x68] sm:$0xff]   ;;  %vm12081_vm11 = vcmask 1044484  }
 0x736   : > { %v12245_v21 = vrot.slane %v12237_v19, %v18293_v18  ;;  %vm19108_vm14 = vmor %vm12080_vm9, %vm12081_vm11  ;;  %v15733_v19 = vld [vmem:[%s19596_s11 + $0x50] sm:$0xff]  }
 0x737   : > { %v11865_v56 = vrot.slane %v11864_v22, 2  ;;  %vm19133_vm1 = vmor %vm19108_vm14, %vm12083_vm12 }
 0x739   : > { %v19051_v27 = vsel %vm19015_vm7, %v11865_v56, %v11869_v48  ;;  %v15728_v56 = vld [vmem:[%s19596_s11 + $0x78] sm:$0xff]  }
 0x73a   : > { %v18962_v41 = vld [vmem:[#allocation6 + $0x10] sm:$0x7f]  ;;  %v11908_v7 = vcombine.low %v11856_v31, %v19051_v27  ;;  %v15729_v31 = vld [vmem:[%s19596_s11 + $0x40] sm:$0xff]  }
 0x73b   : > { %v11787_v60 = vpack.c.bf16 %v18962_v41, %v18962_v41 }
 0x73c   : > { %v18972_v61 = vld [vmem:[#allocation6 + $0x18] sm:$0x7f]  ;;  %v18979_v9 = vld [vmem:[#allocation6 + $0x20] sm:$0x7f] }
 0x73d   : > { %v11788_v26 = vpack.c.bf16 %v18972_v61, %v18972_v61  ;;  %v18984_v2 = vrot.slane %v11787_v60, %v18293_v18  ;;  %v14228_v57 = vpack.c.bf16 %v18972_v61, %v18962_v41  ;;  %v11789_v59 = vpack.c.bf16 %v18979_v9, %v18979_v9  ;;  %v15726_v60 = vld [vmem:[%s19596_s11 + $0x70] sm:$0xff]  }
 0x73f   : > { %v18994_v42 = vrot.slane %v11788_v26, %v18293_v18  ;;  %v18997_v17 = vrot.slane %v14228_v57, %v18293_v18  ;;  %v19001_v0 = vcombine.high %v18984_v2, %v18984_v2  ;;  %v11872_v5 = vshrl.u32 %v18984_v2, 16 }
 0x740   : > { %v11875_v63 = vshll.u32 %v18984_v2, 16  ;;  %v19040_v44 = vrot.slane %v11789_v59, %v18293_v18 }
 0x741   : > { %v12009_v38 = vcombine.low %v12001_v37, %v18997_v17  ;;  %v19025_v58 = vcombine.high %v18994_v42, %v18994_v42  ;;  %v11874_v15 = vrot.slane %v11872_v5, 6  ;;  %v11886_v14 = vshrl.u32 %v18994_v42, 16 }
 0x742   : > { %v11877_v32 = vrot.slane %v11875_v63, 7  ;;  %v11889_v6 = vshll.u32 %v18994_v42, 16  ;;  %v11881_v39 = vshll.u32 %v19001_v0, 16  ;;  %v12216_v28 = vshrl.u32 %v19001_v0, 16 }
 0x743   : > { %15289 = vmatmul.mubr.msk.bf16.vlgmr.msra.gmra.mrb[76].mxu1 %vm9651_vm5, %v12009_v38  ;;  %v12223_v25 = vshrl.u32 %v19025_v58, 16  ;;  %v11888_v1 = vrot.slane %v11886_v14, 6  ;;  %v11895_v12 = vshll.u32 %v19025_v58, 16  ;;  %v14253_v11 = vrot.slane %v11872_v5, 9 }
 0x744   : > { %15305 = vmatpush3.bf16.msra.mxu1 %v15722_v24  ;;  %v11878_v8 = vor.u32 %v11877_v32, %v11874_v15  ;;  %v11891_v54 = vrot.slane %v11889_v6, 7  ;;  %15312 = vmatprep.mubr.msk.bf16.mxu1 %vm15890_vm4, %v19748_v35  ;;  %v12218_v46 = vrot.slane %v12216_v28, 7  ;;  %v14254_v20 = vrot.slane %v11886_v14, 9  ;;  %v15730_v14 = vld [vmem:[%s19596_s11 + $0xa0] sm:$0xff]   ;;  %v15741_v6 = vld [vmem:[%s19596_s11 + $0x90] sm:$0xff]  }
 0x745   : > { %15306 = vmatprep.subr.bf16.mxu1 %v19748_v35  ;;  %v12225_v40 = vrot.slane %v12223_v25, 7  ;;  %v11883_v37 = vrot.slane %v11881_v39, 7  ;;  %v11897_v22 = vrot.slane %v11895_v12, 7  ;;  %v12430_v16 = vshrl.u32 %v19040_v44, 16 }
 0x746   : > { %v11879_v23 = vrot.slane %v11878_v8, 2  ;;  %v11892_v34 = vor.u32 %v11891_v54, %v11888_v1  ;;  %v12219_v50 = vor.u32 %v12218_v46, %v11881_v39  ;;  %v12433_v26 = vshll.u32 %v19040_v44, 16  ;;  %v15731_v54 = vld [vmem:[%s19596_s11 + $0x48] sm:$0xff]  }
 0x747   : > { %v12226_v36 = vor.u32 %v12225_v40, %v11895_v12  ;;  %v12432_v29 = vrot.slane %v12430_v16, 6  ;;  %v11916_v5 = vrot.slane %v11908_v7, %v18293_v18  ;;  %v19089_v48 = vcombine.high %v19040_v44, %v19040_v44 }
 0x748   : > { %15307 = vmatpush3.bf16.msra.mxu1 %v15724_v13  ;;  %v11893_v52 = vrot.slane %v11892_v34, 2  ;;  %v19062_v30 = vsel %vm19007_vm6, %v14253_v11, %v12219_v50  ;;  %v19071_v57 = vsel %vm19015_vm7, %v11879_v23, %v11883_v37  ;;  %v12435_v24 = vrot.slane %v12433_v26, 7  ;;  %v15734_v50 = vld [vmem:[%s19596_s11 + $0xb0] sm:$0xff]  }
 0x749   : > { %15308 = vmatprep.subr.bf16.mxu1 %v19748_v35  ;;  %v19066_v47 = vsel %vm19007_vm6, %v14254_v20, %v12226_v36  ;;  %v14234_v39 = vrot.slane %v18929_v45, 9  ;;  %v12087_v28 = vrot.slane %v18942_v33, 7  ;;  %v12099_v25 = vrot.slane %v19025_v58, 7  ;;  %v15735_v36 = vld [vmem:[%s19596_s11 + $0x58] sm:$0xff]   ;;  %v19186_v26 = vld [vmem:[#allocation6 + $0x28] sm:$0x7f] }
 0x74a   : > { %v19075_v62 = vsel %vm19015_vm7, %v11893_v52, %v11897_v22  ;;  %v12238_v10 = vcombine.low %v19062_v30, %v19066_v47  ;;  %v12436_v15 = vor.u32 %v12435_v24, %v12432_v29  ;;  %v12439_v13 = vshll.u32 %v19089_v48, 16  ;;  %v15737_v29 = vld [vmem:[%s19596_s11 + $0x80] sm:$0xff]  }
 0x74b   : > { %v11909_v59 = vcombine.low %v19071_v57, %v19075_v62  ;;  %v14235_v1 = vrot.slane %v18935_v4, 9  ;;  %v12091_v45 = vrot.slane %v18949_v49, 7  ;;  %v12095_v33 = vrot.slane %v19001_v0, 7  ;;  %v15732_v49 = vld [vmem:[%s19596_s11 + $0xa8] sm:$0xff]   ;;  %v15738_v24 = vld [vmem:[%s19596_s11 + $0xe0] sm:$0xff]  }
 0x74c   : > { %15309 = vmatpush3.bf16.msra.mxu1 %v15726_v60  ;;  %v19097_v38 = vrot.slane %v12238_v10, %v18293_v18  ;;  %v14237_v58 = vrot.slane %v18994_v42, 9  ;;  %v12437_v12 = vrot.slane %v12436_v15, 2  ;;  %v12088_v42 = vsel %vm19133_vm1, %v14234_v39, %v12087_v28 }
 0x74d   : > { %15310 = vmatprep.subr.bf16.mxu1 %v19748_v35  ;;  %v19093_v63 = vrot.slane %v11909_v59, %v18293_v18  ;;  %v14236_v0 = vrot.slane %v18984_v2, 9  ;;  %v12441_v40 = vrot.slane %v12439_v13, 7  ;;  %v19155_v23 = vsel %vm19133_vm1, %v14235_v1, %v12091_v45 }
 0x74e   : > { %v12253_v8 = vcombine.low %v12245_v21, %v19097_v38  ;;  %v19145_v46 = vsel %vm19133_vm1, %v14237_v58, %v12099_v25  ;;  %v12110_v7 = vcombine.low %v12088_v42, %v19155_v23  ;;  %v12641_v60 = vshrl.u32 %v19089_v48, 16  ;;  %v15739_v21 = vld [vmem:[%s19596_s11 + $0x88] sm:$0xff]  }
 0x74f   : > { %v11924_v32 = vcombine.low %v11916_v5, %v19093_v63  ;;  %v19159_v2 = vsel %vm19133_vm1, %v14236_v0, %v12095_v33  ;;  %v19163_v34 = vsel %vm19015_vm7, %v12437_v12, %v12441_v40  ;;  %v12452_v22 = vcombine.low %v19051_v27, %v19071_v57  ;;  %v15746_v40 = vld [vmem:[%s19596_s11 + $0x120] sm:$0xff]  }
 0x750   : > { %15311 = vmatpush3.bf16.msra.mxu1 %v15728_v56  ;;  %v12111_v11 = vcombine.low %v19159_v2, %v19145_v46  ;;  %v12453_v20 = vcombine.low %v19075_v62, %v19163_v34  ;;  %v12118_v37 = vrot.slane %v12110_v7, %v18293_v18  ;;  %v15736_v62 = vld [vmem:[%s19596_s11 + $0xb8] sm:$0xff]   ;;  %v12643_v59 = vrot.slane %v12641_v60, 7 }
 0x751   : > { %15277 = vmatmul.mubr.msk.bf16.vlgmr.msra.gmra.mrb[132].mxu0 %vm9651_vm5, %v11924_v32  ;;  %15328 = vmatprep.subr.bf16.mxu1 %v19748_v35  ;;  %v11790_v27 = vpack.c.bf16 %v19186_v26, %v19186_v26  ;;  %v12460_v5 = vrot.slane %v12452_v22, %v18293_v18  ;;  %v15740_v32 = vld [vmem:[%s19596_s11 + $0xe8] sm:$0xff]  }
 0x752   : > { %15293 = vmatpush3.bf16.msra.mxu0 %v15729_v31  ;;  %15300 = vmatprep.mubr.msk.bf16.mxu0 %vm15890_vm4, %v19748_v35  ;;  %v19182_v52 = vrot.slane %v12111_v11, %v18293_v18  ;;  %v19193_v10 = vrot.slane %v12453_v20, %v18293_v18  ;;  %v12644_v31 = vor.u32 %v12643_v59, %v12439_v13  ;;  %v15742_v13 = vld [vmem:[%s19596_s11 + $0xf0] sm:$0xff]   ;;  %v15747_v11 = vld [vmem:[%s19596_s11 + $0xc8] sm:$0xff]  }
 0x753   : > { %15313 = vmatmul.mubr.msk.bf16.vlgmr.msra.gmra.mrb[80].mxu1 %vm9651_vm5, %v12253_v8  ;;  %15294 = vmatprep.subr.bf16.mxu0 %v19748_v35  ;;  %v19215_v15 = vrot.slane %v11790_v27, %v18293_v18  ;;  %v14276_v8 = vpack.c.bf16 %v18962_v41, %v18918_v51  ;;  %v12655_v51 = vcombine.low %v19033_v55, %v19062_v30  ;;  %v15744_v41 = vld [vmem:[%s19596_s11 + $0xf8] sm:$0xff]   ;;  %v15745_v55 = vld [vmem:[%s19596_s11 + $0xc0] sm:$0xff]  }
 0x754   : > { %15329 = vmatpush3.bf16.msra.mxu1 %v15730_v14  ;;  %15336 = vmatprep.mubr.msk.bf16.mxu1 %vm15890_vm4, %v19748_v35  ;;  %v12126_v57 = vcombine.low %v12118_v37, %v19182_v52  ;;  %v12468_v56 = vcombine.low %v12460_v5, %v19193_v10  ;;  %v14310_v14 = vrot.slane %v12430_v16, 9  ;;  %v14277_v16 = vpack.c.bf16 %v18979_v9, %v18972_v61  ;;  %v15751_v27 = vld [vmem:[%s19596_s11 + $0xd8] sm:$0xff]  }
 0x755   : > { %15330 = vmatprep.subr.bf16.mxu1 %v19748_v35  ;;  %v12840_v28 = vshrl.u32 %v19215_v15, 16  ;;  %v12843_v25 = vshll.u32 %v19215_v15, 16  ;;  %v12342_v58 = vrot.slane %v14276_v8, %v18293_v18  ;;  %v12663_v0 = vrot.slane %v12655_v51, %v18293_v18  ;;  %v19328_v5 = vld [vmem:[#allocation6 + $0x30] sm:$0x7f] }
 0x756   : > { %15295 = vmatpush3.bf16.msra.mxu0 %v15731_v54  ;;  %v19232_v39 = vsel %vm19007_vm6, %v14310_v14, %v12644_v31  ;;  %v15743_v54 = vld [vmem:[%s19596_s11 + $0x98] sm:$0xff]   ;;  %v19254_v33 = vrot.slane %v14277_v16, %v18293_v18 }
 0x757   : > { %15296 = vmatprep.subr.bf16.mxu0 %v19748_v35  ;;  %v12656_v1 = vcombine.low %v19066_v47, %v19232_v39  ;;  %v12842_v61 = vrot.slane %v12840_v28, 6  ;;  %v12845_v45 = vrot.slane %v12843_v25, 7  ;;  %v19263_v47 = vcombine.high %v19215_v15, %v19215_v15 }
 0x758   : > { %15331 = vmatpush3.bf16.msra.mxu1 %v15732_v49  ;;  %v12350_v42 = vcombine.low %v12342_v58, %v19254_v33  ;;  %v14365_v25 = vrot.slane %v12840_v28, 9  ;;  %v15757_v28 = vld [vmem:[%s19596_s11 + $0x110] sm:$0xff]  }
 0x759   : > { %15332 = vmatprep.subr.bf16.mxu1 %v19748_v35  ;;  %v19268_v12 = vrot.slane %v12656_v1, %v18293_v18  ;;  %v12846_v30 = vor.u32 %v12845_v45, %v12842_v61  ;;  %v12849_v49 = vshll.u32 %v19263_v47, 16  ;;  %v14332_v61 = vpack.c.bf16 %v19186_v26, %v18979_v9  ;;  %v15758_v45 = vld [vmem:[%s19596_s11 + $0x170] sm:$0xff]  }
 0x75a   : > { %15297 = vmatpush3.bf16.msra.mxu0 %v15733_v19  ;;  %v12541_v19 = vrot.slane %v19089_v48, 7  ;;  %v15748_v48 = vld [vmem:[%s19596_s11 + $0x128] sm:$0xff]  }
 0x75b   : > { %15298 = vmatprep.subr.bf16.mxu0 %v19748_v35  ;;  %v12671_v7 = vcombine.low %v12663_v0, %v19268_v12  ;;  %v12847_v20 = vrot.slane %v12846_v30, 2  ;;  %v12759_v9 = vrot.slane %v14332_v61, %v18293_v18  ;;  %v15760_v30 = vld [vmem:[%s19596_s11 + $0x178] sm:$0xff]   ;;  %v15778_v61 = vld [vmem:[%s19596_s11 + $0x1c8] sm:$0xff]  }
 0x75c   : > { %15333 = vmatpush3.bf16.msra.mxu1 %v15734_v50  ;;  %v14296_v50 = vrot.slane %v19040_v44, 9  ;;  %v15749_v44 = vld [vmem:[%s19596_s11 + $0xd0] sm:$0xff]  }
 0x75d   : > { %15334 = vmatprep.subr.bf16.mxu1 %v19748_v35 }
 0x75e   : > { %15299 = vmatpush3.bf16.msra.mxu0 %v15735_v36  ;;  %v12851_v36 = vrot.slane %v12849_v49, 7  ;;  %v19297_v60 = vsel %vm19133_vm1, %v14296_v50, %v12541_v19  ;;  %v12760_v19 = vcombine.low %v18997_v17, %v12759_v9  ;;  %v12943_v50 = vrot.slane %v19263_v47, 7  ;;  %v15763_v17 = vld [vmem:[%s19596_s11 + $0x148] sm:$0xff]  }
 0x75f   : > { %15316 = vmatprep.subr.bf16.mxu0 %v19748_v35  ;;  %v12553_v22 = vcombine.low %v19145_v46, %v19297_v60  ;;  %v13035_v46 = vshrl.u32 %v19263_v47, 16  ;;  %v15765_v47 = vld [vmem:[%s19596_s11 + $0x150] sm:$0xff]  }
 0x760   : > { %15335 = vmatpush3.bf16.msra.mxu1 %v15736_v62  ;;  %v19307_v37 = vsel %vm19015_vm7, %v12847_v20, %v12851_v36  ;;  %v15750_v62 = vld [vmem:[%s19596_s11 + $0x130] sm:$0xff]  }
 0x761   : > { %15301 = vmatmul.mubr.msk.bf16.vlgmr.msra.gmra.mrb[136].mxu0 %vm9651_vm5, %v12126_v57  ;;  %15352 = vmatprep.subr.bf16.mxu1 %v19748_v35  ;;  %v12862_v59 = vcombine.low %v19163_v34, %v19307_v37  ;;  %v19326_v57 = vrot.slane %v12553_v22, %v18293_v18 }
 0x762   : > { %15317 = vmatpush3.bf16.msra.mxu0 %v15737_v29  ;;  %15324 = vmatprep.mubr.msk.bf16.mxu0 %vm15890_vm4, %v19748_v35  ;;  %v12552_v29 = vcombine.low %v19155_v23, %v19159_v2  ;;  %v15752_v23 = vld [vmem:[%s19596_s11 + $0x138] sm:$0xff]  }
 0x763   : > { %15337 = vmatmul.mubr.msk.bf16.vlgmr.msra.gmra.mrb[84].mxu1 %vm9651_vm5, %v12468_v56  ;;  %15318 = vmatprep.subr.bf16.mxu0 %v19748_v35  ;;  %v12869_v34 = vrot.slane %v12862_v59, %v18293_v18  ;;  %v13037_v56 = vrot.slane %v13035_v46, 7  ;;  %v15769_v46 = vld [vmem:[%s19596_s11 + $0x180] sm:$0xff]  }
 0x764   : > { %15353 = vmatpush3.bf16.msra.mxu1 %v15738_v24  ;;  %15360 = vmatprep.mubr.msk.bf16.mxu1 %vm15890_vm4, %v19748_v35  ;;  %v12560_v2 = vrot.slane %v12552_v29, %v18293_v18  ;;  %v15753_v24 = vld [vmem:[%s19596_s11 + $0x100] sm:$0xff]  }
 0x765   : > { %15354 = vmatprep.subr.bf16.mxu1 %v19748_v35  ;;  %v12870_v14 = vcombine.low %v19093_v63, %v12869_v34  ;;  %v13038_v16 = vor.u32 %v13037_v56, %v12849_v49  ;;  %v15756_v63 = vld [vmem:[%s19596_s11 + $0x168] sm:$0xff]   ;;  %v15770_v34 = vld [vmem:[%s19596_s11 + $0x1e0] sm:$0xff]  }
 0x766   : > { %15319 = vmatpush3.bf16.msra.mxu0 %v15739_v21  ;;  %v11791_v21 = vpack.c.bf16 %v19328_v5, %v19328_v5  ;;  %v12568_v31 = vcombine.low %v12560_v2, %v19326_v57  ;;  %v15771_v56 = vld [vmem:[%s19596_s11 + $0x188] sm:$0xff]  }
 0x767   : > { %15320 = vmatprep.subr.bf16.mxu0 %v19748_v35  ;;  %v19372_v8 = vsel %vm19007_vm6, %v14365_v25, %v13038_v16 }
 0x768   : > { %15355 = vmatpush3.bf16.msra.mxu1 %v15740_v32  ;;  %v15754_v32 = vld [vmem:[%s19596_s11 + $0x160] sm:$0xff]   ;;  %v13049_v51 = vcombine.low %v19232_v39, %v19372_v8 }
 0x769   : > { %15356 = vmatprep.subr.bf16.mxu1 %v19748_v35 }
 0x76a   : > { %15321 = vmatpush3.bf16.msra.mxu0 %v15741_v6  ;;  %v15755_v6 = vld [vmem:[%s19596_s11 + $0x108] sm:$0xff]   ;;  %v13056_v49 = vrot.slane %v13049_v51, %v18293_v18 }
 0x76b   : > { %15322 = vmatprep.subr.bf16.mxu0 %v19748_v35 }
 0x76c   : > { %15357 = vmatpush3.bf16.msra.mxu1 %v15742_v13  ;;  %v19357_v13 = vrot.slane %v11791_v21, %v18293_v18  ;;  %v13057_v20 = vcombine.low %v19097_v38, %v13056_v49  ;;  %v15764_v38 = vld [vmem:[%s19596_s11 + $0x1a8] sm:$0xff]  }
 0x76d   : > { %15358 = vmatprep.subr.bf16.mxu1 %v19748_v35 }
 0x76e   : > { %15323 = vmatpush3.bf16.msra.mxu0 %v15743_v54  ;;  %v13226_v1 = vshrl.u32 %v19357_v13, 16  ;;  %v13229_v54 = vshll.u32 %v19357_v13, 16  ;;  %v19397_v39 = vcombine.high %v19357_v13, %v19357_v13 }
 0x76f   : > { %15340 = vmatprep.subr.bf16.mxu0 %v19748_v35 }
 0x770   : > { %15359 = vmatpush3.bf16.msra.mxu1 %v15744_v41  ;;  %v15759_v41 = vld [vmem:[%s19596_s11 + $0x118] sm:$0xff]   ;;  %v13228_v58 = vrot.slane %v13226_v1, 6  ;;  %v13421_v59 = vshrl.u32 %v19397_v39, 16 }
 0x771   : > { %15325 = vmatmul.mubr.msk.bf16.vlgmr.msra.gmra.mrb[140].mxu0 %vm9651_vm5, %v12350_v42  ;;  %15376 = vmatprep.subr.bf16.mxu1 %v19748_v35  ;;  %v15761_v42 = vld [vmem:[%s19596_s11 + $0x140] sm:$0xff]  }
 0x772   : > { %15341 = vmatpush3.bf16.msra.mxu0 %v15745_v55  ;;  %15348 = vmatprep.mubr.msk.bf16.mxu0 %vm15890_vm4, %v19748_v35  ;;  %v13231_v55 = vrot.slane %v13229_v54, 7 }
 0x773   : > { %15361 = vmatmul.mubr.msk.bf16.vlgmr.msra.gmra.mrb[88].mxu1 %vm9651_vm5, %v12671_v7  ;;  %15342 = vmatprep.subr.bf16.mxu0 %v19748_v35  ;;  %v15762_v7 = vld [vmem:[%s19596_s11 + $0x1a0] sm:$0xff]  }
 0x774   : > { %15377 = vmatpush3.bf16.msra.mxu1 %v15746_v40  ;;  %15384 = vmatprep.mubr.msk.bf16.mxu1 %vm15890_vm4, %v19748_v35  ;;  %v13232_v0 = vor.u32 %v13231_v55, %v13228_v58  ;;  %v13235_v40 = vshll.u32 %v19397_v39, 16 }
 0x775   : > { %15378 = vmatprep.subr.bf16.mxu1 %v19748_v35 }
 0x776   : > { %15343 = vmatpush3.bf16.msra.mxu0 %v15747_v11  ;;  %v14351_v11 = vrot.slane %v19215_v15, 9  ;;  %v13233_v36 = vrot.slane %v13232_v0, 2 }
 0x777   : > { %15344 = vmatprep.subr.bf16.mxu0 %v19748_v35 }
 0x778   : > { %15379 = vmatpush3.bf16.msra.mxu1 %v15748_v48  ;;  %v13237_v48 = vrot.slane %v13235_v40, 7  ;;  %v19427_v15 = vsel %vm19133_vm1, %v14351_v11, %v12943_v50 }
 0x779   : > { %15380 = vmatprep.subr.bf16.mxu1 %v19748_v35  ;;  %v12954_v22 = vcombine.low %v19297_v60, %v19427_v15 }
 0x77a   : > { %15345 = vmatpush3.bf16.msra.mxu0 %v15749_v44  ;;  %v13238_v44 = vsel %vm19015_vm7, %v13233_v36, %v13237_v48 }
 0x77b   : > { %15346 = vmatprep.subr.bf16.mxu0 %v19748_v35  ;;  %v13248_v29 = vcombine.low %v19307_v37, %v13238_v44  ;;  %v12961_v60 = vrot.slane %v12954_v22, %v18293_v18 }
 0x77c   : > { %15381 = vmatpush3.bf16.msra.mxu1 %v15750_v62  ;;  %v15766_v62 = vld [vmem:[%s19596_s11 + $0x1b0] sm:$0xff]  }
 0x77d   : > { %15382 = vmatprep.subr.bf16.mxu1 %v19748_v35  ;;  %v13255_v37 = vrot.slane %v13248_v29, %v18293_v18  ;;  %v12962_v2 = vcombine.low %v19182_v52, %v12961_v60  ;;  %v14420_v52 = vrot.slane %v13226_v1, 9  ;;  %v13329_v1 = vrot.slane %v19397_v39, 7 }
 0x77e   : > { %15347 = vmatpush3.bf16.msra.mxu0 %v15751_v27  ;;  %v15768_v27 = vld [vmem:[%s19596_s11 + $0x1b8] sm:$0xff]  }
 0x77f   : > { %15364 = vmatprep.subr.bf16.mxu0 %v19748_v35 }
 0x780   : > { %15383 = vmatpush3.bf16.msra.mxu1 %v15752_v23  ;;  %v13423_v23 = vrot.slane %v13421_v59, 7 }
 0x781   : > { %15349 = vmatmul.mubr.msk.bf16.vlgmr.msra.gmra.mrb[144].mxu0 %vm9651_vm5, %v12568_v31  ;;  %15400 = vmatprep.subr.bf16.mxu1 %v19748_v35  ;;  %v15773_v31 = vld [vmem:[%s19596_s11 + $0x190] sm:$0xff]  }
 0x782   : > { %15365 = vmatpush3.bf16.msra.mxu0 %v15753_v24  ;;  %15372 = vmatprep.mubr.msk.bf16.mxu0 %vm15890_vm4, %v19748_v35  ;;  %v13256_v24 = vcombine.low %v19193_v10, %v13255_v37  ;;  %v13424_v21 = vor.u32 %v13423_v23, %v13235_v40  ;;  %v15772_v10 = vld [vmem:[%s19596_s11 + $0x1e8] sm:$0xff]  }
 0x783   : > { %15385 = vmatmul.mubr.msk.bf16.vlgmr.msra.gmra.mrb[92].mxu1 %vm9651_vm5, %v12870_v14  ;;  %15366 = vmatprep.subr.bf16.mxu0 %v19748_v35  ;;  %v14387_v14 = vpack.c.bf16 %v19328_v5, %v19186_v26  ;;  %v15776_v26 = vld [vmem:[%s19596_s11 + $0x1f8] sm:$0xff]  }
 0x784   : > { %15401 = vmatpush3.bf16.msra.mxu1 %v15754_v32  ;;  %15408 = vmatprep.mubr.msk.bf16.mxu1 %vm15890_vm4, %v19748_v35  ;;  %v13425_v32 = vsel %vm19007_vm6, %v14420_v52, %v13424_v21 }
 0x785   : > { %15402 = vmatprep.subr.bf16.mxu1 %v19748_v35  ;;  %v13435_v25 = vcombine.low %v19372_v8, %v13425_v32  ;;  %v13145_v16 = vrot.slane %v14387_v14, %v18293_v18  ;;  %v14406_v8 = vrot.slane %v19357_v13, 9 }
 0x786   : > { %15367 = vmatpush3.bf16.msra.mxu0 %v15755_v6  ;;  %v15774_v6 = vld [vmem:[%s19596_s11 + $0x1f0] sm:$0xff]  }
 0x787   : > { %15368 = vmatprep.subr.bf16.mxu0 %v19748_v35  ;;  %v13442_v5 = vrot.slane %v13435_v25, %v18293_v18 }
 0x788   : > { %15403 = vmatpush3.bf16.msra.mxu1 %v15756_v63  ;;  %v15777_v63 = vld [vmem:[%s19596_s11 + $0x1c0] sm:$0xff]  }
 0x789   : > { %15404 = vmatprep.subr.bf16.mxu1 %v19748_v35  ;;  %v13443_v54 = vcombine.low %v19268_v12, %v13442_v5  ;;  %v15779_v12 = vld [vmem:[%s19596_s11 + $0x1d0] sm:$0xff]  }
 0x78a   : > { %15369 = vmatpush3.bf16.msra.mxu0 %v15757_v28  ;;  %v13146_v28 = vcombine.low %v19254_v33, %v13145_v16  ;;  %v13330_v33 = vsel %vm19133_vm1, %v14406_v8, %v13329_v1 }
 0x78b   : > { %15370 = vmatprep.subr.bf16.mxu0 %v19748_v35  ;;  %v13340_v13 = vcombine.low %v19427_v15, %v13330_v33 }
 0x78c   : > { %15405 = vmatpush3.bf16.msra.mxu1 %v15758_v45  ;;  %v15780_v45 = vld [vmem:[%s19596_s11 + $0x1d8] sm:$0xff]  }
 0x78d   : > { %15406 = vmatprep.subr.bf16.mxu1 %v19748_v35  ;;  %v13347_v51 = vrot.slane %v13340_v13, %v18293_v18  ;;  %v15892_v18 = vmov 0  }
 0x78e   : > { %15371 = vmatpush3.bf16.msra.mxu0 %v15759_v41  ;;  %15594 = vset.pattern.permute.xlu0 %v15892_v18 }
 0x78f   : > { %15388 = vmatprep.subr.bf16.mxu0 %v19748_v35  ;;  %v13348_v4 = vcombine.low %v19326_v57, %v13347_v51  ;;  %15595 = vset.pattern.permute.xlu1 %v15892_v18 }
 0x790   : > { %15407 = vmatpush3.bf16.msra.mxu1 %v15760_v30 }
 0x791   : > { %15373 = vmatmul.mubr.msk.bf16.vlgmr.msra.gmra.mrb[148].mxu0 %vm9651_vm5, %v12760_v19  ;;  %15424 = vmatprep.subr.bf16.mxu1 %v19748_v35 }
 0x792   : > { %15389 = vmatpush3.bf16.msra.mxu0 %v15761_v42  ;;  %15396 = vmatprep.mubr.msk.bf16.mxu0 %vm15890_vm4, %v19748_v35 }
 0x793   : > { %15409 = vmatmul.mubr.msk.bf16.vlgmr.msra.gmra.mrb[96].mxu1 %vm9651_vm5, %v13057_v20  ;;  %15390 = vmatprep.subr.bf16.mxu0 %v19748_v35 }
 0x794   : > { %15425 = vmatpush3.bf16.msra.mxu1 %v15762_v7  ;;  %15432 = vmatprep.mubr.msk.bf16.mxu1 %vm15890_vm4, %v19748_v35 }
 0x795   : > { %15426 = vmatprep.subr.bf16.mxu1 %v19748_v35 }
 0x796   : > { %15391 = vmatpush3.bf16.msra.mxu0 %v15763_v17 }
 0x797   : > { %15392 = vmatprep.subr.bf16.mxu0 %v19748_v35 }
 0x798   : > { %15427 = vmatpush3.bf16.msra.mxu1 %v15764_v38 }
 0x799   : > { %15428 = vmatprep.subr.bf16.mxu1 %v19748_v35 }
 0x79a   : > { %15393 = vmatpush3.bf16.msra.mxu0 %v15765_v47 }
 0x79b   : > { %15394 = vmatprep.subr.bf16.mxu0 %v19748_v35 }
 0x79c   : > { %15429 = vmatpush3.bf16.msra.mxu1 %v15766_v62 }
 0x79d   : > { %15430 = vmatprep.subr.bf16.mxu1 %v19748_v35 }
 0x79e   : > { %15395 = vmatpush3.bf16.msra.mxu0 %v15767_v53 }
 0x79f   : > { %15412 = vmatprep.subr.bf16.mxu0 %v19748_v35 }
 0x7a0   : > { %15431 = vmatpush3.bf16.msra.mxu1 %v15768_v27 }
 0x7a1   : > { %15397 = vmatmul.mubr.msk.bf16.vlgmr.msra.gmra.mrb[152].mxu0 %vm9651_vm5, %v12962_v2  ;;  %15448 = vmatprep.subr.bf16.mxu1 %v19748_v35 }
 0x7a2   : > { %15413 = vmatpush3.bf16.msra.mxu0 %v15769_v46  ;;  %15420 = vmatprep.mubr.msk.bf16.mxu0 %vm15890_vm4, %v19748_v35 }
 0x7a3   : > { %15433 = vmatmul.mubr.msk.bf16.vlgmr.msra.gmra.mrb[100].mxu1 %vm9651_vm5, %v13256_v24  ;;  %15414 = vmatprep.subr.bf16.mxu0 %v19748_v35 }
 0x7a4   : > { %15449 = vmatpush3.bf16.msra.mxu1 %v15770_v34  ;;  %15456 = vmatprep.mubr.msk.bf16.mxu1 %vm15890_vm4, %v19748_v35 }
 0x7a5   : > { %15450 = vmatprep.subr.bf16.mxu1 %v19748_v35 }
 0x7a6   : > { %15415 = vmatpush3.bf16.msra.mxu0 %v15771_v56 }
 0x7a7   : > { %15416 = vmatprep.subr.bf16.mxu0 %v19748_v35 }
 0x7a8   : > { %15451 = vmatpush3.bf16.msra.mxu1 %v15772_v10 }
 0x7a9   : > { %15452 = vmatprep.subr.bf16.mxu1 %v19748_v35 }
 0x7aa   : > { %15417 = vmatpush3.bf16.msra.mxu0 %v15773_v31 }
 0x7ab   : > { %15418 = vmatprep.subr.bf16.mxu0 %v19748_v35 }
 0x7ac   : > { %15453 = vmatpush3.bf16.msra.mxu1 %v15774_v6 }
 0x7ad   : > { %15454 = vmatprep.subr.bf16.mxu1 %v19748_v35 }
 0x7ae   : > { %15419 = vmatpush3.bf16.msra.mxu0 %v15775_v43 }
 0x7af   : > { %15436 = vmatprep.subr.bf16.mxu0 %v19748_v35 }
 0x7b0   : > { %15455 = vmatpush3.bf16.msra.mxu1 %v15776_v26 }
 0x7b1   : > { %15421 = vmatmul.mubr.msk.bf16.vlgmr.msra.gmra.mrb[156].mxu0 %vm9651_vm5, %v13146_v28 }
 0x7b2   : > { %15437 = vmatpush3.bf16.msra.mxu0 %v15777_v63  ;;  %15444 = vmatprep.mubr.msk.bf16.mxu0 %vm15890_vm4, %v19748_v35  ;;  %vm13569_vm4 = vcmask 1041409  }
 0x7b3   : > { %15457 = vmatmul.mubr.msk.bf16.vlgmr.msra.gmra.mrb[104].mxu1 %vm9651_vm5, %v13443_v54  ;;  %15438 = vmatprep.subr.bf16.mxu0 %v19748_v35 }
 0x7b6   : > { %15439 = vmatpush3.bf16.msra.mxu0 %v15778_v61 }
 0x7b7   : > { %15440 = vmatprep.subr.bf16.mxu0 %v19748_v35 }
 0x7ba   : > { %15441 = vmatpush3.bf16.msra.mxu0 %v15779_v12 }
 0x7bb   : > { %15442 = vmatprep.subr.bf16.mxu0 %v19748_v35 }
 0x7be   : > { %15443 = vmatpush3.bf16.msra.mxu0 %v15780_v45 }
 0x7c1   : > { %15445 = vmatmul.mubr.msk.bf16.vlgmr.msra.gmra.mrb[160].mxu0 %vm9651_vm5, %v13348_v4  ;;  %vm13573_vm5 = vcmask 1043459  }
 0x816   : > { %v12071_v41 = vpop.f32.mrb[76].mxu1 }
 0x817   : > { %v15290_v58 = vpop.f32.mrb[77].mxu1 }
 0x818   : > { %v12074_v55 = vpop.f32.mrb[78].mxu1 }
 0x819   : > { %v15291_v9 = vpop.f32.mrb[79].mxu1 }
 0x824   : > { %v11986_v30 = vpop.f32.mrb[132].mxu0 }
 0x825   : > { %v12072_v39 = vadd.f32 %v12071_v41, %v11986_v30  ;;  %v15278_v49 = vpop.f32.mrb[133].mxu0 }
 0x826   : > { %v11989_v42 = vpop.f32.mrb[134].mxu0  ;;  %v12315_v0 = vpop.f32.mrb[80].mxu1 }
 0x827   : > { %v12075_v40 = vadd.f32 %v12074_v55, %v11989_v42  ;;  %v15279_v19 = vpop.f32.mrb[135].mxu0  ;;  %v15314_v7 = vpop.f32.mrb[81].mxu1 }
 0x828   : > { %v12318_v35 = vpop.f32.mrb[82].mxu1 }
 0x829   : > { %v15315_v11 = vpop.f32.mrb[83].mxu1 }
 0x834   : > { %v12188_v57 = vpop.f32.mrb[136].mxu0 }
 0x835   : > { %v12195_v50 = vadd.f32 %v12188_v57, %v12072_v39  ;;  %v15302_v20 = vpop.f32.mrb[137].mxu0 }
 0x836   : > { %v12191_v17 = vpop.f32.mrb[138].mxu0  ;;  %v12530_v36 = vpop.f32.mrb[84].mxu1 }
 0x837   : > { %v12196_v48 = vadd.f32 %v12191_v17, %v12075_v40  ;;  %v15303_v38 = vpop.f32.mrb[139].mxu0  ;;  %v15338_v15 = vpop.f32.mrb[85].mxu1  ;;  %v12322_v47 = vadd.f32 %v12315_v0, %v12195_v50 }
 0x838   : > { %v12533_v44 = vpop.f32.mrb[86].mxu1 }
 0x839   : > { %v15339_v22 = vpop.f32.mrb[87].mxu1  ;;  %v12323_v62 = vadd.f32 %v12318_v35, %v12196_v48 }
 0x844   : > { %v12412_v29 = vpop.f32.mrb[140].mxu0 }
 0x845   : > { %v12419_v53 = vadd.f32 %v12412_v29, %v12322_v47  ;;  %v15326_v59 = vpop.f32.mrb[141].mxu0  ;;  %v14434_v29 = vld [vmem:[#allocation7] ss:$0 sm:$0xff] }
 0x846   : > { %v12415_v60 = vpop.f32.mrb[142].mxu0  ;;  %v12733_v27 = vpop.f32.mrb[88].mxu1 }
 0x847   : > { %v12420_v37 = vadd.f32 %v12415_v60, %v12323_v62  ;;  %v15327_v46 = vpop.f32.mrb[143].mxu0  ;;  %v15362_v23 = vpop.f32.mrb[89].mxu1  ;;  %v12537_v2 = vadd.f32 %v12530_v36, %v12419_v53 }
 0x848   : > { %v12736_v34 = vpop.f32.mrb[90].mxu1 }
 0x849   : > { %v15363_v24 = vpop.f32.mrb[91].mxu1  ;;  %v12538_v56 = vadd.f32 %v12533_v44, %v12420_v37 }
 0x854   : > { %v12630_v52 = vpop.f32.mrb[144].mxu0 }
 0x855   : > { %v12637_v21 = vadd.f32 %v12630_v52, %v12537_v2  ;;  %v15350_v10 = vpop.f32.mrb[145].mxu0 }
 0x856   : > { %v12633_v31 = vpop.f32.mrb[146].mxu0  ;;  %v12932_v32 = vpop.f32.mrb[92].mxu1 }
 0x857   : > { %v12638_v14 = vadd.f32 %v12633_v31, %v12538_v56  ;;  %v15351_v6 = vpop.f32.mrb[147].mxu0  ;;  %v15386_v25 = vpop.f32.mrb[93].mxu1  ;;  %v12740_v43 = vadd.f32 %v12733_v27, %v12637_v21 }
 0x858   : > { %v12935_v16 = vpop.f32.mrb[94].mxu1  ;;  %v19766_v6 = vlaneseq }
 0x859   : > { %v15387_v26 = vpop.f32.mrb[95].mxu1  ;;  %v12741_v5 = vadd.f32 %v12736_v34, %v12638_v14 }
 0x85a   : > { %v13552_v25 = vand.u32 127, %v19766_v6 }
 0x864   : > { %v12822_v63 = vpop.f32.mrb[148].mxu0 }
 0x865   : > { %v12829_v28 = vadd.f32 %v12822_v63, %v12740_v43  ;;  %v15374_v8 = vpop.f32.mrb[149].mxu0 }
 0x866   : > { %v12825_v1 = vpop.f32.mrb[150].mxu0  ;;  %v13119_v54 = vpop.f32.mrb[96].mxu1 }
 0x867   : > { %v12830_v61 = vadd.f32 %v12825_v1, %v12741_v5  ;;  %v15375_v33 = vpop.f32.mrb[151].mxu0  ;;  %v15410_v12 = vpop.f32.mrb[97].mxu1  ;;  %v12939_v13 = vadd.f32 %v12932_v32, %v12829_v28 }
 0x868   : > { %v13122_v45 = vpop.f32.mrb[98].mxu1 }
 0x869   : > { %v15411_v51 = vpop.f32.mrb[99].mxu1  ;;  %v12940_v4 = vadd.f32 %v12935_v16, %v12830_v61  ;;  %v13555_v16 = vsub.s32 %v13552_v25, %v19753_v3 }
 0x874   : > { %v13024_v41 = vpop.f32.mrb[152].mxu0 }
 0x875   : > { %v13031_v58 = vadd.f32 %v13024_v41, %v12939_v13  ;;  %v15398_v55 = vpop.f32.mrb[153].mxu0 }
 0x876   : > { %v13027_v9 = vpop.f32.mrb[154].mxu0  ;;  %v13318_v30 = vpop.f32.mrb[100].mxu1 }
 0x877   : > { %v13032_v39 = vadd.f32 %v13027_v9, %v12940_v4  ;;  %v15399_v49 = vpop.f32.mrb[155].mxu0  ;;  %v15434_v42 = vpop.f32.mrb[101].mxu1  ;;  %v13126_v0 = vadd.f32 %v13119_v54, %v13031_v58 }
 0x878   : > { %v13321_v40 = vpop.f32.mrb[102].mxu1 }
 0x879   : > { %v15435_v19 = vpop.f32.mrb[103].mxu1  ;;  %v13127_v7 = vadd.f32 %v13122_v45, %v13032_v39 }
 0x884   : > { %v13208_v35 = vpop.f32.mrb[156].mxu0 }
 0x885   : > { %v13215_v11 = vadd.f32 %v13208_v35, %v13126_v0  ;;  %v15422_v18 = vpop.f32.mrb[157].mxu0 }
 0x886   : > { %v13211_v57 = vpop.f32.mrb[158].mxu0  ;;  %v13505_v50 = vpop.f32.mrb[104].mxu1 }
 0x887   : > { %v13216_v20 = vadd.f32 %v13211_v57, %v13127_v7  ;;  %v15423_v17 = vpop.f32.mrb[159].mxu0  ;;  %v15458_v36 = vpop.f32.mrb[105].mxu1  ;;  %v13325_v48 = vadd.f32 %v13318_v30, %v13215_v11 }
 0x888   : > { %v13508_v38 = vpop.f32.mrb[106].mxu1 }
 0x889   : > { %v15459_v15 = vpop.f32.mrb[107].mxu1  ;;  %v13326_v47 = vadd.f32 %v13321_v40, %v13216_v20 }
 0x894   : > { %v13410_v44 = vpop.f32.mrb[160].mxu0 }
 0x895   : > { %v13417_v22 = vadd.f32 %v13410_v44, %v13325_v48  ;;  %v15446_v62 = vpop.f32.mrb[161].mxu0 }
 0x896   : > { %v13413_v53 = vpop.f32.mrb[162].mxu0 }
 0x897   : > { %v13512_v59 = vadd.f32 %v13505_v50, %v13417_v22  ;;  %v13418_v60 = vadd.f32 %v13413_v53, %v13326_v47  ;;  %v15447_v27 = vpop.f32.mrb[163].mxu0 }
 0x899   : > { %v13521_v37 = vadd.f32 %v14434_v29, %v13512_v59  ;;  %v13513_v46 = vadd.f32 %v13508_v38, %v13418_v60 }
 0x89b   : > { %v14435_v23 = vmul.f32 -1.442695, %v13521_v37  ;;  %v13522_v2 = vadd.f32 %v14434_v29, %v13513_v46 }
 0x89d   : > { %15781 = vpow2.f32 %v14435_v23  ;;  %v14436_v34 = vmul.f32 -1.442695, %v13522_v2 }
 0x89f   : > { %15783 = vpow2.f32 %v14436_v34 }
 0x8a7   : > { %v15782_v24 = vpop.eup %15781 }
 0x8a8   : > { %v13529_v56 = vadd.f32 1.0, %v15782_v24 }
 0x8a9   : > { %v15784_v52 = vpop.eup %15783 }
 0x8aa   : > { %15785 = vrcp.f32 %v13529_v56  ;;  %v13530_v21 = vadd.f32 1.0, %v15784_v52 }
 0x8ac   : > { %15787 = vrcp.f32 %v13530_v21 }
 0x8b4   : > { %v15786_v10 = vpop.eup %15785 }
 0x8b5   : > { %13540 = vperm.xlu0 %15594, %v15786_v10   ;;  %v13537_v32 = vcombine.high %v15786_v10, %v15786_v10 }
 0x8b6   : > { %v15788_v31 = vpop.eup %15787 }
 0x8b7   : > { %13546 = vperm.xlu1 %15595, %v15788_v31   ;;  %v13538_v14 = vcombine.high %v15788_v31, %v15788_v31 }
 0x8b9   : > { %13543 = vperm.xlu0 %15594, %v13537_v32  }
 0x8bb   : > { %13549 = vperm.xlu1 %15595, %v13538_v14  }
 0x934   : > { %v13541_v43 = vpop.permute.xlu0 %13540 }
 0x935   : > { %v13556_v63 = vrot.slane %v13541_v43, %v13555_v16 }
 0x936   : > { %v13547_v26 = vpop.permute.xlu1 %13546 }
 0x937   : > { %v13564_v8 = vrot.slane %v13547_v26, %v13555_v16 }
 0x938   : > { %v13544_v5 = vpop.permute.xlu0 %13543 }
 0x939   : > { %v13560_v28 = vrot.slane %v13544_v5, %v13555_v16 }
 0x93a   : > { %v13550_v1 = vpop.permute.xlu1 %13549 }
 0x93b   : > { %v13570_v54 = vsel %vm13569_vm4, %v13560_v28, %v13556_v63  ;;  %v13568_v61 = vrot.slane %v13550_v1, %v13555_v16 }
 0x93c   : > { %v13572_v33 = vsel %vm12079_vm8, %v13564_v8, %v13570_v54 }
 0x93d   : > { %v13574_v3 = vsel %vm13573_vm5, %v13568_v61, %v13572_v33 }
 0x93e   : > { %13577 = vst.msk [vmem:[%s450_s23] sm:$0xf] %vm13576_vm2, %v13574_v3 }
 0x93f   : > { %15830 = shalt.err (!%p15827_p7)
}
 0x940   : > { %s15831_s29 = scalar_lea.hbm %s19543_s25, 64  ;;  %s15835_s14 = scalar_lea.hbm %s19598_s13, 128 }
 0x941   : > { %p15832_p8 = scmp.ne.s32.totalorder %s19543_s25, %s15831_s29  ;;  %p15836_p1 = scmp.lt.u32.totalorder %s19543_s25, %s19598_s13 }
 0x942   : > { %p15837_p0 = scmp.lt.u32.totalorder %s15835_s14, %s15831_s29  ;;  %p15839_p6 = scmp.lt.u32.totalorder %s15831_s29, %s19543_s25 }
 0x943   : > { %p15833_p11 = pnand %p15832_p8, %p19767_p9 }
 0x944   : > { %p15838_p5 = por %p15837_p0, %p15836_p1 }
 0x945   : > { %p15834_p13 = pneg %p15833_p11 }
 0x946   : > { %p15840_p10 = por %p15839_p6, %p15838_p5 }
 0x948   : > { %p15841_p12 = pnand %p15840_p10, %p15834_p13 }
 0x94a   : > { %15844 = shalt.err (!%p15841_p12)
}
 0x94b   : > { %15541 = dma.vmem_to_hbm [thread:$0]  (%p19767_p9), %s19545_s24, 64, %s19543_s25, %s13579_s12  }
 0x94c PF: > { %p15553_p2 = scmp.ge.s32.totalorder %s15883_s30, 2  ;;  %s13604_s26 = sand.u32 1, %s15871_s27  }
 0x94d   : > { %p19768_p3 = scmp.ne.s32.totalorder %s19657_s20, 0  ;;  %s13605_s17 = scalar_lea.sflag [#allocation10], %s13604_s26 }
 0x94f   : > { %p15548_p4 = pnand %p15553_p2, %p19768_p3 }
 0x951   : > { %15866 = dma.done.wait (!%p15548_p4), %s13605_s17, 64  }
 0x952   : > { %15868 = vsyncadd (!%p15548_p4), %s13605_s17, 4294967232  ;;  %s19769_s18 = sld [smem:[#allocation14_spill]]  ;;  %s19770_s29 = sld [smem:[#allocation15_spill]] }
 0x953   : > { %p26_p7 = scmp.ge.s32.totalorder %s15992_s15, 4   ;;  %s19771_s27 = smov %s15875_s28 }
 0x954   : > { %s19773_s30 = smov %s15992_s15 }
 0x955   :  { %28 = sbr.rel (!%p26_p7) target bundleno = 7 (0x7), region = 246 }
 0x958   : > { %s19772_s28 = smov %s19769_s18 }
 0x95c   :  { %13610 = vsyncpa [#allocation9], 1 }
 0x95d   :  { %13612 = vsyncpa [#allocation9 + $0x1], 1 }
 0x95e   :  { %13613 = vsyncpa [#allocation10], 1 }
 0x95f   :  { %13615 = vsyncpa [#allocation10 + $0x1], 1 }

</bundles_post_ra>
